<compile_context>
chip_gen: v5e
topology: v5e:2x2
jax: 0.10.0
libtpu: 0.0.40
codegen_flags: <defaults>
</compile_context>

<pallas_src>
import functools

import jax
import jax.numpy as jnp
from jax.experimental import pallas as pl
from jax.experimental.pallas import tpu as pltpu


def _round_up(x, m):
    return (x + m - 1) // m * m


def _pad_gate_cols(w, h, hp):
    """Zero-pad each of the 4 gate blocks of the last dim from h to hp columns."""
    if h == hp:
        return w
    lead = w.shape[:-1]
    w4 = jnp.reshape(w, lead + (4, h))
    w4 = jnp.pad(w4, [(0, 0)] * (w4.ndim - 1) + [(0, hp - h)])
    return jnp.reshape(w4, lead + (4 * hp,))


def _pad_rows(w, h, hp):
    """Zero-pad the leading (input) dim of a 2-D weight from h to hp rows."""
    if h == hp:
        return w
    return jnp.pad(w, ((0, hp - h), (0, 0)))


def _bilstm_kernel(lens_ref, b_ref, gxf_ref, gxb_ref, whh_ref,
                   of_ref, ob_ref, hf_sc, cf_sc, hb_sc, cb_sc, *, Tc, Hp, nT):
    """Serial recurrence of one bidirectional LSTM layer, both directions interleaved.

    grid = (time_block,).  Per grid step:
      lens_ref : (Bp, 1)       int32  valid length per (padded) batch row
      b_ref    : (2, 4Hp)      f32    fused bias per direction
      gxf_ref  : (Tc, Bp, 4Hp) bf16   x @ W_ih, forward direction, time block t
      gxb_ref  : (Tc, Bp, 4Hp) bf16   x @ W_ih, backward direction, time block nT-1-t
      whh_ref  : (2, Hp, 4Hp)  bf16   recurrent weights, both directions
      of_ref   : (Tc, Bp, Hp)  bf16   forward hidden states, time block t
      ob_ref   : (Tc, Bp, Hp)  bf16   backward hidden states, time block nT-1-t
      h*_sc/c*_sc : carried state (persists across grid steps); h bf16, c f32
    """
    t = pl.program_id(0)

    @pl.when(t == 0)
    def _():
        hf_sc[...] = jnp.zeros_like(hf_sc)
        cf_sc[...] = jnp.zeros_like(cf_sc)
        hb_sc[...] = jnp.zeros_like(hb_sc)
        cb_sc[...] = jnp.zeros_like(cb_sc)

    lens = lens_ref[...]                       # (Bp, 1) int32
    bias = b_ref[...]                          # (2, 4Hp) f32
    bias_f, bias_b = bias[0:1, :], bias[1:2, :]
    w_f = whh_ref[0]                           # (Hp, 4Hp) bf16
    w_b = whh_ref[1]

    def cell(gx_raw, bias_d, h_prev, c_prev, w_hh_d):
        # gates in f32; recurrent matmul with bf16 operands + f32 accumulation (MXU).
        gates = gx_raw.astype(jnp.float32) + bias_d + jnp.dot(
            h_prev, w_hh_d, preferred_element_type=jnp.float32)
        # PyTorch nn.LSTM gate order [i, f, g, o]; Hp is lane-aligned so each slice is
        # a clean 128-lane multiple.
        i = jax.nn.sigmoid(gates[:, 0 * Hp:1 * Hp])
        f = jax.nn.sigmoid(gates[:, 1 * Hp:2 * Hp])
        g = jnp.tanh(gates[:, 2 * Hp:3 * Hp])
        o = jax.nn.sigmoid(gates[:, 3 * Hp:4 * Hp])
        c_new = f * c_prev + i * g
        h_new = o * jnp.tanh(c_new)
        return h_new, c_new

    hf, cf = hf_sc[...], cf_sc[...]
    hb, cb = hb_sc[...], cb_sc[...]

    t_f0 = t * Tc                              # absolute time of local step 0 (forward)
    t_b0 = (nT - 1 - t) * Tc                   # absolute time of local step 0 (bwd block)

    # Statically unrolled time loop (static sublane offsets).  Forward and backward
    # recurrences are interleaved per step so the two independent MXU->VPU->EUP chains
    # hide each other's latency.
    for s in range(Tc):
        sb = Tc - 1 - s                        # backward walks its block in reverse
        hf_new, cf_new = cell(gxf_ref[s], bias_f, hf, cf, w_f)
        hb_new, cb_new = cell(gxb_ref[sb], bias_b, hb, cb, w_b)

        vf = (t_f0 + s) < lens                 # (Bp, 1) packed-sequence validity
        vb = (t_b0 + sb) < lens

        of_ref[s] = jnp.where(vf, hf_new, 0.0).astype(of_ref.dtype)
        ob_ref[sb] = jnp.where(vb, hb_new, 0.0).astype(ob_ref.dtype)

        # Freeze state on padded steps (packed-sequence semantics); h carry stays bf16
        # so it feeds the next step's MXU dot without a cast on the critical chain.
        hf = jnp.where(vf, hf_new.astype(jnp.bfloat16), hf)
        cf = jnp.where(vf, cf_new, cf)
        hb = jnp.where(vb, hb_new.astype(jnp.bfloat16), hb)
        cb = jnp.where(vb, cb_new, cb)

    hf_sc[...] = hf
    cf_sc[...] = cf
    hb_sc[...] = hb
    cb_sc[...] = cb


def _bilstm_layer(gx, w_hh, bias, lens, *, time_chunk):
    """gx (2, Tp, Bp, 4Hp) bf16, w_hh (2, Hp, 4Hp) bf16, bias (2, 4Hp) f32,
    lens (Bp, 1) int32 -> (fwd, bwd) hidden states, each (Tp, Bp, Hp) bf16
    (zeros at padded steps / padded lanes)."""
    _, Tp, Bp, G4 = gx.shape
    Hp = w_hh.shape[1]
    Tc = time_chunk
    nT = Tp // Tc

    kernel = functools.partial(_bilstm_kernel, Tc=Tc, Hp=Hp, nT=nT)

    # Live VMEM estimate: 2 bf16 gx streams + 2 bf16 out streams (double-buffered),
    # w_hh / bias, and the h/c scratch.  Explicit scoped limit, capped at 64 MiB (v7x).
    est = (2 * 2 * Tc * Bp * G4 * 2          # gx fwd+bwd streams, 2 buffers each, bf16
           + 2 * 2 * Tc * Bp * Hp * 2        # out fwd+bwd streams
           + 2 * 2 * Hp * G4 * 2             # w_hh (both dirs), 2 buffers
           + 2 * Bp * Hp * (2 + 4)           # h (bf16) + c (f32) carries, both dirs
           + 2 * 2 * G4 * 4)                 # bias
    vmem_limit = int(min(64 * 1024 * 1024, max(32 * 1024 * 1024, 2 * est)))

    return pl.pallas_call(
        kernel,
        out_shape=(jax.ShapeDtypeStruct((Tp, Bp, Hp), jnp.bfloat16),
                   jax.ShapeDtypeStruct((Tp, Bp, Hp), jnp.bfloat16)),
        grid_spec=pltpu.PrefetchScalarGridSpec(
            num_scalar_prefetch=0,
            grid=(nT,),
            in_specs=[
                pl.BlockSpec((Bp, 1), lambda t: (0, 0)),                            # lengths
                pl.BlockSpec((2, G4), lambda t: (0, 0)),                            # fused bias
                pl.BlockSpec((None, Tc, Bp, G4), lambda t: (0, t, 0, 0)),           # gx fwd
                pl.BlockSpec((None, Tc, Bp, G4), lambda t: (1, nT - 1 - t, 0, 0)),  # gx bwd (reversed)
                pl.BlockSpec((2, Hp, G4), lambda t: (0, 0, 0)),                     # w_hh both dirs
            ],
            out_specs=(
                pl.BlockSpec((Tc, Bp, Hp), lambda t: (t, 0, 0)),                    # fwd hidden
                pl.BlockSpec((Tc, Bp, Hp), lambda t: (nT - 1 - t, 0, 0)),           # bwd hidden
            ),
            scratch_shapes=[pltpu.VMEM((Bp, Hp), jnp.bfloat16),   # h fwd carry
                            pltpu.VMEM((Bp, Hp), jnp.float32),    # c fwd carry
                            pltpu.VMEM((Bp, Hp), jnp.bfloat16),   # h bwd carry
                            pltpu.VMEM((Bp, Hp), jnp.float32)],   # c bwd carry
        ),
        compiler_params=pltpu.CompilerParams(
            dimension_semantics=("arbitrary",),        # time is the serial recurrence axis
            vmem_limit_bytes=vmem_limit),
    )(lens, bias, gx, gx, w_hh)


def init_padded_lstm_params(key, input_size, hidden_size, num_layers):
    """nn.LSTM-style uniform init.  Weights stored transposed ((in, 4H)),
    gate order [i, f, g, o] (PyTorch), b = (b_ih + b_hh) fused."""
    bound = 1.0 / (hidden_size ** 0.5)
    params = []
    for layer in range(num_layers):
        in_sz = input_size if layer == 0 else 2 * hidden_size
        layer_p = {}
        for direction in ("fwd", "bwd"):
            key, k1, k2, k3 = jax.random.split(key, 4)
            layer_p[direction] = dict(
                w_ih=jax.random.uniform(k1, (in_sz, 4 * hidden_size), jnp.float32, -bound, bound),
                w_hh=jax.random.uniform(k2, (hidden_size, 4 * hidden_size), jnp.float32, -bound, bound),
                b=jax.random.uniform(k3, (4 * hidden_size,), jnp.float32, -2 * bound, 2 * bound),
            )
        params.append(layer_p)
    return params


def padded_lstm_forward(params, padded_input, mask, *, time_chunk=8):
    """padded_input: (B, T, D) float, mask: (B, T) bool (True = padding).
    Returns (B, T, 2*H), zero-filled at padded positions (pad_packed_sequence)."""
    B, T, _ = padded_input.shape
    H = params[0]["fwd"]["w_hh"].shape[0]
    Hp = _round_up(H, 128)            # lane-aligned gate slices & lane-dense output stores
    Bp = _round_up(B, 16)             # bf16 sublane packing
    Tc = time_chunk
    Tp = _round_up(T, Tc)
    bf16 = jnp.bfloat16
    dirs = ("fwd", "bwd")

    lengths = jnp.sum(jnp.logical_not(mask).astype(jnp.int32), axis=1)       # (B,)
    lens = jnp.pad(lengths, (0, Bp - B))[:, None].astype(jnp.int32)          # (Bp, 1)

    x = jnp.transpose(padded_input, (1, 0, 2)).astype(jnp.float32)           # (T, B, D)
    x = jnp.pad(x, ((0, Tp - T), (0, Bp - B), (0, 0))).astype(bf16)          # (Tp, Bp, D)

    out_f = out_b = None                                                     # (Tp, Bp, Hp) bf16
    for li, lp in enumerate(params):
        b_stack = jnp.stack(
            [_pad_gate_cols(lp[d]["b"], H, Hp) for d in dirs]).astype(jnp.float32)     # (2, 4Hp)
        whh_stack = jnp.stack(
            [_pad_rows(_pad_gate_cols(lp[d]["w_hh"], H, Hp), H, Hp) for d in dirs]
        ).astype(bf16)                                                                  # (2, Hp, 4Hp)

        if li == 0:
            wih_stack = jnp.stack(
                [_pad_gate_cols(lp[d]["w_ih"], H, Hp) for d in dirs]).astype(bf16)      # (2, D, 4Hp)
            gx = jnp.einsum("tbd,kdg->ktbg", x, wih_stack,
                            preferred_element_type=jnp.float32)
        else:
            # Consume the two direction halves of the previous layer directly: W_ih rows
            # [:H] act on the forward half, rows [H:] on the backward half.  Two contiguous
            # matmuls -- no concat / transpose of the activation tensor in HBM.
            wf_stack = jnp.stack(
                [_pad_rows(_pad_gate_cols(lp[d]["w_ih"][:H], H, Hp), H, Hp) for d in dirs]
            ).astype(bf16)                                                               # (2, Hp, 4Hp)
            wb_stack = jnp.stack(
                [_pad_rows(_pad_gate_cols(lp[d]["w_ih"][H:], H, Hp), H, Hp) for d in dirs]
            ).astype(bf16)
            gx = (jnp.einsum("tbh,khg->ktbg", out_f, wf_stack,
                             preferred_element_type=jnp.float32)
                  + jnp.einsum("tbh,khg->ktbg", out_b, wb_stack,
                               preferred_element_type=jnp.float32))
        gx = gx.astype(bf16)                                                             # (2, Tp, Bp, 4Hp)

        out_f, out_b = _bilstm_layer(gx, whh_stack, b_stack, lens, time_chunk=Tc)

    out = jnp.concatenate([out_f[:T, :B, :H], out_b[:T, :B, :H]], axis=-1)               # (T, B, 2H)
    out = jnp.transpose(out, (1, 0, 2)).astype(jnp.float32)                              # (B, T, 2H)
    # TODO(synk): nn.Dropout(p) is stochastic in training mode; identity here (eval mode).
    return out


def padded_lstm_reference(params, padded_input, mask):
    """Pure-JAX f32 reference (lax.scan) with identical packed/padded semantics."""
    B = padded_input.shape[0]
    x = jnp.transpose(padded_input, (1, 0, 2)).astype(jnp.float32)           # (T, B, D)
    valid = jnp.transpose(jnp.logical_not(mask).astype(jnp.float32))[:, :, None]  # (T, B, 1)
    for lp in params:
        outs = []
        for name, rev in (("fwd", False), ("bwd", True)):
            w_ih, w_hh, b = lp[name]["w_ih"], lp[name]["w_hh"], lp[name]["b"]
            H = w_hh.shape[0]
            xs = x[::-1] if rev else x
            vs = valid[::-1] if rev else valid

            def step(carry, inp, w_ih=w_ih, w_hh=w_hh, b=b, H=H):
                h, c = carry
                x_t, v = inp
                gates = x_t @ w_ih + h @ w_hh + b
                i = jax.nn.sigmoid(gates[:, 0 * H:1 * H])
                f = jax.nn.sigmoid(gates[:, 1 * H:2 * H])
                g = jnp.tanh(gates[:, 2 * H:3 * H])
                o = jax.nn.sigmoid(gates[:, 3 * H:4 * H])
                c_new = f * c + i * g
                h_new = o * jnp.tanh(c_new)
                h2 = jnp.where(v > 0, h_new, h)
                c2 = jnp.where(v > 0, c_new, c)
                return (h2, c2), h_new * v

            init = (jnp.zeros((B, H), jnp.float32), jnp.zeros((B, H), jnp.float32))
            _, ys = jax.lax.scan(step, init, (xs, vs))
            outs.append(ys[::-1] if rev else ys)
        x = jnp.concatenate(outs, axis=-1)
    return jnp.transpose(x, (1, 0, 2))


if __name__ == "__main__":
    B, T, D_IN, HIDDEN, NUM_LAYERS = 2, 10, 16, 32, 2

    key = jax.random.PRNGKey(0)
    key, k_in = jax.random.split(key)
    padded_input = jax.random.normal(k_in, (B, T, D_IN), jnp.float32)

    lengths = jnp.array([10, 6], dtype=jnp.int32)
    mask = jnp.arange(T)[None, :] >= lengths[:, None]          # (B, T) bool, True = padding

    params = init_padded_lstm_params(key, D_IN, HIDDEN, NUM_LAYERS)

    fwd = jax.jit(padded_lstm_forward, static_argnames=("time_chunk",))
    out = jax.block_until_ready(fwd(params, padded_input, mask, time_chunk=8))
    assert out.shape == (B, T, 2 * HIDDEN)

    # padded positions must be exactly zero-filled (pad_packed_sequence semantics)
    assert float(jnp.max(jnp.abs(jnp.where(mask[:, :, None], out, 0.0)))) == 0.0

    # validate against a pure-JAX f32 reference (kernel stores gx / outputs in bf16)
    ref = jax.block_until_ready(padded_lstm_reference(params, padded_input, mask))
    err = float(jnp.max(jnp.abs(out - ref)))
    assert err < 5e-2, f"max abs err {err}"

    print("KERNEL_OK")
</pallas_src>

<mosaic_0001>
module attributes {stable_mosaic.version = 11 : i64} {
  func.func @_bilstm_kernel(%arg0: i32, %arg1: memref<16x1xi32, #tpu.memory_space<vmem>>, %arg2: memref<2x512xf32, #tpu.memory_space<vmem>>, %arg3: memref<1x8x16x512xbf16, #tpu.memory_space<vmem>>, %arg4: memref<1x8x16x512xbf16, #tpu.memory_space<vmem>>, %arg5: memref<2x128x512xbf16, #tpu.memory_space<vmem>>, %arg6: memref<8x16x128xbf16, #tpu.memory_space<vmem>>, %arg7: memref<8x16x128xbf16, #tpu.memory_space<vmem>>, %arg8: memref<16x128xbf16, #tpu.memory_space<vmem>>, %arg9: memref<16x128xf32, #tpu.memory_space<vmem>>, %arg10: memref<16x128xbf16, #tpu.memory_space<vmem>>, %arg11: memref<16x128xf32, #tpu.memory_space<vmem>>) attributes {dimension_semantics = [#tpu.dimension_semantics<arbitrary>], iteration_bounds = array<i64: 2>, scalar_prefetch = 0 : i64, scratch_operands = 4 : i64, tpu.core_type = #tpu.core_type<tc>, window_params = [{pipeline_mode = #tpu.pipeline_mode<synchronous>, transform_indices = @transform_0, window_bounds = array<i64: 16, 1>}, {pipeline_mode = #tpu.pipeline_mode<synchronous>, transform_indices = @transform_1, window_bounds = array<i64: 2, 512>}, {transform_indices = @transform_2, window_bounds = array<i64: 1, 8, 16, 512>}, {transform_indices = @transform_3, window_bounds = array<i64: 1, 8, 16, 512>}, {pipeline_mode = #tpu.pipeline_mode<synchronous>, transform_indices = @transform_4, window_bounds = array<i64: 2, 128, 512>}, {transform_indices = @transform_5, window_bounds = array<i64: 8, 16, 128>}, {transform_indices = @transform_6, window_bounds = array<i64: 8, 16, 128>}]} {
    %c0_i32 = arith.constant 0 : i32
    %0 = arith.cmpi eq, %arg0, %c0_i32 : i32
    %1 = arith.extui %0 : i1 to i32
    %c0_i32_0 = arith.constant 0 : i32
    %2 = arith.cmpi ne, %1, %c0_i32_0 : i32
    scf.if %2 {
      %cst_221 = arith.constant 0.000000e+00 : bf16
      %822 = vector.broadcast %cst_221 : bf16 to vector<16x128xbf16>
      %c0_222 = arith.constant 0 : index
      %c0_223 = arith.constant 0 : index
      %823 = vector.load %arg8[%c0_222, %c0_223] : memref<16x128xbf16, #tpu.memory_space<vmem>>, vector<16x128xbf16>
      tpu.vector_store %arg8[%c0_222, %c0_223], %822 {strides = array<i32>} : memref<16x128xbf16, #tpu.memory_space<vmem>>, vector<16x128xbf16>,
      %cst_224 = arith.constant 0.000000e+00 : f32
      %824 = vector.broadcast %cst_224 : f32 to vector<16x128xf32>
      %c0_225 = arith.constant 0 : index
      %c0_226 = arith.constant 0 : index
      %825 = vector.load %arg9[%c0_225, %c0_226] : memref<16x128xf32, #tpu.memory_space<vmem>>, vector<16x128xf32>
      tpu.vector_store %arg9[%c0_225, %c0_226], %824 {strides = array<i32>} : memref<16x128xf32, #tpu.memory_space<vmem>>, vector<16x128xf32>,
      %cst_227 = arith.constant 0.000000e+00 : bf16
      %826 = vector.broadcast %cst_227 : bf16 to vector<16x128xbf16>
      %c0_228 = arith.constant 0 : index
      %c0_229 = arith.constant 0 : index
      %827 = vector.load %arg10[%c0_228, %c0_229] : memref<16x128xbf16, #tpu.memory_space<vmem>>, vector<16x128xbf16>
      tpu.vector_store %arg10[%c0_228, %c0_229], %826 {strides = array<i32>} : memref<16x128xbf16, #tpu.memory_space<vmem>>, vector<16x128xbf16>,
      %cst_230 = arith.constant 0.000000e+00 : f32
      %828 = vector.broadcast %cst_230 : f32 to vector<16x128xf32>
      %c0_231 = arith.constant 0 : index
      %c0_232 = arith.constant 0 : index
      %829 = vector.load %arg11[%c0_231, %c0_232] : memref<16x128xf32, #tpu.memory_space<vmem>>, vector<16x128xf32>
      tpu.vector_store %arg11[%c0_231, %c0_232], %828 {strides = array<i32>} : memref<16x128xf32, #tpu.memory_space<vmem>>, vector<16x128xf32>,
    } else {
    }
    %c0 = arith.constant 0 : index
    %c0_1 = arith.constant 0 : index
    %3 = vector.load %arg1[%c0, %c0_1] : memref<16x1xi32, #tpu.memory_space<vmem>>, vector<16x1xi32>
    %c0_2 = arith.constant 0 : index
    %c0_3 = arith.constant 0 : index
    %4 = vector.load %arg2[%c0_2, %c0_3] : memref<2x512xf32, #tpu.memory_space<vmem>>, vector<2x512xf32>
    %5 = vector.extract_strided_slice %4 {offsets = [0, 0], sizes = [1, 512], strides = [1, 1]} : vector<2x512xf32> to vector<1x512xf32>
    %6 = vector.extract_strided_slice %4 {offsets = [1, 0], sizes = [1, 512], strides = [1, 1]} : vector<2x512xf32> to vector<1x512xf32>
    %c0_4 = arith.constant 0 : index
    %c0_5 = arith.constant 0 : index
    %c0_6 = arith.constant 0 : index
    %7 = vector.load %arg5[%c0_4, %c0_5, %c0_6] : memref<2x128x512xbf16, #tpu.memory_space<vmem>>, vector<1x128x512xbf16>
    %8 = vector.shape_cast %7 : vector<1x128x512xbf16> to vector<128x512xbf16>
    %c1 = arith.constant 1 : index
    %c0_7 = arith.constant 0 : index
    %c0_8 = arith.constant 0 : index
    %9 = vector.load %arg5[%c1, %c0_7, %c0_8] : memref<2x128x512xbf16, #tpu.memory_space<vmem>>, vector<1x128x512xbf16>
    %10 = vector.shape_cast %9 : vector<1x128x512xbf16> to vector<128x512xbf16>
    %c0_9 = arith.constant 0 : index
    %c0_10 = arith.constant 0 : index
    %11 = vector.load %arg8[%c0_9, %c0_10] : memref<16x128xbf16, #tpu.memory_space<vmem>>, vector<16x128xbf16>
    %c0_11 = arith.constant 0 : index
    %c0_12 = arith.constant 0 : index
    %12 = vector.load %arg9[%c0_11, %c0_12] : memref<16x128xf32, #tpu.memory_space<vmem>>, vector<16x128xf32>
    %c0_13 = arith.constant 0 : index
    %c0_14 = arith.constant 0 : index
    %13 = vector.load %arg10[%c0_13, %c0_14] : memref<16x128xbf16, #tpu.memory_space<vmem>>, vector<16x128xbf16>
    %c0_15 = arith.constant 0 : index
    %c0_16 = arith.constant 0 : index
    %14 = vector.load %arg11[%c0_15, %c0_16] : memref<16x128xf32, #tpu.memory_space<vmem>>, vector<16x128xf32>
    %c8_i32 = arith.constant 8 : i32
    %15 = arith.muli %arg0, %c8_i32 : i32
    %c1_i32 = arith.constant 1 : i32
    %16 = arith.subi %c1_i32, %arg0 : i32
    %c8_i32_17 = arith.constant 8 : i32
    %17 = arith.muli %16, %c8_i32_17 : i32
    %c0_18 = arith.constant 0 : index
    %c0_19 = arith.constant 0 : index
    %c0_20 = arith.constant 0 : index
    %c0_21 = arith.constant 0 : index
    %18 = vector.load %arg3[%c0_18, %c0_19, %c0_20, %c0_21] : memref<1x8x16x512xbf16, #tpu.memory_space<vmem>>, vector<1x1x16x512xbf16>
    %19 = vector.shape_cast %18 : vector<1x1x16x512xbf16> to vector<16x512xbf16>
    %20 = arith.extf %19 : vector<16x512xbf16> to vector<16x512xf32>
    %21 = vector.broadcast %5 : vector<1x512xf32> to vector<16x512xf32>
    %22 = arith.addf %20, %21 : vector<16x512xf32>
    %cst = arith.constant dense<0.000000e+00> : vector<16x512xf32>
    %23 = tpu.matmul %11, %8, %cst {dimension_numbers = #tpu.dot_dimension_numbers<[1], [0], [0], [1], [0, 0, 1, 1], [], []>} : vector<16x128xbf16>, vector<128x512xbf16>, vector<16x512xf32> -> vector<16x512xf32>
    %24 = arith.addf %22, %23 : vector<16x512xf32>
    %25 = vector.extract_strided_slice %24 {offsets = [0, 0], sizes = [16, 128], strides = [1, 1]} : vector<16x512xf32> to vector<16x128xf32>
    %26 = arith.negf %25 : vector<16x128xf32>
    %27 = math.exp %26 : vector<16x128xf32>
    %cst_22 = arith.constant 1.000000e+00 : f32
    %28 = vector.broadcast %cst_22 : f32 to vector<16x128xf32>
    %29 = arith.addf %28, %27 : vector<16x128xf32>
    %30 = arith.divf %28, %29 : vector<16x128xf32>
    %31 = vector.extract_strided_slice %24 {offsets = [0, 128], sizes = [16, 128], strides = [1, 1]} : vector<16x512xf32> to vector<16x128xf32>
    %32 = arith.negf %31 : vector<16x128xf32>
    %33 = math.exp %32 : vector<16x128xf32>
    %cst_23 = arith.constant 1.000000e+00 : f32
    %34 = vector.broadcast %cst_23 : f32 to vector<16x128xf32>
    %35 = arith.addf %34, %33 : vector<16x128xf32>
    %36 = arith.divf %34, %35 : vector<16x128xf32>
    %37 = vector.extract_strided_slice %24 {offsets = [0, 256], sizes = [16, 128], strides = [1, 1]} : vector<16x512xf32> to vector<16x128xf32>
    %38 = math.tanh %37 : vector<16x128xf32>
    %39 = vector.extract_strided_slice %24 {offsets = [0, 384], sizes = [16, 128], strides = [1, 1]} : vector<16x512xf32> to vector<16x128xf32>
    %40 = arith.negf %39 : vector<16x128xf32>
    %41 = math.exp %40 : vector<16x128xf32>
    %cst_24 = arith.constant 1.000000e+00 : f32
    %42 = vector.broadcast %cst_24 : f32 to vector<16x128xf32>
    %43 = arith.addf %42, %41 : vector<16x128xf32>
    %44 = arith.divf %42, %43 : vector<16x128xf32>
    %45 = arith.mulf %36, %12 : vector<16x128xf32>
    %46 = arith.mulf %30, %38 : vector<16x128xf32>
    %47 = arith.addf %45, %46 : vector<16x128xf32>
    %48 = math.tanh %47 : vector<16x128xf32>
    %49 = arith.mulf %44, %48 : vector<16x128xf32>
    %c0_25 = arith.constant 0 : index
    %c7 = arith.constant 7 : index
    %c0_26 = arith.constant 0 : index
    %c0_27 = arith.constant 0 : index
    %50 = vector.load %arg4[%c0_25, %c7, %c0_26, %c0_27] : memref<1x8x16x512xbf16, #tpu.memory_space<vmem>>, vector<1x1x16x512xbf16>
    %51 = vector.shape_cast %50 : vector<1x1x16x512xbf16> to vector<16x512xbf16>
    %52 = arith.extf %51 : vector<16x512xbf16> to vector<16x512xf32>
    %53 = vector.broadcast %6 : vector<1x512xf32> to vector<16x512xf32>
    %54 = arith.addf %52, %53 : vector<16x512xf32>
    %cst_28 = arith.constant dense<0.000000e+00> : vector<16x512xf32>
    %55 = tpu.matmul %13, %10, %cst_28 {dimension_numbers = #tpu.dot_dimension_numbers<[1], [0], [0], [1], [0, 0, 1, 1], [], []>} : vector<16x128xbf16>, vector<128x512xbf16>, vector<16x512xf32> -> vector<16x512xf32>
    %56 = arith.addf %54, %55 : vector<16x512xf32>
    %57 = vector.extract_strided_slice %56 {offsets = [0, 0], sizes = [16, 128], strides = [1, 1]} : vector<16x512xf32> to vector<16x128xf32>
    %58 = arith.negf %57 : vector<16x128xf32>
    %59 = math.exp %58 : vector<16x128xf32>
    %cst_29 = arith.constant 1.000000e+00 : f32
    %60 = vector.broadcast %cst_29 : f32 to vector<16x128xf32>
    %61 = arith.addf %60, %59 : vector<16x128xf32>
    %62 = arith.divf %60, %61 : vector<16x128xf32>
    %63 = vector.extract_strided_slice %56 {offsets = [0, 128], sizes = [16, 128], strides = [1, 1]} : vector<16x512xf32> to vector<16x128xf32>
    %64 = arith.negf %63 : vector<16x128xf32>
    %65 = math.exp %64 : vector<16x128xf32>
    %cst_30 = arith.constant 1.000000e+00 : f32
    %66 = vector.broadcast %cst_30 : f32 to vector<16x128xf32>
    %67 = arith.addf %66, %65 : vector<16x128xf32>
    %68 = arith.divf %66, %67 : vector<16x128xf32>
    %69 = vector.extract_strided_slice %56 {offsets = [0, 256], sizes = [16, 128], strides = [1, 1]} : vector<16x512xf32> to vector<16x128xf32>
    %70 = math.tanh %69 : vector<16x128xf32>
    %71 = vector.extract_strided_slice %56 {offsets = [0, 384], sizes = [16, 128], strides = [1, 1]} : vector<16x512xf32> to vector<16x128xf32>
    %72 = arith.negf %71 : vector<16x128xf32>
    %73 = math.exp %72 : vector<16x128xf32>
    %cst_31 = arith.constant 1.000000e+00 : f32
    %74 = vector.broadcast %cst_31 : f32 to vector<16x128xf32>
    %75 = arith.addf %74, %73 : vector<16x128xf32>
    %76 = arith.divf %74, %75 : vector<16x128xf32>
    %77 = arith.mulf %68, %14 : vector<16x128xf32>
    %78 = arith.mulf %62, %70 : vector<16x128xf32>
    %79 = arith.addf %77, %78 : vector<16x128xf32>
    %80 = math.tanh %79 : vector<16x128xf32>
    %81 = arith.mulf %76, %80 : vector<16x128xf32>
    %c0_i32_32 = arith.constant 0 : i32
    %82 = arith.addi %15, %c0_i32_32 : i32
    %83 = vector.broadcast %82 : i32 to vector<16x1xi32>
    %84 = arith.cmpi slt, %83, %3 : vector<16x1xi32>
    %c7_i32 = arith.constant 7 : i32
    %85 = arith.addi %17, %c7_i32 : i32
    %86 = vector.broadcast %85 : i32 to vector<16x1xi32>
    %87 = arith.cmpi slt, %86, %3 : vector<16x1xi32>
    %cst_33 = arith.constant 0.000000e+00 : f32
    %88 = vector.shape_cast %84 : vector<16x1xi1> to vector<16x1xi1>
    %89 = vector.broadcast %88 : vector<16x1xi1> to vector<16x128xi1>
    %90 = vector.broadcast %cst_33 : f32 to vector<16x128xf32>
    %91 = arith.select %89, %49, %90 : vector<16x128xi1>, vector<16x128xf32>
    %92 = arith.truncf %91 : vector<16x128xf32> to vector<16x128xbf16>
    %c0_34 = arith.constant 0 : index
    %c0_35 = arith.constant 0 : index
    %c0_36 = arith.constant 0 : index
    %93 = vector.load %arg6[%c0_34, %c0_35, %c0_36] : memref<8x16x128xbf16, #tpu.memory_space<vmem>>, vector<1x16x128xbf16>
    %94 = vector.shape_cast %93 : vector<1x16x128xbf16> to vector<16x128xbf16>
    %95 = vector.shape_cast %92 : vector<16x128xbf16> to vector<1x16x128xbf16>
    tpu.vector_store %arg6[%c0_34, %c0_35, %c0_36], %95 {strides = array<i32>} : memref<8x16x128xbf16, #tpu.memory_space<vmem>>, vector<1x16x128xbf16>,
    %cst_37 = arith.constant 0.000000e+00 : f32
    %96 = vector.shape_cast %87 : vector<16x1xi1> to vector<16x1xi1>
    %97 = vector.broadcast %96 : vector<16x1xi1> to vector<16x128xi1>
    %98 = vector.broadcast %cst_37 : f32 to vector<16x128xf32>
    %99 = arith.select %97, %81, %98 : vector<16x128xi1>, vector<16x128xf32>
    %100 = arith.truncf %99 : vector<16x128xf32> to vector<16x128xbf16>
    %c7_38 = arith.constant 7 : index
    %c0_39 = arith.constant 0 : index
    %c0_40 = arith.constant 0 : index
    %101 = vector.load %arg7[%c7_38, %c0_39, %c0_40] : memref<8x16x128xbf16, #tpu.memory_space<vmem>>, vector<1x16x128xbf16>
    %102 = vector.shape_cast %101 : vector<1x16x128xbf16> to vector<16x128xbf16>
    %103 = vector.shape_cast %100 : vector<16x128xbf16> to vector<1x16x128xbf16>
    tpu.vector_store %arg7[%c7_38, %c0_39, %c0_40], %103 {strides = array<i32>} : memref<8x16x128xbf16, #tpu.memory_space<vmem>>, vector<1x16x128xbf16>,
    %104 = arith.truncf %49 : vector<16x128xf32> to vector<16x128xbf16>
    %105 = vector.shape_cast %84 : vector<16x1xi1> to vector<16x1xi1>
    %106 = vector.broadcast %105 : vector<16x1xi1> to vector<16x128xi1>
    %107 = arith.select %106, %104, %11 : vector<16x128xi1>, vector<16x128xbf16>
    %108 = vector.shape_cast %84 : vector<16x1xi1> to vector<16x1xi1>
    %109 = vector.broadcast %108 : vector<16x1xi1> to vector<16x128xi1>
    %110 = arith.select %109, %47, %12 : vector<16x128xi1>, vector<16x128xf32>
    %111 = arith.truncf %81 : vector<16x128xf32> to vector<16x128xbf16>
    %112 = vector.shape_cast %87 : vector<16x1xi1> to vector<16x1xi1>
    %113 = vector.broadcast %112 : vector<16x1xi1> to vector<16x128xi1>
    %114 = arith.select %113, %111, %13 : vector<16x128xi1>, vector<16x128xbf16>
    %115 = vector.shape_cast %87 : vector<16x1xi1> to vector<16x1xi1>
    %116 = vector.broadcast %115 : vector<16x1xi1> to vector<16x128xi1>
    %117 = arith.select %116, %79, %14 : vector<16x128xi1>, vector<16x128xf32>
    %c0_41 = arith.constant 0 : index
    %c1_42 = arith.constant 1 : index
    %c0_43 = arith.constant 0 : index
    %c0_44 = arith.constant 0 : index
    %118 = vector.load %arg3[%c0_41, %c1_42, %c0_43, %c0_44] : memref<1x8x16x512xbf16, #tpu.memory_space<vmem>>, vector<1x1x16x512xbf16>
    %119 = vector.shape_cast %118 : vector<1x1x16x512xbf16> to vector<16x512xbf16>
    %120 = arith.extf %119 : vector<16x512xbf16> to vector<16x512xf32>
    %121 = vector.broadcast %5 : vector<1x512xf32> to vector<16x512xf32>
    %122 = arith.addf %120, %121 : vector<16x512xf32>
    %cst_45 = arith.constant dense<0.000000e+00> : vector<16x512xf32>
    %123 = tpu.matmul %107, %8, %cst_45 {dimension_numbers = #tpu.dot_dimension_numbers<[1], [0], [0], [1], [0, 0, 1, 1], [], []>} : vector<16x128xbf16>, vector<128x512xbf16>, vector<16x512xf32> -> vector<16x512xf32>
    %124 = arith.addf %122, %123 : vector<16x512xf32>
    %125 = vector.extract_strided_slice %124 {offsets = [0, 0], sizes = [16, 128], strides = [1, 1]} : vector<16x512xf32> to vector<16x128xf32>
    %126 = arith.negf %125 : vector<16x128xf32>
    %127 = math.exp %126 : vector<16x128xf32>
    %cst_46 = arith.constant 1.000000e+00 : f32
    %128 = vector.broadcast %cst_46 : f32 to vector<16x128xf32>
    %129 = arith.addf %128, %127 : vector<16x128xf32>
    %130 = arith.divf %128, %129 : vector<16x128xf32>
    %131 = vector.extract_strided_slice %124 {offsets = [0, 128], sizes = [16, 128], strides = [1, 1]} : vector<16x512xf32> to vector<16x128xf32>
    %132 = arith.negf %131 : vector<16x128xf32>
    %133 = math.exp %132 : vector<16x128xf32>
    %cst_47 = arith.constant 1.000000e+00 : f32
    %134 = vector.broadcast %cst_47 : f32 to vector<16x128xf32>
    %135 = arith.addf %134, %133 : vector<16x128xf32>
    %136 = arith.divf %134, %135 : vector<16x128xf32>
    %137 = vector.extract_strided_slice %124 {offsets = [0, 256], sizes = [16, 128], strides = [1, 1]} : vector<16x512xf32> to vector<16x128xf32>
    %138 = math.tanh %137 : vector<16x128xf32>
    %139 = vector.extract_strided_slice %124 {offsets = [0, 384], sizes = [16, 128], strides = [1, 1]} : vector<16x512xf32> to vector<16x128xf32>
    %140 = arith.negf %139 : vector<16x128xf32>
    %141 = math.exp %140 : vector<16x128xf32>
    %cst_48 = arith.constant 1.000000e+00 : f32
    %142 = vector.broadcast %cst_48 : f32 to vector<16x128xf32>
    %143 = arith.addf %142, %141 : vector<16x128xf32>
    %144 = arith.divf %142, %143 : vector<16x128xf32>
    %145 = arith.mulf %136, %110 : vector<16x128xf32>
    %146 = arith.mulf %130, %138 : vector<16x128xf32>
    %147 = arith.addf %145, %146 : vector<16x128xf32>
    %148 = math.tanh %147 : vector<16x128xf32>
    %149 = arith.mulf %144, %148 : vector<16x128xf32>
    %c0_49 = arith.constant 0 : index
    %c6 = arith.constant 6 : index
    %c0_50 = arith.constant 0 : index
    %c0_51 = arith.constant 0 : index
    %150 = vector.load %arg4[%c0_49, %c6, %c0_50, %c0_51] : memref<1x8x16x512xbf16, #tpu.memory_space<vmem>>, vector<1x1x16x512xbf16>
    %151 = vector.shape_cast %150 : vector<1x1x16x512xbf16> to vector<16x512xbf16>
    %152 = arith.extf %151 : vector<16x512xbf16> to vector<16x512xf32>
    %153 = vector.broadcast %6 : vector<1x512xf32> to vector<16x512xf32>
    %154 = arith.addf %152, %153 : vector<16x512xf32>
    %cst_52 = arith.constant dense<0.000000e+00> : vector<16x512xf32>
    %155 = tpu.matmul %114, %10, %cst_52 {dimension_numbers = #tpu.dot_dimension_numbers<[1], [0], [0], [1], [0, 0, 1, 1], [], []>} : vector<16x128xbf16>, vector<128x512xbf16>, vector<16x512xf32> -> vector<16x512xf32>
    %156 = arith.addf %154, %155 : vector<16x512xf32>
    %157 = vector.extract_strided_slice %156 {offsets = [0, 0], sizes = [16, 128], strides = [1, 1]} : vector<16x512xf32> to vector<16x128xf32>
    %158 = arith.negf %157 : vector<16x128xf32>
    %159 = math.exp %158 : vector<16x128xf32>
    %cst_53 = arith.constant 1.000000e+00 : f32
    %160 = vector.broadcast %cst_53 : f32 to vector<16x128xf32>
    %161 = arith.addf %160, %159 : vector<16x128xf32>
    %162 = arith.divf %160, %161 : vector<16x128xf32>
    %163 = vector.extract_strided_slice %156 {offsets = [0, 128], sizes = [16, 128], strides = [1, 1]} : vector<16x512xf32> to vector<16x128xf32>
    %164 = arith.negf %163 : vector<16x128xf32>
    %165 = math.exp %164 : vector<16x128xf32>
    %cst_54 = arith.constant 1.000000e+00 : f32
    %166 = vector.broadcast %cst_54 : f32 to vector<16x128xf32>
    %167 = arith.addf %166, %165 : vector<16x128xf32>
    %168 = arith.divf %166, %167 : vector<16x128xf32>
    %169 = vector.extract_strided_slice %156 {offsets = [0, 256], sizes = [16, 128], strides = [1, 1]} : vector<16x512xf32> to vector<16x128xf32>
    %170 = math.tanh %169 : vector<16x128xf32>
    %171 = vector.extract_strided_slice %156 {offsets = [0, 384], sizes = [16, 128], strides = [1, 1]} : vector<16x512xf32> to vector<16x128xf32>
    %172 = arith.negf %171 : vector<16x128xf32>
    %173 = math.exp %172 : vector<16x128xf32>
    %cst_55 = arith.constant 1.000000e+00 : f32
    %174 = vector.broadcast %cst_55 : f32 to vector<16x128xf32>
    %175 = arith.addf %174, %173 : vector<16x128xf32>
    %176 = arith.divf %174, %175 : vector<16x128xf32>
    %177 = arith.mulf %168, %117 : vector<16x128xf32>
    %178 = arith.mulf %162, %170 : vector<16x128xf32>
    %179 = arith.addf %177, %178 : vector<16x128xf32>
    %180 = math.tanh %179 : vector<16x128xf32>
    %181 = arith.mulf %176, %180 : vector<16x128xf32>
    %c1_i32_56 = arith.constant 1 : i32
    %182 = arith.addi %15, %c1_i32_56 : i32
    %183 = vector.broadcast %182 : i32 to vector<16x1xi32>
    %184 = arith.cmpi slt, %183, %3 : vector<16x1xi32>
    %c6_i32 = arith.constant 6 : i32
    %185 = arith.addi %17, %c6_i32 : i32
    %186 = vector.broadcast %185 : i32 to vector<16x1xi32>
    %187 = arith.cmpi slt, %186, %3 : vector<16x1xi32>
    %cst_57 = arith.constant 0.000000e+00 : f32
    %188 = vector.shape_cast %184 : vector<16x1xi1> to vector<16x1xi1>
    %189 = vector.broadcast %188 : vector<16x1xi1> to vector<16x128xi1>
    %190 = vector.broadcast %cst_57 : f32 to vector<16x128xf32>
    %191 = arith.select %189, %149, %190 : vector<16x128xi1>, vector<16x128xf32>
    %192 = arith.truncf %191 : vector<16x128xf32> to vector<16x128xbf16>
    %c1_58 = arith.constant 1 : index
    %c0_59 = arith.constant 0 : index
    %c0_60 = arith.constant 0 : index
    %193 = vector.load %arg6[%c1_58, %c0_59, %c0_60] : memref<8x16x128xbf16, #tpu.memory_space<vmem>>, vector<1x16x128xbf16>
    %194 = vector.shape_cast %193 : vector<1x16x128xbf16> to vector<16x128xbf16>
    %195 = vector.shape_cast %192 : vector<16x128xbf16> to vector<1x16x128xbf16>
    tpu.vector_store %arg6[%c1_58, %c0_59, %c0_60], %195 {strides = array<i32>} : memref<8x16x128xbf16, #tpu.memory_space<vmem>>, vector<1x16x128xbf16>,
    %cst_61 = arith.constant 0.000000e+00 : f32
    %196 = vector.shape_cast %187 : vector<16x1xi1> to vector<16x1xi1>
    %197 = vector.broadcast %196 : vector<16x1xi1> to vector<16x128xi1>
    %198 = vector.broadcast %cst_61 : f32 to vector<16x128xf32>
    %199 = arith.select %197, %181, %198 : vector<16x128xi1>, vector<16x128xf32>
    %200 = arith.truncf %199 : vector<16x128xf32> to vector<16x128xbf16>
    %c6_62 = arith.constant 6 : index
    %c0_63 = arith.constant 0 : index
    %c0_64 = arith.constant 0 : index
    %201 = vector.load %arg7[%c6_62, %c0_63, %c0_64] : memref<8x16x128xbf16, #tpu.memory_space<vmem>>, vector<1x16x128xbf16>
    %202 = vector.shape_cast %201 : vector<1x16x128xbf16> to vector<16x128xbf16>
    %203 = vector.shape_cast %200 : vector<16x128xbf16> to vector<1x16x128xbf16>
    tpu.vector_store %arg7[%c6_62, %c0_63, %c0_64], %203 {strides = array<i32>} : memref<8x16x128xbf16, #tpu.memory_space<vmem>>, vector<1x16x128xbf16>,
    %204 = arith.truncf %149 : vector<16x128xf32> to vector<16x128xbf16>
    %205 = vector.shape_cast %184 : vector<16x1xi1> to vector<16x1xi1>
    %206 = vector.broadcast %205 : vector<16x1xi1> to vector<16x128xi1>
    %207 = arith.select %206, %204, %107 : vector<16x128xi1>, vector<16x128xbf16>
    %208 = vector.shape_cast %184 : vector<16x1xi1> to vector<16x1xi1>
    %209 = vector.broadcast %208 : vector<16x1xi1> to vector<16x128xi1>
    %210 = arith.select %209, %147, %110 : vector<16x128xi1>, vector<16x128xf32>
    %211 = arith.truncf %181 : vector<16x128xf32> to vector<16x128xbf16>
    %212 = vector.shape_cast %187 : vector<16x1xi1> to vector<16x1xi1>
    %213 = vector.broadcast %212 : vector<16x1xi1> to vector<16x128xi1>
    %214 = arith.select %213, %211, %114 : vector<16x128xi1>, vector<16x128xbf16>
    %215 = vector.shape_cast %187 : vector<16x1xi1> to vector<16x1xi1>
    %216 = vector.broadcast %215 : vector<16x1xi1> to vector<16x128xi1>
    %217 = arith.select %216, %179, %117 : vector<16x128xi1>, vector<16x128xf32>
    %c0_65 = arith.constant 0 : index
    %c2 = arith.constant 2 : index
    %c0_66 = arith.constant 0 : index
    %c0_67 = arith.constant 0 : index
    %218 = vector.load %arg3[%c0_65, %c2, %c0_66, %c0_67] : memref<1x8x16x512xbf16, #tpu.memory_space<vmem>>, vector<1x1x16x512xbf16>
    %219 = vector.shape_cast %218 : vector<1x1x16x512xbf16> to vector<16x512xbf16>
    %220 = arith.extf %219 : vector<16x512xbf16> to vector<16x512xf32>
    %221 = vector.broadcast %5 : vector<1x512xf32> to vector<16x512xf32>
    %222 = arith.addf %220, %221 : vector<16x512xf32>
    %cst_68 = arith.constant dense<0.000000e+00> : vector<16x512xf32>
    %223 = tpu.matmul %207, %8, %cst_68 {dimension_numbers = #tpu.dot_dimension_numbers<[1], [0], [0], [1], [0, 0, 1, 1], [], []>} : vector<16x128xbf16>, vector<128x512xbf16>, vector<16x512xf32> -> vector<16x512xf32>
    %224 = arith.addf %222, %223 : vector<16x512xf32>
    %225 = vector.extract_strided_slice %224 {offsets = [0, 0], sizes = [16, 128], strides = [1, 1]} : vector<16x512xf32> to vector<16x128xf32>
    %226 = arith.negf %225 : vector<16x128xf32>
    %227 = math.exp %226 : vector<16x128xf32>
    %cst_69 = arith.constant 1.000000e+00 : f32
    %228 = vector.broadcast %cst_69 : f32 to vector<16x128xf32>
    %229 = arith.addf %228, %227 : vector<16x128xf32>
    %230 = arith.divf %228, %229 : vector<16x128xf32>
    %231 = vector.extract_strided_slice %224 {offsets = [0, 128], sizes = [16, 128], strides = [1, 1]} : vector<16x512xf32> to vector<16x128xf32>
    %232 = arith.negf %231 : vector<16x128xf32>
    %233 = math.exp %232 : vector<16x128xf32>
    %cst_70 = arith.constant 1.000000e+00 : f32
    %234 = vector.broadcast %cst_70 : f32 to vector<16x128xf32>
    %235 = arith.addf %234, %233 : vector<16x128xf32>
    %236 = arith.divf %234, %235 : vector<16x128xf32>
    %237 = vector.extract_strided_slice %224 {offsets = [0, 256], sizes = [16, 128], strides = [1, 1]} : vector<16x512xf32> to vector<16x128xf32>
    %238 = math.tanh %237 : vector<16x128xf32>
    %239 = vector.extract_strided_slice %224 {offsets = [0, 384], sizes = [16, 128], strides = [1, 1]} : vector<16x512xf32> to vector<16x128xf32>
    %240 = arith.negf %239 : vector<16x128xf32>
    %241 = math.exp %240 : vector<16x128xf32>
    %cst_71 = arith.constant 1.000000e+00 : f32
    %242 = vector.broadcast %cst_71 : f32 to vector<16x128xf32>
    %243 = arith.addf %242, %241 : vector<16x128xf32>
    %244 = arith.divf %242, %243 : vector<16x128xf32>
    %245 = arith.mulf %236, %210 : vector<16x128xf32>
    %246 = arith.mulf %230, %238 : vector<16x128xf32>
    %247 = arith.addf %245, %246 : vector<16x128xf32>
    %248 = math.tanh %247 : vector<16x128xf32>
    %249 = arith.mulf %244, %248 : vector<16x128xf32>
    %c0_72 = arith.constant 0 : index
    %c5 = arith.constant 5 : index
    %c0_73 = arith.constant 0 : index
    %c0_74 = arith.constant 0 : index
    %250 = vector.load %arg4[%c0_72, %c5, %c0_73, %c0_74] : memref<1x8x16x512xbf16, #tpu.memory_space<vmem>>, vector<1x1x16x512xbf16>
    %251 = vector.shape_cast %250 : vector<1x1x16x512xbf16> to vector<16x512xbf16>
    %252 = arith.extf %251 : vector<16x512xbf16> to vector<16x512xf32>
    %253 = vector.broadcast %6 : vector<1x512xf32> to vector<16x512xf32>
    %254 = arith.addf %252, %253 : vector<16x512xf32>
    %cst_75 = arith.constant dense<0.000000e+00> : vector<16x512xf32>
    %255 = tpu.matmul %214, %10, %cst_75 {dimension_numbers = #tpu.dot_dimension_numbers<[1], [0], [0], [1], [0, 0, 1, 1], [], []>} : vector<16x128xbf16>, vector<128x512xbf16>, vector<16x512xf32> -> vector<16x512xf32>
    %256 = arith.addf %254, %255 : vector<16x512xf32>
    %257 = vector.extract_strided_slice %256 {offsets = [0, 0], sizes = [16, 128], strides = [1, 1]} : vector<16x512xf32> to vector<16x128xf32>
    %258 = arith.negf %257 : vector<16x128xf32>
    %259 = math.exp %258 : vector<16x128xf32>
    %cst_76 = arith.constant 1.000000e+00 : f32
    %260 = vector.broadcast %cst_76 : f32 to vector<16x128xf32>
    %261 = arith.addf %260, %259 : vector<16x128xf32>
    %262 = arith.divf %260, %261 : vector<16x128xf32>
    %263 = vector.extract_strided_slice %256 {offsets = [0, 128], sizes = [16, 128], strides = [1, 1]} : vector<16x512xf32> to vector<16x128xf32>
    %264 = arith.negf %263 : vector<16x128xf32>
    %265 = math.exp %264 : vector<16x128xf32>
    %cst_77 = arith.constant 1.000000e+00 : f32
    %266 = vector.broadcast %cst_77 : f32 to vector<16x128xf32>
    %267 = arith.addf %266, %265 : vector<16x128xf32>
    %268 = arith.divf %266, %267 : vector<16x128xf32>
    %269 = vector.extract_strided_slice %256 {offsets = [0, 256], sizes = [16, 128], strides = [1, 1]} : vector<16x512xf32> to vector<16x128xf32>
    %270 = math.tanh %269 : vector<16x128xf32>
    %271 = vector.extract_strided_slice %256 {offsets = [0, 384], sizes = [16, 128], strides = [1, 1]} : vector<16x512xf32> to vector<16x128xf32>
    %272 = arith.negf %271 : vector<16x128xf32>
    %273 = math.exp %272 : vector<16x128xf32>
    %cst_78 = arith.constant 1.000000e+00 : f32
    %274 = vector.broadcast %cst_78 : f32 to vector<16x128xf32>
    %275 = arith.addf %274, %273 : vector<16x128xf32>
    %276 = arith.divf %274, %275 : vector<16x128xf32>
    %277 = arith.mulf %268, %217 : vector<16x128xf32>
    %278 = arith.mulf %262, %270 : vector<16x128xf32>
    %279 = arith.addf %277, %278 : vector<16x128xf32>
    %280 = math.tanh %279 : vector<16x128xf32>
    %281 = arith.mulf %276, %280 : vector<16x128xf32>
    %c2_i32 = arith.constant 2 : i32
    %282 = arith.addi %15, %c2_i32 : i32
    %283 = vector.broadcast %282 : i32 to vector<16x1xi32>
    %284 = arith.cmpi slt, %283, %3 : vector<16x1xi32>
    %c5_i32 = arith.constant 5 : i32
    %285 = arith.addi %17, %c5_i32 : i32
    %286 = vector.broadcast %285 : i32 to vector<16x1xi32>
    %287 = arith.cmpi slt, %286, %3 : vector<16x1xi32>
    %cst_79 = arith.constant 0.000000e+00 : f32
    %288 = vector.shape_cast %284 : vector<16x1xi1> to vector<16x1xi1>
    %289 = vector.broadcast %288 : vector<16x1xi1> to vector<16x128xi1>
    %290 = vector.broadcast %cst_79 : f32 to vector<16x128xf32>
    %291 = arith.select %289, %249, %290 : vector<16x128xi1>, vector<16x128xf32>
    %292 = arith.truncf %291 : vector<16x128xf32> to vector<16x128xbf16>
    %c2_80 = arith.constant 2 : index
    %c0_81 = arith.constant 0 : index
    %c0_82 = arith.constant 0 : index
    %293 = vector.load %arg6[%c2_80, %c0_81, %c0_82] : memref<8x16x128xbf16, #tpu.memory_space<vmem>>, vector<1x16x128xbf16>
    %294 = vector.shape_cast %293 : vector<1x16x128xbf16> to vector<16x128xbf16>
    %295 = vector.shape_cast %292 : vector<16x128xbf16> to vector<1x16x128xbf16>
    tpu.vector_store %arg6[%c2_80, %c0_81, %c0_82], %295 {strides = array<i32>} : memref<8x16x128xbf16, #tpu.memory_space<vmem>>, vector<1x16x128xbf16>,
    %cst_83 = arith.constant 0.000000e+00 : f32
    %296 = vector.shape_cast %287 : vector<16x1xi1> to vector<16x1xi1>
    %297 = vector.broadcast %296 : vector<16x1xi1> to vector<16x128xi1>
    %298 = vector.broadcast %cst_83 : f32 to vector<16x128xf32>
    %299 = arith.select %297, %281, %298 : vector<16x128xi1>, vector<16x128xf32>
    %300 = arith.truncf %299 : vector<16x128xf32> to vector<16x128xbf16>
    %c5_84 = arith.constant 5 : index
    %c0_85 = arith.constant 0 : index
    %c0_86 = arith.constant 0 : index
    %301 = vector.load %arg7[%c5_84, %c0_85, %c0_86] : memref<8x16x128xbf16, #tpu.memory_space<vmem>>, vector<1x16x128xbf16>
    %302 = vector.shape_cast %301 : vector<1x16x128xbf16> to vector<16x128xbf16>
    %303 = vector.shape_cast %300 : vector<16x128xbf16> to vector<1x16x128xbf16>
    tpu.vector_store %arg7[%c5_84, %c0_85, %c0_86], %303 {strides = array<i32>} : memref<8x16x128xbf16, #tpu.memory_space<vmem>>, vector<1x16x128xbf16>,
    %304 = arith.truncf %249 : vector<16x128xf32> to vector<16x128xbf16>
    %305 = vector.shape_cast %284 : vector<16x1xi1> to vector<16x1xi1>
    %306 = vector.broadcast %305 : vector<16x1xi1> to vector<16x128xi1>
    %307 = arith.select %306, %304, %207 : vector<16x128xi1>, vector<16x128xbf16>
    %308 = vector.shape_cast %284 : vector<16x1xi1> to vector<16x1xi1>
    %309 = vector.broadcast %308 : vector<16x1xi1> to vector<16x128xi1>
    %310 = arith.select %309, %247, %210 : vector<16x128xi1>, vector<16x128xf32>
    %311 = arith.truncf %281 : vector<16x128xf32> to vector<16x128xbf16>
    %312 = vector.shape_cast %287 : vector<16x1xi1> to vector<16x1xi1>
    %313 = vector.broadcast %312 : vector<16x1xi1> to vector<16x128xi1>
    %314 = arith.select %313, %311, %214 : vector<16x128xi1>, vector<16x128xbf16>
    %315 = vector.shape_cast %287 : vector<16x1xi1> to vector<16x1xi1>
    %316 = vector.broadcast %315 : vector<16x1xi1> to vector<16x128xi1>
    %317 = arith.select %316, %279, %217 : vector<16x128xi1>, vector<16x128xf32>
    %c0_87 = arith.constant 0 : index
    %c3 = arith.constant 3 : index
    %c0_88 = arith.constant 0 : index
    %c0_89 = arith.constant 0 : index
    %318 = vector.load %arg3[%c0_87, %c3, %c0_88, %c0_89] : memref<1x8x16x512xbf16, #tpu.memory_space<vmem>>, vector<1x1x16x512xbf16>
    %319 = vector.shape_cast %318 : vector<1x1x16x512xbf16> to vector<16x512xbf16>
    %320 = arith.extf %319 : vector<16x512xbf16> to vector<16x512xf32>
    %321 = vector.broadcast %5 : vector<1x512xf32> to vector<16x512xf32>
    %322 = arith.addf %320, %321 : vector<16x512xf32>
    %cst_90 = arith.constant dense<0.000000e+00> : vector<16x512xf32>
    %323 = tpu.matmul %307, %8, %cst_90 {dimension_numbers = #tpu.dot_dimension_numbers<[1], [0], [0], [1], [0, 0, 1, 1], [], []>} : vector<16x128xbf16>, vector<128x512xbf16>, vector<16x512xf32> -> vector<16x512xf32>
    %324 = arith.addf %322, %323 : vector<16x512xf32>
    %325 = vector.extract_strided_slice %324 {offsets = [0, 0], sizes = [16, 128], strides = [1, 1]} : vector<16x512xf32> to vector<16x128xf32>
    %326 = arith.negf %325 : vector<16x128xf32>
    %327 = math.exp %326 : vector<16x128xf32>
    %cst_91 = arith.constant 1.000000e+00 : f32
    %328 = vector.broadcast %cst_91 : f32 to vector<16x128xf32>
    %329 = arith.addf %328, %327 : vector<16x128xf32>
    %330 = arith.divf %328, %329 : vector<16x128xf32>
    %331 = vector.extract_strided_slice %324 {offsets = [0, 128], sizes = [16, 128], strides = [1, 1]} : vector<16x512xf32> to vector<16x128xf32>
    %332 = arith.negf %331 : vector<16x128xf32>
    %333 = math.exp %332 : vector<16x128xf32>
    %cst_92 = arith.constant 1.000000e+00 : f32
    %334 = vector.broadcast %cst_92 : f32 to vector<16x128xf32>
    %335 = arith.addf %334, %333 : vector<16x128xf32>
    %336 = arith.divf %334, %335 : vector<16x128xf32>
    %337 = vector.extract_strided_slice %324 {offsets = [0, 256], sizes = [16, 128], strides = [1, 1]} : vector<16x512xf32> to vector<16x128xf32>
    %338 = math.tanh %337 : vector<16x128xf32>
    %339 = vector.extract_strided_slice %324 {offsets = [0, 384], sizes = [16, 128], strides = [1, 1]} : vector<16x512xf32> to vector<16x128xf32>
    %340 = arith.negf %339 : vector<16x128xf32>
    %341 = math.exp %340 : vector<16x128xf32>
    %cst_93 = arith.constant 1.000000e+00 : f32
    %342 = vector.broadcast %cst_93 : f32 to vector<16x128xf32>
    %343 = arith.addf %342, %341 : vector<16x128xf32>
    %344 = arith.divf %342, %343 : vector<16x128xf32>
    %345 = arith.mulf %336, %310 : vector<16x128xf32>
    %346 = arith.mulf %330, %338 : vector<16x128xf32>
    %347 = arith.addf %345, %346 : vector<16x128xf32>
    %348 = math.tanh %347 : vector<16x128xf32>
    %349 = arith.mulf %344, %348 : vector<16x128xf32>
    %c0_94 = arith.constant 0 : index
    %c4 = arith.constant 4 : index
    %c0_95 = arith.constant 0 : index
    %c0_96 = arith.constant 0 : index
    %350 = vector.load %arg4[%c0_94, %c4, %c0_95, %c0_96] : memref<1x8x16x512xbf16, #tpu.memory_space<vmem>>, vector<1x1x16x512xbf16>
    %351 = vector.shape_cast %350 : vector<1x1x16x512xbf16> to vector<16x512xbf16>
    %352 = arith.extf %351 : vector<16x512xbf16> to vector<16x512xf32>
    %353 = vector.broadcast %6 : vector<1x512xf32> to vector<16x512xf32>
    %354 = arith.addf %352, %353 : vector<16x512xf32>
    %cst_97 = arith.constant dense<0.000000e+00> : vector<16x512xf32>
    %355 = tpu.matmul %314, %10, %cst_97 {dimension_numbers = #tpu.dot_dimension_numbers<[1], [0], [0], [1], [0, 0, 1, 1], [], []>} : vector<16x128xbf16>, vector<128x512xbf16>, vector<16x512xf32> -> vector<16x512xf32>
    %356 = arith.addf %354, %355 : vector<16x512xf32>
    %357 = vector.extract_strided_slice %356 {offsets = [0, 0], sizes = [16, 128], strides = [1, 1]} : vector<16x512xf32> to vector<16x128xf32>
    %358 = arith.negf %357 : vector<16x128xf32>
    %359 = math.exp %358 : vector<16x128xf32>
    %cst_98 = arith.constant 1.000000e+00 : f32
    %360 = vector.broadcast %cst_98 : f32 to vector<16x128xf32>
    %361 = arith.addf %360, %359 : vector<16x128xf32>
    %362 = arith.divf %360, %361 : vector<16x128xf32>
    %363 = vector.extract_strided_slice %356 {offsets = [0, 128], sizes = [16, 128], strides = [1, 1]} : vector<16x512xf32> to vector<16x128xf32>
    %364 = arith.negf %363 : vector<16x128xf32>
    %365 = math.exp %364 : vector<16x128xf32>
    %cst_99 = arith.constant 1.000000e+00 : f32
    %366 = vector.broadcast %cst_99 : f32 to vector<16x128xf32>
    %367 = arith.addf %366, %365 : vector<16x128xf32>
    %368 = arith.divf %366, %367 : vector<16x128xf32>
    %369 = vector.extract_strided_slice %356 {offsets = [0, 256], sizes = [16, 128], strides = [1, 1]} : vector<16x512xf32> to vector<16x128xf32>
    %370 = math.tanh %369 : vector<16x128xf32>
    %371 = vector.extract_strided_slice %356 {offsets = [0, 384], sizes = [16, 128], strides = [1, 1]} : vector<16x512xf32> to vector<16x128xf32>
    %372 = arith.negf %371 : vector<16x128xf32>
    %373 = math.exp %372 : vector<16x128xf32>
    %cst_100 = arith.constant 1.000000e+00 : f32
    %374 = vector.broadcast %cst_100 : f32 to vector<16x128xf32>
    %375 = arith.addf %374, %373 : vector<16x128xf32>
    %376 = arith.divf %374, %375 : vector<16x128xf32>
    %377 = arith.mulf %368, %317 : vector<16x128xf32>
    %378 = arith.mulf %362, %370 : vector<16x128xf32>
    %379 = arith.addf %377, %378 : vector<16x128xf32>
    %380 = math.tanh %379 : vector<16x128xf32>
    %381 = arith.mulf %376, %380 : vector<16x128xf32>
    %c3_i32 = arith.constant 3 : i32
    %382 = arith.addi %15, %c3_i32 : i32
    %383 = vector.broadcast %382 : i32 to vector<16x1xi32>
    %384 = arith.cmpi slt, %383, %3 : vector<16x1xi32>
    %c4_i32 = arith.constant 4 : i32
    %385 = arith.addi %17, %c4_i32 : i32
    %386 = vector.broadcast %385 : i32 to vector<16x1xi32>
    %387 = arith.cmpi slt, %386, %3 : vector<16x1xi32>
    %cst_101 = arith.constant 0.000000e+00 : f32
    %388 = vector.shape_cast %384 : vector<16x1xi1> to vector<16x1xi1>
    %389 = vector.broadcast %388 : vector<16x1xi1> to vector<16x128xi1>
    %390 = vector.broadcast %cst_101 : f32 to vector<16x128xf32>
    %391 = arith.select %389, %349, %390 : vector<16x128xi1>, vector<16x128xf32>
    %392 = arith.truncf %391 : vector<16x128xf32> to vector<16x128xbf16>
    %c3_102 = arith.constant 3 : index
    %c0_103 = arith.constant 0 : index
    %c0_104 = arith.constant 0 : index
    %393 = vector.load %arg6[%c3_102, %c0_103, %c0_104] : memref<8x16x128xbf16, #tpu.memory_space<vmem>>, vector<1x16x128xbf16>
    %394 = vector.shape_cast %393 : vector<1x16x128xbf16> to vector<16x128xbf16>
    %395 = vector.shape_cast %392 : vector<16x128xbf16> to vector<1x16x128xbf16>
    tpu.vector_store %arg6[%c3_102, %c0_103, %c0_104], %395 {strides = array<i32>} : memref<8x16x128xbf16, #tpu.memory_space<vmem>>, vector<1x16x128xbf16>,
    %cst_105 = arith.constant 0.000000e+00 : f32
    %396 = vector.shape_cast %387 : vector<16x1xi1> to vector<16x1xi1>
    %397 = vector.broadcast %396 : vector<16x1xi1> to vector<16x128xi1>
    %398 = vector.broadcast %cst_105 : f32 to vector<16x128xf32>
    %399 = arith.select %397, %381, %398 : vector<16x128xi1>, vector<16x128xf32>
    %400 = arith.truncf %399 : vector<16x128xf32> to vector<16x128xbf16>
    %c4_106 = arith.constant 4 : index
    %c0_107 = arith.constant 0 : index
    %c0_108 = arith.constant 0 : index
    %401 = vector.load %arg7[%c4_106, %c0_107, %c0_108] : memref<8x16x128xbf16, #tpu.memory_space<vmem>>, vector<1x16x128xbf16>
    %402 = vector.shape_cast %401 : vector<1x16x128xbf16> to vector<16x128xbf16>
    %403 = vector.shape_cast %400 : vector<16x128xbf16> to vector<1x16x128xbf16>
    tpu.vector_store %arg7[%c4_106, %c0_107, %c0_108], %403 {strides = array<i32>} : memref<8x16x128xbf16, #tpu.memory_space<vmem>>, vector<1x16x128xbf16>,
    %404 = arith.truncf %349 : vector<16x128xf32> to vector<16x128xbf16>
    %405 = vector.shape_cast %384 : vector<16x1xi1> to vector<16x1xi1>
    %406 = vector.broadcast %405 : vector<16x1xi1> to vector<16x128xi1>
    %407 = arith.select %406, %404, %307 : vector<16x128xi1>, vector<16x128xbf16>
    %408 = vector.shape_cast %384 : vector<16x1xi1> to vector<16x1xi1>
    %409 = vector.broadcast %408 : vector<16x1xi1> to vector<16x128xi1>
    %410 = arith.select %409, %347, %310 : vector<16x128xi1>, vector<16x128xf32>
    %411 = arith.truncf %381 : vector<16x128xf32> to vector<16x128xbf16>
    %412 = vector.shape_cast %387 : vector<16x1xi1> to vector<16x1xi1>
    %413 = vector.broadcast %412 : vector<16x1xi1> to vector<16x128xi1>
    %414 = arith.select %413, %411, %314 : vector<16x128xi1>, vector<16x128xbf16>
    %415 = vector.shape_cast %387 : vector<16x1xi1> to vector<16x1xi1>
    %416 = vector.broadcast %415 : vector<16x1xi1> to vector<16x128xi1>
    %417 = arith.select %416, %379, %317 : vector<16x128xi1>, vector<16x128xf32>
    %c0_109 = arith.constant 0 : index
    %c4_110 = arith.constant 4 : index
    %c0_111 = arith.constant 0 : index
    %c0_112 = arith.constant 0 : index
    %418 = vector.load %arg3[%c0_109, %c4_110, %c0_111, %c0_112] : memref<1x8x16x512xbf16, #tpu.memory_space<vmem>>, vector<1x1x16x512xbf16>
    %419 = vector.shape_cast %418 : vector<1x1x16x512xbf16> to vector<16x512xbf16>
    %420 = arith.extf %419 : vector<16x512xbf16> to vector<16x512xf32>
    %421 = vector.broadcast %5 : vector<1x512xf32> to vector<16x512xf32>
    %422 = arith.addf %420, %421 : vector<16x512xf32>
    %cst_113 = arith.constant dense<0.000000e+00> : vector<16x512xf32>
    %423 = tpu.matmul %407, %8, %cst_113 {dimension_numbers = #tpu.dot_dimension_numbers<[1], [0], [0], [1], [0, 0, 1, 1], [], []>} : vector<16x128xbf16>, vector<128x512xbf16>, vector<16x512xf32> -> vector<16x512xf32>
    %424 = arith.addf %422, %423 : vector<16x512xf32>
    %425 = vector.extract_strided_slice %424 {offsets = [0, 0], sizes = [16, 128], strides = [1, 1]} : vector<16x512xf32> to vector<16x128xf32>
    %426 = arith.negf %425 : vector<16x128xf32>
    %427 = math.exp %426 : vector<16x128xf32>
    %cst_114 = arith.constant 1.000000e+00 : f32
    %428 = vector.broadcast %cst_114 : f32 to vector<16x128xf32>
    %429 = arith.addf %428, %427 : vector<16x128xf32>
    %430 = arith.divf %428, %429 : vector<16x128xf32>
    %431 = vector.extract_strided_slice %424 {offsets = [0, 128], sizes = [16, 128], strides = [1, 1]} : vector<16x512xf32> to vector<16x128xf32>
    %432 = arith.negf %431 : vector<16x128xf32>
    %433 = math.exp %432 : vector<16x128xf32>
    %cst_115 = arith.constant 1.000000e+00 : f32
    %434 = vector.broadcast %cst_115 : f32 to vector<16x128xf32>
    %435 = arith.addf %434, %433 : vector<16x128xf32>
    %436 = arith.divf %434, %435 : vector<16x128xf32>
    %437 = vector.extract_strided_slice %424 {offsets = [0, 256], sizes = [16, 128], strides = [1, 1]} : vector<16x512xf32> to vector<16x128xf32>
    %438 = math.tanh %437 : vector<16x128xf32>
    %439 = vector.extract_strided_slice %424 {offsets = [0, 384], sizes = [16, 128], strides = [1, 1]} : vector<16x512xf32> to vector<16x128xf32>
    %440 = arith.negf %439 : vector<16x128xf32>
    %441 = math.exp %440 : vector<16x128xf32>
    %cst_116 = arith.constant 1.000000e+00 : f32
    %442 = vector.broadcast %cst_116 : f32 to vector<16x128xf32>
    %443 = arith.addf %442, %441 : vector<16x128xf32>
    %444 = arith.divf %442, %443 : vector<16x128xf32>
    %445 = arith.mulf %436, %410 : vector<16x128xf32>
    %446 = arith.mulf %430, %438 : vector<16x128xf32>
    %447 = arith.addf %445, %446 : vector<16x128xf32>
    %448 = math.tanh %447 : vector<16x128xf32>
    %449 = arith.mulf %444, %448 : vector<16x128xf32>
    %c0_117 = arith.constant 0 : index
    %c3_118 = arith.constant 3 : index
    %c0_119 = arith.constant 0 : index
    %c0_120 = arith.constant 0 : index
    %450 = vector.load %arg4[%c0_117, %c3_118, %c0_119, %c0_120] : memref<1x8x16x512xbf16, #tpu.memory_space<vmem>>, vector<1x1x16x512xbf16>
    %451 = vector.shape_cast %450 : vector<1x1x16x512xbf16> to vector<16x512xbf16>
    %452 = arith.extf %451 : vector<16x512xbf16> to vector<16x512xf32>
    %453 = vector.broadcast %6 : vector<1x512xf32> to vector<16x512xf32>
    %454 = arith.addf %452, %453 : vector<16x512xf32>
    %cst_121 = arith.constant dense<0.000000e+00> : vector<16x512xf32>
    %455 = tpu.matmul %414, %10, %cst_121 {dimension_numbers = #tpu.dot_dimension_numbers<[1], [0], [0], [1], [0, 0, 1, 1], [], []>} : vector<16x128xbf16>, vector<128x512xbf16>, vector<16x512xf32> -> vector<16x512xf32>
    %456 = arith.addf %454, %455 : vector<16x512xf32>
    %457 = vector.extract_strided_slice %456 {offsets = [0, 0], sizes = [16, 128], strides = [1, 1]} : vector<16x512xf32> to vector<16x128xf32>
    %458 = arith.negf %457 : vector<16x128xf32>
    %459 = math.exp %458 : vector<16x128xf32>
    %cst_122 = arith.constant 1.000000e+00 : f32
    %460 = vector.broadcast %cst_122 : f32 to vector<16x128xf32>
    %461 = arith.addf %460, %459 : vector<16x128xf32>
    %462 = arith.divf %460, %461 : vector<16x128xf32>
    %463 = vector.extract_strided_slice %456 {offsets = [0, 128], sizes = [16, 128], strides = [1, 1]} : vector<16x512xf32> to vector<16x128xf32>
    %464 = arith.negf %463 : vector<16x128xf32>
    %465 = math.exp %464 : vector<16x128xf32>
    %cst_123 = arith.constant 1.000000e+00 : f32
    %466 = vector.broadcast %cst_123 : f32 to vector<16x128xf32>
    %467 = arith.addf %466, %465 : vector<16x128xf32>
    %468 = arith.divf %466, %467 : vector<16x128xf32>
    %469 = vector.extract_strided_slice %456 {offsets = [0, 256], sizes = [16, 128], strides = [1, 1]} : vector<16x512xf32> to vector<16x128xf32>
    %470 = math.tanh %469 : vector<16x128xf32>
    %471 = vector.extract_strided_slice %456 {offsets = [0, 384], sizes = [16, 128], strides = [1, 1]} : vector<16x512xf32> to vector<16x128xf32>
    %472 = arith.negf %471 : vector<16x128xf32>
    %473 = math.exp %472 : vector<16x128xf32>
    %cst_124 = arith.constant 1.000000e+00 : f32
    %474 = vector.broadcast %cst_124 : f32 to vector<16x128xf32>
    %475 = arith.addf %474, %473 : vector<16x128xf32>
    %476 = arith.divf %474, %475 : vector<16x128xf32>
    %477 = arith.mulf %468, %417 : vector<16x128xf32>
    %478 = arith.mulf %462, %470 : vector<16x128xf32>
    %479 = arith.addf %477, %478 : vector<16x128xf32>
    %480 = math.tanh %479 : vector<16x128xf32>
    %481 = arith.mulf %476, %480 : vector<16x128xf32>
    %c4_i32_125 = arith.constant 4 : i32
    %482 = arith.addi %15, %c4_i32_125 : i32
    %483 = vector.broadcast %482 : i32 to vector<16x1xi32>
    %484 = arith.cmpi slt, %483, %3 : vector<16x1xi32>
    %c3_i32_126 = arith.constant 3 : i32
    %485 = arith.addi %17, %c3_i32_126 : i32
    %486 = vector.broadcast %485 : i32 to vector<16x1xi32>
    %487 = arith.cmpi slt, %486, %3 : vector<16x1xi32>
    %cst_127 = arith.constant 0.000000e+00 : f32
    %488 = vector.shape_cast %484 : vector<16x1xi1> to vector<16x1xi1>
    %489 = vector.broadcast %488 : vector<16x1xi1> to vector<16x128xi1>
    %490 = vector.broadcast %cst_127 : f32 to vector<16x128xf32>
    %491 = arith.select %489, %449, %490 : vector<16x128xi1>, vector<16x128xf32>
    %492 = arith.truncf %491 : vector<16x128xf32> to vector<16x128xbf16>
    %c4_128 = arith.constant 4 : index
    %c0_129 = arith.constant 0 : index
    %c0_130 = arith.constant 0 : index
    %493 = vector.load %arg6[%c4_128, %c0_129, %c0_130] : memref<8x16x128xbf16, #tpu.memory_space<vmem>>, vector<1x16x128xbf16>
    %494 = vector.shape_cast %493 : vector<1x16x128xbf16> to vector<16x128xbf16>
    %495 = vector.shape_cast %492 : vector<16x128xbf16> to vector<1x16x128xbf16>
    tpu.vector_store %arg6[%c4_128, %c0_129, %c0_130], %495 {strides = array<i32>} : memref<8x16x128xbf16, #tpu.memory_space<vmem>>, vector<1x16x128xbf16>,
    %cst_131 = arith.constant 0.000000e+00 : f32
    %496 = vector.shape_cast %487 : vector<16x1xi1> to vector<16x1xi1>
    %497 = vector.broadcast %496 : vector<16x1xi1> to vector<16x128xi1>
    %498 = vector.broadcast %cst_131 : f32 to vector<16x128xf32>
    %499 = arith.select %497, %481, %498 : vector<16x128xi1>, vector<16x128xf32>
    %500 = arith.truncf %499 : vector<16x128xf32> to vector<16x128xbf16>
    %c3_132 = arith.constant 3 : index
    %c0_133 = arith.constant 0 : index
    %c0_134 = arith.constant 0 : index
    %501 = vector.load %arg7[%c3_132, %c0_133, %c0_134] : memref<8x16x128xbf16, #tpu.memory_space<vmem>>, vector<1x16x128xbf16>
    %502 = vector.shape_cast %501 : vector<1x16x128xbf16> to vector<16x128xbf16>
    %503 = vector.shape_cast %500 : vector<16x128xbf16> to vector<1x16x128xbf16>
    tpu.vector_store %arg7[%c3_132, %c0_133, %c0_134], %503 {strides = array<i32>} : memref<8x16x128xbf16, #tpu.memory_space<vmem>>, vector<1x16x128xbf16>,
    %504 = arith.truncf %449 : vector<16x128xf32> to vector<16x128xbf16>
    %505 = vector.shape_cast %484 : vector<16x1xi1> to vector<16x1xi1>
    %506 = vector.broadcast %505 : vector<16x1xi1> to vector<16x128xi1>
    %507 = arith.select %506, %504, %407 : vector<16x128xi1>, vector<16x128xbf16>
    %508 = vector.shape_cast %484 : vector<16x1xi1> to vector<16x1xi1>
    %509 = vector.broadcast %508 : vector<16x1xi1> to vector<16x128xi1>
    %510 = arith.select %509, %447, %410 : vector<16x128xi1>, vector<16x128xf32>
    %511 = arith.truncf %481 : vector<16x128xf32> to vector<16x128xbf16>
    %512 = vector.shape_cast %487 : vector<16x1xi1> to vector<16x1xi1>
    %513 = vector.broadcast %512 : vector<16x1xi1> to vector<16x128xi1>
    %514 = arith.select %513, %511, %414 : vector<16x128xi1>, vector<16x128xbf16>
    %515 = vector.shape_cast %487 : vector<16x1xi1> to vector<16x1xi1>
    %516 = vector.broadcast %515 : vector<16x1xi1> to vector<16x128xi1>
    %517 = arith.select %516, %479, %417 : vector<16x128xi1>, vector<16x128xf32>
    %c0_135 = arith.constant 0 : index
    %c5_136 = arith.constant 5 : index
    %c0_137 = arith.constant 0 : index
    %c0_138 = arith.constant 0 : index
    %518 = vector.load %arg3[%c0_135, %c5_136, %c0_137, %c0_138] : memref<1x8x16x512xbf16, #tpu.memory_space<vmem>>, vector<1x1x16x512xbf16>
    %519 = vector.shape_cast %518 : vector<1x1x16x512xbf16> to vector<16x512xbf16>
    %520 = arith.extf %519 : vector<16x512xbf16> to vector<16x512xf32>
    %521 = vector.broadcast %5 : vector<1x512xf32> to vector<16x512xf32>
    %522 = arith.addf %520, %521 : vector<16x512xf32>
    %cst_139 = arith.constant dense<0.000000e+00> : vector<16x512xf32>
    %523 = tpu.matmul %507, %8, %cst_139 {dimension_numbers = #tpu.dot_dimension_numbers<[1], [0], [0], [1], [0, 0, 1, 1], [], []>} : vector<16x128xbf16>, vector<128x512xbf16>, vector<16x512xf32> -> vector<16x512xf32>
    %524 = arith.addf %522, %523 : vector<16x512xf32>
    %525 = vector.extract_strided_slice %524 {offsets = [0, 0], sizes = [16, 128], strides = [1, 1]} : vector<16x512xf32> to vector<16x128xf32>
    %526 = arith.negf %525 : vector<16x128xf32>
    %527 = math.exp %526 : vector<16x128xf32>
    %cst_140 = arith.constant 1.000000e+00 : f32
    %528 = vector.broadcast %cst_140 : f32 to vector<16x128xf32>
    %529 = arith.addf %528, %527 : vector<16x128xf32>
    %530 = arith.divf %528, %529 : vector<16x128xf32>
    %531 = vector.extract_strided_slice %524 {offsets = [0, 128], sizes = [16, 128], strides = [1, 1]} : vector<16x512xf32> to vector<16x128xf32>
    %532 = arith.negf %531 : vector<16x128xf32>
    %533 = math.exp %532 : vector<16x128xf32>
    %cst_141 = arith.constant 1.000000e+00 : f32
    %534 = vector.broadcast %cst_141 : f32 to vector<16x128xf32>
    %535 = arith.addf %534, %533 : vector<16x128xf32>
    %536 = arith.divf %534, %535 : vector<16x128xf32>
    %537 = vector.extract_strided_slice %524 {offsets = [0, 256], sizes = [16, 128], strides = [1, 1]} : vector<16x512xf32> to vector<16x128xf32>
    %538 = math.tanh %537 : vector<16x128xf32>
    %539 = vector.extract_strided_slice %524 {offsets = [0, 384], sizes = [16, 128], strides = [1, 1]} : vector<16x512xf32> to vector<16x128xf32>
    %540 = arith.negf %539 : vector<16x128xf32>
    %541 = math.exp %540 : vector<16x128xf32>
    %cst_142 = arith.constant 1.000000e+00 : f32
    %542 = vector.broadcast %cst_142 : f32 to vector<16x128xf32>
    %543 = arith.addf %542, %541 : vector<16x128xf32>
    %544 = arith.divf %542, %543 : vector<16x128xf32>
    %545 = arith.mulf %536, %510 : vector<16x128xf32>
    %546 = arith.mulf %530, %538 : vector<16x128xf32>
    %547 = arith.addf %545, %546 : vector<16x128xf32>
    %548 = math.tanh %547 : vector<16x128xf32>
    %549 = arith.mulf %544, %548 : vector<16x128xf32>
    %c0_143 = arith.constant 0 : index
    %c2_144 = arith.constant 2 : index
    %c0_145 = arith.constant 0 : index
    %c0_146 = arith.constant 0 : index
    %550 = vector.load %arg4[%c0_143, %c2_144, %c0_145, %c0_146] : memref<1x8x16x512xbf16, #tpu.memory_space<vmem>>, vector<1x1x16x512xbf16>
    %551 = vector.shape_cast %550 : vector<1x1x16x512xbf16> to vector<16x512xbf16>
    %552 = arith.extf %551 : vector<16x512xbf16> to vector<16x512xf32>
    %553 = vector.broadcast %6 : vector<1x512xf32> to vector<16x512xf32>
    %554 = arith.addf %552, %553 : vector<16x512xf32>
    %cst_147 = arith.constant dense<0.000000e+00> : vector<16x512xf32>
    %555 = tpu.matmul %514, %10, %cst_147 {dimension_numbers = #tpu.dot_dimension_numbers<[1], [0], [0], [1], [0, 0, 1, 1], [], []>} : vector<16x128xbf16>, vector<128x512xbf16>, vector<16x512xf32> -> vector<16x512xf32>
    %556 = arith.addf %554, %555 : vector<16x512xf32>
    %557 = vector.extract_strided_slice %556 {offsets = [0, 0], sizes = [16, 128], strides = [1, 1]} : vector<16x512xf32> to vector<16x128xf32>
    %558 = arith.negf %557 : vector<16x128xf32>
    %559 = math.exp %558 : vector<16x128xf32>
    %cst_148 = arith.constant 1.000000e+00 : f32
    %560 = vector.broadcast %cst_148 : f32 to vector<16x128xf32>
    %561 = arith.addf %560, %559 : vector<16x128xf32>
    %562 = arith.divf %560, %561 : vector<16x128xf32>
    %563 = vector.extract_strided_slice %556 {offsets = [0, 128], sizes = [16, 128], strides = [1, 1]} : vector<16x512xf32> to vector<16x128xf32>
    %564 = arith.negf %563 : vector<16x128xf32>
    %565 = math.exp %564 : vector<16x128xf32>
    %cst_149 = arith.constant 1.000000e+00 : f32
    %566 = vector.broadcast %cst_149 : f32 to vector<16x128xf32>
    %567 = arith.addf %566, %565 : vector<16x128xf32>
    %568 = arith.divf %566, %567 : vector<16x128xf32>
    %569 = vector.extract_strided_slice %556 {offsets = [0, 256], sizes = [16, 128], strides = [1, 1]} : vector<16x512xf32> to vector<16x128xf32>
    %570 = math.tanh %569 : vector<16x128xf32>
    %571 = vector.extract_strided_slice %556 {offsets = [0, 384], sizes = [16, 128], strides = [1, 1]} : vector<16x512xf32> to vector<16x128xf32>
    %572 = arith.negf %571 : vector<16x128xf32>
    %573 = math.exp %572 : vector<16x128xf32>
    %cst_150 = arith.constant 1.000000e+00 : f32
    %574 = vector.broadcast %cst_150 : f32 to vector<16x128xf32>
    %575 = arith.addf %574, %573 : vector<16x128xf32>
    %576 = arith.divf %574, %575 : vector<16x128xf32>
    %577 = arith.mulf %568, %517 : vector<16x128xf32>
    %578 = arith.mulf %562, %570 : vector<16x128xf32>
    %579 = arith.addf %577, %578 : vector<16x128xf32>
    %580 = math.tanh %579 : vector<16x128xf32>
    %581 = arith.mulf %576, %580 : vector<16x128xf32>
    %c5_i32_151 = arith.constant 5 : i32
    %582 = arith.addi %15, %c5_i32_151 : i32
    %583 = vector.broadcast %582 : i32 to vector<16x1xi32>
    %584 = arith.cmpi slt, %583, %3 : vector<16x1xi32>
    %c2_i32_152 = arith.constant 2 : i32
    %585 = arith.addi %17, %c2_i32_152 : i32
    %586 = vector.broadcast %585 : i32 to vector<16x1xi32>
    %587 = arith.cmpi slt, %586, %3 : vector<16x1xi32>
    %cst_153 = arith.constant 0.000000e+00 : f32
    %588 = vector.shape_cast %584 : vector<16x1xi1> to vector<16x1xi1>
    %589 = vector.broadcast %588 : vector<16x1xi1> to vector<16x128xi1>
    %590 = vector.broadcast %cst_153 : f32 to vector<16x128xf32>
    %591 = arith.select %589, %549, %590 : vector<16x128xi1>, vector<16x128xf32>
    %592 = arith.truncf %591 : vector<16x128xf32> to vector<16x128xbf16>
    %c5_154 = arith.constant 5 : index
    %c0_155 = arith.constant 0 : index
    %c0_156 = arith.constant 0 : index
    %593 = vector.load %arg6[%c5_154, %c0_155, %c0_156] : memref<8x16x128xbf16, #tpu.memory_space<vmem>>, vector<1x16x128xbf16>
    %594 = vector.shape_cast %593 : vector<1x16x128xbf16> to vector<16x128xbf16>
    %595 = vector.shape_cast %592 : vector<16x128xbf16> to vector<1x16x128xbf16>
    tpu.vector_store %arg6[%c5_154, %c0_155, %c0_156], %595 {strides = array<i32>} : memref<8x16x128xbf16, #tpu.memory_space<vmem>>, vector<1x16x128xbf16>,
    %cst_157 = arith.constant 0.000000e+00 : f32
    %596 = vector.shape_cast %587 : vector<16x1xi1> to vector<16x1xi1>
    %597 = vector.broadcast %596 : vector<16x1xi1> to vector<16x128xi1>
    %598 = vector.broadcast %cst_157 : f32 to vector<16x128xf32>
    %599 = arith.select %597, %581, %598 : vector<16x128xi1>, vector<16x128xf32>
    %600 = arith.truncf %599 : vector<16x128xf32> to vector<16x128xbf16>
    %c2_158 = arith.constant 2 : index
    %c0_159 = arith.constant 0 : index
    %c0_160 = arith.constant 0 : index
    %601 = vector.load %arg7[%c2_158, %c0_159, %c0_160] : memref<8x16x128xbf16, #tpu.memory_space<vmem>>, vector<1x16x128xbf16>
    %602 = vector.shape_cast %601 : vector<1x16x128xbf16> to vector<16x128xbf16>
    %603 = vector.shape_cast %600 : vector<16x128xbf16> to vector<1x16x128xbf16>
    tpu.vector_store %arg7[%c2_158, %c0_159, %c0_160], %603 {strides = array<i32>} : memref<8x16x128xbf16, #tpu.memory_space<vmem>>, vector<1x16x128xbf16>,
    %604 = arith.truncf %549 : vector<16x128xf32> to vector<16x128xbf16>
    %605 = vector.shape_cast %584 : vector<16x1xi1> to vector<16x1xi1>
    %606 = vector.broadcast %605 : vector<16x1xi1> to vector<16x128xi1>
    %607 = arith.select %606, %604, %507 : vector<16x128xi1>, vector<16x128xbf16>
    %608 = vector.shape_cast %584 : vector<16x1xi1> to vector<16x1xi1>
    %609 = vector.broadcast %608 : vector<16x1xi1> to vector<16x128xi1>
    %610 = arith.select %609, %547, %510 : vector<16x128xi1>, vector<16x128xf32>
    %611 = arith.truncf %581 : vector<16x128xf32> to vector<16x128xbf16>
    %612 = vector.shape_cast %587 : vector<16x1xi1> to vector<16x1xi1>
    %613 = vector.broadcast %612 : vector<16x1xi1> to vector<16x128xi1>
    %614 = arith.select %613, %611, %514 : vector<16x128xi1>, vector<16x128xbf16>
    %615 = vector.shape_cast %587 : vector<16x1xi1> to vector<16x1xi1>
    %616 = vector.broadcast %615 : vector<16x1xi1> to vector<16x128xi1>
    %617 = arith.select %616, %579, %517 : vector<16x128xi1>, vector<16x128xf32>
    %c0_161 = arith.constant 0 : index
    %c6_162 = arith.constant 6 : index
    %c0_163 = arith.constant 0 : index
    %c0_164 = arith.constant 0 : index
    %618 = vector.load %arg3[%c0_161, %c6_162, %c0_163, %c0_164] : memref<1x8x16x512xbf16, #tpu.memory_space<vmem>>, vector<1x1x16x512xbf16>
    %619 = vector.shape_cast %618 : vector<1x1x16x512xbf16> to vector<16x512xbf16>
    %620 = arith.extf %619 : vector<16x512xbf16> to vector<16x512xf32>
    %621 = vector.broadcast %5 : vector<1x512xf32> to vector<16x512xf32>
    %622 = arith.addf %620, %621 : vector<16x512xf32>
    %cst_165 = arith.constant dense<0.000000e+00> : vector<16x512xf32>
    %623 = tpu.matmul %607, %8, %cst_165 {dimension_numbers = #tpu.dot_dimension_numbers<[1], [0], [0], [1], [0, 0, 1, 1], [], []>} : vector<16x128xbf16>, vector<128x512xbf16>, vector<16x512xf32> -> vector<16x512xf32>
    %624 = arith.addf %622, %623 : vector<16x512xf32>
    %625 = vector.extract_strided_slice %624 {offsets = [0, 0], sizes = [16, 128], strides = [1, 1]} : vector<16x512xf32> to vector<16x128xf32>
    %626 = arith.negf %625 : vector<16x128xf32>
    %627 = math.exp %626 : vector<16x128xf32>
    %cst_166 = arith.constant 1.000000e+00 : f32
    %628 = vector.broadcast %cst_166 : f32 to vector<16x128xf32>
    %629 = arith.addf %628, %627 : vector<16x128xf32>
    %630 = arith.divf %628, %629 : vector<16x128xf32>
    %631 = vector.extract_strided_slice %624 {offsets = [0, 128], sizes = [16, 128], strides = [1, 1]} : vector<16x512xf32> to vector<16x128xf32>
    %632 = arith.negf %631 : vector<16x128xf32>
    %633 = math.exp %632 : vector<16x128xf32>
    %cst_167 = arith.constant 1.000000e+00 : f32
    %634 = vector.broadcast %cst_167 : f32 to vector<16x128xf32>
    %635 = arith.addf %634, %633 : vector<16x128xf32>
    %636 = arith.divf %634, %635 : vector<16x128xf32>
    %637 = vector.extract_strided_slice %624 {offsets = [0, 256], sizes = [16, 128], strides = [1, 1]} : vector<16x512xf32> to vector<16x128xf32>
    %638 = math.tanh %637 : vector<16x128xf32>
    %639 = vector.extract_strided_slice %624 {offsets = [0, 384], sizes = [16, 128], strides = [1, 1]} : vector<16x512xf32> to vector<16x128xf32>
    %640 = arith.negf %639 : vector<16x128xf32>
    %641 = math.exp %640 : vector<16x128xf32>
    %cst_168 = arith.constant 1.000000e+00 : f32
    %642 = vector.broadcast %cst_168 : f32 to vector<16x128xf32>
    %643 = arith.addf %642, %641 : vector<16x128xf32>
    %644 = arith.divf %642, %643 : vector<16x128xf32>
    %645 = arith.mulf %636, %610 : vector<16x128xf32>
    %646 = arith.mulf %630, %638 : vector<16x128xf32>
    %647 = arith.addf %645, %646 : vector<16x128xf32>
    %648 = math.tanh %647 : vector<16x128xf32>
    %649 = arith.mulf %644, %648 : vector<16x128xf32>
    %c0_169 = arith.constant 0 : index
    %c1_170 = arith.constant 1 : index
    %c0_171 = arith.constant 0 : index
    %c0_172 = arith.constant 0 : index
    %650 = vector.load %arg4[%c0_169, %c1_170, %c0_171, %c0_172] : memref<1x8x16x512xbf16, #tpu.memory_space<vmem>>, vector<1x1x16x512xbf16>
    %651 = vector.shape_cast %650 : vector<1x1x16x512xbf16> to vector<16x512xbf16>
    %652 = arith.extf %651 : vector<16x512xbf16> to vector<16x512xf32>
    %653 = vector.broadcast %6 : vector<1x512xf32> to vector<16x512xf32>
    %654 = arith.addf %652, %653 : vector<16x512xf32>
    %cst_173 = arith.constant dense<0.000000e+00> : vector<16x512xf32>
    %655 = tpu.matmul %614, %10, %cst_173 {dimension_numbers = #tpu.dot_dimension_numbers<[1], [0], [0], [1], [0, 0, 1, 1], [], []>} : vector<16x128xbf16>, vector<128x512xbf16>, vector<16x512xf32> -> vector<16x512xf32>
    %656 = arith.addf %654, %655 : vector<16x512xf32>
    %657 = vector.extract_strided_slice %656 {offsets = [0, 0], sizes = [16, 128], strides = [1, 1]} : vector<16x512xf32> to vector<16x128xf32>
    %658 = arith.negf %657 : vector<16x128xf32>
    %659 = math.exp %658 : vector<16x128xf32>
    %cst_174 = arith.constant 1.000000e+00 : f32
    %660 = vector.broadcast %cst_174 : f32 to vector<16x128xf32>
    %661 = arith.addf %660, %659 : vector<16x128xf32>
    %662 = arith.divf %660, %661 : vector<16x128xf32>
    %663 = vector.extract_strided_slice %656 {offsets = [0, 128], sizes = [16, 128], strides = [1, 1]} : vector<16x512xf32> to vector<16x128xf32>
    %664 = arith.negf %663 : vector<16x128xf32>
    %665 = math.exp %664 : vector<16x128xf32>
    %cst_175 = arith.constant 1.000000e+00 : f32
    %666 = vector.broadcast %cst_175 : f32 to vector<16x128xf32>
    %667 = arith.addf %666, %665 : vector<16x128xf32>
    %668 = arith.divf %666, %667 : vector<16x128xf32>
    %669 = vector.extract_strided_slice %656 {offsets = [0, 256], sizes = [16, 128], strides = [1, 1]} : vector<16x512xf32> to vector<16x128xf32>
    %670 = math.tanh %669 : vector<16x128xf32>
    %671 = vector.extract_strided_slice %656 {offsets = [0, 384], sizes = [16, 128], strides = [1, 1]} : vector<16x512xf32> to vector<16x128xf32>
    %672 = arith.negf %671 : vector<16x128xf32>
    %673 = math.exp %672 : vector<16x128xf32>
    %cst_176 = arith.constant 1.000000e+00 : f32
    %674 = vector.broadcast %cst_176 : f32 to vector<16x128xf32>
    %675 = arith.addf %674, %673 : vector<16x128xf32>
    %676 = arith.divf %674, %675 : vector<16x128xf32>
    %677 = arith.mulf %668, %617 : vector<16x128xf32>
    %678 = arith.mulf %662, %670 : vector<16x128xf32>
    %679 = arith.addf %677, %678 : vector<16x128xf32>
    %680 = math.tanh %679 : vector<16x128xf32>
    %681 = arith.mulf %676, %680 : vector<16x128xf32>
    %c6_i32_177 = arith.constant 6 : i32
    %682 = arith.addi %15, %c6_i32_177 : i32
    %683 = vector.broadcast %682 : i32 to vector<16x1xi32>
    %684 = arith.cmpi slt, %683, %3 : vector<16x1xi32>
    %c1_i32_178 = arith.constant 1 : i32
    %685 = arith.addi %17, %c1_i32_178 : i32
    %686 = vector.broadcast %685 : i32 to vector<16x1xi32>
    %687 = arith.cmpi slt, %686, %3 : vector<16x1xi32>
    %cst_179 = arith.constant 0.000000e+00 : f32
    %688 = vector.shape_cast %684 : vector<16x1xi1> to vector<16x1xi1>
    %689 = vector.broadcast %688 : vector<16x1xi1> to vector<16x128xi1>
    %690 = vector.broadcast %cst_179 : f32 to vector<16x128xf32>
    %691 = arith.select %689, %649, %690 : vector<16x128xi1>, vector<16x128xf32>
    %692 = arith.truncf %691 : vector<16x128xf32> to vector<16x128xbf16>
    %c6_180 = arith.constant 6 : index
    %c0_181 = arith.constant 0 : index
    %c0_182 = arith.constant 0 : index
    %693 = vector.load %arg6[%c6_180, %c0_181, %c0_182] : memref<8x16x128xbf16, #tpu.memory_space<vmem>>, vector<1x16x128xbf16>
    %694 = vector.shape_cast %693 : vector<1x16x128xbf16> to vector<16x128xbf16>
    %695 = vector.shape_cast %692 : vector<16x128xbf16> to vector<1x16x128xbf16>
    tpu.vector_store %arg6[%c6_180, %c0_181, %c0_182], %695 {strides = array<i32>} : memref<8x16x128xbf16, #tpu.memory_space<vmem>>, vector<1x16x128xbf16>,
    %cst_183 = arith.constant 0.000000e+00 : f32
    %696 = vector.shape_cast %687 : vector<16x1xi1> to vector<16x1xi1>
    %697 = vector.broadcast %696 : vector<16x1xi1> to vector<16x128xi1>
    %698 = vector.broadcast %cst_183 : f32 to vector<16x128xf32>
    %699 = arith.select %697, %681, %698 : vector<16x128xi1>, vector<16x128xf32>
    %700 = arith.truncf %699 : vector<16x128xf32> to vector<16x128xbf16>
    %c1_184 = arith.constant 1 : index
    %c0_185 = arith.constant 0 : index
    %c0_186 = arith.constant 0 : index
    %701 = vector.load %arg7[%c1_184, %c0_185, %c0_186] : memref<8x16x128xbf16, #tpu.memory_space<vmem>>, vector<1x16x128xbf16>
    %702 = vector.shape_cast %701 : vector<1x16x128xbf16> to vector<16x128xbf16>
    %703 = vector.shape_cast %700 : vector<16x128xbf16> to vector<1x16x128xbf16>
    tpu.vector_store %arg7[%c1_184, %c0_185, %c0_186], %703 {strides = array<i32>} : memref<8x16x128xbf16, #tpu.memory_space<vmem>>, vector<1x16x128xbf16>,
    %704 = arith.truncf %649 : vector<16x128xf32> to vector<16x128xbf16>
    %705 = vector.shape_cast %684 : vector<16x1xi1> to vector<16x1xi1>
    %706 = vector.broadcast %705 : vector<16x1xi1> to vector<16x128xi1>
    %707 = arith.select %706, %704, %607 : vector<16x128xi1>, vector<16x128xbf16>
    %708 = vector.shape_cast %684 : vector<16x1xi1> to vector<16x1xi1>
    %709 = vector.broadcast %708 : vector<16x1xi1> to vector<16x128xi1>
    %710 = arith.select %709, %647, %610 : vector<16x128xi1>, vector<16x128xf32>
    %711 = arith.truncf %681 : vector<16x128xf32> to vector<16x128xbf16>
    %712 = vector.shape_cast %687 : vector<16x1xi1> to vector<16x1xi1>
    %713 = vector.broadcast %712 : vector<16x1xi1> to vector<16x128xi1>
    %714 = arith.select %713, %711, %614 : vector<16x128xi1>, vector<16x128xbf16>
    %715 = vector.shape_cast %687 : vector<16x1xi1> to vector<16x1xi1>
    %716 = vector.broadcast %715 : vector<16x1xi1> to vector<16x128xi1>
    %717 = arith.select %716, %679, %617 : vector<16x128xi1>, vector<16x128xf32>
    %c0_187 = arith.constant 0 : index
    %c7_188 = arith.constant 7 : index
    %c0_189 = arith.constant 0 : index
    %c0_190 = arith.constant 0 : index
    %718 = vector.load %arg3[%c0_187, %c7_188, %c0_189, %c0_190] : memref<1x8x16x512xbf16, #tpu.memory_space<vmem>>, vector<1x1x16x512xbf16>
    %719 = vector.shape_cast %718 : vector<1x1x16x512xbf16> to vector<16x512xbf16>
    %720 = arith.extf %719 : vector<16x512xbf16> to vector<16x512xf32>
    %721 = vector.broadcast %5 : vector<1x512xf32> to vector<16x512xf32>
    %722 = arith.addf %720, %721 : vector<16x512xf32>
    %cst_191 = arith.constant dense<0.000000e+00> : vector<16x512xf32>
    %723 = tpu.matmul %707, %8, %cst_191 {dimension_numbers = #tpu.dot_dimension_numbers<[1], [0], [0], [1], [0, 0, 1, 1], [], []>} : vector<16x128xbf16>, vector<128x512xbf16>, vector<16x512xf32> -> vector<16x512xf32>
    %724 = arith.addf %722, %723 : vector<16x512xf32>
    %725 = vector.extract_strided_slice %724 {offsets = [0, 0], sizes = [16, 128], strides = [1, 1]} : vector<16x512xf32> to vector<16x128xf32>
    %726 = arith.negf %725 : vector<16x128xf32>
    %727 = math.exp %726 : vector<16x128xf32>
    %cst_192 = arith.constant 1.000000e+00 : f32
    %728 = vector.broadcast %cst_192 : f32 to vector<16x128xf32>
    %729 = arith.addf %728, %727 : vector<16x128xf32>
    %730 = arith.divf %728, %729 : vector<16x128xf32>
    %731 = vector.extract_strided_slice %724 {offsets = [0, 128], sizes = [16, 128], strides = [1, 1]} : vector<16x512xf32> to vector<16x128xf32>
    %732 = arith.negf %731 : vector<16x128xf32>
    %733 = math.exp %732 : vector<16x128xf32>
    %cst_193 = arith.constant 1.000000e+00 : f32
    %734 = vector.broadcast %cst_193 : f32 to vector<16x128xf32>
    %735 = arith.addf %734, %733 : vector<16x128xf32>
    %736 = arith.divf %734, %735 : vector<16x128xf32>
    %737 = vector.extract_strided_slice %724 {offsets = [0, 256], sizes = [16, 128], strides = [1, 1]} : vector<16x512xf32> to vector<16x128xf32>
    %738 = math.tanh %737 : vector<16x128xf32>
    %739 = vector.extract_strided_slice %724 {offsets = [0, 384], sizes = [16, 128], strides = [1, 1]} : vector<16x512xf32> to vector<16x128xf32>
    %740 = arith.negf %739 : vector<16x128xf32>
    %741 = math.exp %740 : vector<16x128xf32>
    %cst_194 = arith.constant 1.000000e+00 : f32
    %742 = vector.broadcast %cst_194 : f32 to vector<16x128xf32>
    %743 = arith.addf %742, %741 : vector<16x128xf32>
    %744 = arith.divf %742, %743 : vector<16x128xf32>
    %745 = arith.mulf %736, %710 : vector<16x128xf32>
    %746 = arith.mulf %730, %738 : vector<16x128xf32>
    %747 = arith.addf %745, %746 : vector<16x128xf32>
    %748 = math.tanh %747 : vector<16x128xf32>
    %749 = arith.mulf %744, %748 : vector<16x128xf32>
    %c0_195 = arith.constant 0 : index
    %c0_196 = arith.constant 0 : index
    %c0_197 = arith.constant 0 : index
    %c0_198 = arith.constant 0 : index
    %750 = vector.load %arg4[%c0_195, %c0_196, %c0_197, %c0_198] : memref<1x8x16x512xbf16, #tpu.memory_space<vmem>>, vector<1x1x16x512xbf16>
    %751 = vector.shape_cast %750 : vector<1x1x16x512xbf16> to vector<16x512xbf16>
    %752 = arith.extf %751 : vector<16x512xbf16> to vector<16x512xf32>
    %753 = vector.broadcast %6 : vector<1x512xf32> to vector<16x512xf32>
    %754 = arith.addf %752, %753 : vector<16x512xf32>
    %cst_199 = arith.constant dense<0.000000e+00> : vector<16x512xf32>
    %755 = tpu.matmul %714, %10, %cst_199 {dimension_numbers = #tpu.dot_dimension_numbers<[1], [0], [0], [1], [0, 0, 1, 1], [], []>} : vector<16x128xbf16>, vector<128x512xbf16>, vector<16x512xf32> -> vector<16x512xf32>
    %756 = arith.addf %754, %755 : vector<16x512xf32>
    %757 = vector.extract_strided_slice %756 {offsets = [0, 0], sizes = [16, 128], strides = [1, 1]} : vector<16x512xf32> to vector<16x128xf32>
    %758 = arith.negf %757 : vector<16x128xf32>
    %759 = math.exp %758 : vector<16x128xf32>
    %cst_200 = arith.constant 1.000000e+00 : f32
    %760 = vector.broadcast %cst_200 : f32 to vector<16x128xf32>
    %761 = arith.addf %760, %759 : vector<16x128xf32>
    %762 = arith.divf %760, %761 : vector<16x128xf32>
    %763 = vector.extract_strided_slice %756 {offsets = [0, 128], sizes = [16, 128], strides = [1, 1]} : vector<16x512xf32> to vector<16x128xf32>
    %764 = arith.negf %763 : vector<16x128xf32>
    %765 = math.exp %764 : vector<16x128xf32>
    %cst_201 = arith.constant 1.000000e+00 : f32
    %766 = vector.broadcast %cst_201 : f32 to vector<16x128xf32>
    %767 = arith.addf %766, %765 : vector<16x128xf32>
    %768 = arith.divf %766, %767 : vector<16x128xf32>
    %769 = vector.extract_strided_slice %756 {offsets = [0, 256], sizes = [16, 128], strides = [1, 1]} : vector<16x512xf32> to vector<16x128xf32>
    %770 = math.tanh %769 : vector<16x128xf32>
    %771 = vector.extract_strided_slice %756 {offsets = [0, 384], sizes = [16, 128], strides = [1, 1]} : vector<16x512xf32> to vector<16x128xf32>
    %772 = arith.negf %771 : vector<16x128xf32>
    %773 = math.exp %772 : vector<16x128xf32>
    %cst_202 = arith.constant 1.000000e+00 : f32
    %774 = vector.broadcast %cst_202 : f32 to vector<16x128xf32>
    %775 = arith.addf %774, %773 : vector<16x128xf32>
    %776 = arith.divf %774, %775 : vector<16x128xf32>
    %777 = arith.mulf %768, %717 : vector<16x128xf32>
    %778 = arith.mulf %762, %770 : vector<16x128xf32>
    %779 = arith.addf %777, %778 : vector<16x128xf32>
    %780 = math.tanh %779 : vector<16x128xf32>
    %781 = arith.mulf %776, %780 : vector<16x128xf32>
    %c7_i32_203 = arith.constant 7 : i32
    %782 = arith.addi %15, %c7_i32_203 : i32
    %783 = vector.broadcast %782 : i32 to vector<16x1xi32>
    %784 = arith.cmpi slt, %783, %3 : vector<16x1xi32>
    %c0_i32_204 = arith.constant 0 : i32
    %785 = arith.addi %17, %c0_i32_204 : i32
    %786 = vector.broadcast %785 : i32 to vector<16x1xi32>
    %787 = arith.cmpi slt, %786, %3 : vector<16x1xi32>
    %cst_205 = arith.constant 0.000000e+00 : f32
    %788 = vector.shape_cast %784 : vector<16x1xi1> to vector<16x1xi1>
    %789 = vector.broadcast %788 : vector<16x1xi1> to vector<16x128xi1>
    %790 = vector.broadcast %cst_205 : f32 to vector<16x128xf32>
    %791 = arith.select %789, %749, %790 : vector<16x128xi1>, vector<16x128xf32>
    %792 = arith.truncf %791 : vector<16x128xf32> to vector<16x128xbf16>
    %c7_206 = arith.constant 7 : index
    %c0_207 = arith.constant 0 : index
    %c0_208 = arith.constant 0 : index
    %793 = vector.load %arg6[%c7_206, %c0_207, %c0_208] : memref<8x16x128xbf16, #tpu.memory_space<vmem>>, vector<1x16x128xbf16>
    %794 = vector.shape_cast %793 : vector<1x16x128xbf16> to vector<16x128xbf16>
    %795 = vector.shape_cast %792 : vector<16x128xbf16> to vector<1x16x128xbf16>
    tpu.vector_store %arg6[%c7_206, %c0_207, %c0_208], %795 {strides = array<i32>} : memref<8x16x128xbf16, #tpu.memory_space<vmem>>, vector<1x16x128xbf16>,
    %cst_209 = arith.constant 0.000000e+00 : f32
    %796 = vector.shape_cast %787 : vector<16x1xi1> to vector<16x1xi1>
    %797 = vector.broadcast %796 : vector<16x1xi1> to vector<16x128xi1>
    %798 = vector.broadcast %cst_209 : f32 to vector<16x128xf32>
    %799 = arith.select %797, %781, %798 : vector<16x128xi1>, vector<16x128xf32>
    %800 = arith.truncf %799 : vector<16x128xf32> to vector<16x128xbf16>
    %c0_210 = arith.constant 0 : index
    %c0_211 = arith.constant 0 : index
    %c0_212 = arith.constant 0 : index
    %801 = vector.load %arg7[%c0_210, %c0_211, %c0_212] : memref<8x16x128xbf16, #tpu.memory_space<vmem>>, vector<1x16x128xbf16>
    %802 = vector.shape_cast %801 : vector<1x16x128xbf16> to vector<16x128xbf16>
    %803 = vector.shape_cast %800 : vector<16x128xbf16> to vector<1x16x128xbf16>
    tpu.vector_store %arg7[%c0_210, %c0_211, %c0_212], %803 {strides = array<i32>} : memref<8x16x128xbf16, #tpu.memory_space<vmem>>, vector<1x16x128xbf16>,
    %804 = arith.truncf %749 : vector<16x128xf32> to vector<16x128xbf16>
    %805 = vector.shape_cast %784 : vector<16x1xi1> to vector<16x1xi1>
    %806 = vector.broadcast %805 : vector<16x1xi1> to vector<16x128xi1>
    %807 = arith.select %806, %804, %707 : vector<16x128xi1>, vector<16x128xbf16>
    %808 = vector.shape_cast %784 : vector<16x1xi1> to vector<16x1xi1>
    %809 = vector.broadcast %808 : vector<16x1xi1> to vector<16x128xi1>
    %810 = arith.select %809, %747, %710 : vector<16x128xi1>, vector<16x128xf32>
    %811 = arith.truncf %781 : vector<16x128xf32> to vector<16x128xbf16>
    %812 = vector.shape_cast %787 : vector<16x1xi1> to vector<16x1xi1>
    %813 = vector.broadcast %812 : vector<16x1xi1> to vector<16x128xi1>
    %814 = arith.select %813, %811, %714 : vector<16x128xi1>, vector<16x128xbf16>
    %815 = vector.shape_cast %787 : vector<16x1xi1> to vector<16x1xi1>
    %816 = vector.broadcast %815 : vector<16x1xi1> to vector<16x128xi1>
    %817 = arith.select %816, %779, %717 : vector<16x128xi1>, vector<16x128xf32>
    %c0_213 = arith.constant 0 : index
    %c0_214 = arith.constant 0 : index
    %818 = vector.load %arg8[%c0_213, %c0_214] : memref<16x128xbf16, #tpu.memory_space<vmem>>, vector<16x128xbf16>
    tpu.vector_store %arg8[%c0_213, %c0_214], %807 {strides = array<i32>} : memref<16x128xbf16, #tpu.memory_space<vmem>>, vector<16x128xbf16>,
    %c0_215 = arith.constant 0 : index
    %c0_216 = arith.constant 0 : index
    %819 = vector.load %arg9[%c0_215, %c0_216] : memref<16x128xf32, #tpu.memory_space<vmem>>, vector<16x128xf32>
    tpu.vector_store %arg9[%c0_215, %c0_216], %810 {strides = array<i32>} : memref<16x128xf32, #tpu.memory_space<vmem>>, vector<16x128xf32>,
    %c0_217 = arith.constant 0 : index
    %c0_218 = arith.constant 0 : index
    %820 = vector.load %arg10[%c0_217, %c0_218] : memref<16x128xbf16, #tpu.memory_space<vmem>>, vector<16x128xbf16>
    tpu.vector_store %arg10[%c0_217, %c0_218], %814 {strides = array<i32>} : memref<16x128xbf16, #tpu.memory_space<vmem>>, vector<16x128xbf16>,
    %c0_219 = arith.constant 0 : index
    %c0_220 = arith.constant 0 : index
    %821 = vector.load %arg11[%c0_219, %c0_220] : memref<16x128xf32, #tpu.memory_space<vmem>>, vector<16x128xf32>
    tpu.vector_store %arg11[%c0_219, %c0_220], %817 {strides = array<i32>} : memref<16x128xf32, #tpu.memory_space<vmem>>, vector<16x128xf32>,
    return
  }
  func.func @transform_0(%arg0: i32) -> (i32, i32) {
    %c0_i32 = arith.constant 0 : i32
    %c0_i32_0 = arith.constant 0 : i32
    %c0_i32_1 = arith.constant 0 : i32
    return %c0_i32, %c0_i32_0 : i32, i32
  }
  func.func @transform_1(%arg0: i32) -> (i32, i32) {
    %c0_i32 = arith.constant 0 : i32
    %c0_i32_0 = arith.constant 0 : i32
    %c0_i32_1 = arith.constant 0 : i32
    return %c0_i32, %c0_i32_0 : i32, i32
  }
  func.func @transform_2(%arg0: i32) -> (i32, i32, i32, i32) {
    %c0_i32 = arith.constant 0 : i32
    %c0_i32_0 = arith.constant 0 : i32
    %c0_i32_1 = arith.constant 0 : i32
    %c0_i32_2 = arith.constant 0 : i32
    return %c0_i32, %arg0, %c0_i32_0, %c0_i32_1 : i32, i32, i32, i32
  }
  func.func @transform_3(%arg0: i32) -> (i32, i32, i32, i32) {
    %c1_i32 = arith.constant 1 : i32
    %0 = arith.subi %c1_i32, %arg0 : i32
    %c1_i32_0 = arith.constant 1 : i32
    %c0_i32 = arith.constant 0 : i32
    %c0_i32_1 = arith.constant 0 : i32
    %c0_i32_2 = arith.constant 0 : i32
    return %c1_i32_0, %0, %c0_i32, %c0_i32_1 : i32, i32, i32, i32
  }
  func.func @transform_4(%arg0: i32) -> (i32, i32, i32) {
    %c0_i32 = arith.constant 0 : i32
    %c0_i32_0 = arith.constant 0 : i32
    %c0_i32_1 = arith.constant 0 : i32
    %c0_i32_2 = arith.constant 0 : i32
    return %c0_i32, %c0_i32_0, %c0_i32_1 : i32, i32, i32
  }
  func.func @transform_5(%arg0: i32) -> (i32, i32, i32) {
    %c0_i32 = arith.constant 0 : i32
    %c0_i32_0 = arith.constant 0 : i32
    %c0_i32_1 = arith.constant 0 : i32
    return %arg0, %c0_i32, %c0_i32_0 : i32, i32, i32
  }
  func.func @transform_6(%arg0: i32) -> (i32, i32, i32) {
    %c1_i32 = arith.constant 1 : i32
    %0 = arith.subi %c1_i32, %arg0 : i32
    %c0_i32 = arith.constant 0 : i32
    %c0_i32_0 = arith.constant 0 : i32
    %c0_i32_1 = arith.constant 0 : i32
    return %0, %c0_i32, %c0_i32_0 : i32, i32, i32
  }
}

</mosaic_0001>

<bundles_post_ra>
// kernel: padded_lstm_forward.2
= control target key start
LH: loop header
LB: loop body
LE: loop exit
PB: predicated region body
PF: predicated region fallthrough
CT: control target
= control target key end

     0   :  { %s6053_s21 = smov 0   ;;  %s9781_s0 = inlined_call_operand.vmem [shape: s32[16,1], index: 0, kind: input, shape index: {}]   ;;  %s9782_s1 = inlined_call_operand.vmem [shape: f32[2,512], index: 1, kind: input, shape index: {}]   ;;  %s9783_s2 = inlined_call_operand.vmem [shape: bf16[2,16,16,512], index: 2, kind: input, shape index: {}, may-alias: {2,3}]   ;;  %s9784_s3 = inlined_call_operand.vmem [shape: bf16[2,16,16,512], index: 3, kind: input, shape index: {}, may-alias: {2,3}]   ;;  %s9785_s4 = inlined_call_operand.vmem [shape: bf16[2,128,512], index: 4, kind: input, shape index: {}]   ;;  %s9786_s5 = inlined_call_operand.vmem [shape: bf16[16,16,128], index: 5, kind: output, shape index: {0}]   ;;  %s9787_s6 = inlined_call_operand.vmem [shape: bf16[16,16,128], index: 6, kind: output, shape index: {1}]  }
   0x1 LB: > { %s4813_s22 = sadd.s32 4294967295, %s6013_s21   ;;  %p4817_p0 = scmp.ge.s32.totalorder %s6013_s21, 1  ;;  %s6013_s21 = sphi %s6053_s21, %s17_s21  }
   0x2   : > { %p236_p1 = scmp.lt.s32.totalorder %s6013_s21, 3 }
   0x4   : > { %p237_p2 = pnand %p4817_p0, %p236_p1 }
   0x6   : > { %240 = sbr.rel (%p237_p2) target bundleno = 1656 (0x678), region = 40 }
   0xb   : > { %s6061_s23 = sshll.u32 %s4813_s22, 3  ;;  %s290_s24 = ssub.s32 1, %s4813_s22 }
   0xc   : > { %p284_p3 = scmp.lt.s32.totalorder %s6061_s23, 15  ;;  %s6064_s25 = sshll.u32 %s290_s24, 3 }
   0xd   : > { %p292_p4 = scmp.lt.s32.totalorder %s6064_s25, 15  ;;  %p4830_p5 = scmp.ne.s32.totalorder %s4813_s22, 0 }
   0xe   : > { %s285_s26 = scalar_select %p284_p3, %s6061_s23, 15 }
   0xf   : > { %s293_s27 = scalar_select %p292_p4, %s6064_s25, 15 }
  0x10   : > { %s5315_s28 = sshll.u32 %s285_s26, 5  ;;  %s5317_s29 = sshll.u32 %s285_s26, 3 }
  0x11   : > { %s6072_s8 = scalar_lea.vmem %s9783_s2, %s5315_s28  ;;  %s5316_s9 = sshll.u32 %s293_s27, 5 }
  0x12   : > { %s6077_s12 = scalar_lea.vmem %s9784_s3, %s5316_s9  ;;  %s6082_s15 = scalar_lea.vmem %s9786_s5, %s5317_s29 }
  0x13   : > { %s5318_s16 = sshll.u32 %s293_s27, 3  ;;  %320 = sbr.rel (%p4830_p5) target bundleno = 33 (0x21), region = 44 }
  0x14   : > { %s6087_s19 = scalar_lea.vmem %s9787_s6, %s5318_s16 }
  0x18   : > { %v6015_v0 = vmov 0   ;;  %v6016_v1 = vmov 0.0  }
  0x19   : > { %321 = vst [vmem:[#allocation2] sm:$0xf] %v6015_v0 }
  0x1a   : > { %322 = vst [vmem:[#allocation2 + $0x4] sm:$0xf] %v6015_v0 }
  0x1b   : > { %325 = vst [vmem:[#allocation4] sm:$0xf] %v6015_v0 }
  0x1c   : > { %326 = vst [vmem:[#allocation4 + $0x4] sm:$0xf] %v6015_v0 }
  0x1d   : > { %323 = vst [vmem:[#allocation3] sm:$0xff] %v6016_v1 }
  0x1e   : > { %324 = vst [vmem:[#allocation3 + $0x8] sm:$0xff] %v6016_v1 }
  0x1f   : > { %327 = vst [vmem:[#allocation5 + $0x8] sm:$0xff] %v6016_v1 }
  0x20   : > { %328 = vst [vmem:[#allocation5] sm:$0xff] %v6016_v1 }
  0x21 PF: > { %v4983_v2 = vld [vmem:[%s9785_s4 + $0xe0] sm:$0xf]  ;;  %v5349_v3 = vld [vmem:[%s9785_s4 + $0xec] sm:$0xf0]  ;;  %v5347_v4 = vld [vmem:[%s9785_s4 + $0xe4] sm:$0xf]  ;;  %v1186_v43 = vstv %s6061_s23 }
  0x22   : > { %v6098_v5 = vor.u32 %v5349_v3, %v4983_v2  ;;  %v4985_v6 = vld [vmem:[%s9785_s4 + $0xf0] sm:$0xf0]  ;;  %v5348_v7 = vld [vmem:[%s9785_s4 + $0xec] sm:$0xf]  ;;  %v4993_v8 = vld [vmem:[%s9785_s4 + $0xf8] sm:$0xf0] }
  0x23   : > { %v6109_v9 = vor.u32 %v5347_v4, %v4985_v6  ;;  %v6111_v10 = vor.u32 %v5348_v7, %v4993_v8  ;;  %v4967_v11 = vld [vmem:[%s9785_s4 + $0xc0] sm:$0xf]  ;;  %v5345_v12 = vld [vmem:[%s9785_s4 + $0xcc] sm:$0xf0]  ;;  %v5343_v13 = vld [vmem:[%s9785_s4 + $0xc4] sm:$0xf] }
  0x24   : > { %607 = vmatpush.bf16.msra.mxu0 %v6098_v5  ;;  %v6123_v14 = vor.u32 %v5345_v12, %v4967_v11  ;;  %v4969_v15 = vld [vmem:[%s9785_s4 + $0xd0] sm:$0xf0]  ;;  %v5344_v16 = vld [vmem:[%s9785_s4 + $0xcc] sm:$0xf]  ;;  %v4977_v17 = vld [vmem:[%s9785_s4 + $0xd8] sm:$0xf0] }
  0x25   : > { %621 = vmatpush.bf16.msra.mxu1 %v6109_v9  ;;  %649 = vmatpush.bf16.msra.mxu3 %v6111_v10  ;;  %v6136_v18 = vor.u32 %v5343_v13, %v4969_v15  ;;  %v6138_v19 = vor.u32 %v5344_v16, %v4977_v17  ;;  %v4991_v20 = vld [vmem:[%s9785_s4 + $0xe8] sm:$0xf]  ;;  %v5350_v21 = vld [vmem:[%s9785_s4 + $0xf4] sm:$0xf0]  ;;  %v4951_v22 = vld [vmem:[%s9785_s4 + $0xa0] sm:$0xf] }
  0x26   : > { %v6149_v23 = vor.u32 %v5350_v21, %v4991_v20  ;;  %v5341_v24 = vld [vmem:[%s9785_s4 + $0xac] sm:$0xf0]  ;;  %v5339_v25 = vld [vmem:[%s9785_s4 + $0xa4] sm:$0xf]  ;;  %v4953_v26 = vld [vmem:[%s9785_s4 + $0xb0] sm:$0xf0] }
  0x27   : > { %v5340_v27 = vld [vmem:[%s9785_s4 + $0xac] sm:$0xf]  ;;  %v4961_v28 = vld [vmem:[%s9785_s4 + $0xb8] sm:$0xf0]  ;;  %v4975_v29 = vld [vmem:[%s9785_s4 + $0xc8] sm:$0xf]  ;;  %v6171_v30 = vor.u32 %v5341_v24, %v4951_v22  ;;  %v6184_v34 = vor.u32 %v5339_v25, %v4953_v26 }
  0x28   : > { %608 = vmatpush.bf16.msra.mxu0 %v6123_v14  ;;  %635 = vmatpush.bf16.msra.mxu2 %v6149_v23  ;;  %v5346_v31 = vld [vmem:[%s9785_s4 + $0xd4] sm:$0xf0]  ;;  %v4935_v32 = vld [vmem:[%s9785_s4 + $0x80] sm:$0xf]  ;;  %v5337_v33 = vld [vmem:[%s9785_s4 + $0x8c] sm:$0xf0]  ;;  %v6186_v35 = vor.u32 %v5340_v27, %v4961_v28 }
  0x29   : > { %622 = vmatpush.bf16.msra.mxu1 %v6136_v18  ;;  %650 = vmatpush.bf16.msra.mxu3 %v6138_v19  ;;  %v6188_v36 = vor.u32 %v5346_v31, %v4975_v29  ;;  %v5335_v37 = vld [vmem:[%s9785_s4 + $0x84] sm:$0xf]  ;;  %v4937_v38 = vld [vmem:[%s9785_s4 + $0x90] sm:$0xf0]  ;;  %v5336_v39 = vld [vmem:[%s9785_s4 + $0x8c] sm:$0xf]  ;;  %v6211_v44 = vor.u32 %v5337_v33, %v4935_v32 }
  0x2a   : > { %v4945_v40 = vld [vmem:[%s9785_s4 + $0x98] sm:$0xf0]  ;;  %v4959_v41 = vld [vmem:[%s9785_s4 + $0xa8] sm:$0xf]  ;;  %v5342_v42 = vld [vmem:[%s9785_s4 + $0xb4] sm:$0xf0]  ;;  %v6226_v49 = vor.u32 %v5335_v37, %v4937_v38 }
  0x2b   : > { %v6213_v45 = vor.u32 %v5342_v42, %v4959_v41  ;;  %v4919_v46 = vld [vmem:[%s9785_s4 + $0x60] sm:$0xf]  ;;  %v5333_v47 = vld [vmem:[%s9785_s4 + $0x6c] sm:$0xf0]  ;;  %v5331_v48 = vld [vmem:[%s9785_s4 + $0x64] sm:$0xf]  ;;  %v6228_v50 = vor.u32 %v5336_v39, %v4945_v40 }
  0x2c   : > { %609 = vmatpush.bf16.msra.mxu0 %v6171_v30  ;;  %636 = vmatpush.bf16.msra.mxu2 %v6188_v36  ;;  %v6233_v51 = vld [vmem:[%s9781_s0] sm:$0xff]  ;;  %v4943_v52 = vld [vmem:[%s9785_s4 + $0x88] sm:$0xf]  ;;  %v5338_v53 = vld [vmem:[%s9785_s4 + $0x94] sm:$0xf0]  ;;  %v9789_v57 = vmov 0   ;;  %v6257_v59 = vor.u32 %v5333_v47, %v4919_v46 }
  0x2d   : > { %623 = vmatpush.bf16.msra.mxu1 %v6184_v34  ;;  %651 = vmatpush.bf16.msra.mxu3 %v6186_v35  ;;  %v4921_v54 = vld [vmem:[%s9785_s4 + $0x70] sm:$0xf0]  ;;  %v5332_v55 = vld [vmem:[%s9785_s4 + $0x6c] sm:$0xf]  ;;  %v4929_v56 = vld [vmem:[%s9785_s4 + $0x78] sm:$0xf0]  ;;  %vm1187_vm0 = vcmp.lt.s32.totalorder %v1186_v43, %v6233_v51  ;;  %v6259_v60 = vor.u32 %v5338_v53, %v4943_v52 }
  0x2e   : > { %5490 = vset.pattern.permute.xlu0 %v9789_v57  ;;  %5491 = vset.pattern.permute.xlu1 %v9789_v57  ;;  %v1193_v58 = vsel %vm1187_vm0, 1, %v9789_v57  ;;  %9948 = vst [vmem:[#allocation6_spill] sm:$0xff] %v6257_v59  ;;  %v4903_v61 = vld [vmem:[%s9785_s4 + $0x40] sm:$0xf]  ;;  %v5329_v62 = vld [vmem:[%s9785_s4 + $0x4c] sm:$0xf0]  ;;  %v6272_v0 = vor.u32 %v5331_v48, %v4921_v54  ;;  %v6274_v1 = vor.u32 %v5332_v55, %v4929_v56 }
  0x2f   : > { %5492 = vset.pattern.permute.xlu2 %v9789_v57  ;;  %v5327_v63 = vld [vmem:[%s9785_s4 + $0x44] sm:$0xf]  ;;  %v4927_v2 = vld [vmem:[%s9785_s4 + $0x68] sm:$0xf]  ;;  %v5334_v3 = vld [vmem:[%s9785_s4 + $0x74] sm:$0xf0]  ;;  %1196 = vperm.xlu0 %5490, %v1193_v58   ;;  %v6298_v11 = vor.u32 %v5329_v62, %v4903_v61 }
  0x30   : > { %610 = vmatpush.bf16.msra.mxu0 %v6211_v44  ;;  %637 = vmatpush.bf16.msra.mxu2 %v6213_v45  ;;  %9949 = vst [vmem:[#allocation7_spill] sm:$0xff] %v6272_v0  ;;  %v6285_v4 = vld [vmem:[%s9781_s0 + $0x8] sm:$0xff]  ;;  %v4905_v6 = vld [vmem:[%s9785_s4 + $0x50] sm:$0xf0]  ;;  %v4913_v8 = vld [vmem:[%s9785_s4 + $0x58] sm:$0xf0]  ;;  %v6300_v12 = vor.u32 %v5334_v3, %v4927_v2 }
  0x31   : > { %624 = vmatpush.bf16.msra.mxu1 %v6226_v49  ;;  %652 = vmatpush.bf16.msra.mxu3 %v6228_v50  ;;  %9950 = vst [vmem:[#allocation8_spill] sm:$0xff] %v6274_v1  ;;  %v5328_v7 = vld [vmem:[%s9785_s4 + $0x4c] sm:$0xf]  ;;  %v4887_v13 = vld [vmem:[%s9785_s4 + $0x20] sm:$0xf]  ;;  %vm1188_vm1 = vcmp.lt.s32.totalorder %v1186_v43, %v6285_v4  ;;  %v6311_v16 = vor.u32 %v5327_v63, %v4905_v6  ;;  %s1189_s11 = sadd.s32 7, %s6064_s25 }
  0x32   : > { %9951 = vst [vmem:[#allocation9_spill] sm:$0xff] %v6298_v11  ;;  %v5325_v15 = vld [vmem:[%s9785_s4 + $0x2c] sm:$0xf0]  ;;  %v6313_v17 = vor.u32 %v5328_v7, %v4913_v8  ;;  %v5323_v20 = vld [vmem:[%s9785_s4 + $0x24] sm:$0xf]  ;;  %v1194_v27 = vsel %vm1188_vm1, 1, %v9789_v57  ;;  %v1190_v53 = vstv %s1189_s11 }
  0x33   : > { %9952 = vst [vmem:[#allocation10_spill] sm:$0xff] %v6300_v12  ;;  %v4911_v21 = vld [vmem:[%s9785_s4 + $0x48] sm:$0xf]  ;;  %v5330_v22 = vld [vmem:[%s9785_s4 + $0x54] sm:$0xf0]  ;;  %v6339_v29 = vor.u32 %v5325_v15, %v4887_v13  ;;  %s1680_s13 = sadd.s32 6, %s6064_s25  ;;  %vm1191_vm2 = vcmp.lt.s32.totalorder %v1190_v53, %v6233_v51  ;;  %vm1192_vm4 = vcmp.lt.s32.totalorder %v1190_v53, %v6285_v4 }
  0x34   : > { %611 = vmatpush.bf16.msra.mxu0 %v6257_v59  ;;  %638 = vmatpush.bf16.msra.mxu2 %v6259_v60  ;;  %9953 = vst [vmem:[#allocation11_spill] sm:$0xff] %v6311_v16  ;;  %v4889_v24 = vld [vmem:[%s9785_s4 + $0x30] sm:$0xf0]  ;;  %v5324_v25 = vld [vmem:[%s9785_s4 + $0x2c] sm:$0xf]  ;;  %v6341_v31 = vor.u32 %v5330_v22, %v4911_v21  ;;  %v6397_v61 = vstv %s1680_s13  ;;  %v6405_v2 = vld [vmem:[#allocation2] sm:$0xff] }
  0x35   : > { %625 = vmatpush.bf16.msra.mxu1 %v6272_v0  ;;  %653 = vmatpush.bf16.msra.mxu3 %v6274_v1  ;;  %9954 = vst [vmem:[#allocation12_spill] sm:$0xff] %v6313_v17  ;;  %v4897_v26 = vld [vmem:[%s9785_s4 + $0x38] sm:$0xf0]  ;;  %v4871_v28 = vld [vmem:[%s9785_s4] sm:$0xf]  ;;  %v6354_v38 = vor.u32 %v5323_v20, %v4889_v24  ;;  %v1209_v6 = vsel %vm1191_vm2, 1, %v9789_v57  ;;  %vm1682_vm3 = vcmp.lt.s32.totalorder %v6397_v61, %v6233_v51 }
  0x36   : > { %9955 = vst [vmem:[#allocation13_spill] sm:$0xff] %v6339_v29  ;;  %v5321_v32 = vld [vmem:[%s9785_s4 + $0xc] sm:$0xf0]  ;;  %v5319_v33 = vld [vmem:[%s9785_s4 + $0x4] sm:$0xf]  ;;  %v6356_v39 = vor.u32 %v5324_v25, %v4897_v26  ;;  %1212 = vperm.xlu1 %5491, %v1209_v6   ;;  %s2168_s9 = sadd.s32 2, %s6061_s23  ;;  %vm1683_vm6 = vcmp.lt.s32.totalorder %v6397_v61, %v6285_v4 }
  0x37   : > { %9956 = vst [vmem:[#allocation14_spill] sm:$0xff] %v6341_v31  ;;  %v4873_v37 = vld [vmem:[%s9785_s4 + $0x10] sm:$0xf0]  ;;  %v5320_v40 = vld [vmem:[%s9785_s4 + $0xc] sm:$0xf]  ;;  %1199 = vperm.xlu0 %5490, %v1194_v27   ;;  %v6386_v54 = vor.u32 %v5321_v32, %v4871_v28  ;;  %v6493_v6 = vstv %s2168_s9  ;;  %s2660_s7 = sadd.s32 3, %s6061_s23 }
  0x38   : > { %612 = vmatpush.bf16.msra.mxu0 %v6298_v11  ;;  %639 = vmatpush.bf16.msra.mxu2 %v6300_v12  ;;  %9957 = vst [vmem:[#allocation15_spill] sm:$0xff] %v6354_v38  ;;  %v4895_v41 = vld [vmem:[%s9785_s4 + $0x28] sm:$0xf]  ;;  %v5326_v42 = vld [vmem:[%s9785_s4 + $0x34] sm:$0xf0]  ;;  %v6401_v62 = vor.u32 %v5319_v33, %v4873_v37  ;;  %vm2171_vm5 = vcmp.lt.s32.totalorder %v6493_v6, %v6285_v4  ;;  %s2172_s10 = sadd.s32 5, %s6064_s25 }
  0x39   : > { %626 = vmatpush.bf16.msra.mxu1 %v6311_v16  ;;  %654 = vmatpush.bf16.msra.mxu3 %v6313_v17  ;;  %9958 = vst [vmem:[#allocation16_spill] sm:$0xff] %v6356_v39  ;;  %v4881_v43 = vld [vmem:[%s9785_s4 + $0x18] sm:$0xf0]  ;;  %v5125_v46 = vld [vmem:[%s9785_s4 + $0x1e0] sm:$0xf]  ;;  %v6394_v58 = vor.u32 %v5326_v42, %v4895_v41  ;;  %s2664_s11 = sadd.s32 4, %s6064_s25 }
  0x3a   : > { %v5381_v47 = vld [vmem:[%s9785_s4 + $0x1ec] sm:$0xf0]  ;;  %v5379_v48 = vld [vmem:[%s9785_s4 + $0x1e4] sm:$0xf]  ;;  %v5127_v52 = vld [vmem:[%s9785_s4 + $0x1f0] sm:$0xf0]  ;;  %v6403_v63 = vor.u32 %v5320_v40, %v4881_v43 }
  0x3b   : > { %9959 = vst [vmem:[#allocation17_spill] sm:$0xff] %v6386_v54  ;;  %v5380_v55 = vld [vmem:[%s9785_s4 + $0x1ec] sm:$0xf]  ;;  %v5135_v56 = vld [vmem:[%s9785_s4 + $0x1f8] sm:$0xf0]  ;;  %v6411_v7 = vor.u32 %v5381_v47, %v5125_v46  ;;  %v6413_v8 = vor.u32 %v5379_v48, %v5127_v52  ;;  %v1701_v40 = vsel %vm1682_vm3, 1, %v9789_v57 }
  0x3c   : > { %613 = vmatpush.bf16.msra.mxu0 %v6339_v29  ;;  %640 = vmatpush.bf16.msra.mxu2 %v6341_v31  ;;  %9960 = vst [vmem:[#allocation18_spill] sm:$0xff] %v6394_v58  ;;  %v5109_v3 = vld [vmem:[%s9785_s4 + $0x1c0] sm:$0xf]  ;;  %v5377_v13 = vld [vmem:[%s9785_s4 + $0x1cc] sm:$0xf0]  ;;  %v6424_v21 = vor.u32 %v5380_v55, %v5135_v56  ;;  %s3156_s30 = sadd.s32 3, %s6064_s25 }
  0x3d   : > { %627 = vmatpush.bf16.msra.mxu1 %v6354_v38  ;;  %655 = vmatpush.bf16.msra.mxu3 %v6356_v39  ;;  %9961 = vst [vmem:[#allocation19_spill] sm:$0xff] %v6401_v62  ;;  %v4879_v15 = vld [vmem:[%s9785_s4 + $0x8] sm:$0xf]  ;;  %v5322_v20 = vld [vmem:[%s9785_s4 + $0x14] sm:$0xf0]  ;;  %v6455_v33 = vor.u32 %v5377_v13, %v5109_v3  ;;  %v1210_v13 = vsel %vm1192_vm4, 1, %v9789_v57 }
  0x3e   : > { %9962 = vst [vmem:[#allocation20_spill] sm:$0xff] %v6403_v63  ;;  %v5375_v22 = vld [vmem:[%s9785_s4 + $0x1c4] sm:$0xf]  ;;  %v5111_v24 = vld [vmem:[%s9785_s4 + $0x1d0] sm:$0xf0]  ;;  %v6450_v32 = vor.u32 %v5322_v20, %v4879_v15  ;;  %1215 = vperm.xlu1 %5491, %v1210_v13   ;;  %s3644_s14 = sadd.s32 5, %s6061_s23 }
  0x3f   : > { %9963 = vst [vmem:[#allocation21_spill] sm:$0xff] %v6411_v7  ;;  %v5376_v25 = vld [vmem:[%s9785_s4 + $0x1cc] sm:$0xf]  ;;  %v5119_v26 = vld [vmem:[%s9785_s4 + $0x1d8] sm:$0xf0]  ;;  %v6457_v37 = vor.u32 %v5375_v22, %v5111_v24  ;;  %1704 = vperm.xlu0 %5490, %v1701_v40   ;;  %s4136_s16 = sadd.s32 6, %s6061_s23 }
  0x40   : > { %9964 = vst [vmem:[#allocation22_spill] sm:$0xff] %v6413_v8  ;;  %614 = vmatpush.bf16.msra.mxu0 %v6386_v54  ;;  %641 = vmatpush.bf16.msra.mxu2 %v6394_v58  ;;  %v5133_v27 = vld [vmem:[%s9785_s4 + $0x1e8] sm:$0xf]  ;;  %v5382_v28 = vld [vmem:[%s9785_s4 + $0x1f4] sm:$0xf0]  ;;  %v6469_v43 = vor.u32 %v5376_v25, %v5119_v26  ;;  %s3648_s17 = sadd.s32 2, %s6064_s25 }
  0x41   : > { %9965 = vst [vmem:[#allocation23_spill] sm:$0xff] %v6424_v21  ;;  %628 = vmatpush.bf16.msra.mxu1 %v6401_v62  ;;  %656 = vmatpush.bf16.msra.mxu3 %v6403_v63  ;;  %v5093_v41 = vld [vmem:[%s9785_s4 + $0x1a0] sm:$0xf]  ;;  %v5373_v42 = vld [vmem:[%s9785_s4 + $0x1ac] sm:$0xf0]  ;;  %v6471_v46 = vor.u32 %v5382_v28, %v5133_v27  ;;  %s4140_s18 = sadd.s32 1, %s6064_s25 }
  0x42   : > { %9966 = vst [vmem:[#allocation24_spill] sm:$0xff] %v6450_v32  ;;  %v5371_v47 = vld [vmem:[%s9785_s4 + $0x1a4] sm:$0xf]  ;;  %v5095_v48 = vld [vmem:[%s9785_s4 + $0x1b0] sm:$0xf0]  ;;  %v6501_v15 = vor.u32 %v5373_v42, %v5093_v41  ;;  %s4627_s20 = sadd.s32 7, %s6061_s23 }
  0x43   : > { %9967 = vst [vmem:[#allocation25_spill] sm:$0xff] %v6455_v33  ;;  %615 = vmatmul.bf16.vlgmr.msra.gmra.mxu0 %v6405_v2  ;;  %v5372_v52 = vld [vmem:[%s9785_s4 + $0x1ac] sm:$0xf]  ;;  %v5103_v55 = vld [vmem:[%s9785_s4 + $0x1b8] sm:$0xf0]  ;;  %v6503_v20 = vor.u32 %v5371_v47, %v5095_v48  ;;  %s1676_s26 = sadd.s32 1, %s6061_s23 }
  0x44   : > { %996 = vmatpush.bf16.msrb.mxu0 %v6411_v7  ;;  %9968 = vst [vmem:[#allocation26_spill] sm:$0xff] %v6457_v37  ;;  %629 = vmatmul.bf16.vlgmr.msra.gmra.mxu1 %v6405_v2  ;;  %v5117_v56 = vld [vmem:[%s9785_s4 + $0x1c8] sm:$0xf]  ;;  %v5378_v3 = vld [vmem:[%s9785_s4 + $0x1d4] sm:$0xf0]  ;;  %v6513_v53 = vor.u32 %v5372_v52, %v5103_v55  ;;  %v2177_v52 = vsel %vm2171_vm5, 1, %v9789_v57 }
  0x45   : > { %1010 = vmatpush.bf16.msrb.mxu1 %v6413_v8  ;;  %1038 = vmatpush.bf16.msrb.mxu3 %v6424_v21  ;;  %9969 = vst [vmem:[#allocation27_spill] sm:$0xff] %v6469_v43  ;;  %v5077_v22 = vld [vmem:[%s9785_s4 + $0x180] sm:$0xf]  ;;  %v5369_v24 = vld [vmem:[%s9785_s4 + $0x18c] sm:$0xf0]  ;;  %v6515_v25 = vor.u32 %v5378_v3, %v5117_v56 }
  0x46   : > { %9970 = vst [vmem:[#allocation28_spill] sm:$0xff] %v6471_v46  ;;  %657 = vmatmul.bf16.vlgmr.msra.gmra.mxu3 %v6405_v2  ;;  %642 = vmatpush.bf16.msra.mxu2 %v6450_v32  ;;  %v5367_v26 = vld [vmem:[%s9785_s4 + $0x184] sm:$0xf]  ;;  %v5079_v27 = vld [vmem:[%s9785_s4 + $0x190] sm:$0xf0]  ;;  %v6541_v47 = vor.u32 %v5369_v24, %v5077_v22 }
  0x47   : > { %9971 = vst [vmem:[#allocation29_spill] sm:$0xff] %v6493_v6  ;;  %v5368_v28 = vld [vmem:[%s9785_s4 + $0x18c] sm:$0xf]  ;;  %v5087_v40 = vld [vmem:[%s9785_s4 + $0x198] sm:$0xf0]  ;;  %v6543_v48 = vor.u32 %v5367_v26, %v5079_v27  ;;  %2182 = vperm.xlu0 %5490, %v2177_v52  }
  0x48   : > { %997 = vmatpush.bf16.msrb.mxu0 %v6455_v33  ;;  %9972 = vst [vmem:[#allocation30_spill] sm:$0xff] %v6501_v15  ;;  %v5101_v41 = vld [vmem:[%s9785_s4 + $0x1a8] sm:$0xf]  ;;  %v5374_v42 = vld [vmem:[%s9785_s4 + $0x1b4] sm:$0xf0]  ;;  %v6556_v56 = vor.u32 %v5368_v28, %v5087_v40  ;;  %v6578_v28 = vstv %s2660_s7  ;;  %v1702_v40 = vsel %vm1683_vm6, 1, %v9789_v57 }
  0x49   : > { %1011 = vmatpush.bf16.msrb.mxu1 %v6457_v37  ;;  %9973 = vst [vmem:[#allocation31_spill] sm:$0xff] %v6503_v20  ;;  %1039 = vmatpush.bf16.msrb.mxu3 %v6469_v43  ;;  %v5061_v55 = vld [vmem:[%s9785_s4 + $0x160] sm:$0xf]  ;;  %v6558_v3 = vor.u32 %v5374_v42, %v5101_v41  ;;  %v5363_v13 = vld [vmem:[%s9785_s4 + $0x164] sm:$0xf]  ;;  %vm2662_vm7 = vcmp.lt.s32.totalorder %v6578_v28, %v6233_v51 }
  0x4a   : > { %1024 = vmatpush.bf16.msrb.mxu2 %v6471_v46  ;;  %9974 = vst [vmem:[#allocation32_spill] sm:$0xff] %v6513_v53  ;;  %v5063_v22 = vld [vmem:[%s9785_s4 + $0x170] sm:$0xf0]  ;;  %v5364_v61 = vld [vmem:[%s9785_s4 + $0x16c] sm:$0xf]  ;;  %1707 = vperm.xlu1 %5491, %v1702_v40   ;;  %vm2663_vm10 = vcmp.lt.s32.totalorder %v6578_v28, %v6285_v4  ;;  %v5384_v28 = vld [vmem:[#allocation4] sm:$0xff] }
  0x4b   : > { %9975 = vst [vmem:[#allocation33_spill] sm:$0xff] %v6515_v25  ;;  %643 = vmatmul.bf16.vlgmr.msra.gmra.mxu2 %v6405_v2  ;;  %v5365_v2 = vld [vmem:[%s9785_s4 + $0x16c] sm:$0xf0]  ;;  %v5071_v24 = vld [vmem:[%s9785_s4 + $0x178] sm:$0xf0]  ;;  %v6586_v42 = vor.u32 %v5363_v13, %v5063_v22  ;;  %v6611_v22 = vstv %s2172_s10 }
  0x4c   : > { %998 = vmatpush.bf16.msrb.mxu0 %v6501_v15  ;;  %9976 = vst [vmem:[#allocation34_spill] sm:$0xff] %v6541_v47  ;;  %v5085_v26 = vld [vmem:[%s9785_s4 + $0x188] sm:$0xf]  ;;  %v5370_v27 = vld [vmem:[%s9785_s4 + $0x194] sm:$0xf0]  ;;  %v6584_v41 = vor.u32 %v5365_v2, %v5061_v55  ;;  %v6596_v57 = vor.u32 %v5364_v61, %v5071_v24  ;;  %vm2174_vm8 = vcmp.lt.s32.totalorder %v6611_v22, %v6233_v51 }
  0x4d   : > { %1012 = vmatpush.bf16.msrb.mxu1 %v6503_v20  ;;  %9977 = vst [vmem:[#allocation35_spill] sm:$0xff] %v6543_v48  ;;  %1040 = vmatpush.bf16.msrb.mxu3 %v6513_v53  ;;  %v5045_v6 = vld [vmem:[%s9785_s4 + $0x140] sm:$0xf]  ;;  %v5361_v52 = vld [vmem:[%s9785_s4 + $0x14c] sm:$0xf0] }
  0x4e   : > { %1025 = vmatpush.bf16.msrb.mxu2 %v6515_v25  ;;  %9978 = vst [vmem:[#allocation36_spill] sm:$0xff] %v6556_v56  ;;  %v5359_v55 = vld [vmem:[%s9785_s4 + $0x144] sm:$0xf]  ;;  %v5047_v2 = vld [vmem:[%s9785_s4 + $0x150] sm:$0xf0] }
  0x4f   : > { %9979 = vst [vmem:[#allocation37_spill] sm:$0xff] %v6558_v3  ;;  %v5360_v13 = vld [vmem:[%s9785_s4 + $0x14c] sm:$0xf]  ;;  %v5055_v61 = vld [vmem:[%s9785_s4 + $0x158] sm:$0xf0] }
  0x50   : > { %999 = vmatpush.bf16.msrb.mxu0 %v6541_v47  ;;  %9980 = vst [vmem:[#allocation38_spill] sm:$0xff] %v6584_v41  ;;  %v5069_v24 = vld [vmem:[%s9785_s4 + $0x168] sm:$0xf]  ;;  %v9987_v47 = vmov 0   ;;  %v5029_v40 = vld [vmem:[%s9785_s4 + $0x120] sm:$0xf] }
  0x51   : > { %1013 = vmatpush.bf16.msrb.mxu1 %v6543_v48  ;;  %9981 = vst [vmem:[#allocation39_spill] sm:$0xff] %v6586_v42  ;;  %1041 = vmatpush.bf16.msrb.mxu3 %v6556_v56  ;;  %v6598_v48 = vor.u32 %v5370_v27, %v5085_v26  ;;  %v5366_v26 = vld [vmem:[%s9785_s4 + $0x174] sm:$0xf0]  ;;  %v6625_v27 = vor.u32 %v5361_v52, %v5045_v6  ;;  %v2668_v53 = vsel %vm2662_vm7, 1, %v9987_v47  ;;  %v5353_v20 = vld [vmem:[%s9785_s4 + $0x10c] sm:$0xf0] }
  0x52   : > { %1026 = vmatpush.bf16.msrb.mxu2 %v6558_v3  ;;  %9982 = vst [vmem:[#allocation40_spill] sm:$0xff] %v6596_v57  ;;  %v6627_v56 = vor.u32 %v5359_v55, %v5047_v2  ;;  %v5357_v3 = vld [vmem:[%s9785_s4 + $0x12c] sm:$0xf0]  ;;  %v6640_v6 = vor.u32 %v5360_v13, %v5055_v61  ;;  %v6642_v52 = vor.u32 %v5366_v26, %v5069_v24  ;;  %v5355_v55 = vld [vmem:[%s9785_s4 + $0x124] sm:$0xf]  ;;  %v6662_v24 = vstv %s2664_s11  ;;  %s3152_s11 = sadd.s32 4, %s6061_s23 }
  0x53   : > { %9983 = vst [vmem:[#allocation41_spill] sm:$0xff] %v6598_v48  ;;  %v5031_v2 = vld [vmem:[%s9785_s4 + $0x130] sm:$0xf0]  ;;  %v5053_v13 = vld [vmem:[%s9785_s4 + $0x148] sm:$0xf]  ;;  %2671 = vperm.xlu0 %5490, %v2668_v53   ;;  %v2193_v26 = vsel %vm2174_vm8, 1, %v9987_v47  ;;  %vm2667_vm9 = vcmp.lt.s32.totalorder %v6662_v24, %v6285_v4 }
  0x54   : > { %9984 = vst [vmem:[#allocation42_spill] sm:$0xff] %v6611_v22  ;;  %1000 = vmatpush.bf16.msrb.mxu0 %v6584_v41  ;;  %v5356_v22 = vld [vmem:[%s9785_s4 + $0x12c] sm:$0xf]  ;;  %v5362_v61 = vld [vmem:[%s9785_s4 + $0x154] sm:$0xf0]  ;;  %v6669_v41 = vor.u32 %v5355_v55, %v5031_v2  ;;  %2196 = vperm.xlu1 %5491, %v2193_v26   ;;  %v2686_v26 = vsel %vm2667_vm9, 1, %v9987_v47 }
  0x55   : > { %1014 = vmatpush.bf16.msrb.mxu1 %v6586_v42  ;;  %9985 = vst [vmem:[#allocation43_spill] sm:$0xff] %v6625_v27  ;;  %1042 = vmatpush.bf16.msrb.mxu3 %v6596_v57  ;;  %v5039_v57 = vld [vmem:[%s9785_s4 + $0x138] sm:$0xf0]  ;;  %v6667_v42 = vor.u32 %v5357_v3, %v5029_v40  ;;  %v5351_v3 = vld [vmem:[%s9785_s4 + $0x104] sm:$0xf] }
  0x56   : > { %9986 = vst [vmem:[#allocation44_spill] sm:$0xff] %v6627_v56  ;;  %1027 = vmatpush.bf16.msrb.mxu2 %v6598_v48  ;;  %v5013_v48 = vld [vmem:[%s9785_s4 + $0x100] sm:$0xf]  ;;  %v6679_v53 = vor.u32 %v5356_v22, %v5039_v57  ;;  %v5015_v40 = vld [vmem:[%s9785_s4 + $0x110] sm:$0xf0] }
  0x57   : > { %9988 = vst [vmem:[#allocation45_spill] sm:$0xff] %v6640_v6  ;;  %v5352_v55 = vld [vmem:[%s9785_s4 + $0x10c] sm:$0xf]  ;;  %v5023_v57 = vld [vmem:[%s9785_s4 + $0x118] sm:$0xf0] }
  0x58   : > { %9989 = vst [vmem:[#allocation46_spill] sm:$0xff] %v6642_v52  ;;  %1001 = vmatpush.bf16.msrb.mxu0 %v6625_v27  ;;  %v5037_v22 = vld [vmem:[%s9785_s4 + $0x128] sm:$0xf]  ;;  %v5358_v2 = vld [vmem:[%s9785_s4 + $0x134] sm:$0xf0] }
  0x59   : > { %9990 = vst [vmem:[#allocation47_spill] sm:$0xff] %v6662_v24  ;;  %1015 = vmatpush.bf16.msrb.mxu1 %v6627_v56  ;;  %1043 = vmatpush.bf16.msrb.mxu3 %v6640_v6  ;;  %v6681_v56 = vor.u32 %v5362_v61, %v5053_v13  ;;  %v6706_v13 = vor.u32 %v5353_v20, %v5013_v48  ;;  %v5021_v20 = vld [vmem:[%s9785_s4 + $0x108] sm:$0xf]  ;;  %v5354_v48 = vld [vmem:[%s9785_s4 + $0x114] sm:$0xf0] }
  0x5a   : > { %9991 = vst [vmem:[#allocation48_spill] sm:$0xff] %v6667_v42  ;;  %1028 = vmatpush.bf16.msrb.mxu2 %v6642_v52  ;;  %v6708_v61 = vor.u32 %v5351_v3, %v5015_v40  ;;  %v6715_v24 = vor.u32 %v5352_v55, %v5023_v57  ;;  %v6717_v6 = vor.u32 %v5358_v2, %v5037_v22  ;;  %v3157_v3 = vstv %s3156_s30 }
  0x5b   : > { %9992 = vst [vmem:[#allocation49_spill] sm:$0xff] %v6669_v41  ;;  %2691 = vperm.xlu0 %5490, %v2686_v26   ;;  %v2669_v40 = vsel %vm2663_vm10, 1, %v9987_v47  ;;  %v6731_v55 = vor.u32 %v5354_v48, %v5021_v20  ;;  %vm3158_vm11 = vcmp.lt.s32.totalorder %v3157_v3, %v6233_v51  ;;  %v6734_v57 = vstv %s3152_s11 }
  0x5c   : > { %9993 = vst [vmem:[#allocation50_spill] sm:$0xff] %v6679_v53  ;;  %1002 = vmatpush.bf16.msrb.mxu0 %v6667_v42  ;;  %2674 = vperm.xlu1 %5491, %v2669_v40   ;;  %v3177_v22 = vsel %vm3158_vm11, 1, %v9987_v47  ;;  %vm3154_vm12 = vcmp.lt.s32.totalorder %v6734_v57, %v6233_v51  ;;  %v6744_v2 = vstv %s3644_s14  ;;  %vm3159_vm14 = vcmp.lt.s32.totalorder %v3157_v3, %v6285_v4 }
  0x5d   : > { %9994 = vst [vmem:[#allocation51_spill] sm:$0xff] %v6681_v56  ;;  %1016 = vmatpush.bf16.msrb.mxu1 %v6669_v41  ;;  %1044 = vmatpush.bf16.msrb.mxu3 %v6679_v53  ;;  %v3160_v26 = vsel %vm3154_vm12, 1, %v9987_v47  ;;  %vm3647_vm13 = vcmp.lt.s32.totalorder %v6744_v2, %v6285_v4  ;;  %v4137_v48 = vstv %s4136_s16  ;;  %v6766_v40 = vstv %s3648_s17 }
  0x5e   : > { %9995 = vst [vmem:[#allocation52_spill] sm:$0xff] %v6706_v13  ;;  %1029 = vmatpush.bf16.msrb.mxu2 %v6681_v56  ;;  %v3653_v20 = vsel %vm3647_vm13, 1, %v9987_v47  ;;  %vm4138_vm15 = vcmp.lt.s32.totalorder %v4137_v48, %v6233_v51  ;;  %vm3650_vm0 = vcmp.lt.s32.totalorder %v6766_v40, %v6233_v51  ;;  %vm4139_vm2 = vcmp.lt.s32.totalorder %v4137_v48, %v6285_v4 }
  0x5f   : > { %9996 = vst [vmem:[#allocation53_spill] sm:$0xff] %v6708_v61  ;;  %v4144_v3 = vsel %vm4138_vm15, 1, %v9987_v47  ;;  %v6800_v48 = vstv %s4627_s20 }
  0x60   : > { %9997 = vst [vmem:[#allocation54_spill] sm:$0xff] %v6715_v24  ;;  %1003 = vmatpush.bf16.msrb.mxu0 %v6706_v13  ;;  %vm4629_vm4 = vcmp.lt.s32.totalorder %v6800_v48, %v6233_v51 }
  0x61   : > { %9998 = vst [vmem:[#allocation55_spill] sm:$0xff] %v6717_v6  ;;  %1017 = vmatpush.bf16.msrb.mxu1 %v6708_v61  ;;  %1045 = vmatpush.bf16.msrb.mxu3 %v6715_v24 }
  0x62   : > { %1030 = vmatpush.bf16.msrb.mxu2 %v6717_v6  ;;  %9999 = vst [vmem:[#allocation56_spill] sm:$0xff] %v6731_v55 }
  0x63   : > { %10000 = vst [vmem:[#allocation57_spill] sm:$0xff] %v6734_v57  ;;  %1004 = vmatmul.bf16.vlgmr.msrb.gmra.mxu0 %v5384_v28  ;;  %3180 = vperm.xlu0 %5490, %v3177_v22   ;;  %v6777_v22 = vstv %s4140_s18 }
  0x64   : > { %1269 = vmatpush.bf16.msra.mxu0 %v6098_v5  ;;  %1018 = vmatmul.bf16.vlgmr.msrb.gmra.mxu1 %v5384_v28  ;;  %10001 = vst [vmem:[#allocation58_spill] sm:$0xff] %v6744_v2  ;;  %vm4143_vm1 = vcmp.lt.s32.totalorder %v6777_v22, %v6285_v4  ;;  %v10010_v2 = vld [vmem:[#allocation41_spill] sm:$0xff] }
  0x65   : > { %1046 = vmatmul.bf16.vlgmr.msrb.gmra.mxu3 %v5384_v28  ;;  %1283 = vmatpush.bf16.msra.mxu1 %v6109_v9  ;;  %10002 = vst [vmem:[#allocation59_spill] sm:$0xff] %v6766_v40 }
  0x66   : > { %1031 = vmatpush.bf16.msrb.mxu2 %v6731_v55  ;;  %1311 = vmatpush.bf16.msra.mxu3 %v6111_v10  ;;  %10003 = vst [vmem:[#allocation60_spill] sm:$0xff] %v6777_v22  ;;  %v10006_v22 = vld [vmem:[#allocation37_spill] sm:$0xff] }
  0x67   : > { %3163 = vperm.xlu1 %5491, %v3160_v26   ;;  %v3669_v26 = vsel %vm3650_vm0, 1, %v9987_v47  ;;  %10004 = vst [vmem:[#allocation61_spill] sm:$0xff] %v6800_v48  ;;  %v10008_v48 = vld [vmem:[#allocation34_spill] sm:$0xff] }
  0x68   : > { %1270 = vmatpush.bf16.msra.mxu0 %v6123_v14 }
  0x69   : > { %1032 = vmatmul.bf16.vlgmr.msrb.gmra.mxu2 %v5384_v28  ;;  %1284 = vmatpush.bf16.msra.mxu1 %v6136_v18  ;;  %v3178_v28 = vsel %vm3159_vm14, 1, %v9987_v47 }
  0x6a   : > { %1297 = vmatpush.bf16.msra.mxu2 %v6149_v23  ;;  %1312 = vmatpush.bf16.msra.mxu3 %v6138_v19 }
  0x6b   : > { %3658 = vperm.xlu0 %5490, %v3653_v20   ;;  %v4162_v20 = vsel %vm4143_vm1, 1, %v9987_v47 }
  0x6c   : > { %1271 = vmatpush.bf16.msra.mxu0 %v6171_v30 }
  0x6d   : > { %1285 = vmatpush.bf16.msra.mxu1 %v6184_v34 }
  0x6e   : > { %1298 = vmatpush.bf16.msra.mxu2 %v6188_v36  ;;  %1313 = vmatpush.bf16.msra.mxu3 %v6186_v35 }
  0x6f   : > { %3183 = vperm.xlu1 %5491, %v3178_v28   ;;  %v4631_v28 = vstv %s6064_s25 }
  0x70   : > { %1272 = vmatpush.bf16.msra.mxu0 %v6211_v44  ;;  %vm4632_vm3 = vcmp.lt.s32.totalorder %v4631_v28, %v6233_v51  ;;  %vm4633_vm5 = vcmp.lt.s32.totalorder %v4631_v28, %v6285_v4  ;;  %v10007_v51 = vld [vmem:[#allocation32_spill] sm:$0xff] }
  0x71   : > { %1286 = vmatpush.bf16.msra.mxu1 %v6226_v49  ;;  %v4652_v40 = vsel %vm4633_vm5, 1, %v9987_v47  ;;  %v10014_v4 = vld [vmem:[#allocation40_spill] sm:$0xff] }
  0x72   : > { %1299 = vmatpush.bf16.msra.mxu2 %v6213_v45  ;;  %1314 = vmatpush.bf16.msra.mxu3 %v6228_v50  ;;  %v10015_v28 = vld [vmem:[#allocation44_spill] sm:$0xff] }
  0x73   : > { %4147 = vperm.xlu0 %5490, %v4144_v3   ;;  %v4145_v3 = vsel %vm4139_vm2, 1, %v9987_v47 }
  0x74   : > { %1273 = vmatpush.bf16.msra.mxu0 %v6257_v59 }
  0x75   : > { %1287 = vmatpush.bf16.msra.mxu1 %v6272_v0 }
  0x76   : > { %1300 = vmatpush.bf16.msra.mxu2 %v6259_v60  ;;  %1315 = vmatpush.bf16.msra.mxu3 %v6274_v1 }
  0x77   : > { %3672 = vperm.xlu1 %5491, %v3669_v26   ;;  %v4651_v26 = vsel %vm4632_vm3, 1, %v9987_v47 }
  0x78   : > { %1274 = vmatpush.bf16.msra.mxu0 %v6298_v11 }
  0x79   : > { %1288 = vmatpush.bf16.msra.mxu1 %v6311_v16 }
  0x7a   : > { %1301 = vmatpush.bf16.msra.mxu2 %v6300_v12  ;;  %1316 = vmatpush.bf16.msra.mxu3 %v6313_v17 }
  0x7b   : > { %4167 = vperm.xlu0 %5490, %v4162_v20   ;;  %v4634_v20 = vsel %vm4629_vm4, 1, %v9987_v47 }
  0x7c   : > { %1275 = vmatpush.bf16.msra.mxu0 %v6339_v29 }
  0x7d   : > { %1289 = vmatpush.bf16.msra.mxu1 %v6354_v38 }
  0x7e   : > { %1302 = vmatpush.bf16.msra.mxu2 %v6341_v31  ;;  %1317 = vmatpush.bf16.msra.mxu3 %v6356_v39 }
  0x7f   : > { %4150 = vperm.xlu1 %5491, %v4145_v3   ;;  %v10005_v3 = vld [vmem:[#allocation31_spill] sm:$0xff] }
  0x80   : > { %1276 = vmatpush.bf16.msra.mxu0 %v6386_v54 }
  0x81   : > { %1290 = vmatpush.bf16.msra.mxu1 %v6401_v62 }
  0x82   : > { %1303 = vmatpush.bf16.msra.mxu2 %v6394_v58  ;;  %1318 = vmatpush.bf16.msra.mxu3 %v6403_v63 }
  0x83   : > { %4654 = vperm.xlu0 %5490, %v4651_v26   ;;  %v10009_v26 = vld [vmem:[#allocation35_spill] sm:$0xff] }
  0x84   : > { %1486 = vmatpush.bf16.msrb.mxu0 %v6411_v7 }
  0x85   : > { %1500 = vmatpush.bf16.msrb.mxu1 %v6413_v8 }
  0x86   : > { %1304 = vmatpush.bf16.msra.mxu2 %v6450_v32  ;;  %1528 = vmatpush.bf16.msrb.mxu3 %v6424_v21 }
  0x87   : > { %4637 = vperm.xlu1 %5491, %v4634_v20   ;;  %v10016_v20 = vld [vmem:[#allocation45_spill] sm:$0xff] }
  0x88   : > { %1487 = vmatpush.bf16.msrb.mxu0 %v6455_v33 }
  0x89   : > { %1501 = vmatpush.bf16.msrb.mxu1 %v6457_v37 }
  0x8a   : > { %1514 = vmatpush.bf16.msrb.mxu2 %v6471_v46  ;;  %1529 = vmatpush.bf16.msrb.mxu3 %v6469_v43  ;;  %v10011_v43 = vld [vmem:[#allocation36_spill] sm:$0xff] }
  0x8c   : > { %1488 = vmatpush.bf16.msrb.mxu0 %v6501_v15  ;;  %v10012_v15 = vld [vmem:[#allocation38_spill] sm:$0xff] }
  0x8d   : > { %1502 = vmatpush.bf16.msrb.mxu1 %v10005_v3  ;;  %v10013_v3 = vld [vmem:[#allocation39_spill] sm:$0xff] }
  0x8e   : > { %1515 = vmatpush.bf16.msrb.mxu2 %v6515_v25  ;;  %1530 = vmatpush.bf16.msrb.mxu3 %v10007_v51 }
  0x8f   : > { %4657 = vperm.xlu1 %5491, %v4652_v40   ;;  %v6844_v40 = vld [vmem:[%s9782_s1] sm:$0xff] }
  0x90   : > { %1489 = vmatpush.bf16.msrb.mxu0 %v10008_v48 }
  0x91   : > { %1503 = vmatpush.bf16.msrb.mxu1 %v10009_v26 }
  0x92   : > { %1516 = vmatpush.bf16.msrb.mxu2 %v10006_v22  ;;  %1531 = vmatpush.bf16.msrb.mxu3 %v10011_v43 }
  0x94   : > { %1490 = vmatpush.bf16.msrb.mxu0 %v10012_v15 }
  0x95   : > { %1504 = vmatpush.bf16.msrb.mxu1 %v10013_v3 }
  0x96   : > { %1517 = vmatpush.bf16.msrb.mxu2 %v10010_v2  ;;  %1532 = vmatpush.bf16.msrb.mxu3 %v10014_v4 }
  0x98   : > { %1491 = vmatpush.bf16.msrb.mxu0 %v6625_v27  ;;  %v410_v27 = vld [vmem:[%s6072_s8 + $0x10] sm:$0xff] }
  0x99   : > { %1505 = vmatpush.bf16.msrb.mxu1 %v10015_v28  ;;  %v417_v43 = vunpack.c.h.bf16 %v410_v27 }
  0x9a   : > { %1518 = vmatpush.bf16.msrb.mxu2 %v6642_v52  ;;  %1533 = vmatpush.bf16.msrb.mxu3 %v10016_v20 }
  0x9c   : > { %1492 = vmatpush.bf16.msrb.mxu0 %v6667_v42  ;;  %v422_v42 = vperm.slane %v6844_v40, 2 }
  0x9d   : > { %1506 = vmatpush.bf16.msrb.mxu1 %v6669_v41  ;;  %v421_v41 = vperm.slane %v6844_v40, 0 }
  0x9e   : > { %1519 = vmatpush.bf16.msrb.mxu2 %v6681_v56  ;;  %1534 = vmatpush.bf16.msrb.mxu3 %v6679_v53  ;;  %v6851_v56 = vperm.slane %v422_v42, 0 }
  0x9f   : > { %v6849_v20 = vperm.slane %v421_v41, 0 }
  0xa0   : > { %1493 = vmatpush.bf16.msrb.mxu0 %v6706_v13  ;;  %10018 = vst [vmem:[#allocation63_spill] sm:$0xff] %v6851_v56  ;;  %v438_v51 = vadd.f32 %v6851_v56, %v417_v43  ;;  %v811_v43 = vperm.slane %v6844_v40, 3 }
  0xa1   : > { %1507 = vmatpush.bf16.msrb.mxu1 %v6708_v61  ;;  %10017 = vst [vmem:[#allocation62_spill] sm:$0xff] %v6849_v20  ;;  %v6856_v61 = vld [vmem:[%s6072_s8 + $0x8] sm:$0xff] }
  0xa2   : > { %1520 = vmatpush.bf16.msrb.mxu2 %v6717_v6  ;;  %1535 = vmatpush.bf16.msrb.mxu3 %v6715_v24  ;;  %v408_v6 = vld [vmem:[%s6072_s8] sm:$0xff]  ;;  %v415_v52 = vunpack.c.h.bf16 %v6856_v61 }
  0xa3   : > { %v412_v53 = vunpack.c.l.bf16 %v408_v6  ;;  %v413_v13 = vunpack.c.h.bf16 %v408_v6  ;;  %v416_v6 = vunpack.c.l.bf16 %v410_v27 }
  0xa5   : > { %v433_v24 = vadd.f32 %v6849_v20, %v412_v53  ;;  %v434_v28 = vadd.f32 %v6851_v56, %v413_v13  ;;  %v411_v53 = vld [vmem:[%s6072_s8 + $0x18] sm:$0xff]  ;;  %v437_v13 = vadd.f32 %v6849_v20, %v416_v6  ;;  %v6888_v56 = vperm.slane %v811_v43, 1 }
  0xa6   : > { %1521 = vmatpush.bf16.msrb.mxu2 %v6731_v55  ;;  %v424_v55 = vperm.slane %v6844_v40, 6 }
  0xa7   : > { %10022 = vst [vmem:[#allocation67_spill] sm:$0xff] %v6888_v56 }
  0xa8   : > { %v6861_v3 = vperm.slane %v424_v55, 0  ;;  %v419_v55 = vunpack.c.h.bf16 %v411_v53 }
  0xaa   : > { %10019 = vst [vmem:[#allocation64_spill] sm:$0xff] %v6861_v3  ;;  %v436_v48 = vadd.f32 %v6861_v3, %v415_v52 }
  0xc0   : > { %v616_v4 = vpop.f32.mrf.mxu0 }
  0xc1   : > { %v663_v41 = vadd.f32 %v616_v4, %v433_v24  ;;  %v630_v15 = vpop.f32.mrf.mxu1 }
  0xc2   : > { %v664_v42 = vadd.f32 %v630_v15, %v434_v28  ;;  %v423_v28 = vperm.slane %v6844_v40, 4 }
  0xc3   : > { %v4997_v2 = vmul.f32 -1.442695, %v663_v41 }
  0xc4   : > { %v4999_v26 = vmul.f32 -1.442695, %v664_v42  ;;  %v5003_v42 = vld [vmem:[%s6077_s12 + $0x2e0] sm:$0xff] }
  0xc5   : > { %5493 = vpow2.f32 %v4997_v2  ;;  %v440_v2 = vadd.f32 %v6861_v3, %v419_v55  ;;  %v6882_v55 = vperm.slane %v423_v28, 0  ;;  %v5005_v3 = vld [vmem:[%s6077_s12 + $0x2f0] sm:$0xff] }
  0xc6   : > { %5495 = vpow2.f32 %v4999_v26  ;;  %v810_v26 = vperm.slane %v6844_v40, 1  ;;  %v806_v28 = vunpack.c.l.bf16 %v5005_v3  ;;  %v807_v33 = vunpack.c.h.bf16 %v5005_v3 }
  0xc7   : > { %10020 = vst [vmem:[#allocation65_spill] sm:$0xff] %v6882_v55 }
  0xc8   : > { %v618_v24 = vpop.f32.mrf.mxu0 }
  0xc9   : > { %v658_v22 = vpop.f32.mrf.mxu3  ;;  %v667_v4 = vadd.f32 %v618_v24, %v437_v13  ;;  %v632_v37 = vpop.f32.mrf.mxu1  ;;  %v6879_v13 = vld [vmem:[%s6077_s12 + $0x2e8] sm:$0xff]  ;;  %v418_v24 = vunpack.c.l.bf16 %v411_v53 }
  0xca   : > { %v666_v25 = vadd.f32 %v658_v22, %v436_v48  ;;  %v668_v27 = vadd.f32 %v632_v37, %v438_v51  ;;  %v813_v37 = vperm.slane %v6844_v40, 7  ;;  %v414_v51 = vunpack.c.l.bf16 %v6856_v61 }
  0xcb   : > { %v5494_v52 = vpop.eup %5493  ;;  %v4998_v41 = vmul.f32 -1.442695, %v667_v4  ;;  %v802_v4 = vunpack.c.l.bf16 %v5003_v42 }
  0xcc   : > { %v5001_v15 = vmul.f32 -1.442695, %v666_v25  ;;  %v5496_v6 = vpop.eup %5495  ;;  %v6872_v22 = vadd.f32 1.0, %v5494_v52  ;;  %v5000_v48 = vmul.f32 -1.442695, %v668_v27  ;;  %v6886_v52 = vperm.slane %v810_v26, 1 }
  0xcd   : > { %v6875_v25 = vadd.f32 1.0, %v5496_v6  ;;  %v803_v6 = vunpack.c.h.bf16 %v5003_v42  ;;  %v6891_v20 = vperm.slane %v813_v37, 1  ;;  %v435_v8 = vadd.f32 %v6882_v55, %v414_v51 }
  0xce   : > { %5497 = vpow2.f32 %v5001_v15  ;;  %v644_v27 = vpop.f32.mrf.mxu2  ;;  %10021 = vst [vmem:[#allocation66_spill] sm:$0xff] %v6886_v52  ;;  %v439_v26 = vadd.f32 %v6882_v55, %v418_v24  ;;  %v6898_v42 = vadd.f32 %v6886_v52, %v802_v4  ;;  %v6916_v24 = vadd.f32 %v6886_v52, %v806_v28 }
  0xcf   : > { %5499 = vpow2.f32 %v4998_v41  ;;  %v805_v41 = vunpack.c.h.bf16 %v6879_v13  ;;  %10023 = vst [vmem:[#allocation68_spill] sm:$0xff] %v6891_v20  ;;  %v6905_v3 = vadd.f32 %v6888_v56, %v803_v6  ;;  %v688_v6 = vand.u32 2147483647, %v6872_v22 }
  0xd0   : > { %5501 = vrcp.f32 %v6872_v22  ;;  %v690_v28 = vand.u32 2147483648, %v6872_v22  ;;  %vm722_vm6 = vweird.f32 %v6875_v25  ;;  %v665_v52 = vadd.f32 %v644_v27, %v435_v8 }
  0xd1   : > { %5503 = vrcp.f32 %v6875_v25  ;;  %v660_v15 = vpop.f32.mrf.mxu3  ;;  %vm684_vm7 = vweird.f32 %v6872_v22  ;;  %vm6941_vm10 = vcmp.eq.f32.partialorder %v688_v6, 8.507059e+37 }
  0xd2   : > { %5505 = vpow2.f32 %v5000_v48  ;;  %v670_v61 = vadd.f32 %v660_v15, %v440_v2  ;;  %v6908_v48 = vadd.f32 %v6891_v20, %v805_v41  ;;  %v728_v15 = vand.u32 2147483648, %v6875_v25 }
  0xd3   : > { %v691_v62 = vor.u32 1.1754944e-38, %v690_v28 }
  0xd4   : > { %v5498_v53 = vpop.eup %5497  ;;  %v5002_v21 = vmul.f32 -1.442695, %v670_v61  ;;  %v6927_v61 = vld [vmem:[%s6077_s12 + $0x2f8] sm:$0xff] }
  0xd5   : > { %v5500_v63 = vpop.eup %5499  ;;  %v6893_v46 = vadd.f32 1.0, %v5498_v53 }
  0xd6   : > { %v6900_v2 = vpop.eup %5501  ;;  %v6902_v43 = vadd.f32 1.0, %v5500_v63  ;;  %5507 = vpow2.f32 %v5002_v21  ;;  %v6919_v63 = vadd.f32 %v6888_v56, %v807_v33  ;;  %v726_v33 = vand.u32 2147483647, %v6875_v25  ;;  %v646_v57 = vpop.f32.mrf.mxu2 }
  0xd7   : > { %v6910_v37 = vpop.eup %5503  ;;  %v680_v51 = vmul.f32 %v6900_v2, %v6872_v22  ;;  %5509 = vrcp.f32 %v6893_v46  ;;  %vm685_vm8 = vweird.f32 %v6900_v2  ;;  %v669_v6 = vadd.f32 %v646_v57, %v439_v26 }
  0xd8   : > { %v5506_v21 = vpop.eup %5505  ;;  %v718_v4 = vmul.f32 %v6910_v37, %v6875_v25  ;;  %5511 = vrcp.f32 %v6902_v43  ;;  %vm723_vm9 = vweird.f32 %v6910_v37  ;;  %vm6950_vm11 = vcmp.eq.f32.partialorder %v726_v33, 8.507059e+37  ;;  %vm6958_vm12 = vmor %vm684_vm7, %vm685_vm8 }
  0xd9   : > { %v681_v41 = vsub.f32 1.0, %v680_v51  ;;  %v6929_v53 = vadd.f32 1.0, %v5506_v21  ;;  %v809_v51 = vunpack.c.h.bf16 %v6927_v61  ;;  %vm6966_vm13 = vmor %vm722_vm6, %vm723_vm9  ;;  %v766_v57 = vand.u32 2147483647, %v6893_v46 }
  0xda   : > { %v719_v56 = vsub.f32 1.0, %v718_v4  ;;  %v729_v4 = vor.u32 1.1754944e-38, %v728_v15  ;;  %vm699_vm14 = vweird.f32 %v6902_v43  ;;  %vm762_vm0 = vweird.f32 %v6893_v46 }
  0xdb   : > { %5513 = vrcp.f32 %v6929_v53  ;;  %v682_v55 = vmul.f32 %v6900_v2, %v681_v41  ;;  %v743_v22 = vand.u32 2147483648, %v6929_v53  ;;  %v6975_v33 = vadd.f32 %v6891_v20, %v809_v51 }
  0xdc   : > { %v5508_v21 = vpop.eup %5507  ;;  %v720_v7 = vmul.f32 %v6910_v37, %v719_v56  ;;  %5515 = vtanh.f32 %v665_v52  ;;  %vm737_vm15 = vweird.f32 %v6929_v53  ;;  %v703_v20 = vand.u32 2147483647, %v6902_v43 }
  0xdd   : > { %v6945_v8 = vpop.eup %5509  ;;  %v6947_v27 = vadd.f32 1.0, %v5508_v21  ;;  %v683_v41 = vadd.f32 %v6900_v2, %v682_v55  ;;  %v705_v29 = vand.u32 2147483648, %v6902_v43  ;;  %v744_v17 = vor.u32 1.1754944e-38, %v743_v22 }
  0xde   : > { %v6954_v39 = vpop.eup %5511  ;;  %v721_v15 = vadd.f32 %v6910_v37, %v720_v7  ;;  %v758_v7 = vmul.f32 %v6945_v8, %v6893_v46  ;;  %vm763_vm2 = vweird.f32 %v6945_v8  ;;  %vm704_vm5 = vcmp.eq.f32.partialorder %v703_v20, 8.507059e+37 }
  0xdf   : > { %v695_v28 = vmul.f32 %v6954_v39, %v6902_v43  ;;  %5517 = vrcp.f32 %v6947_v27  ;;  %v687_v51 = vsel %vm6958_vm12, %v6900_v2, %v683_v41  ;;  %vm700_vm1 = vweird.f32 %v6954_v39  ;;  %vm7042_vm9 = vmor %vm762_vm0, %vm763_vm2 }
  0xe0   : > { %v1005_v52 = vpop.f32.mrf.mxu0  ;;  %v725_v25 = vsel %vm6966_vm13, %v6910_v37, %v721_v15  ;;  %5519 = vtanh.f32 %v669_v6  ;;  %v759_v41 = vsub.f32 1.0, %v758_v7  ;;  %v692_v16 = vsel %vm6941_vm10, %v691_v62, %v687_v51  ;;  %v7001_v37 = vld [vmem:[#allocation3] sm:$0xff]  ;;  %vm7014_vm4 = vmor %vm699_vm14, %vm700_vm1 }
  0xe1   : > { %v1019_v26 = vpop.f32.mrf.mxu1  ;;  %v5514_v21 = vpop.eup %5513  ;;  %v696_v58 = vsub.f32 1.0, %v695_v28  ;;  %v741_v28 = vand.u32 2147483647, %v6929_v53  ;;  %v730_v15 = vsel %vm6950_vm11, %v729_v4, %v725_v25  ;;  %v1052_v22 = vadd.f32 %v1005_v52, %v6898_v42 }
  0xe2   : > { %v733_v38 = vmul.f32 %v5514_v21, %v6929_v53  ;;  %v5516_v2 = vpop.eup %5515  ;;  %v1053_v6 = vadd.f32 %v1019_v26, %v6905_v3  ;;  %vm738_vm3 = vweird.f32 %v5514_v21  ;;  %v706_v54 = vor.u32 1.1754944e-38, %v705_v29 }
  0xe3   : > { %v697_v31 = vmul.f32 %v6954_v39, %v696_v58  ;;  %v5139_v32 = vmul.f32 -1.442695, %v1052_v22  ;;  %v760_v4 = vmul.f32 %v6945_v8, %v759_v41  ;;  %v787_v25 = vmul.f32 %v730_v15, %v7001_v37  ;;  %vm739_vm6 = vmor %vm737_vm15, %vm738_vm3 }
  0xe4   : > { %v734_v56 = vsub.f32 1.0, %v733_v38  ;;  %v5141_v42 = vmul.f32 -1.442695, %v1053_v6  ;;  %v789_v52 = vmul.f32 %v5516_v2, %v692_v16  ;;  %vm742_vm7 = vcmp.eq.f32.partialorder %v741_v28, 8.507059e+37 }
  0xe5   : > { %v6999_v55 = vpop.eup %5517  ;;  %v698_v58 = vadd.f32 %v6954_v39, %v697_v31  ;;  %5521 = vpow2.f32 %v5139_v32  ;;  %vm7030_vm8 = vcmp.eq.f32.partialorder %v766_v57, 8.507059e+37  ;;  %v761_v22 = vadd.f32 %v6945_v8, %v760_v4 }
  0xe6   : > { %v735_v7 = vmul.f32 %v5514_v21, %v734_v56  ;;  %v773_v38 = vmul.f32 %v6999_v55, %v6947_v27  ;;  %v5520_v56 = vpop.eup %5519  ;;  %5523 = vpow2.f32 %v5141_v42  ;;  %v7036_v6 = vadd.f32 %v789_v52, %v787_v25 }
  0xe7   : > { %v702_v31 = vsel %vm7014_vm4, %v6954_v39, %v698_v58  ;;  %v7027_v39 = vld [vmem:[#allocation3 + $0x8] sm:$0xff]  ;;  %v10038_v57 = vand.u32 2147483648, %v6893_v46  ;;  %vm777_vm10 = vweird.f32 %v6947_v27  ;;  %v781_v42 = vand.u32 2147483647, %v6947_v27 }
  0xe8   : > { %v1047_v3 = vpop.f32.mrf.mxu3  ;;  %v736_v26 = vadd.f32 %v5514_v21, %v735_v7  ;;  %v1007_v43 = vpop.f32.mrf.mxu0  ;;  %v774_v20 = vsub.f32 1.0, %v773_v38  ;;  %v707_v62 = vsel %vm704_vm5, %v706_v54, %v702_v31  ;;  %v804_v38 = vunpack.c.l.bf16 %v6879_v13 }
  0xe9   : > { %v1021_v51 = vpop.f32.mrf.mxu1  ;;  %v1055_v29 = vadd.f32 %v1047_v3, %v6908_v48  ;;  %v1056_v16 = vadd.f32 %v1007_v43, %v6916_v24  ;;  %v790_v48 = vmul.f32 %v5520_v56, %v707_v62  ;;  %v769_v28 = vor.u32 1.1754944e-38, %v10038_v57  ;;  %v7071_v56 = vpop.permute.xlu0 %1196 }
  0xea   : > { %v740_v58 = vsel %vm739_vm6, %v5514_v21, %v736_v26  ;;  %v1057_v53 = vadd.f32 %v1021_v51, %v6919_v63  ;;  %v775_v21 = vmul.f32 %v6999_v55, %v774_v20  ;;  %v10039_v31 = vperm.slane %v6844_v40, 5 }
  0xeb   : > { %v745_v41 = vsel %vm742_vm7, %v744_v17, %v740_v58  ;;  %v5143_v15 = vmul.f32 -1.442695, %v1055_v29  ;;  %v5140_v7 = vmul.f32 -1.442695, %v1056_v16  ;;  %v5522_v32 = vpop.eup %5521  ;;  %v783_v3 = vand.u32 2147483648, %v6947_v27 }
  0xec   : > { %v788_v17 = vmul.f32 %v745_v41, %v7027_v39  ;;  %v5142_v63 = vmul.f32 -1.442695, %v1057_v53  ;;  %v7053_v54 = vperm.slane %v10039_v31, 1  ;;  %v5524_v25 = vpop.eup %5523  ;;  %v765_v46 = vsel %vm7042_vm9, %v6945_v8, %v761_v22  ;;  %v1033_v13 = vpop.f32.mrf.mxu2 }
  0xed   : > { %5525 = vpow2.f32 %v5143_v15  ;;  %vm778_vm11 = vweird.f32 %v6999_v55  ;;  %v7063_v40 = vadd.f32 1.0, %v5522_v32  ;;  %v776_v52 = vadd.f32 %v6999_v55, %v775_v21 }
  0xee   : > { %5527 = vpow2.f32 %v5140_v7  ;;  %10040 = vst [vmem:[#allocation69_spill] sm:$0xff] %v7053_v54  ;;  %v7066_v26 = vadd.f32 %v790_v48, %v788_v17  ;;  %v7068_v43 = vadd.f32 1.0, %v5524_v25  ;;  %v824_v8 = vadd.f32 %v7053_v54, %v804_v38  ;;  %vm7084_vm13 = vmor %vm777_vm10, %vm778_vm11 }
  0xef   : > { %5529 = vpow2.f32 %v5142_v63  ;;  %vm7075_vm12 = vcmp.eq.f32.partialorder %v781_v42, 8.507059e+37  ;;  %v784_v58 = vor.u32 1.1754944e-38, %v783_v3  ;;  %v808_v41 = vunpack.c.l.bf16 %v6927_v61 }
  0xf0   : > { %v1049_v4 = vpop.f32.mrf.mxu3  ;;  %5531 = vtanh.f32 %v7036_v6  ;;  %v770_v15 = vsel %vm7030_vm8, %v769_v28, %v765_v46  ;;  %v780_v27 = vsel %vm7084_vm13, %v6999_v55, %v776_v52  ;;  %v1054_v24 = vadd.f32 %v1033_v13, %v824_v8 }
  0xf1   : > { %v1059_v51 = vadd.f32 %v1049_v4, %v6975_v33  ;;  %5533 = vrcp.f32 %v7063_v40  ;;  %v1077_v21 = vand.u32 2147483647, %v7063_v40  ;;  %v1079_v61 = vand.u32 2147483648, %v7063_v40 }
  0xf2   : > { %5535 = vrcp.f32 %v7068_v43  ;;  %v1117_v2 = vand.u32 2147483648, %v7068_v43  ;;  %v1115_v63 = vand.u32 2147483647, %v7068_v43  ;;  %v828_v55 = vadd.f32 %v7053_v54, %v808_v41 }
  0xf3   : > { %v5526_v20 = vpop.eup %5525  ;;  %5537 = vtanh.f32 %v7066_v26  ;;  %v5144_v48 = vmul.f32 -1.442695, %v1059_v51  ;;  %v7110_v28 = vsel %vm7075_vm12, %v784_v58, %v780_v27  ;;  %vm1073_vm14 = vweird.f32 %v7063_v40 }
  0xf4   : > { %v5528_v29 = vpop.eup %5527  ;;  %v7088_v16 = vadd.f32 1.0, %v5526_v20  ;;  %vm1111_vm15 = vweird.f32 %v7068_v43  ;;  %vm7119_vm0 = vcmp.eq.f32.partialorder %v1077_v21, 8.507059e+37  ;;  %v1035_v4 = vpop.f32.mrf.mxu2  ;;  %v1118_v13 = vor.u32 1.1754944e-38, %v1117_v2 }
  0xf5   : > { %v5530_v53 = vpop.eup %5529  ;;  %v7094_v22 = vadd.f32 1.0, %v5528_v29  ;;  %v1080_v52 = vor.u32 1.1754944e-38, %v1079_v61  ;;  %vm7123_vm1 = vcmp.eq.f32.partialorder %v1115_v63, 8.507059e+37  ;;  %vm1201_vm2 = vcmp.eq.s32.totalorder %v7071_v56, 1  ;;  %v7130_v20 = vpop.permute.xlu0 %1199 }
  0xf6   : > { %v5532_v7 = vpop.eup %5531  ;;  %5539 = vrcp.f32 %v7088_v16  ;;  %v7104_v17 = vadd.f32 1.0, %v5530_v53  ;;  %vm1202_vm3 = vcmp.eq.s32.totalorder %v7130_v20, 1  ;;  %vm1151_vm10 = vweird.f32 %v7088_v16  ;;  %vm7179_vm13 = vmpackc.low %vm1201_vm2, %vm1201_vm2  ;;  %v10130_v20 = vld [vmem:[#allocation68_spill] sm:$0xff] }
  0xf7   : > { %5541 = vrcp.f32 %v7094_v22  ;;  %v5534_v57 = vpop.eup %5533  ;;  %v7115_v32 = vmul.f32 %v5532_v7, %v770_v15  ;;  %vm1088_vm6 = vweird.f32 %v7094_v22  ;;  %v1092_v21 = vand.u32 2147483647, %v7094_v22 }
  0xf8   : > { %5543 = vpow2.f32 %v5144_v48  ;;  %v5536_v38 = vpop.eup %5535  ;;  %v1069_v31 = vmul.f32 %v5534_v57, %v7063_v40  ;;  %v1132_v58 = vand.u32 2147483648, %v7104_v17  ;;  %vm1074_vm4 = vweird.f32 %v5534_v57 }
  0xf9   : > { %5545 = vrcp.f32 %v7104_v17  ;;  %v1107_v42 = vmul.f32 %v5536_v38, %v7068_v43  ;;  %v5538_v25 = vpop.eup %5537  ;;  %v1058_v48 = vadd.f32 %v1035_v4, %v828_v55  ;;  %vm1112_vm5 = vweird.f32 %v5536_v38  ;;  %vm1075_vm8 = vmor %vm1073_vm14, %vm1074_vm4 }
  0xfa   : > { %5547 = vtanh.f32 %v1054_v24  ;;  %v1070_v46 = vsub.f32 1.0, %v1069_v31  ;;  %vm1126_vm7 = vweird.f32 %v7104_v17  ;;  %vm1113_vm9 = vmor %vm1111_vm15, %vm1112_vm5  ;;  %vm7165_vm11 = vcmp.eq.f32.partialorder %v1092_v21, 8.507059e+37 }
  0xfb   : > { %v1108_v62 = vsub.f32 1.0, %v1107_v42 }
  0xfc   : > { %v7127_v8 = vpop.eup %5539  ;;  %v1071_v53 = vmul.f32 %v5534_v57, %v1070_v46  ;;  %v1133_v46 = vor.u32 1.1754944e-38, %v1132_v58 }
  0xfd   : > { %v7135_v41 = vpop.eup %5541  ;;  %v1147_v15 = vmul.f32 %v7127_v8, %v7088_v16  ;;  %v1109_v7 = vmul.f32 %v5536_v38, %v1108_v62  ;;  %vm1152_vm14 = vweird.f32 %v7127_v8 }
  0xfe   : > { %v5544_v27 = vpop.eup %5543  ;;  %v1084_v24 = vmul.f32 %v7135_v41, %v7094_v22  ;;  %v1072_v63 = vadd.f32 %v5534_v57, %v1071_v53  ;;  %vm1089_vm12 = vweird.f32 %v7135_v41 }
  0xff   : > { %v7144_v61 = vpop.eup %5545  ;;  %v1148_v2 = vsub.f32 1.0, %v1147_v15  ;;  %v7147_v31 = vadd.f32 1.0, %v5544_v27  ;;  %v1110_v62 = vadd.f32 %v5536_v38, %v1109_v7  ;;  %v7157_v15 = vld [vmem:[#allocation5 + $0x8] sm:$0xff]  ;;  %v1094_v27 = vand.u32 2147483648, %v7094_v22 }
 0x100   : > { %v5548_v42 = vpop.eup %5547  ;;  %v1085_v55 = vsub.f32 1.0, %v1084_v24  ;;  %v1122_v4 = vmul.f32 %v7144_v61, %v7104_v17  ;;  %v1076_v53 = vsel %vm1075_vm8, %v5534_v57, %v1072_v63  ;;  %v1130_v24 = vand.u32 2147483647, %v7104_v17 }
 0x101   : > { %5549 = vrcp.f32 %v7147_v31  ;;  %v1081_v40 = vsel %vm7119_vm0, %v1080_v52, %v1076_v53  ;;  %v1114_v7 = vsel %vm1113_vm9, %v5536_v38, %v1110_v62  ;;  %v1149_v43 = vmul.f32 %v7127_v8, %v1148_v2  ;;  %vm7189_vm0 = vmpackc.low %vm1202_vm3, %vm1202_vm3  ;;  %v397_v2 = vld [vmem:[#allocation2] sm:$0xf] }
 0x102   : > { %v1123_v58 = vsub.f32 1.0, %v1122_v4  ;;  %v1119_v57 = vsel %vm7123_vm1, %v1118_v13, %v1114_v7  ;;  %v1178_v63 = vmul.f32 %v5548_v42, %v1081_v40  ;;  %5551 = vtanh.f32 %v1058_v48  ;;  %vm1090_vm1 = vmor %vm1088_vm6, %vm1089_vm12  ;;  %v7217_v53 = vld [vmem:[#allocation5] sm:$0xff] }
 0x103   : > { %v1176_v54 = vmul.f32 %v1119_v57, %v7157_v15  ;;  %v1086_v4 = vmul.f32 %v7135_v41, %v1085_v55  ;;  %vm1127_vm15 = vweird.f32 %v7144_v61  ;;  %v1095_v3 = vor.u32 1.1754944e-38, %v1094_v27  ;;  %vm7241_vm6 = vmor %vm1151_vm10, %vm1152_vm14 }
 0x104   : > { %v1124_v33 = vmul.f32 %v7144_v61, %v1123_v58  ;;  %v796_v13 = vmul.f32 %v5538_v25, %v7110_v28  ;;  %v1226_v42 = vpack.c.bf16 %v7115_v32, %v7115_v32  ;;  %v1150_v28 = vadd.f32 %v7127_v8, %v1149_v43  ;;  %vm1128_vm5 = vmor %vm1126_vm7, %vm1127_vm15 }
 0x105   : > { %v7193_v51 = vadd.f32 %v1178_v63, %v1176_v54  ;;  %v1087_v48 = vadd.f32 %v7135_v41, %v1086_v4  ;;  %vm7204_vm4 = vcmp.eq.f32.partialorder %v1130_v24, 8.507059e+37  ;;  %v398_v54 = vld [vmem:[#allocation2 + $0x4] sm:$0xf]  ;;  %v1203_v24 = vsel %vm1201_vm2, %v7115_v32, 0.0 }
 0x106   : > { %v1125_v21 = vadd.f32 %v7144_v61, %v1124_v33  ;;  %v1204_v33 = vsel %vm1202_vm3, %v796_v13, 0.0  ;;  %v1227_v62 = vpack.c.bf16 %v796_v13, %v796_v13  ;;  %v7229_v43 = vsel %vm7179_vm13, %v1226_v42, %v397_v2 }
 0x107   : > { %v7199_v55 = vpop.eup %5549  ;;  %5553 = vtanh.f32 %v7193_v51  ;;  %v1091_v27 = vsel %vm1090_vm1, %v7135_v41, %v1087_v48  ;;  %v5388_v7 = vpack.c.bf16 %v1204_v33, %v1203_v24  ;;  %v1265_v4 = vunpack.c.l.b16 %v7229_v43  ;;  %v7258_v48 = vld [vmem:[%s9781_s0] sm:$0xff] }
 0x108   : > { %v1162_v22 = vmul.f32 %v7199_v55, %v7147_v31  ;;  %v5552_v58 = vpop.eup %5551  ;;  %v1096_v17 = vsel %vm7165_vm11, %v1095_v3, %v1091_v27  ;;  %v1129_v40 = vsel %vm1128_vm5, %v7144_v61, %v1125_v21  ;;  %v7235_v32 = vsel %vm7189_vm0, %v1227_v62, %v398_v54  ;;  %v7249_v3 = vpop.permute.xlu1 %1212 }
 0x109   : > { %v1134_v41 = vsel %vm7204_vm4, %v1133_v46, %v1129_v40  ;;  %v1179_v63 = vmul.f32 %v5552_v58, %v1096_v17  ;;  %5389 = vst [vmem:[%s6082_s15] sm:$0xff] %v5388_v7   ;;  %v1266_v46 = vunpack.c.l.b16 %v7235_v32  ;;  %v1677_v38 = vstv %s1676_s26 }
 0x10a   : > { %v1163_v57 = vsub.f32 1.0, %v1162_v22  ;;  %v1177_v61 = vmul.f32 %v1134_v41, %v7217_v53  ;;  %v1154_v13 = vsel %vm7241_vm6, %v7127_v8, %v1150_v28  ;;  %vm1678_vm7 = vcmp.lt.s32.totalorder %v1677_v38, %v7258_v48 }
 0x10b   : > { %v10059_v21 = vand.u32 2147483648, %v7088_v16  ;;  %v1267_v25 = vpack.c.b16 %v1266_v46, %v1265_v4  ;;  %v1684_v54 = vsel %vm1678_vm7, 1, %v9987_v47  ;;  %v10060_v8 = vand.u32 2147483647, %v7088_v16  ;;  %v7277_v16 = vld [vmem:[%s9781_s0 + $0x8] sm:$0xff] }
 0x10c   : > { %v1164_v52 = vmul.f32 %v7199_v55, %v1163_v57  ;;  %v7263_v42 = vadd.f32 %v1179_v63, %v1177_v61  ;;  %vm1167_vm9 = vweird.f32 %v7199_v55  ;;  %1687 = vperm.xlu2 %5492, %v1684_v54   ;;  %v1172_v62 = vand.u32 2147483648, %v7147_v31  ;;  %v402_v61 = vld [vmem:[#allocation4 + $0x4] sm:$0xf]  ;;  %v10063_v4 = vld [vmem:[#allocation29_spill] sm:$0xff]  ;;  %v10074_v57 = vld [vmem:[#allocation16_spill] sm:$0xff] }
 0x10d   : > { %v1158_v2 = vor.u32 1.1754944e-38, %v10059_v21  ;;  %v5554_v33 = vpop.eup %5553  ;;  %vm1156_vm8 = vcmp.eq.f32.partialorder %v10060_v8, 8.507059e+37  ;;  %1277 = vmatmul.bf16.vlgmr.msra.gmra.mxu0 %v1267_v25  ;;  %1291 = vmatmul.bf16.vlgmr.msra.gmra.mxu1 %v1267_v25  ;;  %vm1166_vm10 = vweird.f32 %v7147_v31  ;;  %v1170_v27 = vand.u32 2147483647, %v7147_v31 }
 0x10e   : > { %v1165_v28 = vadd.f32 %v7199_v55, %v1164_v52  ;;  %5555 = vtanh.f32 %v7263_v42  ;;  %1305 = vmatmul.bf16.vlgmr.msra.gmra.mxu2 %v1267_v25  ;;  %1319 = vmatmul.bf16.vlgmr.msra.gmra.mxu3 %v1267_v25  ;;  %vm1679_vm11 = vcmp.lt.s32.totalorder %v1677_v38, %v7277_v16  ;;  %vm1168_vm12 = vmor %vm1166_vm10, %vm1167_vm9  ;;  %v1173_v31 = vor.u32 1.1754944e-38, %v1172_v62 }
 0x10f   : > { %v1159_v22 = vsel %vm1156_vm8, %v1158_v2, %v1154_v13  ;;  %1761 = vmatpush.bf16.msra.mxu0 %v6098_v5  ;;  %1775 = vmatpush.bf16.msra.mxu1 %v6109_v9  ;;  %v1685_v17 = vsel %vm1679_vm11, 1, %v9987_v47  ;;  %vm1217_vm13 = vcmp.eq.s32.totalorder %v7249_v3, 1  ;;  %vm1171_vm14 = vcmp.eq.f32.partialorder %v1170_v27, 8.507059e+37  ;;  %v10068_v27 = vld [vmem:[#allocation14_spill] sm:$0xff] }
 0x110   : > { %v1184_v24 = vmul.f32 %v5554_v33, %v1159_v22  ;;  %v1169_v58 = vsel %vm1168_vm12, %v7199_v55, %v1165_v28  ;;  %1789 = vmatpush.bf16.msra.mxu2 %v6149_v23  ;;  %1803 = vmatpush.bf16.msra.mxu3 %v6111_v10  ;;  %vm7290_vm15 = vmpackc.low %vm1217_vm13, %vm1217_vm13  ;;  %v401_v55 = vld [vmem:[#allocation4] sm:$0xf]  ;;  %v7296_v63 = vpop.permute.xlu1 %1215  ;;  %vm2170_vm1 = vcmp.lt.s32.totalorder %v10063_v4, %v7258_v48  ;;  %v10066_v28 = vld [vmem:[#allocation42_spill] sm:$0xff] }
 0x111   : > { %v1174_v41 = vsel %vm1171_vm14, %v1173_v31, %v1169_v58  ;;  %vm1218_vm0 = vcmp.eq.s32.totalorder %v7296_v63, 1  ;;  %v2176_v33 = vsel %vm2170_vm1, 1, %v9987_v47  ;;  %vm2175_vm5 = vcmp.lt.s32.totalorder %v10066_v28, %v7277_v16  ;;  %v10067_v22 = vld [vmem:[#allocation11_spill] sm:$0xff]  ;;  %v10070_v58 = vld [vmem:[#allocation12_spill] sm:$0xff]  ;;  %v10071_v31 = vld [vmem:[#allocation13_spill] sm:$0xff] }
 0x112   : > { %v1234_v40 = vpack.c.bf16 %v1184_v24, %v1184_v24  ;;  %v1219_v46 = vsel %vm1217_vm13, %v1184_v24, 0.0  ;;  %vm1237_vm4 = vmpackc.low %vm1218_vm0, %vm1218_vm0  ;;  %v2194_v62 = vsel %vm2175_vm5, 1, %v9987_v47  ;;  %v10069_v24 = vld [vmem:[#allocation47_spill] sm:$0xff]  ;;  %v10079_v4 = vld [vmem:[#allocation57_spill] sm:$0xff] }
 0x113   : > { %1762 = vmatpush.bf16.msra.mxu0 %v6123_v14  ;;  %1776 = vmatpush.bf16.msra.mxu1 %v6136_v18  ;;  %vm2666_vm6 = vcmp.lt.s32.totalorder %v10069_v24, %v7258_v48  ;;  %vm3155_vm7 = vcmp.lt.s32.totalorder %v10079_v4, %v7277_v16  ;;  %v10087_v28 = vld [vmem:[#allocation27_spill] sm:$0xff]  ;;  %v10089_v24 = vld [vmem:[#allocation58_spill] sm:$0xff]  ;;  %v10091_v4 = vld [vmem:[#allocation37_spill] sm:$0xff] }
 0x114   : > { %v5556_v7 = vpop.eup %5555  ;;  %1690 = vperm.xlu2 %5492, %v1685_v17   ;;  %1790 = vmatpush.bf16.msra.mxu2 %v6188_v36  ;;  %v7309_v52 = vsel %vm7290_vm15, %v1234_v40, %v401_v55  ;;  %v10072_v17 = vld [vmem:[#allocation15_spill] sm:$0xff]  ;;  %v2685_v40 = vsel %vm2666_vm6, 1, %v9987_v47  ;;  %v10075_v55 = vld [vmem:[#allocation17_spill] sm:$0xff]  ;;  %vm3646_vm8 = vcmp.lt.s32.totalorder %v10089_v24, %v7258_v48 }
 0x115   : > { %v1185_v29 = vmul.f32 %v5556_v7, %v1174_v41  ;;  %1804 = vmatpush.bf16.msra.mxu3 %v6138_v19  ;;  %10064 = vst [vmem:[#allocation29_spill] sm:$0xff] %v7309_v52  ;;  %v1482_v25 = vunpack.c.l.b16 %v7309_v52  ;;  %v10073_v7 = vld [vmem:[#allocation18_spill] sm:$0xff]  ;;  %v10076_v41 = vld [vmem:[#allocation19_spill] sm:$0xff] }
 0x116   : > { %v10098_v24 = vld [vmem:[#allocation59_spill] sm:$0xff] }
 0x117   : > { %v1220_v38 = vsel %vm1218_vm0, %v1185_v29, 0.0  ;;  %v1235_v13 = vpack.c.bf16 %v1185_v29, %v1185_v29  ;;  %1763 = vmatpush.bf16.msra.mxu0 %v6171_v30  ;;  %1777 = vmatpush.bf16.msra.mxu1 %v6184_v34  ;;  %v10077_v29 = vld [vmem:[#allocation24_spill] sm:$0xff]  ;;  %vm3651_vm9 = vcmp.lt.s32.totalorder %v10098_v24, %v7277_v16 }
 0x118   : > { %v5393_v21 = vpack.c.bf16 %v1220_v38, %v1219_v46  ;;  %1791 = vmatpush.bf16.msra.mxu2 %v6213_v45  ;;  %v10080_v46 = vld [vmem:[#allocation22_spill] sm:$0xff]  ;;  %v10081_v38 = vld [vmem:[#allocation28_spill] sm:$0xff]  ;;  %v1708_v63 = vpop.permute.xlu1 %1707 }
 0x119   : > { %v7316_v2 = vsel %vm1237_vm4, %v1235_v13, %v402_v61  ;;  %1805 = vmatpush.bf16.msra.mxu3 %v6186_v35  ;;  %v10078_v61 = vld [vmem:[#allocation21_spill] sm:$0xff]  ;;  %v10082_v13 = vld [vmem:[#allocation20_spill] sm:$0xff] }
 0x11a   : > { %10065 = vst [vmem:[#allocation70_spill] sm:$0xff] %v7316_v2  ;;  %v1483_v54 = vunpack.c.l.b16 %v7316_v2  ;;  %v10107_v24 = vld [vmem:[#allocation60_spill] sm:$0xff] }
 0x11b   : > { %5465 = vst [vmem:[%s6087_s19 + $0x38] sm:$0xff] %v5393_v21   ;;  %1764 = vmatpush.bf16.msra.mxu0 %v6211_v44  ;;  %1778 = vmatpush.bf16.msra.mxu1 %v6226_v49  ;;  %v10083_v21 = vld [vmem:[#allocation23_spill] sm:$0xff]  ;;  %vm4142_vm10 = vcmp.lt.s32.totalorder %v10107_v24, %v7258_v48  ;;  %v10115_v48 = vld [vmem:[#allocation61_spill] sm:$0xff] }
 0x11c   : > { %v1484_v8 = vpack.c.b16 %v1483_v54, %v1482_v25  ;;  %2179 = vperm.xlu2 %5492, %v2176_v33   ;;  %1792 = vmatpush.bf16.msra.mxu2 %v6259_v60  ;;  %v3161_v25 = vsel %vm3155_vm7, 1, %v9987_v47  ;;  %v10084_v54 = vld [vmem:[#allocation25_spill] sm:$0xff]  ;;  %v10085_v33 = vld [vmem:[#allocation26_spill] sm:$0xff]  ;;  %vm4630_vm11 = vcmp.lt.s32.totalorder %v10115_v48, %v7277_v16 }
 0x11d   : > { %1806 = vmatpush.bf16.msra.mxu3 %v6228_v50  ;;  %v4635_v24 = vsel %vm4630_vm11, 1, %v9987_v47 }
 0x11e   : > { %1494 = vmatmul.bf16.vlgmr.msrb.gmra.mxu0 %v1484_v8  ;;  %1508 = vmatmul.bf16.vlgmr.msrb.gmra.mxu1 %v1484_v8 }
 0x11f   : > { %1522 = vmatmul.bf16.vlgmr.msrb.gmra.mxu2 %v1484_v8  ;;  %1536 = vmatmul.bf16.vlgmr.msrb.gmra.mxu3 %v1484_v8  ;;  %v10086_v8 = vld [vmem:[#allocation33_spill] sm:$0xff] }
 0x120   : > { %1765 = vmatpush.bf16.msra.mxu0 %v6257_v59  ;;  %1779 = vmatpush.bf16.msra.mxu1 %v6272_v0 }
 0x121   : > { %1793 = vmatpush.bf16.msra.mxu2 %v6300_v12  ;;  %1807 = vmatpush.bf16.msra.mxu3 %v6274_v1 }
 0x124   : > { %1766 = vmatpush.bf16.msra.mxu0 %v6298_v11  ;;  %2199 = vperm.xlu2 %5492, %v2194_v62   ;;  %v10088_v62 = vld [vmem:[#allocation30_spill] sm:$0xff] }
 0x125   : > { %1780 = vmatpush.bf16.msra.mxu1 %v10067_v22  ;;  %1794 = vmatpush.bf16.msra.mxu2 %v10068_v27 }
 0x126   : > { %1808 = vmatpush.bf16.msra.mxu3 %v10070_v58 }
 0x128   : > { %1767 = vmatpush.bf16.msra.mxu0 %v10071_v31 }
 0x129   : > { %1781 = vmatpush.bf16.msra.mxu1 %v10072_v17  ;;  %1795 = vmatpush.bf16.msra.mxu2 %v10073_v7 }
 0x12a   : > { %1809 = vmatpush.bf16.msra.mxu3 %v10074_v57  ;;  %v5150_v57 = vld [vmem:[%s6072_s8 + $0x38] sm:$0xff] }
 0x12c   : > { %1768 = vmatpush.bf16.msra.mxu0 %v10075_v55  ;;  %2688 = vperm.xlu2 %5492, %v2685_v40   ;;  %v10090_v40 = vld [vmem:[#allocation31_spill] sm:$0xff] }
 0x12d   : > { %1782 = vmatpush.bf16.msra.mxu1 %v10076_v41  ;;  %1796 = vmatpush.bf16.msra.mxu2 %v10077_v29 }
 0x12e   : > { %1810 = vmatpush.bf16.msra.mxu3 %v10082_v13 }
 0x130   : > { %1978 = vmatpush.bf16.msrb.mxu0 %v10078_v61  ;;  %v5148_v61 = vld [vmem:[%s6072_s8 + $0x28] sm:$0xff] }
 0x131   : > { %1992 = vmatpush.bf16.msrb.mxu1 %v10080_v46  ;;  %2006 = vmatpush.bf16.msrb.mxu2 %v10081_v38  ;;  %v10093_v38 = vld [vmem:[#allocation34_spill] sm:$0xff]  ;;  %v10117_v46 = vld [vmem:[#allocation63_spill] sm:$0xff]  ;;  %v1250_v13 = vunpack.c.h.bf16 %v5148_v61 }
 0x132   : > { %2020 = vmatpush.bf16.msrb.mxu3 %v10083_v21  ;;  %v10092_v21 = vld [vmem:[#allocation32_spill] sm:$0xff] }
 0x134   : > { %1979 = vmatpush.bf16.msrb.mxu0 %v10084_v54  ;;  %3166 = vperm.xlu2 %5492, %v3161_v25   ;;  %v3652_v54 = vsel %vm3646_vm8, 1, %v9987_v47  ;;  %v10095_v25 = vld [vmem:[#allocation41_spill] sm:$0xff] }
 0x135   : > { %1993 = vmatpush.bf16.msrb.mxu1 %v10085_v33  ;;  %2007 = vmatpush.bf16.msrb.mxu2 %v10086_v8  ;;  %v10094_v33 = vld [vmem:[#allocation35_spill] sm:$0xff] }
 0x136   : > { %2021 = vmatpush.bf16.msrb.mxu3 %v10087_v28  ;;  %v10096_v28 = vld [vmem:[#allocation36_spill] sm:$0xff]  ;;  %v10102_v8 = vld [vmem:[#allocation43_spill] sm:$0xff] }
 0x138   : > { %1980 = vmatpush.bf16.msrb.mxu0 %v10088_v62  ;;  %v10097_v62 = vld [vmem:[#allocation38_spill] sm:$0xff] }
 0x139   : > { %1994 = vmatpush.bf16.msrb.mxu1 %v10090_v40  ;;  %2008 = vmatpush.bf16.msrb.mxu2 %v10091_v4  ;;  %v10099_v40 = vld [vmem:[#allocation39_spill] sm:$0xff]  ;;  %v10100_v4 = vld [vmem:[#allocation46_spill] sm:$0xff] }
 0x13a   : > { %2022 = vmatpush.bf16.msrb.mxu3 %v10092_v21  ;;  %v10101_v21 = vld [vmem:[#allocation40_spill] sm:$0xff] }
 0x13c   : > { %1981 = vmatpush.bf16.msrb.mxu0 %v10093_v38  ;;  %3655 = vperm.xlu2 %5492, %v3652_v54   ;;  %v3670_v38 = vsel %vm3651_vm9, 1, %v9987_v47  ;;  %v10104_v54 = vld [vmem:[#allocation51_spill] sm:$0xff] }
 0x13d   : > { %1995 = vmatpush.bf16.msrb.mxu1 %v10094_v33  ;;  %2009 = vmatpush.bf16.msrb.mxu2 %v10095_v25  ;;  %v10103_v33 = vld [vmem:[#allocation44_spill] sm:$0xff] }
 0x13e   : > { %2023 = vmatpush.bf16.msrb.mxu3 %v10096_v28  ;;  %v10105_v28 = vld [vmem:[#allocation45_spill] sm:$0xff] }
 0x140   : > { %1982 = vmatpush.bf16.msrb.mxu0 %v10097_v62  ;;  %v10106_v62 = vld [vmem:[#allocation48_spill] sm:$0xff] }
 0x141   : > { %1996 = vmatpush.bf16.msrb.mxu1 %v10099_v40  ;;  %2010 = vmatpush.bf16.msrb.mxu2 %v10100_v4  ;;  %v10108_v4 = vld [vmem:[#allocation49_spill] sm:$0xff]  ;;  %v10110_v40 = vld [vmem:[#allocation50_spill] sm:$0xff] }
 0x142   : > { %2024 = vmatpush.bf16.msrb.mxu3 %v10101_v21  ;;  %v10109_v21 = vld [vmem:[#allocation55_spill] sm:$0xff] }
 0x144   : > { %1983 = vmatpush.bf16.msrb.mxu0 %v10102_v8  ;;  %3675 = vperm.xlu2 %5492, %v3670_v38   ;;  %v10112_v38 = vld [vmem:[#allocation53_spill] sm:$0xff]  ;;  %v10116_v8 = vld [vmem:[#allocation62_spill] sm:$0xff] }
 0x145   : > { %1997 = vmatpush.bf16.msrb.mxu1 %v10103_v33  ;;  %2011 = vmatpush.bf16.msrb.mxu2 %v10104_v54  ;;  %v4161_v33 = vsel %vm4142_vm10, 1, %v9987_v47  ;;  %v10111_v54 = vld [vmem:[#allocation52_spill] sm:$0xff] }
 0x146   : > { %2025 = vmatpush.bf16.msrb.mxu3 %v10105_v28  ;;  %v10113_v28 = vld [vmem:[#allocation56_spill] sm:$0xff] }
 0x148   : > { %1984 = vmatpush.bf16.msrb.mxu0 %v10106_v62  ;;  %v10114_v62 = vld [vmem:[#allocation54_spill] sm:$0xff] }
 0x149   : > { %1998 = vmatpush.bf16.msrb.mxu1 %v10108_v4  ;;  %2012 = vmatpush.bf16.msrb.mxu2 %v10109_v21  ;;  %v5147_v21 = vld [vmem:[%s6072_s8 + $0x20] sm:$0xff] }
 0x14a   : > { %2026 = vmatpush.bf16.msrb.mxu3 %v10110_v40  ;;  %v1247_v40 = vunpack.c.l.bf16 %v5147_v21  ;;  %v1248_v4 = vunpack.c.h.bf16 %v5147_v21 }
 0x14c   : > { %1985 = vmatpush.bf16.msrb.mxu0 %v10111_v54  ;;  %4164 = vperm.xlu2 %5492, %v4161_v33   ;;  %v1255_v25 = vadd.f32 %v1247_v40, %v10116_v8  ;;  %v1256_v54 = vadd.f32 %v1248_v4, %v10117_v46 }
 0x14d   : > { %1999 = vmatpush.bf16.msrb.mxu1 %v10112_v38  ;;  %2013 = vmatpush.bf16.msrb.mxu2 %v10113_v28  ;;  %v5149_v38 = vld [vmem:[%s6072_s8 + $0x30] sm:$0xff] }
 0x14e   : > { %2027 = vmatpush.bf16.msrb.mxu3 %v10114_v62  ;;  %v1251_v41 = vunpack.c.l.bf16 %v5149_v38  ;;  %v1252_v16 = vunpack.c.h.bf16 %v5149_v38  ;;  %v1254_v38 = vunpack.c.h.bf16 %v5150_v57 }
 0x150   : > { %v1259_v21 = vadd.f32 %v1251_v41, %v10116_v8  ;;  %v1260_v40 = vadd.f32 %v1252_v16, %v10117_v46  ;;  %v10119_v16 = vld [vmem:[#allocation65_spill] sm:$0xff] }
 0x154   : > { %4640 = vperm.xlu2 %5492, %v4635_v24   ;;  %v10118_v24 = vld [vmem:[#allocation64_spill] sm:$0xff] }
 0x155   : > { %v1258_v55 = vadd.f32 %v1250_v13, %v10118_v24 }
 0x18a   : > { %v1278_v28 = vpop.f32.mrf.mxu0  ;;  %v1292_v33 = vpop.f32.mrf.mxu1 }
 0x18b   : > { %v1325_v62 = vadd.f32 %v1278_v28, %v1255_v25  ;;  %v1326_v29 = vadd.f32 %v1292_v33, %v1256_v54  ;;  %v1249_v25 = vunpack.c.l.bf16 %v5148_v61 }
 0x18d   : > { %v5151_v48 = vmul.f32 -1.442695, %v1325_v62  ;;  %v5153_v47 = vmul.f32 -1.442695, %v1326_v29 }
 0x18f   : > { %5557 = vpow2.f32 %v5151_v48 }
 0x190   : > { %5559 = vpow2.f32 %v5153_v47  ;;  %v1262_v47 = vadd.f32 %v1254_v38, %v10118_v24 }
 0x191   : > { %v1320_v4 = vpop.f32.mrf.mxu3  ;;  %v1306_v8 = vpop.f32.mrf.mxu2 }
 0x192   : > { %v1328_v7 = vadd.f32 %v1320_v4, %v1258_v55  ;;  %v1280_v17 = vpop.f32.mrf.mxu0  ;;  %v1294_v31 = vpop.f32.mrf.mxu1  ;;  %v1257_v55 = vadd.f32 %v1249_v25, %v10119_v16  ;;  %v7419_v25 = vsel %vm1201_vm2, %v7036_v6, %v7001_v37 }
 0x193   : > { %v1329_v58 = vadd.f32 %v1280_v17, %v1259_v21  ;;  %v1330_v28 = vadd.f32 %v1294_v31, %v1260_v40  ;;  %v1253_v17 = vunpack.c.l.bf16 %v5150_v57 }
 0x194   : > { %v5155_v54 = vmul.f32 -1.442695, %v1328_v7  ;;  %v1327_v61 = vadd.f32 %v1306_v8, %v1257_v55 }
 0x195   : > { %v5558_v62 = vpop.eup %5557  ;;  %v5152_v29 = vmul.f32 -1.442695, %v1329_v58  ;;  %v5154_v48 = vmul.f32 -1.442695, %v1330_v28  ;;  %v1261_v57 = vadd.f32 %v1253_v17, %v10119_v16 }
 0x196   : > { %v5560_v33 = vpop.eup %5559  ;;  %v1339_v13 = vadd.f32 1.0, %v5558_v62  ;;  %5561 = vpow2.f32 %v5155_v54  ;;  %v5157_v54 = vld [vmem:[%s6077_s12 + $0x2c0] sm:$0xff] }
 0x197   : > { %v1377_v41 = vadd.f32 1.0, %v5560_v33  ;;  %5563 = vpow2.f32 %v5152_v29  ;;  %v1465_v17 = vunpack.c.h.bf16 %v5157_v54 }
 0x198   : > { %5565 = vrcp.f32 %v1339_v13  ;;  %v1350_v33 = vand.u32 2147483647, %v1339_v13  ;;  %v1352_v6 = vand.u32 2147483648, %v1339_v13  ;;  %vm1346_vm14 = vweird.f32 %v1339_v13 }
 0x199   : > { %5567 = vrcp.f32 %v1377_v41  ;;  %v1322_v31 = vpop.f32.mrf.mxu3  ;;  %v1390_v37 = vand.u32 2147483648, %v1377_v41  ;;  %vm1384_vm15 = vweird.f32 %v1377_v41 }
 0x19a   : > { %5569 = vpow2.f32 %v5154_v48  ;;  %v1332_v58 = vadd.f32 %v1322_v31, %v1262_v47  ;;  %v1308_v31 = vpop.f32.mrf.mxu2  ;;  %vm7438_vm4 = vcmp.eq.f32.partialorder %v1350_v33, 8.507059e+37 }
 0x19b   : > { %v1509_v22 = vpop.f32.mrf.mxu1 }
 0x19c   : > { %v5562_v7 = vpop.eup %5561  ;;  %v5156_v48 = vmul.f32 -1.442695, %v1332_v58  ;;  %v1495_v58 = vpop.f32.mrf.mxu0 }
 0x19d   : > { %v5564_v21 = vpop.eup %5563  ;;  %v7408_v40 = vadd.f32 1.0, %v5562_v7  ;;  %v1464_v7 = vunpack.c.l.bf16 %v5157_v54 }
 0x19e   : > { %v5566_v4 = vpop.eup %5565  ;;  %v7410_v28 = vadd.f32 1.0, %v5564_v21  ;;  %v1388_v21 = vand.u32 2147483647, %v1377_v41 }
 0x19f   : > { %v7413_v62 = vpop.eup %5567  ;;  %v1342_v29 = vmul.f32 %v5566_v4, %v1339_v13  ;;  %5571 = vrcp.f32 %v7408_v40  ;;  %vm1347_vm2 = vweird.f32 %v5566_v4  ;;  %v1353_v13 = vor.u32 1.1754944e-38, %v1352_v6 }
 0x1a0   : > { %v5570_v8 = vpop.eup %5569  ;;  %v1380_v38 = vmul.f32 %v7413_v62, %v1377_v41  ;;  %5573 = vtanh.f32 %v1327_v61  ;;  %vm1385_vm12 = vweird.f32 %v7413_v62  ;;  %v1331_v61 = vadd.f32 %v1308_v31, %v1261_v57  ;;  %vm7434_vm1 = vmor %vm1346_vm14, %vm1347_vm2 }
 0x1a1   : > { %v1343_v55 = vsub.f32 1.0, %v1342_v29  ;;  %5575 = vrcp.f32 %v7410_v28  ;;  %v7425_v47 = vadd.f32 1.0, %v5570_v8  ;;  %vm7445_vm5 = vmor %vm1384_vm15, %vm1385_vm12  ;;  %vm7451_vm6 = vcmp.eq.f32.partialorder %v1388_v21, 8.507059e+37 }
 0x1a2   : > { %v1381_v56 = vsub.f32 1.0, %v1380_v38  ;;  %v10120_v38 = vld [vmem:[#allocation66_spill] sm:$0xff]  ;;  %vm1361_vm7 = vweird.f32 %v7410_v28  ;;  %vm1424_vm15 = vweird.f32 %v7408_v40 }
 0x1a3   : > { %v1344_v24 = vmul.f32 %v5566_v4, %v1343_v55  ;;  %5577 = vrcp.f32 %v7425_v47  ;;  %v1472_v46 = vadd.f32 %v1464_v7, %v10120_v38  ;;  %v1391_v55 = vor.u32 1.1754944e-38, %v1390_v37  ;;  %v10129_v7 = vld [vmem:[#allocation67_spill] sm:$0xff] }
 0x1a4   : > { %v1382_v16 = vmul.f32 %v7413_v62, %v1381_v56  ;;  %5579 = vpow2.f32 %v5156_v48  ;;  %v1473_v56 = vadd.f32 %v1465_v17, %v10129_v7  ;;  %v1405_v21 = vand.u32 2147483648, %v7425_v47 }
 0x1a5   : > { %v7430_v29 = vpop.eup %5571  ;;  %v1345_v8 = vadd.f32 %v5566_v4, %v1344_v24  ;;  %v1542_v33 = vadd.f32 %v1495_v58, %v1472_v46  ;;  %5581 = vtanh.f32 %v1331_v61  ;;  %v1365_v46 = vand.u32 2147483647, %v7410_v28  ;;  %v7470_v24 = vld [vmem:[%s6077_s12 + $0x2c8] sm:$0xff] }
 0x1a6   : > { %v5574_v27 = vpop.eup %5573  ;;  %v1383_v57 = vadd.f32 %v7413_v62, %v1382_v16  ;;  %v1420_v37 = vmul.f32 %v7430_v29, %v7408_v40  ;;  %v1403_v1 = vand.u32 2147483647, %v7425_v47  ;;  %v1543_v12 = vadd.f32 %v1509_v22, %v1473_v56 }
 0x1a7   : > { %v5576_v31 = vpop.eup %5575  ;;  %v1349_v41 = vsel %vm7434_vm1, %v5566_v4, %v1345_v8  ;;  %v5161_v58 = vmul.f32 -1.442695, %v1542_v33  ;;  %vm1399_vm10 = vweird.f32 %v7425_v47  ;;  %v7484_v56 = vsel %vm1202_vm3, %v7066_v26, %v7027_v39 }
 0x1a8   : > { %v1387_v16 = vsel %vm7445_vm5, %v7413_v62, %v1383_v57  ;;  %v1357_v6 = vmul.f32 %v5576_v31, %v7410_v28  ;;  %v1354_v17 = vsel %vm7438_vm4, %v1353_v13, %v1349_v41  ;;  %v1367_v57 = vand.u32 2147483648, %v7410_v28 }
 0x1a9   : > { %v5578_v4 = vpop.eup %5577  ;;  %v1392_v11 = vsel %vm7451_vm6, %v1391_v55, %v1387_v16  ;;  %5583 = vpow2.f32 %v5161_v58  ;;  %v1421_v2 = vsub.f32 1.0, %v1420_v37  ;;  %vm1362_vm8 = vweird.f32 %v5576_v31  ;;  %v1537_v16 = vpop.f32.mrf.mxu3 }
 0x1aa   : > { %v1358_v8 = vsub.f32 1.0, %v1357_v6  ;;  %v1395_v62 = vmul.f32 %v5578_v4, %v7425_v47  ;;  %v5580_v61 = vpop.eup %5579  ;;  %v1451_v54 = vmul.f32 %v5574_v27, %v1354_v17  ;;  %v5163_v41 = vmul.f32 -1.442695, %v1543_v12  ;;  %vm1363_vm11 = vmor %vm1361_vm7, %vm1362_vm8 }
 0x1ab   : > { %v7475_v13 = vadd.f32 1.0, %v5580_v61  ;;  %v1467_v6 = vunpack.c.h.bf16 %v7470_v24  ;;  %v5582_v59 = vpop.eup %5581  ;;  %v1449_v52 = vmul.f32 %v1392_v11, %v7419_v25  ;;  %vm1400_vm9 = vweird.f32 %v5578_v4 }
 0x1ac   : > { %v1396_v33 = vsub.f32 1.0, %v1395_v62  ;;  %v1359_v0 = vmul.f32 %v5576_v31, %v1358_v8  ;;  %v1368_v12 = vor.u32 1.1754944e-38, %v1367_v57  ;;  %vm1366_vm2 = vcmp.eq.f32.partialorder %v1365_v46, 8.507059e+37  ;;  %vm1401_vm12 = vmor %vm1399_vm10, %vm1400_vm9 }
 0x1ad   : > { %5585 = vrcp.f32 %v7475_v13  ;;  %v1406_v47 = vor.u32 1.1754944e-38, %v1405_v21  ;;  %vm1404_vm14 = vcmp.eq.f32.partialorder %v1403_v1, 8.507059e+37  ;;  %v1475_v39 = vadd.f32 %v1467_v6, %v10130_v20  ;;  %v1497_v1 = vpop.f32.mrf.mxu0 }
 0x1ae   : > { %v1397_v48 = vmul.f32 %v5578_v4, %v1396_v33  ;;  %v1360_v55 = vadd.f32 %v5576_v31, %v1359_v0  ;;  %5587 = vpow2.f32 %v5163_v41  ;;  %v5159_v0 = vld [vmem:[%s6077_s12 + $0x2d0] sm:$0xff]  ;;  %v7491_v26 = vadd.f32 %v1451_v54, %v1449_v52 }
 0x1af   : > { %v5584_v37 = vpop.eup %5583  ;;  %v1422_v28 = vmul.f32 %v7430_v29, %v1421_v2  ;;  %v1545_v8 = vadd.f32 %v1537_v16, %v1475_v39  ;;  %v1468_v62 = vunpack.c.l.bf16 %v5159_v0  ;;  %v1466_v21 = vunpack.c.l.bf16 %v7470_v24 }
 0x1b0   : > { %v1364_v27 = vsel %vm1363_vm11, %v5576_v31, %v1360_v55  ;;  %v1398_v11 = vadd.f32 %v5578_v4, %v1397_v48  ;;  %v7494_v17 = vadd.f32 1.0, %v5584_v37  ;;  %v1469_v61 = vunpack.c.h.bf16 %v5159_v0 }
 0x1b1   : > { %v1369_v22 = vsel %vm1366_vm2, %v1368_v12, %v1364_v27  ;;  %v1428_v52 = vand.u32 2147483647, %v7408_v40  ;;  %v5165_v2 = vmul.f32 -1.442695, %v1545_v8  ;;  %vm1425_vm3 = vweird.f32 %v7430_v29  ;;  %v1511_v12 = vpop.f32.mrf.mxu1  ;;  %v5160_v8 = vld [vmem:[%s6077_s12 + $0x2d8] sm:$0xff] }
 0x1b2   : > { %v1402_v58 = vsel %vm1401_vm12, %v5578_v4, %v1398_v11  ;;  %v1452_v46 = vmul.f32 %v5582_v59, %v1369_v22  ;;  %5589 = vrcp.f32 %v7494_v17  ;;  %v1476_v4 = vadd.f32 %v1468_v62, %v10120_v38  ;;  %v10131_v11 = vld [vmem:[#allocation69_spill] sm:$0xff]  ;;  %v1523_v22 = vpop.f32.mrf.mxu2  ;;  %vm7528_vm4 = vmor %vm1424_vm15, %vm1425_vm3 }
 0x1b3   : > { %v1407_v31 = vsel %vm1404_vm14, %v1406_v47, %v1402_v58  ;;  %v7499_v33 = vpop.eup %5585  ;;  %v7504_v59 = vadd.f32 %v7430_v29, %v1422_v28  ;;  %v1430_v41 = vand.u32 2147483648, %v7408_v40  ;;  %5591 = vpow2.f32 %v5165_v2 }
 0x1b4   : > { %v1450_v57 = vmul.f32 %v1407_v31, %v7484_v56  ;;  %v5588_v54 = vpop.eup %5587  ;;  %v1435_v24 = vmul.f32 %v7499_v33, %v7475_v13  ;;  %v1546_v55 = vadd.f32 %v1497_v1, %v1476_v4  ;;  %5593 = vtanh.f32 %v7491_v26  ;;  %v7542_v1 = vpop.permute.xlu2 %1687 }
 0x1b5   : > { %v7512_v48 = vadd.f32 1.0, %v5588_v54  ;;  %v1474_v16 = vadd.f32 %v1466_v21, %v10131_v11  ;;  %v1477_v0 = vadd.f32 %v1469_v61, %v10129_v7  ;;  %vm7518_vm1 = vcmp.eq.f32.partialorder %v1428_v52, 8.507059e+37 }
 0x1b6   : > { %v7510_v6 = vadd.f32 %v1452_v46, %v1450_v57  ;;  %v1436_v27 = vsub.f32 1.0, %v1435_v24  ;;  %v1443_v47 = vand.u32 2147483647, %v7475_v13  ;;  %v1445_v40 = vand.u32 2147483648, %v7475_v13 }
 0x1b7   : > { %5595 = vrcp.f32 %v7512_v48  ;;  %v5162_v31 = vmul.f32 -1.442695, %v1546_v55  ;;  %v1547_v46 = vadd.f32 %v1511_v12, %v1477_v0  ;;  %v1427_v62 = vsel %vm7528_vm4, %v7430_v29, %v7504_v59 }
 0x1b8   : > { %v7524_v39 = vpop.eup %5589  ;;  %v1437_v58 = vmul.f32 %v7499_v33, %v1436_v27  ;;  %v1431_v57 = vor.u32 1.1754944e-38, %v1430_v41  ;;  %5597 = vtanh.f32 %v7510_v6  ;;  %vm1439_vm5 = vweird.f32 %v7475_v13 }
 0x1b9   : > { %v1559_v21 = vmul.f32 %v7524_v39, %v7494_v17  ;;  %v1544_v61 = vadd.f32 %v1523_v22, %v1474_v16  ;;  %5599 = vpow2.f32 %v5162_v31  ;;  %v5164_v52 = vmul.f32 -1.442695, %v1547_v46  ;;  %v5592_v2 = vpop.eup %5591  ;;  %v1539_v22 = vpop.f32.mrf.mxu3 }
 0x1ba   : > { %v1438_v4 = vadd.f32 %v7499_v33, %v1437_v58  ;;  %vm1440_vm6 = vweird.f32 %v7499_v33  ;;  %v1471_v29 = vunpack.c.h.bf16 %v5160_v8  ;;  %v5594_v59 = vpop.eup %5593  ;;  %vm7547_vm7 = vcmp.eq.f32.partialorder %v1443_v47, 8.507059e+37 }
 0x1bb   : > { %v1560_v54 = vsub.f32 1.0, %v1559_v21  ;;  %v1446_v24 = vor.u32 1.1754944e-38, %v1445_v40  ;;  %v7551_v55 = vadd.f32 1.0, %v5592_v2  ;;  %5601 = vpow2.f32 %v5164_v52  ;;  %vm7561_vm10 = vmor %vm1439_vm5, %vm1440_vm6 }
 0x1bc   : > { %vm1563_vm8 = vweird.f32 %v7494_v17  ;;  %v1470_v16 = vunpack.c.l.bf16 %v5160_v8  ;;  %v1479_v0 = vadd.f32 %v1471_v29, %v10130_v20  ;;  %vm1692_vm9 = vcmp.eq.s32.totalorder %v7542_v1, 1 }
 0x1bd   : > { %v5596_v12 = vpop.eup %5595  ;;  %v1561_v27 = vmul.f32 %v7524_v39, %v1560_v54  ;;  %v1567_v58 = vand.u32 2147483647, %v7494_v17  ;;  %v1569_v40 = vand.u32 2147483648, %v7494_v17  ;;  %5603 = vrcp.f32 %v7551_v55  ;;  %v1691_v17 = vpop.permute.xlu2 %1690  ;;  %vm7605_vm5 = vmpackc.low %vm1692_vm9, %vm1692_vm9 }
 0x1be   : > { %v1597_v28 = vmul.f32 %v5596_v12, %v7512_v48  ;;  %v5598_v31 = vpop.eup %5597  ;;  %vm1564_vm11 = vweird.f32 %v7524_v39  ;;  %5605 = vtanh.f32 %v1544_v61  ;;  %v1442_v13 = vsel %vm7561_vm10, %v7499_v33, %v1438_v4 }
 0x1bf   : > { %v1562_v46 = vadd.f32 %v7524_v39, %v1561_v27  ;;  %v5600_v8 = vpop.eup %5599  ;;  %v1607_v52 = vand.u32 2147483648, %v7512_v48  ;;  %v1549_v2 = vadd.f32 %v1539_v22, %v1479_v0  ;;  %v1432_v54 = vsel %vm7518_vm1, %v1431_v57, %v1427_v62  ;;  %vm7585_vm12 = vmor %vm1563_vm8, %vm1564_vm11 }
 0x1c0   : > { %v1598_v21 = vsub.f32 1.0, %v1597_v28  ;;  %v1605_v29 = vand.u32 2147483647, %v7512_v48  ;;  %v7578_v20 = vadd.f32 1.0, %v5600_v8  ;;  %v1478_v27 = vadd.f32 %v1470_v16, %v10131_v11 }
 0x1c1   : > { %v1457_v7 = vmul.f32 %v5594_v59, %v1432_v54  ;;  %v5602_v61 = vpop.eup %5601  ;;  %vm1602_vm2 = vweird.f32 %v5596_v12  ;;  %v5166_v37 = vmul.f32 -1.442695, %v1549_v2  ;;  %v1447_v62 = vsel %vm7547_vm7, %v1446_v24, %v1442_v13  ;;  %v1525_v59 = vpop.f32.mrf.mxu2 }
 0x1c2   : > { %v1599_v38 = vmul.f32 %v5596_v12, %v1598_v21  ;;  %v1566_v57 = vsel %vm7585_vm12, %v7524_v39, %v1562_v46  ;;  %5607 = vrcp.f32 %v7578_v20  ;;  %v7595_v4 = vadd.f32 1.0, %v5602_v61  ;;  %v7624_v2 = vpop.permute.xlu0 %1704 }
 0x1c3   : > { %v1458_v16 = vmul.f32 %v5598_v31, %v1447_v62  ;;  %v7597_v0 = vpop.eup %5603  ;;  %vm1601_vm14 = vweird.f32 %v7512_v48  ;;  %v1570_v22 = vor.u32 1.1754944e-38, %v1569_v40  ;;  %5609 = vpow2.f32 %v5166_v37 }
 0x1c4   : > { %v1600_v47 = vadd.f32 %v5596_v12, %v1599_v38  ;;  %v5606_v41 = vpop.eup %5605  ;;  %vm1693_vm3 = vcmp.eq.s32.totalorder %v1691_v17, 1  ;;  %vm1603_vm15 = vmor %vm1601_vm14, %vm1602_vm2  ;;  %v1608_v24 = vor.u32 1.1754944e-38, %v1607_v52  ;;  %vm1568_vm1 = vcmp.eq.f32.partialorder %v1567_v58, 8.507059e+37 }
 0x1c5   : > { %5611 = vrcp.f32 %v7595_v4  ;;  %v1571_v39 = vsel %vm1568_vm1, %v1570_v22, %v1566_v57  ;;  %vm1606_vm4 = vcmp.eq.f32.partialorder %v1605_v29, 8.507059e+37  ;;  %v1548_v31 = vadd.f32 %v1525_v59, %v1478_v27  ;;  %vm7616_vm6 = vmpackc.low %vm1693_vm3, %vm1693_vm3 }
 0x1c6   : > { %v1604_v28 = vsel %vm1603_vm15, %v5596_v12, %v1600_v47  ;;  %v1637_v40 = vmul.f32 %v7597_v0, %v7551_v55  ;;  %v1694_v58 = vsel %vm1692_vm9, %v1457_v7, 0.0  ;;  %v1695_v46 = vsel %vm1693_vm3, %v1458_v16, 0.0 }
 0x1c7   : > { %v1609_v38 = vsel %vm1606_vm4, %v1608_v24, %v1604_v28  ;;  %v1240_v13 = vsel %vm1217_vm13, %v7193_v51, %v7157_v15  ;;  %v5398_v8 = vpack.c.bf16 %v1695_v46, %v1694_v58  ;;  %v1718_v21 = vpack.c.bf16 %v1457_v7, %v1457_v7 }
 0x1c8   : > { %v5608_v52 = vpop.eup %5607  ;;  %v1666_v54 = vmul.f32 %v1609_v38, %v1240_v13  ;;  %v1668_v29 = vmul.f32 %v5606_v41, %v1571_v39  ;;  %v1719_v27 = vpack.c.bf16 %v1458_v16, %v1458_v16  ;;  %v7630_v61 = vsel %vm1692_vm9, %v7491_v26, %v7419_v25 }
 0x1c9   : > { %v5610_v33 = vpop.eup %5609  ;;  %vm1709_vm7 = vcmp.eq.s32.totalorder %v7624_v2, 1  ;;  %v1574_v3 = vmul.f32 %v5608_v52, %v7578_v20  ;;  %5613 = vtanh.f32 %v1548_v31  ;;  %5466 = vst [vmem:[%s6082_s15 + $0x8] sm:$0xff] %v5398_v8   ;;  %v1638_v51 = vsub.f32 1.0, %v1637_v40  ;;  %v10154_v2 = vld [vmem:[#allocation8_spill] sm:$0xff] }
 0x1ca   : > { %v7635_v7 = vadd.f32 1.0, %v5610_v33  ;;  %v7640_v37 = vsel %vm7605_vm5, %v1718_v21, %v7229_v43  ;;  %v7645_v25 = vsel %vm7616_vm6, %v1719_v27, %v7235_v32  ;;  %vm1578_vm13 = vweird.f32 %v7578_v20  ;;  %v10161_v27 = vld [vmem:[#allocation18_spill] sm:$0xff] }
 0x1cb   : > { %v5612_v15 = vpop.eup %5611  ;;  %v1575_v26 = vsub.f32 1.0, %v1574_v3  ;;  %v1582_v62 = vand.u32 2147483647, %v7578_v20  ;;  %v1670_v57 = vadd.f32 %v1668_v29, %v1666_v54  ;;  %vm1579_vm8 = vweird.f32 %v5608_v52 }
 0x1cc   : > { %v1612_v1 = vmul.f32 %v5612_v15, %v7595_v4  ;;  %v1584_v59 = vand.u32 2147483648, %v7578_v20  ;;  %5615 = vrcp.f32 %v7635_v7  ;;  %v1757_v22 = vunpack.c.l.b16 %v7640_v37  ;;  %vm1580_vm11 = vmor %vm1578_vm13, %vm1579_vm8 }
 0x1cd   : > { %v1576_v16 = vmul.f32 %v5608_v52, %v1575_v26  ;;  %v1758_v32 = vunpack.c.l.b16 %v7645_v25  ;;  %v1639_v47 = vmul.f32 %v7597_v0, %v1638_v51  ;;  %v1622_v41 = vand.u32 2147483648, %v7595_v4 }
 0x1ce   : > { %v1613_v43 = vsub.f32 1.0, %v1612_v1  ;;  %v1620_v24 = vand.u32 2147483647, %v7595_v4  ;;  %v7660_v39 = vsel %vm1693_vm3, %v7510_v6, %v7484_v56  ;;  %vm1617_vm9 = vweird.f32 %v5612_v15 }
 0x1cf   : > { %v5614_v28 = vpop.eup %5613  ;;  %v1577_v48 = vadd.f32 %v5608_v52, %v1576_v16  ;;  %v1759_v38 = vpack.c.b16 %v1758_v32, %v1757_v22  ;;  %v1647_v40 = vand.u32 2147483648, %v7551_v55  ;;  %vm1616_vm10 = vweird.f32 %v7595_v4 }
 0x1d0   : > { %v1614_v31 = vmul.f32 %v5612_v15, %v1613_v43  ;;  %v1585_v58 = vor.u32 1.1754944e-38, %v1584_v59  ;;  %v7669_v46 = vsel %vm1709_vm7, %v1670_v57, %v1240_v13  ;;  %5617 = vtanh.f32 %v1670_v57  ;;  %vm1618_vm14 = vmor %vm1616_vm10, %vm1617_vm9 }
 0x1d1   : > { %v1581_v56 = vsel %vm1580_vm11, %v5608_v52, %v1577_v48  ;;  %vm1583_vm2 = vcmp.eq.f32.partialorder %v1582_v62, 8.507059e+37  ;;  %1769 = vmatmul.bf16.vlgmr.msra.gmra.mxu0 %v1759_v38  ;;  %1783 = vmatmul.bf16.vlgmr.msra.gmra.mxu1 %v1759_v38  ;;  %v1640_v12 = vadd.f32 %v7597_v0, %v1639_v47  ;;  %vm1642_vm12 = vweird.f32 %v7597_v0  ;;  %vm1728_vm9 = vmpackc.low %vm1709_vm7, %vm1709_vm7 }
 0x1d2   : > { %v1615_v6 = vadd.f32 %v5612_v15, %v1614_v31  ;;  %v5616_v17 = vpop.eup %5615  ;;  %v1623_v20 = vor.u32 1.1754944e-38, %v1622_v41  ;;  %v1586_v4 = vsel %vm1583_vm2, %v1585_v58, %v1581_v56  ;;  %1797 = vmatmul.bf16.vlgmr.msra.gmra.mxu2 %v1759_v38  ;;  %1811 = vmatmul.bf16.vlgmr.msra.gmra.mxu3 %v1759_v38  ;;  %vm1621_vm3 = vcmp.eq.f32.partialorder %v1620_v24, 8.507059e+37  ;;  %v10148_v31 = vld [vmem:[#allocation29_spill] sm:$0xff]  ;;  %v10150_v58 = vld [vmem:[#allocation7_spill] sm:$0xff]  ;;  %v10151_v56 = vld [vmem:[#allocation70_spill] sm:$0xff] }
 0x1d3   : > { %v1669_v13 = vmul.f32 %v5614_v28, %v1586_v4  ;;  %v1652_v21 = vmul.f32 %v5616_v17, %v7635_v7  ;;  %2253 = vmatpush.bf16.msra.mxu0 %v6098_v5  ;;  %2267 = vmatpush.bf16.msra.mxu1 %v6109_v9  ;;  %vm1641_vm15 = vweird.f32 %v7551_v55  ;;  %v1645_v52 = vand.u32 2147483647, %v7551_v55 }
 0x1d4   : > { %v1619_v8 = vsel %vm1618_vm14, %v5612_v15, %v1615_v6  ;;  %v1241_v54 = vsel %vm1218_vm0, %v7263_v42, %v7217_v53  ;;  %2281 = vmatpush.bf16.msra.mxu2 %v6149_v23  ;;  %2295 = vmatpush.bf16.msra.mxu3 %v6111_v10  ;;  %vm7687_vm1 = vmor %vm1641_vm15, %vm1642_vm12  ;;  %v1648_v53 = vor.u32 1.1754944e-38, %v1647_v40  ;;  %vm1710_vm0 = vcmp.eq.s32.totalorder %v1708_v63, 1  ;;  %v10149_v40 = vld [vmem:[#allocation6_spill] sm:$0xff]  ;;  %v10166_v63 = vld [vmem:[#allocation20_spill] sm:$0xff] }
 0x1d5   : > { %v1624_v29 = vsel %vm1621_vm3, %v1623_v20, %v1619_v8  ;;  %v1653_v3 = vsub.f32 1.0, %v1652_v21  ;;  %v1644_v55 = vsel %vm7687_vm1, %v7597_v0, %v1640_v12  ;;  %vm1646_vm4 = vcmp.eq.f32.partialorder %v1645_v52, 8.507059e+37  ;;  %vm1729_vm10 = vmpackc.low %vm1710_vm0, %vm1710_vm0  ;;  %v10155_v8 = vld [vmem:[#allocation9_spill] sm:$0xff]  ;;  %v10157_v21 = vld [vmem:[#allocation14_spill] sm:$0xff] }
 0x1d6   : > { %v1667_v33 = vmul.f32 %v1624_v29, %v1241_v54  ;;  %v5618_v15 = vpop.eup %5617  ;;  %vm1657_vm5 = vweird.f32 %v5616_v17  ;;  %v1662_v26 = vand.u32 2147483648, %v7635_v7  ;;  %v1649_v1 = vsel %vm1646_vm4, %v1648_v53, %v1644_v55  ;;  %v10158_v52 = vld [vmem:[#allocation12_spill] sm:$0xff]  ;;  %v10160_v29 = vld [vmem:[#allocation15_spill] sm:$0xff]  ;;  %v10167_v53 = vld [vmem:[#allocation21_spill] sm:$0xff] }
 0x1d7   : > { %v1654_v51 = vmul.f32 %v5616_v17, %v1653_v3  ;;  %2254 = vmatpush.bf16.msra.mxu0 %v6123_v14  ;;  %2268 = vmatpush.bf16.msra.mxu1 %v6136_v18  ;;  %vm1656_vm6 = vweird.f32 %v7635_v7  ;;  %v1660_v57 = vand.u32 2147483647, %v7635_v7  ;;  %v1674_v59 = vmul.f32 %v5618_v15, %v1649_v1  ;;  %v10163_v3 = vld [vmem:[#allocation17_spill] sm:$0xff]  ;;  %v10164_v55 = vld [vmem:[#allocation19_spill] sm:$0xff]  ;;  %v10165_v15 = vld [vmem:[#allocation24_spill] sm:$0xff] }
 0x1d8   : > { %v1671_v42 = vadd.f32 %v1669_v13, %v1667_v33  ;;  %2282 = vmatpush.bf16.msra.mxu2 %v6188_v36  ;;  %2296 = vmatpush.bf16.msra.mxu3 %v6138_v19  ;;  %vm1658_vm13 = vmor %vm1656_vm6, %vm1657_vm5  ;;  %v1663_v16 = vor.u32 1.1754944e-38, %v1662_v26  ;;  %v10156_v13 = vld [vmem:[#allocation11_spill] sm:$0xff]  ;;  %v10162_v33 = vld [vmem:[#allocation16_spill] sm:$0xff] }
 0x1d9   : > { %v1655_v0 = vadd.f32 %v5616_v17, %v1654_v51  ;;  %vm1661_vm8 = vcmp.eq.f32.partialorder %v1660_v57, 8.507059e+37  ;;  %v1726_v22 = vpack.c.bf16 %v1674_v59, %v1674_v59  ;;  %v1711_v41 = vsel %vm1709_vm7, %v1674_v59, 0.0  ;;  %v10169_v51 = vld [vmem:[#allocation28_spill] sm:$0xff]  ;;  %v10170_v26 = vld [vmem:[#allocation23_spill] sm:$0xff]  ;;  %v10172_v1 = vld [vmem:[#allocation26_spill] sm:$0xff] }
 0x1da   : > { %5619 = vtanh.f32 %v1671_v42  ;;  %v7700_v62 = vsel %vm1710_vm0, %v1671_v42, %v1241_v54  ;;  %v10159_v54 = vld [vmem:[#allocation13_spill] sm:$0xff]  ;;  %v10168_v42 = vld [vmem:[#allocation22_spill] sm:$0xff]  ;;  %v10174_v59 = vld [vmem:[#allocation27_spill] sm:$0xff] }
 0x1db   : > { %2255 = vmatpush.bf16.msra.mxu0 %v6171_v30  ;;  %2269 = vmatpush.bf16.msra.mxu1 %v6184_v34  ;;  %v1659_v43 = vsel %vm1658_vm13, %v5616_v17, %v1655_v0  ;;  %v7719_v48 = vsel %vm1728_vm9, %v1726_v22, %v10148_v31  ;;  %v10153_v17 = vld [vmem:[#allocation10_spill] sm:$0xff]  ;;  %v10171_v0 = vld [vmem:[#allocation25_spill] sm:$0xff]  ;;  %v10184_v31 = vld [vmem:[#allocation39_spill] sm:$0xff] }
 0x1dc   : > { %2283 = vmatpush.bf16.msra.mxu2 %v6213_v45  ;;  %2297 = vmatpush.bf16.msra.mxu3 %v6186_v35  ;;  %v1664_v47 = vsel %vm1661_vm8, %v1663_v16, %v1659_v43  ;;  %v1974_v12 = vunpack.c.l.b16 %v7719_v48  ;;  %v10173_v57 = vld [vmem:[#allocation33_spill] sm:$0xff]  ;;  %v10175_v43 = vld [vmem:[#allocation30_spill] sm:$0xff]  ;;  %v10176_v16 = vld [vmem:[#allocation31_spill] sm:$0xff] }
 0x1dd   : > { %v10177_v22 = vld [vmem:[#allocation37_spill] sm:$0xff] }
 0x1df   : > { %2256 = vmatpush.bf16.msra.mxu0 %v6211_v44  ;;  %2270 = vmatpush.bf16.msra.mxu1 %v6226_v49 }
 0x1e0   : > { %v5620_v32 = vpop.eup %5619  ;;  %2284 = vmatpush.bf16.msra.mxu2 %v6259_v60  ;;  %2298 = vmatpush.bf16.msra.mxu3 %v6228_v50 }
 0x1e1   : > { %v1675_v7 = vmul.f32 %v5620_v32, %v1664_v47  ;;  %v10178_v32 = vld [vmem:[#allocation32_spill] sm:$0xff]  ;;  %v10179_v47 = vld [vmem:[#allocation34_spill] sm:$0xff] }
 0x1e3   : > { %v1712_v24 = vsel %vm1710_vm0, %v1675_v7, 0.0  ;;  %v1727_v28 = vpack.c.bf16 %v1675_v7, %v1675_v7  ;;  %2257 = vmatpush.bf16.msra.mxu0 %v10149_v40  ;;  %2271 = vmatpush.bf16.msra.mxu1 %v10150_v58  ;;  %v10180_v7 = vld [vmem:[#allocation35_spill] sm:$0xff] }
 0x1e4   : > { %v5403_v38 = vpack.c.bf16 %v1712_v24, %v1711_v41  ;;  %2285 = vmatpush.bf16.msra.mxu2 %v10153_v17  ;;  %2299 = vmatpush.bf16.msra.mxu3 %v10154_v2  ;;  %v10181_v41 = vld [vmem:[#allocation41_spill] sm:$0xff]  ;;  %v10182_v24 = vld [vmem:[#allocation36_spill] sm:$0xff] }
 0x1e5   : > { %v7726_v6 = vsel %vm1729_vm10, %v1727_v28, %v10151_v56  ;;  %v10183_v28 = vld [vmem:[#allocation38_spill] sm:$0xff]  ;;  %v10186_v56 = vld [vmem:[#allocation40_spill] sm:$0xff] }
 0x1e6   : > { %10152 = vst [vmem:[#allocation42_spill] sm:$0xff] %v7726_v6  ;;  %v1975_v20 = vunpack.c.l.b16 %v7726_v6 }
 0x1e7   : > { %5467 = vst [vmem:[%s6087_s19 + $0x30] sm:$0xff] %v5403_v38   ;;  %2258 = vmatpush.bf16.msra.mxu0 %v10155_v8  ;;  %2272 = vmatpush.bf16.msra.mxu1 %v10156_v13  ;;  %v10185_v38 = vld [vmem:[#allocation46_spill] sm:$0xff] }
 0x1e8   : > { %v1976_v4 = vpack.c.b16 %v1975_v20, %v1974_v12  ;;  %2286 = vmatpush.bf16.msra.mxu2 %v10157_v21  ;;  %2300 = vmatpush.bf16.msra.mxu3 %v10158_v52  ;;  %v10187_v12 = vld [vmem:[#allocation43_spill] sm:$0xff]  ;;  %v10188_v20 = vld [vmem:[#allocation44_spill] sm:$0xff] }
 0x1ea   : > { %1986 = vmatmul.bf16.vlgmr.msrb.gmra.mxu0 %v1976_v4  ;;  %2000 = vmatmul.bf16.vlgmr.msrb.gmra.mxu1 %v1976_v4 }
 0x1eb   : > { %2014 = vmatmul.bf16.vlgmr.msrb.gmra.mxu2 %v1976_v4  ;;  %2028 = vmatmul.bf16.vlgmr.msrb.gmra.mxu3 %v1976_v4  ;;  %v10189_v4 = vld [vmem:[#allocation51_spill] sm:$0xff] }
 0x1ec   : > { %2259 = vmatpush.bf16.msra.mxu0 %v10159_v54  ;;  %2273 = vmatpush.bf16.msra.mxu1 %v10160_v29 }
 0x1ed   : > { %2287 = vmatpush.bf16.msra.mxu2 %v10161_v27  ;;  %2301 = vmatpush.bf16.msra.mxu3 %v10162_v33 }
 0x1f0   : > { %2260 = vmatpush.bf16.msra.mxu0 %v10163_v3  ;;  %2274 = vmatpush.bf16.msra.mxu1 %v10164_v55 }
 0x1f1   : > { %2288 = vmatpush.bf16.msra.mxu2 %v10165_v15  ;;  %2302 = vmatpush.bf16.msra.mxu3 %v10166_v63 }
 0x1f4   : > { %2470 = vmatpush.bf16.msrb.mxu0 %v10167_v53  ;;  %2484 = vmatpush.bf16.msrb.mxu1 %v10168_v42 }
 0x1f5   : > { %2498 = vmatpush.bf16.msrb.mxu2 %v10169_v51  ;;  %2512 = vmatpush.bf16.msrb.mxu3 %v10170_v26 }
 0x1f8   : > { %2471 = vmatpush.bf16.msrb.mxu0 %v10171_v0  ;;  %2485 = vmatpush.bf16.msrb.mxu1 %v10172_v1 }
 0x1f9   : > { %2499 = vmatpush.bf16.msrb.mxu2 %v10173_v57  ;;  %2513 = vmatpush.bf16.msrb.mxu3 %v10174_v59 }
 0x1fc   : > { %2472 = vmatpush.bf16.msrb.mxu0 %v10175_v43  ;;  %2486 = vmatpush.bf16.msrb.mxu1 %v10176_v16  ;;  %v5173_v43 = vld [vmem:[%s6072_s8 + $0x50] sm:$0xff] }
 0x1fd   : > { %2500 = vmatpush.bf16.msrb.mxu2 %v10177_v22  ;;  %2514 = vmatpush.bf16.msrb.mxu3 %v10178_v32  ;;  %v1744_v1 = vunpack.c.h.bf16 %v5173_v43 }
 0x200   : > { %2473 = vmatpush.bf16.msrb.mxu0 %v10179_v47  ;;  %2487 = vmatpush.bf16.msrb.mxu1 %v10180_v7  ;;  %v10190_v7 = vld [vmem:[#allocation45_spill] sm:$0xff] }
 0x201   : > { %2501 = vmatpush.bf16.msrb.mxu2 %v10181_v41  ;;  %2515 = vmatpush.bf16.msrb.mxu3 %v10182_v24  ;;  %v10191_v24 = vld [vmem:[#allocation48_spill] sm:$0xff]  ;;  %v10193_v41 = vld [vmem:[#allocation55_spill] sm:$0xff] }
 0x204   : > { %2474 = vmatpush.bf16.msrb.mxu0 %v10183_v28  ;;  %2488 = vmatpush.bf16.msrb.mxu1 %v10184_v31  ;;  %v10192_v28 = vld [vmem:[#allocation49_spill] sm:$0xff]  ;;  %v10194_v31 = vld [vmem:[#allocation50_spill] sm:$0xff] }
 0x205   : > { %2502 = vmatpush.bf16.msrb.mxu2 %v10185_v38  ;;  %2516 = vmatpush.bf16.msrb.mxu3 %v10186_v56  ;;  %v10195_v38 = vld [vmem:[#allocation52_spill] sm:$0xff]  ;;  %v10196_v56 = vld [vmem:[#allocation53_spill] sm:$0xff] }
 0x208   : > { %2475 = vmatpush.bf16.msrb.mxu0 %v10187_v12  ;;  %2489 = vmatpush.bf16.msrb.mxu1 %v10188_v20  ;;  %v10197_v12 = vld [vmem:[#allocation56_spill] sm:$0xff]  ;;  %v10198_v20 = vld [vmem:[#allocation54_spill] sm:$0xff] }
 0x209   : > { %2503 = vmatpush.bf16.msrb.mxu2 %v10189_v4  ;;  %2517 = vmatpush.bf16.msrb.mxu3 %v10190_v7  ;;  %v5171_v4 = vld [vmem:[%s6072_s8 + $0x40] sm:$0xff]  ;;  %v10199_v7 = vld [vmem:[#allocation62_spill] sm:$0xff] }
 0x20a   : > { %v1739_v47 = vunpack.c.l.bf16 %v5171_v4  ;;  %v1740_v32 = vunpack.c.h.bf16 %v5171_v4 }
 0x20c   : > { %2476 = vmatpush.bf16.msrb.mxu0 %v10191_v24  ;;  %2490 = vmatpush.bf16.msrb.mxu1 %v10192_v28  ;;  %v1747_v22 = vadd.f32 %v1739_v47, %v10199_v7  ;;  %v10200_v24 = vld [vmem:[#allocation63_spill] sm:$0xff]  ;;  %v5172_v28 = vld [vmem:[%s6072_s8 + $0x48] sm:$0xff] }
 0x20d   : > { %2504 = vmatpush.bf16.msrb.mxu2 %v10193_v41  ;;  %2518 = vmatpush.bf16.msrb.mxu3 %v10194_v31  ;;  %v1748_v16 = vadd.f32 %v1740_v32, %v10200_v24  ;;  %v1742_v31 = vunpack.c.h.bf16 %v5172_v28  ;;  %v1752_v47 = vadd.f32 %v1744_v1, %v10200_v24  ;;  %v1741_v32 = vunpack.c.l.bf16 %v5172_v28 }
 0x210   : > { %2477 = vmatpush.bf16.msrb.mxu0 %v10195_v38  ;;  %2491 = vmatpush.bf16.msrb.mxu1 %v10196_v56  ;;  %v1743_v56 = vunpack.c.l.bf16 %v5173_v43 }
 0x211   : > { %2505 = vmatpush.bf16.msrb.mxu2 %v10197_v12  ;;  %2519 = vmatpush.bf16.msrb.mxu3 %v10198_v20  ;;  %v10201_v20 = vld [vmem:[#allocation64_spill] sm:$0xff] }
 0x212   : > { %v1750_v26 = vadd.f32 %v1742_v31, %v10201_v20  ;;  %v1751_v4 = vadd.f32 %v1743_v56, %v10199_v7 }
 0x24e   : > { %v1770_v41 = vpop.f32.mrf.mxu0  ;;  %v1784_v59 = vpop.f32.mrf.mxu1 }
 0x24f   : > { %v1817_v57 = vadd.f32 %v1770_v41, %v1747_v22  ;;  %v1818_v38 = vadd.f32 %v1784_v59, %v1748_v16  ;;  %v5174_v22 = vld [vmem:[%s6072_s8 + $0x58] sm:$0xff]  ;;  %v10202_v41 = vld [vmem:[#allocation65_spill] sm:$0xff] }
 0x250   : > { %v1746_v53 = vunpack.c.h.bf16 %v5174_v22 }
 0x251   : > { %v5175_v12 = vmul.f32 -1.442695, %v1817_v57  ;;  %v5177_v0 = vmul.f32 -1.442695, %v1818_v38  ;;  %v1749_v38 = vadd.f32 %v1741_v32, %v10202_v41 }
 0x253   : > { %5621 = vpow2.f32 %v5175_v12 }
 0x254   : > { %5623 = vpow2.f32 %v5177_v0 }
 0x255   : > { %v1812_v51 = vpop.f32.mrf.mxu3  ;;  %v1798_v31 = vpop.f32.mrf.mxu2 }
 0x256   : > { %v1820_v63 = vadd.f32 %v1812_v51, %v1750_v26  ;;  %v1772_v15 = vpop.f32.mrf.mxu0  ;;  %v1786_v42 = vpop.f32.mrf.mxu1  ;;  %v5181_v51 = vld [vmem:[%s6077_s12 + $0x2a0] sm:$0xff] }
 0x257   : > { %v1821_v59 = vadd.f32 %v1772_v15, %v1751_v4  ;;  %v1822_v16 = vadd.f32 %v1786_v42, %v1752_v47  ;;  %v1819_v15 = vadd.f32 %v1798_v31, %v1749_v38  ;;  %v1754_v42 = vadd.f32 %v1746_v53, %v10201_v20  ;;  %v10203_v31 = vld [vmem:[#allocation66_spill] sm:$0xff] }
 0x258   : > { %v5179_v43 = vmul.f32 -1.442695, %v1820_v63  ;;  %v1745_v63 = vunpack.c.l.bf16 %v5174_v22  ;;  %v1956_v28 = vunpack.c.l.bf16 %v5181_v51  ;;  %v1957_v4 = vunpack.c.h.bf16 %v5181_v51 }
 0x259   : > { %v5622_v57 = vpop.eup %5621  ;;  %v5176_v12 = vmul.f32 -1.442695, %v1821_v59  ;;  %v5178_v0 = vmul.f32 -1.442695, %v1822_v16 }
 0x25a   : > { %v5624_v56 = vpop.eup %5623  ;;  %v7787_v7 = vadd.f32 1.0, %v5622_v57  ;;  %5625 = vpow2.f32 %v5179_v43  ;;  %v1753_v16 = vadd.f32 %v1745_v63, %v10202_v41  ;;  %v5183_v41 = vld [vmem:[%s6077_s12 + $0x2b0] sm:$0xff] }
 0x25b   : > { %v7789_v1 = vadd.f32 1.0, %v5624_v56  ;;  %5627 = vpow2.f32 %v5176_v12  ;;  %v1964_v12 = vadd.f32 %v1956_v28, %v10203_v31  ;;  %v1961_v13 = vunpack.c.h.bf16 %v5183_v41 }
 0x25c   : > { %5629 = vrcp.f32 %v7787_v7  ;;  %v1842_v38 = vand.u32 2147483647, %v7787_v7  ;;  %v1844_v53 = vand.u32 2147483648, %v7787_v7  ;;  %vm1838_vm11 = vweird.f32 %v7787_v7 }
 0x25d   : > { %5631 = vrcp.f32 %v7789_v1  ;;  %v1814_v26 = vpop.f32.mrf.mxu3  ;;  %vm1876_vm7 = vweird.f32 %v7789_v1  ;;  %v1800_v51 = vpop.f32.mrf.mxu2  ;;  %v1882_v28 = vand.u32 2147483648, %v7789_v1 }
 0x25e   : > { %5633 = vpow2.f32 %v5178_v0  ;;  %v1824_v43 = vadd.f32 %v1814_v26, %v1754_v42  ;;  %v7813_v42 = vld [vmem:[%s6077_s12 + $0x2a8] sm:$0xff]  ;;  %vm7824_vm2 = vcmp.eq.f32.partialorder %v1842_v38, 8.507059e+37  ;;  %v1845_v33 = vor.u32 1.1754944e-38, %v1844_v53 }
 0x25f   : > { %5635 = vtanh.f32 %v1819_v15  ;;  %v10204_v15 = vld [vmem:[#allocation67_spill] sm:$0xff]  ;;  %v1823_v27 = vadd.f32 %v1800_v51, %v1753_v16  ;;  %v1959_v54 = vunpack.c.h.bf16 %v7813_v42 }
 0x260   : > { %v5626_v47 = vpop.eup %5625  ;;  %v1965_v63 = vadd.f32 %v1957_v4, %v10204_v15  ;;  %v5180_v55 = vmul.f32 -1.442695, %v1824_v43  ;;  %v1883_v43 = vor.u32 1.1754944e-38, %v1882_v28  ;;  %v10209_v28 = vld [vmem:[#allocation68_spill] sm:$0xff] }
 0x261   : > { %v5628_v32 = vpop.eup %5627  ;;  %v7795_v59 = vadd.f32 1.0, %v5626_v47 }
 0x262   : > { %v7798_v57 = vpop.eup %5629  ;;  %v7802_v22 = vadd.f32 1.0, %v5628_v32  ;;  %v1880_v32 = vand.u32 2147483647, %v7789_v1 }
 0x263   : > { %v7805_v56 = vpop.eup %5631  ;;  %v1834_v0 = vmul.f32 %v7798_v57, %v7787_v7  ;;  %5637 = vrcp.f32 %v7795_v59  ;;  %vm1839_vm12 = vweird.f32 %v7798_v57 }
 0x264   : > { %v5634_v26 = vpop.eup %5633  ;;  %v1872_v47 = vmul.f32 %v7805_v56, %v7789_v1  ;;  %5639 = vrcp.f32 %v7802_v22  ;;  %vm7833_vm14 = vcmp.eq.f32.partialorder %v1880_v32, 8.507059e+37  ;;  %vm1877_vm3 = vweird.f32 %v7805_v56  ;;  %vm7846_vm15 = vmor %vm1838_vm11, %vm1839_vm12 }
 0x265   : > { %v1835_v20 = vsub.f32 1.0, %v1834_v0  ;;  %v7822_v24 = vadd.f32 1.0, %v5634_v26  ;;  %v5636_v52 = vpop.eup %5635  ;;  %v1960_v0 = vunpack.c.l.bf16 %v5183_v41  ;;  %vm7858_vm1 = vmor %vm1876_vm7, %vm1877_vm3  ;;  %vm1853_vm0 = vweird.f32 %v7802_v22 }
 0x266   : > { %v1873_v4 = vsub.f32 1.0, %v1872_v47  ;;  %v1958_v47 = vunpack.c.l.bf16 %v7813_v42  ;;  %vm1916_vm11 = vweird.f32 %v7795_v59 }
 0x267   : > { %v1987_v29 = vpop.f32.mrf.mxu0  ;;  %v1836_v21 = vmul.f32 %v7798_v57, %v1835_v20  ;;  %5641 = vrcp.f32 %v7822_v24  ;;  %v2001_v16 = vpop.f32.mrf.mxu1  ;;  %vm1891_vm4 = vweird.f32 %v7822_v24 }
 0x268   : > { %v1874_v26 = vmul.f32 %v7805_v56, %v1873_v4  ;;  %5643 = vpow2.f32 %v5180_v55  ;;  %v2034_v20 = vadd.f32 %v1987_v29, %v1964_v12  ;;  %v1967_v4 = vadd.f32 %v1959_v54, %v10209_v28 }
 0x269   : > { %v1837_v53 = vadd.f32 %v7798_v57, %v1836_v21  ;;  %v7839_v51 = vpop.eup %5637  ;;  %5645 = vtanh.f32 %v1823_v27  ;;  %v2035_v21 = vadd.f32 %v2001_v16, %v1965_v63  ;;  %v1968_v29 = vadd.f32 %v1960_v0, %v10203_v31 }
 0x26a   : > { %v1875_v41 = vadd.f32 %v7805_v56, %v1874_v26  ;;  %v5640_v32 = vpop.eup %5639  ;;  %v5185_v2 = vmul.f32 -1.442695, %v2034_v20  ;;  %v7852_v55 = vadd.f32 %v1961_v13, %v10204_v15  ;;  %v1857_v12 = vand.u32 2147483647, %v7802_v22 }
 0x26b   : > { %v1841_v27 = vsel %vm7846_vm15, %v7798_v57, %v1837_v53  ;;  %v1849_v7 = vmul.f32 %v5640_v32, %v7802_v22  ;;  %v1912_v1 = vmul.f32 %v7839_v51, %v7795_v59  ;;  %v1897_v0 = vand.u32 2147483648, %v7822_v24 }
 0x26c   : > { %v1879_v63 = vsel %vm7858_vm1, %v7805_v56, %v1875_v41  ;;  %5647 = vpow2.f32 %v5185_v2  ;;  %v1859_v26 = vand.u32 2147483648, %v7802_v22  ;;  %v1846_v53 = vsel %vm7824_vm2, %v1845_v33, %v1841_v27 }
 0x26d   : > { %v5642_v13 = vpop.eup %5641  ;;  %v1850_v8 = vsub.f32 1.0, %v1849_v7  ;;  %v1895_v56 = vand.u32 2147483647, %v7822_v24  ;;  %v5187_v20 = vmul.f32 -1.442695, %v2035_v21  ;;  %v1884_v2 = vsel %vm7833_vm14, %v1883_v43, %v1879_v63 }
 0x26e   : > { %v2029_v42 = vpop.f32.mrf.mxu3  ;;  %v1887_v57 = vmul.f32 %v5642_v13, %v7822_v24  ;;  %v5644_v16 = vpop.eup %5643  ;;  %vm1854_vm5 = vweird.f32 %v5640_v32  ;;  %v1913_v17 = vsub.f32 1.0, %v1912_v1  ;;  %vm1892_vm6 = vweird.f32 %v5642_v13 }
 0x26f   : > { %v2037_v41 = vadd.f32 %v2029_v42, %v1967_v4  ;;  %v5646_v54 = vpop.eup %5645  ;;  %v1851_v7 = vmul.f32 %v5640_v32, %v1850_v8  ;;  %v1989_v31 = vpop.f32.mrf.mxu0  ;;  %v7882_v58 = vadd.f32 1.0, %v5644_v16  ;;  %5649 = vpow2.f32 %v5187_v20  ;;  %vm1855_vm13 = vmor %vm1853_vm0, %vm1854_vm5 }
 0x270   : > { %v1888_v15 = vsub.f32 1.0, %v1887_v57  ;;  %v1860_v3 = vor.u32 1.1754944e-38, %v1859_v26  ;;  %v1941_v4 = vmul.f32 %v1884_v2, %v7630_v61  ;;  %v1943_v21 = vmul.f32 %v5636_v52, %v1846_v53  ;;  %vm1893_vm9 = vmor %vm1891_vm4, %vm1892_vm6  ;;  %v2003_v52 = vpop.f32.mrf.mxu1 }
 0x271   : > { %v5189_v40 = vmul.f32 -1.442695, %v2037_v41  ;;  %v1852_v33 = vadd.f32 %v5640_v32, %v1851_v7  ;;  %5651 = vrcp.f32 %v7882_v58  ;;  %v2038_v43 = vadd.f32 %v1989_v31, %v1968_v29  ;;  %v2015_v29 = vpop.f32.mrf.mxu2 }
 0x272   : > { %v1889_v6 = vmul.f32 %v5642_v13, %v1888_v15  ;;  %v5648_v27 = vpop.eup %5647  ;;  %vm1858_vm8 = vcmp.eq.f32.partialorder %v1857_v12, 8.507059e+37  ;;  %v1914_v15 = vmul.f32 %v7839_v51, %v1913_v17  ;;  %v1898_v42 = vor.u32 1.1754944e-38, %v1897_v0 }
 0x273   : > { %v1856_v38 = vsel %vm1855_vm13, %v5640_v32, %v1852_v33  ;;  %v7888_v1 = vadd.f32 1.0, %v5648_v27  ;;  %5653 = vpow2.f32 %v5189_v40  ;;  %vm1896_vm10 = vcmp.eq.f32.partialorder %v1895_v56, 8.507059e+37 }
 0x274   : > { %v1890_v63 = vadd.f32 %v5642_v13, %v1889_v6  ;;  %v1861_v8 = vsel %vm1858_vm8, %v1860_v3, %v1856_v38  ;;  %v1966_v22 = vadd.f32 %v1958_v47, %v10131_v11  ;;  %v7895_v6 = vadd.f32 %v1943_v21, %v1941_v4  ;;  %v7909_v47 = vld [vmem:[%s6077_s12 + $0x2b8] sm:$0xff] }
 0x275   : > { %5655 = vrcp.f32 %v7888_v1  ;;  %v5650_v31 = vpop.eup %5649  ;;  %v1922_v32 = vand.u32 2147483648, %v7795_v59  ;;  %v5186_v24 = vmul.f32 -1.442695, %v2038_v43  ;;  %v1944_v0 = vmul.f32 %v5646_v54, %v1861_v8 }
 0x276   : > { %v1894_v57 = vsel %vm1893_vm9, %v5642_v13, %v1890_v63  ;;  %v7899_v40 = vadd.f32 1.0, %v5650_v31  ;;  %v2039_v13 = vadd.f32 %v2003_v52, %v7852_v55  ;;  %v7905_v16 = vadd.f32 %v7839_v51, %v1914_v15 }
 0x277   : > { %v1899_v17 = vsel %vm1896_vm10, %v1898_v42, %v1894_v57  ;;  %v7902_v26 = vpop.eup %5651  ;;  %vm1917_vm7 = vweird.f32 %v7839_v51  ;;  %5657 = vpow2.f32 %v5186_v24  ;;  %v1920_v53 = vand.u32 2147483647, %v7795_v59  ;;  %v2031_v24 = vpop.f32.mrf.mxu3 }
 0x278   : > { %v1942_v12 = vmul.f32 %v1899_v17, %v7660_v39  ;;  %v1927_v56 = vmul.f32 %v7902_v26, %v7882_v58  ;;  %5659 = vrcp.f32 %v7899_v40  ;;  %v2036_v20 = vadd.f32 %v2015_v29, %v1966_v22  ;;  %vm7919_vm2 = vmor %vm1916_vm11, %vm1917_vm7 }
 0x279   : > { %v5654_v41 = vpop.eup %5653  ;;  %v7916_v55 = vor.u32 1.1754944e-38, %v1922_v32  ;;  %v5188_v54 = vmul.f32 -1.442695, %v2039_v13  ;;  %5661 = vtanh.f32 %v7895_v6  ;;  %v1963_v27 = vunpack.c.h.bf16 %v7909_v47  ;;  %v7952_v13 = vpop.permute.xlu2 %2179 }
 0x27a   : > { %v7923_v33 = vadd.f32 %v1944_v0, %v1942_v12  ;;  %v1928_v3 = vsub.f32 1.0, %v1927_v56  ;;  %v1919_v59 = vsel %vm7919_vm2, %v7839_v51, %v7905_v16  ;;  %vm1931_vm12 = vweird.f32 %v7882_v58  ;;  %v7950_v0 = vpop.permute.xlu0 %2182 }
 0x27b   : > { %v5656_v2 = vpop.eup %5655  ;;  %v7932_v21 = vadd.f32 1.0, %v5654_v41  ;;  %vm7934_vm14 = vcmp.eq.f32.partialorder %v1920_v53, 8.507059e+37  ;;  %v1935_v38 = vand.u32 2147483647, %v7882_v58  ;;  %v1937_v63 = vand.u32 2147483648, %v7882_v58 }
 0x27c   : > { %v2051_v4 = vmul.f32 %v5656_v2, %v7888_v1  ;;  %v2059_v15 = vand.u32 2147483647, %v7888_v1  ;;  %5663 = vtanh.f32 %v2036_v20  ;;  %v1929_v51 = vmul.f32 %v7902_v26, %v1928_v3 }
 0x27d   : > { %v5658_v42 = vpop.eup %5657  ;;  %v2061_v52 = vand.u32 2147483648, %v7888_v1  ;;  %5665 = vpow2.f32 %v5188_v54  ;;  %v1962_v31 = vunpack.c.l.bf16 %v7909_v47  ;;  %v1971_v32 = vadd.f32 %v1963_v27, %v10209_v28 }
 0x27e   : > { %v2052_v8 = vsub.f32 1.0, %v2051_v4  ;;  %v5660_v57 = vpop.eup %5659  ;;  %5667 = vtanh.f32 %v7923_v33  ;;  %v7944_v22 = vadd.f32 1.0, %v5658_v42  ;;  %vm2056_vm3 = vweird.f32 %v5656_v2 }
 0x27f   : > { %v2089_v17 = vmul.f32 %v5660_v57, %v7899_v40  ;;  %5669 = vrcp.f32 %v7932_v21  ;;  %v5662_v12 = vpop.eup %5661  ;;  %vm7954_vm15 = vcmp.eq.f32.partialorder %v1935_v38, 8.507059e+37  ;;  %vm2055_vm1 = vweird.f32 %v7888_v1 }
 0x280   : > { %v2053_v29 = vmul.f32 %v5656_v2, %v2052_v8  ;;  %vm7959_vm0 = vcmp.eq.f32.partialorder %v2059_v15, 8.507059e+37  ;;  %5671 = vrcp.f32 %v7944_v22  ;;  %vm2185_vm4 = vcmp.eq.s32.totalorder %v7950_v0, 1  ;;  %vm2057_vm13 = vmor %vm2055_vm1, %vm2056_vm3 }
 0x281   : > { %vm2184_vm5 = vcmp.eq.s32.totalorder %v7952_v13, 1  ;;  %v1930_v53 = vadd.f32 %v7902_v26, %v1929_v51  ;;  %vm1932_vm6 = vweird.f32 %v7902_v26  ;;  %v2090_v56 = vsub.f32 1.0, %v2089_v17  ;;  %v7972_v51 = vpop.permute.xlu1 %2196  ;;  %vm2213_vm3 = vmpackc.low %vm2185_vm4, %vm2185_vm4 }
 0x282   : > { %v2054_v20 = vadd.f32 %v5656_v2, %v2053_v29  ;;  %v5664_v41 = vpop.eup %5663  ;;  %v2099_v54 = vand.u32 2147483648, %v7899_v40  ;;  %v2062_v1 = vor.u32 1.1754944e-38, %v2061_v52  ;;  %v2097_v7 = vand.u32 2147483647, %v7899_v40  ;;  %vm7978_vm9 = vmor %vm1931_vm12, %vm1932_vm6 }
 0x283   : > { %v2041_v3 = vadd.f32 %v2031_v24, %v1971_v32  ;;  %v5666_v27 = vpop.eup %5665  ;;  %v2091_v4 = vmul.f32 %v5660_v57, %v2090_v56  ;;  %vm2094_vm8 = vweird.f32 %v5660_v57  ;;  %v1970_v15 = vadd.f32 %v1962_v31, %v10131_v11 }
 0x284   : > { %v2058_v38 = vsel %vm2057_vm13, %v5656_v2, %v2054_v20  ;;  %v5668_v42 = vpop.eup %5667  ;;  %v1938_v52 = vor.u32 1.1754944e-38, %v1937_v63  ;;  %v7984_v17 = vadd.f32 1.0, %v5666_v27  ;;  %v2017_v2 = vpop.f32.mrf.mxu2  ;;  %vm2201_vm10 = vcmp.eq.s32.totalorder %v7972_v51, 1 }
 0x285   : > { %v2063_v32 = vsel %vm7959_vm0, %v2062_v1, %v2058_v38  ;;  %v5190_v29 = vmul.f32 -1.442695, %v2041_v3  ;;  %v7986_v31 = vpop.eup %5669  ;;  %v1934_v58 = vsel %vm7978_vm9, %v7902_v26, %v1930_v53  ;;  %vm2093_vm7 = vweird.f32 %v7899_v40 }
 0x286   : > { %v2092_v24 = vadd.f32 %v5660_v57, %v2091_v4  ;;  %v1924_v63 = vsel %vm7934_vm14, %v7916_v55, %v1919_v59  ;;  %v5672_v47 = vpop.eup %5671  ;;  %vm2095_vm11 = vmor %vm2093_vm7, %vm2094_vm8  ;;  %v2100_v56 = vor.u32 1.1754944e-38, %v2099_v54  ;;  %vm2098_vm2 = vcmp.eq.f32.partialorder %v2097_v7, 8.507059e+37 }
 0x287   : > { %5673 = vrcp.f32 %v7984_v17  ;;  %v1949_v20 = vmul.f32 %v5662_v12, %v1924_v63  ;;  %v2160_v3 = vmul.f32 %v5664_v41, %v2063_v32  ;;  %v2066_v27 = vmul.f32 %v5672_v47, %v7944_v22  ;;  %vm2212_vm14 = vmpackc.low %vm2184_vm5, %vm2184_vm5 }
 0x288   : > { %v2096_v1 = vsel %vm2095_vm11, %v5660_v57, %v2092_v24  ;;  %v2040_v26 = vadd.f32 %v2017_v2, %v1970_v15  ;;  %v2129_v40 = vmul.f32 %v7986_v31, %v7932_v21  ;;  %5675 = vpow2.f32 %v5190_v29 }
 0x289   : > { %v2101_v53 = vsel %vm2098_vm2, %v2100_v56, %v2096_v1  ;;  %v1939_v55 = vsel %vm7954_vm15, %v1938_v52, %v1934_v58  ;;  %v2067_v43 = vsub.f32 1.0, %v2066_v27  ;;  %v2074_v54 = vand.u32 2147483647, %v7944_v22 }
 0x28a   : > { %v2158_v59 = vmul.f32 %v2101_v53, %v7669_v46  ;;  %v1950_v7 = vmul.f32 %v5668_v42, %v1939_v55  ;;  %vm2071_vm12 = vweird.f32 %v5672_v47  ;;  %v2210_v57 = vpack.c.bf16 %v1949_v20, %v1949_v20 }
 0x28b   : > { %v8009_v12 = vsel %vm2184_vm5, %v7895_v6, %v7630_v61  ;;  %v8015_v16 = vsel %vm2185_vm4, %v7923_v33, %v7660_v39  ;;  %v2068_v4 = vmul.f32 %v5672_v47, %v2067_v43  ;;  %v2186_v38 = vsel %vm2184_vm5, %v1949_v20, 0.0 }
 0x28c   : > { %v2162_v41 = vadd.f32 %v2160_v3, %v2158_v59  ;;  %v2187_v15 = vsel %vm2185_vm4, %v1950_v7, 0.0  ;;  %v2130_v61 = vsub.f32 1.0, %v2129_v40  ;;  %v2076_v6 = vand.u32 2147483648, %v7944_v22 }
 0x28d   : > { %v5674_v42 = vpop.eup %5673  ;;  %v5408_v8 = vpack.c.bf16 %v2187_v15, %v2186_v38  ;;  %v2211_v39 = vpack.c.bf16 %v1950_v7, %v1950_v7  ;;  %v2069_v52 = vadd.f32 %v5672_v47, %v2068_v4  ;;  %vm2070_vm15 = vweird.f32 %v7944_v22 }
 0x28e   : > { %v2104_v33 = vmul.f32 %v5674_v42, %v7984_v17  ;;  %v8031_v32 = vsel %vm2212_vm14, %v2210_v57, %v7640_v37  ;;  %v5676_v13 = vpop.eup %5675  ;;  %vm8034_vm1 = vmor %vm2070_vm15, %vm2071_vm12  ;;  %vm8038_vm0 = vcmp.eq.f32.partialorder %v2074_v54, 8.507059e+37  ;;  %5677 = vtanh.f32 %v2040_v26 }
 0x28f   : > { %5468 = vst [vmem:[%s6082_s15 + $0x10] sm:$0xff] %v5408_v8   ;;  %v8044_v0 = vsel %vm2213_vm3, %v2211_v39, %v7645_v25  ;;  %v8049_v37 = vsel %vm2201_vm10, %v2162_v41, %v7669_v46  ;;  %v2073_v58 = vsel %vm8034_vm1, %v5672_v47, %v2069_v52  ;;  %v8053_v24 = vadd.f32 1.0, %v5676_v13  ;;  %vm2220_vm1 = vmpackc.low %vm2201_vm10, %vm2201_vm10 }
 0x290   : > { %v2105_v22 = vsub.f32 1.0, %v2104_v33  ;;  %v2250_v63 = vunpack.c.l.b16 %v8044_v0  ;;  %v2131_v56 = vmul.f32 %v7986_v31, %v2130_v61  ;;  %v2114_v20 = vand.u32 2147483648, %v7984_v17 }
 0x291   : > { %v2077_v1 = vor.u32 1.1754944e-38, %v2076_v6  ;;  %v2249_v25 = vunpack.c.l.b16 %v8031_v32  ;;  %vm2109_vm4 = vweird.f32 %v5674_v42  ;;  %v2112_v46 = vand.u32 2147483647, %v7984_v17 }
 0x292   : > { %v2106_v3 = vmul.f32 %v5674_v42, %v2105_v22  ;;  %5679 = vrcp.f32 %v8053_v24  ;;  %vm2108_vm5 = vweird.f32 %v7984_v17  ;;  %v2132_v40 = vadd.f32 %v7986_v31, %v2131_v56 }
 0x293   : > { %v2078_v47 = vsel %vm8038_vm0, %v2077_v1, %v2073_v58  ;;  %v2251_v27 = vpack.c.b16 %v2250_v63, %v2249_v25  ;;  %5681 = vtanh.f32 %v2162_v41  ;;  %vm2134_vm6 = vweird.f32 %v7986_v31  ;;  %vm2110_vm13 = vmor %vm2108_vm5, %vm2109_vm4  ;;  %v10241_v41 = vld [vmem:[#allocation15_spill] sm:$0xff] }
 0x294   : > { %v2107_v26 = vadd.f32 %v5674_v42, %v2106_v3  ;;  %v5678_v53 = vpop.eup %5677  ;;  %v2115_v55 = vor.u32 1.1754944e-38, %v2114_v20  ;;  %v2139_v59 = vand.u32 2147483648, %v7932_v21  ;;  %vm2113_vm8 = vcmp.eq.f32.partialorder %v2112_v46, 8.507059e+37 }
 0x295   : > { %2261 = vmatmul.bf16.vlgmr.msra.gmra.mxu0 %v2251_v27  ;;  %2275 = vmatmul.bf16.vlgmr.msra.gmra.mxu1 %v2251_v27  ;;  %v2161_v54 = vmul.f32 %v5678_v53, %v2078_v47  ;;  %vm2133_vm9 = vweird.f32 %v7932_v21  ;;  %v2137_v17 = vand.u32 2147483647, %v7932_v21  ;;  %v2154_v39 = vand.u32 2147483648, %v8053_v24  ;;  %v10230_v47 = vld [vmem:[#allocation42_spill] sm:$0xff]  ;;  %v10233_v53 = vld [vmem:[#allocation7_spill] sm:$0xff] }
 0x296   : > { %v2111_v43 = vsel %vm2110_vm13, %v5674_v42, %v2107_v26  ;;  %2289 = vmatmul.bf16.vlgmr.msra.gmra.mxu2 %v2251_v27  ;;  %2303 = vmatmul.bf16.vlgmr.msra.gmra.mxu3 %v2251_v27  ;;  %vm8073_vm7 = vmor %vm2133_vm9, %vm2134_vm6  ;;  %v2200_v42 = vpop.permute.xlu2 %2199  ;;  %v2140_v61 = vor.u32 1.1754944e-38, %v2139_v59  ;;  %v2152_v13 = vand.u32 2147483647, %v8053_v24  ;;  %vm2148_vm14 = vweird.f32 %v8053_v24  ;;  %v10232_v26 = vld [vmem:[#allocation6_spill] sm:$0xff] }
 0x297   : > { %v2116_v7 = vsel %vm2113_vm8, %v2115_v55, %v2111_v43  ;;  %2745 = vmatpush.bf16.msra.mxu0 %v6098_v5  ;;  %2759 = vmatpush.bf16.msra.mxu1 %v6109_v9  ;;  %v2136_v21 = vsel %vm8073_vm7, %v7986_v31, %v2132_v40  ;;  %vm2202_vm11 = vcmp.eq.s32.totalorder %v2200_v42, 1  ;;  %vm2138_vm2 = vcmp.eq.f32.partialorder %v2137_v17, 8.507059e+37  ;;  %v10234_v55 = vld [vmem:[#allocation10_spill] sm:$0xff]  ;;  %v10236_v43 = vld [vmem:[#allocation9_spill] sm:$0xff] }
 0x298   : > { %v5680_v57 = vpop.eup %5679  ;;  %v2159_v4 = vmul.f32 %v2116_v7, %v7700_v62  ;;  %2773 = vmatpush.bf16.msra.mxu2 %v6149_v23  ;;  %2787 = vmatpush.bf16.msra.mxu3 %v6111_v10  ;;  %v2141_v33 = vsel %vm2138_vm2, %v2140_v61, %v2136_v21  ;;  %v2155_v22 = vor.u32 1.1754944e-38, %v2154_v39  ;;  %vm2153_vm15 = vcmp.eq.f32.partialorder %v2152_v13, 8.507059e+37  ;;  %vm2221_vm0 = vmpackc.low %vm2202_vm11, %vm2202_vm11  ;;  %v10238_v17 = vld [vmem:[#allocation14_spill] sm:$0xff]  ;;  %v10239_v7 = vld [vmem:[#allocation12_spill] sm:$0xff] }
 0x299   : > { %v2144_v38 = vmul.f32 %v5680_v57, %v8053_v24  ;;  %v5682_v15 = vpop.eup %5681  ;;  %vm2149_vm12 = vweird.f32 %v5680_v57  ;;  %v10243_v21 = vld [vmem:[#allocation16_spill] sm:$0xff]  ;;  %v10246_v42 = vld [vmem:[#allocation21_spill] sm:$0xff]  ;;  %v10247_v61 = vld [vmem:[#allocation22_spill] sm:$0xff] }
 0x29a   : > { %v2163_v6 = vadd.f32 %v2161_v54, %v2159_v4  ;;  %v2166_v2 = vmul.f32 %v5682_v15, %v2141_v33  ;;  %vm2150_vm3 = vmor %vm2148_vm14, %vm2149_vm12  ;;  %v10237_v54 = vld [vmem:[#allocation11_spill] sm:$0xff]  ;;  %v10242_v4 = vld [vmem:[#allocation18_spill] sm:$0xff] }
 0x29b   : > { %v2145_v8 = vsub.f32 1.0, %v2144_v38  ;;  %2746 = vmatpush.bf16.msra.mxu0 %v6123_v14  ;;  %2760 = vmatpush.bf16.msra.mxu1 %v6136_v18  ;;  %v10244_v38 = vld [vmem:[#allocation17_spill] sm:$0xff]  ;;  %v10245_v15 = vld [vmem:[#allocation19_spill] sm:$0xff]  ;;  %v10250_v39 = vld [vmem:[#allocation28_spill] sm:$0xff] }
 0x29c   : > { %5683 = vtanh.f32 %v2163_v6  ;;  %2774 = vmatpush.bf16.msra.mxu2 %v6188_v36  ;;  %2788 = vmatpush.bf16.msra.mxu3 %v6138_v19  ;;  %v8091_v31 = vsel %vm2202_vm11, %v2163_v6, %v7700_v62  ;;  %v2218_v58 = vpack.c.bf16 %v2166_v2, %v2166_v2  ;;  %v2203_v24 = vsel %vm2201_vm10, %v2166_v2, 0.0  ;;  %v10248_v6 = vld [vmem:[#allocation24_spill] sm:$0xff]  ;;  %v10251_v33 = vld [vmem:[#allocation23_spill] sm:$0xff]  ;;  %v10253_v13 = vld [vmem:[#allocation26_spill] sm:$0xff] }
 0x29d   : > { %v2146_v52 = vmul.f32 %v5680_v57, %v2145_v8  ;;  %v10249_v8 = vld [vmem:[#allocation20_spill] sm:$0xff]  ;;  %v10254_v2 = vld [vmem:[#allocation33_spill] sm:$0xff] }
 0x29e   : > { %v8110_v3 = vsel %vm2220_vm1, %v2218_v58, %v7719_v48  ;;  %v10235_v48 = vld [vmem:[#allocation8_spill] sm:$0xff]  ;;  %v10258_v58 = vld [vmem:[#allocation37_spill] sm:$0xff] }
 0x29f   : > { %v2147_v29 = vadd.f32 %v5680_v57, %v2146_v52  ;;  %2747 = vmatpush.bf16.msra.mxu0 %v6171_v30  ;;  %2761 = vmatpush.bf16.msra.mxu1 %v6184_v34  ;;  %v2466_v51 = vunpack.c.l.b16 %v8110_v3  ;;  %v10252_v52 = vld [vmem:[#allocation25_spill] sm:$0xff] }
 0x2a0   : > { %2775 = vmatpush.bf16.msra.mxu2 %v6213_v45  ;;  %2789 = vmatpush.bf16.msra.mxu3 %v6186_v35 }
 0x2a1   : > { %v2151_v62 = vsel %vm2150_vm3, %v5680_v57, %v2147_v29  ;;  %v10240_v57 = vld [vmem:[#allocation13_spill] sm:$0xff]  ;;  %v10255_v29 = vld [vmem:[#allocation27_spill] sm:$0xff] }
 0x2a2   : > { %v5684_v63 = vpop.eup %5683  ;;  %v2156_v56 = vsel %vm2153_vm15, %v2155_v22, %v2151_v62  ;;  %v10256_v22 = vld [vmem:[#allocation30_spill] sm:$0xff]  ;;  %v10257_v62 = vld [vmem:[#allocation31_spill] sm:$0xff] }
 0x2a3   : > { %v2167_v20 = vmul.f32 %v5684_v63, %v2156_v56  ;;  %2748 = vmatpush.bf16.msra.mxu0 %v6211_v44  ;;  %2762 = vmatpush.bf16.msra.mxu1 %v6226_v49  ;;  %v10259_v63 = vld [vmem:[#allocation32_spill] sm:$0xff]  ;;  %v10260_v56 = vld [vmem:[#allocation34_spill] sm:$0xff] }
 0x2a4   : > { %2776 = vmatpush.bf16.msra.mxu2 %v6259_v60  ;;  %2790 = vmatpush.bf16.msra.mxu3 %v6228_v50 }
 0x2a5   : > { %v2204_v1 = vsel %vm2202_vm11, %v2167_v20, 0.0  ;;  %v2219_v25 = vpack.c.bf16 %v2167_v20, %v2167_v20  ;;  %v10261_v20 = vld [vmem:[#allocation35_spill] sm:$0xff] }
 0x2a6   : > { %v5413_v46 = vpack.c.bf16 %v2204_v1, %v2203_v24  ;;  %v10262_v24 = vld [vmem:[#allocation41_spill] sm:$0xff]  ;;  %v10263_v1 = vld [vmem:[#allocation36_spill] sm:$0xff] }
 0x2a7   : > { %v8115_v27 = vsel %vm2221_vm0, %v2219_v25, %v10230_v47  ;;  %2749 = vmatpush.bf16.msra.mxu0 %v10232_v26  ;;  %2763 = vmatpush.bf16.msra.mxu1 %v10233_v53  ;;  %v10264_v25 = vld [vmem:[#allocation38_spill] sm:$0xff] }
 0x2a8   : > { %10231 = vst [vmem:[#allocation47_spill] sm:$0xff] %v8115_v27  ;;  %v2467_v40 = vunpack.c.l.b16 %v8115_v27  ;;  %2777 = vmatpush.bf16.msra.mxu2 %v10234_v55  ;;  %2791 = vmatpush.bf16.msra.mxu3 %v10235_v48  ;;  %v10266_v47 = vld [vmem:[#allocation46_spill] sm:$0xff] }
 0x2a9   : > { %5469 = vst [vmem:[%s6087_s19 + $0x28] sm:$0xff] %v5413_v46   ;;  %v10265_v46 = vld [vmem:[#allocation39_spill] sm:$0xff] }
 0x2aa   : > { %v2468_v59 = vpack.c.b16 %v2467_v40, %v2466_v51  ;;  %v10267_v51 = vld [vmem:[#allocation40_spill] sm:$0xff]  ;;  %v10268_v40 = vld [vmem:[#allocation43_spill] sm:$0xff] }
 0x2ab   : > { %2750 = vmatpush.bf16.msra.mxu0 %v10236_v43  ;;  %2764 = vmatpush.bf16.msra.mxu1 %v10237_v54 }
 0x2ac   : > { %2478 = vmatmul.bf16.vlgmr.msrb.gmra.mxu0 %v2468_v59  ;;  %2492 = vmatmul.bf16.vlgmr.msrb.gmra.mxu1 %v2468_v59 }
 0x2ad   : > { %2506 = vmatmul.bf16.vlgmr.msrb.gmra.mxu2 %v2468_v59  ;;  %2520 = vmatmul.bf16.vlgmr.msrb.gmra.mxu3 %v2468_v59  ;;  %v10269_v59 = vld [vmem:[#allocation44_spill] sm:$0xff] }
 0x2ae   : > { %2778 = vmatpush.bf16.msra.mxu2 %v10238_v17  ;;  %2792 = vmatpush.bf16.msra.mxu3 %v10239_v7 }
 0x2af   : > { %2751 = vmatpush.bf16.msra.mxu0 %v10240_v57  ;;  %2765 = vmatpush.bf16.msra.mxu1 %v10241_v41 }
 0x2b2   : > { %2779 = vmatpush.bf16.msra.mxu2 %v10242_v4  ;;  %2793 = vmatpush.bf16.msra.mxu3 %v10243_v21 }
 0x2b3   : > { %2752 = vmatpush.bf16.msra.mxu0 %v10244_v38  ;;  %2766 = vmatpush.bf16.msra.mxu1 %v10245_v15 }
 0x2b6   : > { %2780 = vmatpush.bf16.msra.mxu2 %v10248_v6  ;;  %2794 = vmatpush.bf16.msra.mxu3 %v10249_v8 }
 0x2b7   : > { %2962 = vmatpush.bf16.msrb.mxu0 %v10246_v42  ;;  %2976 = vmatpush.bf16.msrb.mxu1 %v10247_v61 }
 0x2ba   : > { %2990 = vmatpush.bf16.msrb.mxu2 %v10250_v39  ;;  %3004 = vmatpush.bf16.msrb.mxu3 %v10251_v33 }
 0x2bb   : > { %2963 = vmatpush.bf16.msrb.mxu0 %v10252_v52  ;;  %2977 = vmatpush.bf16.msrb.mxu1 %v10253_v13 }
 0x2be   : > { %2991 = vmatpush.bf16.msrb.mxu2 %v10254_v2  ;;  %3005 = vmatpush.bf16.msrb.mxu3 %v10255_v29  ;;  %v5197_v29 = vld [vmem:[%s6072_s8 + $0x70] sm:$0xff] }
 0x2bf   : > { %2964 = vmatpush.bf16.msrb.mxu0 %v10256_v22  ;;  %2978 = vmatpush.bf16.msrb.mxu1 %v10257_v62  ;;  %v2236_v52 = vunpack.c.h.bf16 %v5197_v29 }
 0x2c2   : > { %2992 = vmatpush.bf16.msrb.mxu2 %v10258_v58  ;;  %3006 = vmatpush.bf16.msrb.mxu3 %v10259_v63 }
 0x2c3   : > { %2965 = vmatpush.bf16.msrb.mxu0 %v10260_v56  ;;  %2979 = vmatpush.bf16.msrb.mxu1 %v10261_v20  ;;  %v10270_v56 = vld [vmem:[#allocation51_spill] sm:$0xff]  ;;  %v10271_v20 = vld [vmem:[#allocation45_spill] sm:$0xff] }
 0x2c6   : > { %2993 = vmatpush.bf16.msrb.mxu2 %v10262_v24  ;;  %3007 = vmatpush.bf16.msrb.mxu3 %v10263_v1  ;;  %v10272_v1 = vld [vmem:[#allocation48_spill] sm:$0xff]  ;;  %v10274_v24 = vld [vmem:[#allocation55_spill] sm:$0xff] }
 0x2c7   : > { %2966 = vmatpush.bf16.msrb.mxu0 %v10264_v25  ;;  %2980 = vmatpush.bf16.msrb.mxu1 %v10265_v46  ;;  %v10273_v25 = vld [vmem:[#allocation49_spill] sm:$0xff]  ;;  %v10275_v46 = vld [vmem:[#allocation50_spill] sm:$0xff] }
 0x2ca   : > { %2994 = vmatpush.bf16.msrb.mxu2 %v10266_v47  ;;  %3008 = vmatpush.bf16.msrb.mxu3 %v10267_v51  ;;  %v10276_v47 = vld [vmem:[#allocation52_spill] sm:$0xff]  ;;  %v10277_v51 = vld [vmem:[#allocation53_spill] sm:$0xff] }
 0x2cb   : > { %2967 = vmatpush.bf16.msrb.mxu0 %v10268_v40  ;;  %2981 = vmatpush.bf16.msrb.mxu1 %v10269_v59  ;;  %v10278_v40 = vld [vmem:[#allocation56_spill] sm:$0xff]  ;;  %v10279_v59 = vld [vmem:[#allocation54_spill] sm:$0xff] }
 0x2ce   : > { %2995 = vmatpush.bf16.msrb.mxu2 %v10270_v56  ;;  %3009 = vmatpush.bf16.msrb.mxu3 %v10271_v20  ;;  %v5195_v56 = vld [vmem:[%s6072_s8 + $0x60] sm:$0xff]  ;;  %v10280_v20 = vld [vmem:[#allocation62_spill] sm:$0xff] }
 0x2cf   : > { %2968 = vmatpush.bf16.msrb.mxu0 %v10272_v1  ;;  %2982 = vmatpush.bf16.msrb.mxu1 %v10273_v25  ;;  %v2231_v63 = vunpack.c.l.bf16 %v5195_v56  ;;  %v2232_v58 = vunpack.c.h.bf16 %v5195_v56  ;;  %v10281_v1 = vld [vmem:[#allocation63_spill] sm:$0xff]  ;;  %v5196_v25 = vld [vmem:[%s6072_s8 + $0x68] sm:$0xff] }
 0x2d1   : > { %v2239_v62 = vadd.f32 %v2231_v63, %v10280_v20  ;;  %v2240_v22 = vadd.f32 %v2232_v58, %v10281_v1  ;;  %v2244_v63 = vadd.f32 %v2236_v52, %v10281_v1  ;;  %v2233_v58 = vunpack.c.l.bf16 %v5196_v25 }
 0x2d2   : > { %2996 = vmatpush.bf16.msrb.mxu2 %v10274_v24  ;;  %3010 = vmatpush.bf16.msrb.mxu3 %v10275_v46  ;;  %v2234_v46 = vunpack.c.h.bf16 %v5196_v25 }
 0x2d3   : > { %2969 = vmatpush.bf16.msrb.mxu0 %v10276_v47  ;;  %2983 = vmatpush.bf16.msrb.mxu1 %v10277_v51  ;;  %v2235_v51 = vunpack.c.l.bf16 %v5197_v29 }
 0x2d5   : > { %v2243_v56 = vadd.f32 %v2235_v51, %v10280_v20 }
 0x2d6   : > { %2997 = vmatpush.bf16.msrb.mxu2 %v10278_v40  ;;  %3011 = vmatpush.bf16.msrb.mxu3 %v10279_v59  ;;  %v10282_v59 = vld [vmem:[#allocation64_spill] sm:$0xff] }
 0x2d7   : > { %v2242_v39 = vadd.f32 %v2234_v46, %v10282_v59 }
 0x312   : > { %v2262_v24 = vpop.f32.mrf.mxu0  ;;  %v2276_v2 = vpop.f32.mrf.mxu1 }
 0x313   : > { %v2309_v13 = vadd.f32 %v2262_v24, %v2239_v62  ;;  %v2310_v47 = vadd.f32 %v2276_v2, %v2240_v22  ;;  %v5198_v62 = vld [vmem:[%s6072_s8 + $0x78] sm:$0xff]  ;;  %v10283_v24 = vld [vmem:[#allocation65_spill] sm:$0xff] }
 0x314   : > { %v2238_v15 = vunpack.c.h.bf16 %v5198_v62 }
 0x315   : > { %v5199_v40 = vmul.f32 -1.442695, %v2309_v13  ;;  %v5201_v33 = vmul.f32 -1.442695, %v2310_v47  ;;  %v2241_v47 = vadd.f32 %v2233_v58, %v10283_v24 }
 0x317   : > { %5685 = vpow2.f32 %v5199_v40 }
 0x318   : > { %5687 = vpow2.f32 %v5201_v33 }
 0x319   : > { %v2304_v8 = vpop.f32.mrf.mxu3  ;;  %v2290_v46 = vpop.f32.mrf.mxu2 }
 0x31a   : > { %v2312_v6 = vadd.f32 %v2304_v8, %v2242_v39  ;;  %v2264_v61 = vpop.f32.mrf.mxu0  ;;  %v2278_v42 = vpop.f32.mrf.mxu1  ;;  %v5205_v8 = vld [vmem:[%s6077_s12 + $0x280] sm:$0xff] }
 0x31b   : > { %v2313_v2 = vadd.f32 %v2264_v61, %v2243_v56  ;;  %v2314_v22 = vadd.f32 %v2278_v42, %v2244_v63  ;;  %v2311_v42 = vadd.f32 %v2290_v46, %v2241_v47  ;;  %v2237_v61 = vunpack.c.l.bf16 %v5198_v62  ;;  %v10284_v46 = vld [vmem:[#allocation66_spill] sm:$0xff] }
 0x31c   : > { %v5203_v29 = vmul.f32 -1.442695, %v2312_v6  ;;  %v2246_v6 = vadd.f32 %v2238_v15, %v10282_v59  ;;  %v2448_v25 = vunpack.c.l.bf16 %v5205_v8  ;;  %v2449_v56 = vunpack.c.h.bf16 %v5205_v8 }
 0x31d   : > { %v5686_v13 = vpop.eup %5685  ;;  %v5200_v40 = vmul.f32 -1.442695, %v2313_v2  ;;  %v5202_v33 = vmul.f32 -1.442695, %v2314_v22  ;;  %v2245_v22 = vadd.f32 %v2237_v61, %v10283_v24  ;;  %v5207_v24 = vld [vmem:[%s6077_s12 + $0x290] sm:$0xff] }
 0x31e   : > { %v5688_v51 = vpop.eup %5687  ;;  %v8178_v20 = vadd.f32 1.0, %v5686_v13  ;;  %5689 = vpow2.f32 %v5203_v29  ;;  %v2453_v43 = vunpack.c.h.bf16 %v5207_v24 }
 0x31f   : > { %v8180_v52 = vadd.f32 1.0, %v5688_v51  ;;  %5691 = vpow2.f32 %v5200_v40  ;;  %v2456_v40 = vadd.f32 %v2448_v25, %v10284_v46 }
 0x320   : > { %5693 = vrcp.f32 %v8178_v20  ;;  %v2334_v47 = vand.u32 2147483647, %v8178_v20  ;;  %v2336_v15 = vand.u32 2147483648, %v8178_v20  ;;  %vm2330_vm4 = vweird.f32 %v8178_v20 }
 0x321   : > { %5695 = vrcp.f32 %v8180_v52  ;;  %v2306_v39 = vpop.f32.mrf.mxu3  ;;  %vm2368_vm10 = vweird.f32 %v8180_v52  ;;  %v2292_v8 = vpop.f32.mrf.mxu2  ;;  %v2374_v25 = vand.u32 2147483648, %v8180_v52 }
 0x322   : > { %5697 = vpow2.f32 %v5202_v33  ;;  %v2316_v29 = vadd.f32 %v2306_v39, %v2246_v6  ;;  %v8204_v6 = vld [vmem:[%s6077_s12 + $0x288] sm:$0xff]  ;;  %vm8215_vm5 = vcmp.eq.f32.partialorder %v2334_v47, 8.507059e+37  ;;  %v2337_v4 = vor.u32 1.1754944e-38, %v2336_v15 }
 0x323   : > { %5699 = vtanh.f32 %v2311_v42  ;;  %v10285_v42 = vld [vmem:[#allocation67_spill] sm:$0xff]  ;;  %v2315_v41 = vadd.f32 %v2292_v8, %v2245_v22  ;;  %v2451_v7 = vunpack.c.h.bf16 %v8204_v6 }
 0x324   : > { %v5690_v63 = vpop.eup %5689  ;;  %v2457_v61 = vadd.f32 %v2449_v56, %v10285_v42  ;;  %v5204_v38 = vmul.f32 -1.442695, %v2316_v29  ;;  %v2375_v29 = vor.u32 1.1754944e-38, %v2374_v25 }
 0x325   : > { %v5692_v58 = vpop.eup %5691  ;;  %v8186_v2 = vadd.f32 1.0, %v5690_v63  ;;  %v2459_v25 = vadd.f32 %v2451_v7, %v10209_v28 }
 0x326   : > { %v8189_v13 = vpop.eup %5693  ;;  %v8193_v62 = vadd.f32 1.0, %v5692_v58  ;;  %v2372_v58 = vand.u32 2147483647, %v8180_v52 }
 0x327   : > { %v8196_v51 = vpop.eup %5695  ;;  %v2326_v33 = vmul.f32 %v8189_v13, %v8178_v20  ;;  %5701 = vrcp.f32 %v8186_v2  ;;  %vm2331_vm6 = vweird.f32 %v8189_v13 }
 0x328   : > { %v5698_v39 = vpop.eup %5697  ;;  %v2364_v63 = vmul.f32 %v8196_v51, %v8180_v52  ;;  %5703 = vrcp.f32 %v8193_v62  ;;  %vm8224_vm13 = vcmp.eq.f32.partialorder %v2372_v58, 8.507059e+37  ;;  %vm2369_vm8 = vweird.f32 %v8196_v51  ;;  %vm8237_vm9 = vmor %vm2330_vm4, %vm2331_vm6 }
 0x329   : > { %v2327_v59 = vsub.f32 1.0, %v2326_v33  ;;  %v8213_v1 = vadd.f32 1.0, %v5698_v39  ;;  %v2479_v57 = vpop.f32.mrf.mxu0  ;;  %v5700_v17 = vpop.eup %5699  ;;  %v2452_v33 = vunpack.c.l.bf16 %v5207_v24  ;;  %vm8249_vm7 = vmor %vm2368_vm10, %vm2369_vm8  ;;  %vm2345_vm11 = vweird.f32 %v8193_v62 }
 0x32a   : > { %v2365_v56 = vsub.f32 1.0, %v2364_v63  ;;  %v2493_v22 = vpop.f32.mrf.mxu1  ;;  %v2450_v63 = vunpack.c.l.bf16 %v8204_v6  ;;  %vm2408_vm4 = vweird.f32 %v8186_v2 }
 0x32b   : > { %v2328_v54 = vmul.f32 %v8189_v13, %v2327_v59  ;;  %5705 = vrcp.f32 %v8213_v1  ;;  %v2526_v59 = vadd.f32 %v2479_v57, %v2456_v40  ;;  %v2460_v57 = vadd.f32 %v2452_v33, %v10284_v46 }
 0x32c   : > { %v2366_v39 = vmul.f32 %v8196_v51, %v2365_v56  ;;  %5707 = vpow2.f32 %v5204_v38  ;;  %v8243_v38 = vadd.f32 %v2453_v43, %v10285_v42  ;;  %v2349_v40 = vand.u32 2147483647, %v8193_v62 }
 0x32d   : > { %v2329_v15 = vadd.f32 %v8189_v13, %v2328_v54  ;;  %v8230_v8 = vpop.eup %5701  ;;  %5709 = vtanh.f32 %v2315_v41  ;;  %v5209_v48 = vmul.f32 -1.442695, %v2526_v59  ;;  %v2527_v54 = vadd.f32 %v2493_v22, %v2457_v61 }
 0x32e   : > { %v2367_v24 = vadd.f32 %v8196_v51, %v2366_v39  ;;  %v5704_v58 = vpop.eup %5703  ;;  %v2404_v6 = vmul.f32 %v8230_v8, %v8186_v2  ;;  %vm2383_vm2 = vweird.f32 %v8213_v1  ;;  %v2389_v39 = vand.u32 2147483648, %v8213_v1 }
 0x32f   : > { %v2333_v41 = vsel %vm8237_vm9, %v8189_v13, %v2329_v15  ;;  %v2341_v20 = vmul.f32 %v5704_v58, %v8193_v62  ;;  %5711 = vpow2.f32 %v5209_v48  ;;  %v2351_v22 = vand.u32 2147483648, %v8193_v62 }
 0x330   : > { %v2521_v43 = vpop.f32.mrf.mxu3  ;;  %v2371_v52 = vsel %vm8249_vm7, %v8196_v51, %v2367_v24  ;;  %v2338_v59 = vsel %vm8215_vm5, %v2337_v4, %v2333_v41  ;;  %v2387_v56 = vand.u32 2147483647, %v8213_v1  ;;  %v5211_v51 = vmul.f32 -1.442695, %v2527_v54 }
 0x331   : > { %v5706_v61 = vpop.eup %5705  ;;  %v2342_v33 = vsub.f32 1.0, %v2341_v20  ;;  %v2529_v24 = vadd.f32 %v2521_v43, %v2459_v25  ;;  %v2376_v42 = vsel %vm8224_vm13, %v2375_v29, %v2371_v52  ;;  %vm2346_vm12 = vweird.f32 %v5704_v58  ;;  %v2481_v46 = vpop.f32.mrf.mxu0 }
 0x332   : > { %v2379_v13 = vmul.f32 %v5706_v61, %v8213_v1  ;;  %v5708_v15 = vpop.eup %5707  ;;  %v2405_v55 = vsub.f32 1.0, %v2404_v6  ;;  %5713 = vpow2.f32 %v5211_v51  ;;  %vm2384_vm14 = vweird.f32 %v5706_v61  ;;  %vm2347_vm3 = vmor %vm2345_vm11, %vm2346_vm12 }
 0x333   : > { %v5710_v7 = vpop.eup %5709  ;;  %v2343_v20 = vmul.f32 %v5704_v58, %v2342_v33  ;;  %v8273_v53 = vadd.f32 1.0, %v5708_v15  ;;  %v5213_v26 = vmul.f32 -1.442695, %v2529_v24  ;;  %v2352_v21 = vor.u32 1.1754944e-38, %v2351_v22  ;;  %vm2385_vm1 = vmor %vm2383_vm2, %vm2384_vm14 }
 0x334   : > { %v2380_v48 = vsub.f32 1.0, %v2379_v13  ;;  %v2433_v25 = vmul.f32 %v2376_v42, %v8009_v12  ;;  %v2435_v54 = vmul.f32 %v5700_v17, %v2338_v59  ;;  %v2530_v29 = vadd.f32 %v2481_v46, %v2460_v57  ;;  %v2495_v17 = vpop.f32.mrf.mxu1  ;;  %v2507_v57 = vpop.f32.mrf.mxu2 }
 0x335   : > { %v2344_v4 = vadd.f32 %v5704_v58, %v2343_v20  ;;  %v5712_v41 = vpop.eup %5711  ;;  %5715 = vrcp.f32 %v8273_v53  ;;  %vm2350_vm15 = vcmp.eq.f32.partialorder %v2349_v40, 8.507059e+37  ;;  %v2406_v6 = vmul.f32 %v8230_v8, %v2405_v55 }
 0x336   : > { %v2381_v27 = vmul.f32 %v5706_v61, %v2380_v48  ;;  %v8279_v52 = vadd.f32 1.0, %v5712_v41  ;;  %v2390_v33 = vor.u32 1.1754944e-38, %v2389_v39  ;;  %5717 = vpow2.f32 %v5213_v26 }
 0x337   : > { %v2348_v47 = vsel %vm2347_vm3, %v5704_v58, %v2344_v4  ;;  %vm2388_vm0 = vcmp.eq.f32.partialorder %v2387_v56, 8.507059e+37  ;;  %v2458_v62 = vadd.f32 %v2450_v63, %v10131_v11  ;;  %v2414_v58 = vand.u32 2147483648, %v8186_v2  ;;  %v8300_v63 = vld [vmem:[%s6077_s12 + $0x298] sm:$0xff] }
 0x338   : > { %v2382_v43 = vadd.f32 %v5706_v61, %v2381_v27  ;;  %v2353_v13 = vsel %vm2350_vm15, %v2352_v21, %v2348_v47  ;;  %5719 = vrcp.f32 %v8279_v52  ;;  %v5714_v46 = vpop.eup %5713  ;;  %v8286_v27 = vadd.f32 %v2435_v54, %v2433_v25 }
 0x339   : > { %v5210_v1 = vmul.f32 -1.442695, %v2530_v29  ;;  %v2436_v39 = vmul.f32 %v5710_v7, %v2353_v13  ;;  %v8290_v26 = vadd.f32 1.0, %v5714_v46  ;;  %v8296_v15 = vadd.f32 %v8230_v8, %v2406_v6 }
 0x33a   : > { %v2386_v42 = vsel %vm2385_vm1, %v5706_v61, %v2382_v43  ;;  %v2531_v61 = vadd.f32 %v2495_v17, %v8243_v38  ;;  %vm2409_vm10 = vweird.f32 %v8230_v8  ;;  %v2412_v59 = vand.u32 2147483647, %v8186_v2 }
 0x33b   : > { %v2391_v55 = vsel %vm2388_vm0, %v2390_v33, %v2386_v42  ;;  %v8293_v22 = vpop.eup %5715  ;;  %5721 = vpow2.f32 %v5210_v1  ;;  %v2528_v51 = vadd.f32 %v2507_v57, %v2458_v62  ;;  %v8307_v38 = vor.u32 1.1754944e-38, %v2414_v58  ;;  %vm8310_vm5 = vmor %vm2408_vm4, %vm2409_vm10  ;;  %v2523_v1 = vpop.f32.mrf.mxu3 }
 0x33c   : > { %v2434_v40 = vmul.f32 %v2391_v55, %v8015_v16  ;;  %v2419_v56 = vmul.f32 %v8293_v22, %v8273_v53  ;;  %5723 = vrcp.f32 %v8290_v26  ;;  %v5718_v24 = vpop.eup %5717  ;;  %v5212_v7 = vmul.f32 -1.442695, %v2531_v61  ;;  %v8343_v61 = vpop.permute.xlu1 %2674 }
 0x33d   : > { %5725 = vtanh.f32 %v8286_v27  ;;  %v2455_v41 = vunpack.c.h.bf16 %v8300_v63  ;;  %v2411_v2 = vsel %vm8310_vm5, %v8230_v8, %v8296_v15  ;;  %vm2423_vm6 = vweird.f32 %v8273_v53 }
 0x33e   : > { %v5720_v48 = vpop.eup %5719  ;;  %v8314_v4 = vadd.f32 %v2436_v39, %v2434_v40  ;;  %v2420_v21 = vsub.f32 1.0, %v2419_v56  ;;  %v8323_v54 = vadd.f32 1.0, %v5718_v24  ;;  %vm8325_vm13 = vcmp.eq.f32.partialorder %v2412_v59, 8.507059e+37  ;;  %v8341_v39 = vpop.permute.xlu0 %2671 }
 0x33f   : > { %v2543_v25 = vmul.f32 %v5720_v48, %v8279_v52  ;;  %v2427_v47 = vand.u32 2147483647, %v8273_v53  ;;  %v2429_v43 = vand.u32 2147483648, %v8273_v53  ;;  %v2551_v6 = vand.u32 2147483647, %v8279_v52 }
 0x340   : > { %5727 = vtanh.f32 %v2528_v51  ;;  %v2421_v8 = vmul.f32 %v8293_v22, %v2420_v21  ;;  %v2553_v17 = vand.u32 2147483648, %v8279_v52  ;;  %v2454_v46 = vunpack.c.l.bf16 %v8300_v63 }
 0x341   : > { %v5722_v33 = vpop.eup %5721  ;;  %v2544_v13 = vsub.f32 1.0, %v2543_v25  ;;  %5729 = vpow2.f32 %v5212_v7  ;;  %v2463_v58 = vadd.f32 %v2455_v41, %v10209_v28  ;;  %vm2548_vm8 = vweird.f32 %v5720_v48 }
 0x342   : > { %v5724_v42 = vpop.eup %5723  ;;  %5731 = vtanh.f32 %v8314_v4  ;;  %v8335_v62 = vadd.f32 1.0, %v5722_v33  ;;  %vm8345_vm9 = vcmp.eq.f32.partialorder %v2427_v47, 8.507059e+37  ;;  %vm2547_vm7 = vweird.f32 %v8279_v52 }
 0x343   : > { %v2581_v55 = vmul.f32 %v5724_v42, %v8290_v26  ;;  %v2545_v57 = vmul.f32 %v5720_v48, %v2544_v13  ;;  %5733 = vrcp.f32 %v8323_v54  ;;  %v5726_v40 = vpop.eup %5725  ;;  %vm8350_vm11 = vcmp.eq.f32.partialorder %v2551_v6, 8.507059e+37  ;;  %vm2549_vm3 = vmor %vm2547_vm7, %vm2548_vm8 }
 0x344   : > { %5735 = vrcp.f32 %v8335_v62  ;;  %vm2676_vm2 = vcmp.eq.s32.totalorder %v8341_v39, 1  ;;  %vm2677_vm12 = vcmp.eq.s32.totalorder %v8343_v61, 1  ;;  %v2422_v59 = vadd.f32 %v8293_v22, %v2421_v8  ;;  %v8363_v8 = vpop.permute.xlu2 %2688 }
 0x345   : > { %vm2424_vm14 = vweird.f32 %v8293_v22  ;;  %v2582_v56 = vsub.f32 1.0, %v2581_v55  ;;  %v2546_v51 = vadd.f32 %v5720_v48, %v2545_v57  ;;  %v2591_v7 = vand.u32 2147483648, %v8290_v26  ;;  %vm2705_vm8 = vmpackc.low %vm2677_vm12, %vm2677_vm12 }
 0x346   : > { %v5728_v24 = vpop.eup %5727  ;;  %v2554_v52 = vor.u32 1.1754944e-38, %v2553_v17  ;;  %v2589_v20 = vand.u32 2147483647, %v8290_v26  ;;  %v2533_v21 = vadd.f32 %v2523_v1, %v2463_v58  ;;  %vm2586_vm15 = vweird.f32 %v5724_v42  ;;  %vm8369_vm1 = vmor %vm2423_vm6, %vm2424_vm14 }
 0x347   : > { %v5730_v41 = vpop.eup %5729  ;;  %v2583_v25 = vmul.f32 %v5724_v42, %v2582_v56  ;;  %v2550_v47 = vsel %vm2549_vm3, %v5720_v48, %v2546_v51  ;;  %v2462_v6 = vadd.f32 %v2454_v46, %v10131_v11  ;;  %v2430_v17 = vor.u32 1.1754944e-38, %v2429_v43  ;;  %v2509_v48 = vpop.f32.mrf.mxu2 }
 0x348   : > { %v5732_v33 = vpop.eup %5731  ;;  %v2555_v58 = vsel %vm8350_vm11, %v2554_v52, %v2550_v47  ;;  %v8375_v55 = vadd.f32 1.0, %v5730_v41  ;;  %v5214_v57 = vmul.f32 -1.442695, %v2533_v21  ;;  %vm2693_vm0 = vcmp.eq.s32.totalorder %v8363_v8, 1 }
 0x349   : > { %v8377_v46 = vpop.eup %5733  ;;  %v2426_v53 = vsel %vm8369_vm1, %v8293_v22, %v2422_v59  ;;  %vm2585_vm10 = vweird.f32 %v8290_v26  ;;  %v2584_v1 = vadd.f32 %v5724_v42, %v2583_v25  ;;  %v2416_v43 = vsel %vm8325_vm13, %v8307_v38, %v2411_v2  ;;  %vm2704_vm13 = vmpackc.low %vm2676_vm2, %vm2676_vm2 }
 0x34a   : > { %v5736_v63 = vpop.eup %5735  ;;  %vm2587_vm4 = vmor %vm2585_vm10, %vm2586_vm15  ;;  %v2592_v56 = vor.u32 1.1754944e-38, %v2591_v7  ;;  %vm2590_vm5 = vcmp.eq.f32.partialorder %v2589_v20, 8.507059e+37  ;;  %5737 = vrcp.f32 %v8375_v55  ;;  %v2441_v51 = vmul.f32 %v5726_v40, %v2416_v43 }
 0x34b   : > { %v2588_v52 = vsel %vm2587_vm4, %v5724_v42, %v2584_v1  ;;  %v2652_v21 = vmul.f32 %v5728_v24, %v2555_v58  ;;  %v2558_v41 = vmul.f32 %v5736_v63, %v8335_v62  ;;  %v2532_v22 = vadd.f32 %v2509_v48, %v2462_v6 }
 0x34c   : > { %v2593_v59 = vsel %vm2590_vm5, %v2592_v56, %v2588_v52  ;;  %v2621_v26 = vmul.f32 %v8377_v46, %v8323_v54  ;;  %5739 = vpow2.f32 %v5214_v57  ;;  %v2431_v38 = vsel %vm8345_vm9, %v2430_v17, %v2426_v53 }
 0x34d   : > { %v2650_v2 = vmul.f32 %v2593_v59, %v8049_v37  ;;  %v2559_v29 = vsub.f32 1.0, %v2558_v41  ;;  %v2566_v7 = vand.u32 2147483647, %v8335_v62  ;;  %v2442_v20 = vmul.f32 %v5732_v33, %v2431_v38 }
 0x34e   : > { %vm2563_vm6 = vweird.f32 %v5736_v63  ;;  %v2702_v42 = vpack.c.bf16 %v2441_v51, %v2441_v51  ;;  %v8400_v40 = vsel %vm2676_vm2, %v8286_v27, %v8009_v12  ;;  %v8406_v15 = vsel %vm2677_vm12, %v8314_v4, %v8015_v16 }
 0x34f   : > { %v2654_v24 = vadd.f32 %v2652_v21, %v2650_v2  ;;  %v2560_v25 = vmul.f32 %v5736_v63, %v2559_v29  ;;  %v2678_v47 = vsel %vm2676_vm2, %v2441_v51, 0.0  ;;  %v2679_v6 = vsel %vm2677_vm12, %v2442_v20, 0.0 }
 0x350   : > { %v5738_v33 = vpop.eup %5737  ;;  %v2622_v12 = vsub.f32 1.0, %v2621_v26  ;;  %v2568_v27 = vand.u32 2147483648, %v8335_v62  ;;  %v5418_v13 = vpack.c.bf16 %v2679_v6, %v2678_v47  ;;  %v2703_v16 = vpack.c.bf16 %v2442_v20, %v2442_v20 }
 0x351   : > { %v2596_v4 = vmul.f32 %v5738_v33, %v8375_v55  ;;  %v2561_v17 = vadd.f32 %v5736_v63, %v2560_v25  ;;  %vm2562_vm9 = vweird.f32 %v8335_v62  ;;  %v8422_v58 = vsel %vm2704_vm13, %v2702_v42, %v8031_v32 }
 0x352   : > { %v5740_v39 = vpop.eup %5739  ;;  %vm8425_vm7 = vmor %vm2562_vm9, %vm2563_vm6  ;;  %vm8429_vm11 = vcmp.eq.f32.partialorder %v2566_v7, 8.507059e+37  ;;  %5741 = vtanh.f32 %v2532_v22  ;;  %5470 = vst [vmem:[%s6082_s15 + $0x18] sm:$0xff] %v5418_v13   ;;  %v8435_v61 = vsel %vm2705_vm8, %v2703_v16, %v8044_v0  ;;  %v8440_v32 = vsel %vm2693_vm0, %v2654_v24, %v8049_v37 }
 0x353   : > { %v2597_v62 = vsub.f32 1.0, %v2596_v4  ;;  %v2565_v53 = vsel %vm8425_vm7, %v5736_v63, %v2561_v17  ;;  %v8444_v1 = vadd.f32 1.0, %v5740_v39  ;;  %v2742_v43 = vunpack.c.l.b16 %v8435_v61  ;;  %vm2712_vm7 = vmpackc.low %vm2693_vm0, %vm2693_vm0 }
 0x354   : > { %v2623_v56 = vmul.f32 %v8377_v46, %v2622_v12  ;;  %v2606_v51 = vand.u32 2147483648, %v8375_v55  ;;  %v2569_v52 = vor.u32 1.1754944e-38, %v2568_v27  ;;  %v2741_v0 = vunpack.c.l.b16 %v8422_v58 }
 0x355   : > { %v2598_v21 = vmul.f32 %v5738_v33, %v2597_v62  ;;  %vm2601_vm2 = vweird.f32 %v5738_v33  ;;  %v2604_v37 = vand.u32 2147483647, %v8375_v55  ;;  %5743 = vrcp.f32 %v8444_v1 }
 0x356   : > { %v2570_v63 = vsel %vm8429_vm11, %v2569_v52, %v2565_v53  ;;  %v2743_v41 = vpack.c.b16 %v2742_v43, %v2741_v0  ;;  %5745 = vtanh.f32 %v2654_v24  ;;  %vm2600_vm12 = vweird.f32 %v8375_v55  ;;  %v10321_v24 = vld [vmem:[#allocation15_spill] sm:$0xff] }
 0x357   : > { %v2599_v22 = vadd.f32 %v5738_v33, %v2598_v21  ;;  %v2624_v26 = vadd.f32 %v8377_v46, %v2623_v56  ;;  %vm2626_vm14 = vweird.f32 %v8377_v46  ;;  %vm2602_vm3 = vmor %vm2600_vm12, %vm2601_vm2  ;;  %v2607_v38 = vor.u32 1.1754944e-38, %v2606_v51 }
 0x358   : > { %v5742_v59 = vpop.eup %5741  ;;  %2753 = vmatmul.bf16.vlgmr.msra.gmra.mxu0 %v2743_v41  ;;  %2767 = vmatmul.bf16.vlgmr.msra.gmra.mxu1 %v2743_v41  ;;  %v2631_v2 = vand.u32 2147483648, %v8323_v54  ;;  %vm2605_vm15 = vcmp.eq.f32.partialorder %v2604_v37, 8.507059e+37  ;;  %vm2625_vm1 = vweird.f32 %v8323_v54  ;;  %v2629_v55 = vand.u32 2147483647, %v8323_v54 }
 0x359   : > { %v2603_v29 = vsel %vm2602_vm3, %v5738_v33, %v2599_v22  ;;  %v2653_v7 = vmul.f32 %v5742_v59, %v2570_v63  ;;  %2781 = vmatmul.bf16.vlgmr.msra.gmra.mxu2 %v2743_v41  ;;  %2795 = vmatmul.bf16.vlgmr.msra.gmra.mxu3 %v2743_v41  ;;  %vm8464_vm10 = vmor %vm2625_vm1, %vm2626_vm14  ;;  %v2692_v33 = vpop.permute.xlu0 %2691  ;;  %v2646_v16 = vand.u32 2147483648, %v8444_v1  ;;  %v2644_v39 = vand.u32 2147483647, %v8444_v1  ;;  %v10310_v63 = vld [vmem:[#allocation47_spill] sm:$0xff]  ;;  %v10312_v22 = vld [vmem:[#allocation6_spill] sm:$0xff] }
 0x35a   : > { %v2608_v20 = vsel %vm2605_vm15, %v2607_v38, %v2603_v29  ;;  %3237 = vmatpush.bf16.msra.mxu0 %v6098_v5  ;;  %3251 = vmatpush.bf16.msra.mxu1 %v6109_v9  ;;  %v2628_v54 = vsel %vm8464_vm10, %v8377_v46, %v2624_v26  ;;  %v2632_v12 = vor.u32 1.1754944e-38, %v2631_v2  ;;  %vm2694_vm4 = vcmp.eq.s32.totalorder %v2692_v33, 1  ;;  %v10313_v59 = vld [vmem:[#allocation7_spill] sm:$0xff]  ;;  %v10314_v38 = vld [vmem:[#allocation10_spill] sm:$0xff]  ;;  %v10316_v29 = vld [vmem:[#allocation9_spill] sm:$0xff] }
 0x35b   : > { %v5744_v42 = vpop.eup %5743  ;;  %v2651_v25 = vmul.f32 %v2608_v20, %v8091_v31  ;;  %3265 = vmatpush.bf16.msra.mxu2 %v6149_v23  ;;  %3279 = vmatpush.bf16.msra.mxu3 %v6111_v10  ;;  %vm2630_vm5 = vcmp.eq.f32.partialorder %v2629_v55, 8.507059e+37  ;;  %vm2640_vm13 = vweird.f32 %v8444_v1  ;;  %v2647_v62 = vor.u32 1.1754944e-38, %v2646_v16  ;;  %vm2713_vm11 = vmpackc.low %vm2694_vm4, %vm2694_vm4  ;;  %v10318_v55 = vld [vmem:[#allocation14_spill] sm:$0xff]  ;;  %v10319_v20 = vld [vmem:[#allocation12_spill] sm:$0xff] }
 0x35c   : > { %v2636_v47 = vmul.f32 %v5744_v42, %v8444_v1  ;;  %v5746_v6 = vpop.eup %5745  ;;  %v2633_v4 = vsel %vm2630_vm5, %v2632_v12, %v2628_v54  ;;  %vm2641_vm6 = vweird.f32 %v5744_v42  ;;  %vm2645_vm9 = vcmp.eq.f32.partialorder %v2644_v39, 8.507059e+37  ;;  %v10323_v54 = vld [vmem:[#allocation16_spill] sm:$0xff]  ;;  %v10326_v33 = vld [vmem:[#allocation21_spill] sm:$0xff]  ;;  %v10327_v12 = vld [vmem:[#allocation22_spill] sm:$0xff] }
 0x35d   : > { %v2655_v27 = vadd.f32 %v2653_v7, %v2651_v25  ;;  %v2658_v48 = vmul.f32 %v5746_v6, %v2633_v4  ;;  %vm2642_vm8 = vmor %vm2640_vm13, %vm2641_vm6  ;;  %v10317_v7 = vld [vmem:[#allocation11_spill] sm:$0xff]  ;;  %v10322_v25 = vld [vmem:[#allocation18_spill] sm:$0xff] }
 0x35e   : > { %v2637_v13 = vsub.f32 1.0, %v2636_v47  ;;  %3238 = vmatpush.bf16.msra.mxu0 %v6123_v14  ;;  %3252 = vmatpush.bf16.msra.mxu1 %v6136_v18  ;;  %v10324_v47 = vld [vmem:[#allocation17_spill] sm:$0xff]  ;;  %v10325_v6 = vld [vmem:[#allocation19_spill] sm:$0xff]  ;;  %v10330_v16 = vld [vmem:[#allocation28_spill] sm:$0xff] }
 0x35f   : > { %5747 = vtanh.f32 %v2655_v27  ;;  %3266 = vmatpush.bf16.msra.mxu2 %v6188_v36  ;;  %3280 = vmatpush.bf16.msra.mxu3 %v6138_v19  ;;  %v8482_v46 = vsel %vm2694_vm4, %v2655_v27, %v8091_v31  ;;  %v2710_v53 = vpack.c.bf16 %v2658_v48, %v2658_v48  ;;  %v2695_v1 = vsel %vm2693_vm0, %v2658_v48, 0.0  ;;  %v10328_v27 = vld [vmem:[#allocation24_spill] sm:$0xff]  ;;  %v10331_v4 = vld [vmem:[#allocation23_spill] sm:$0xff]  ;;  %v10333_v39 = vld [vmem:[#allocation26_spill] sm:$0xff] }
 0x360   : > { %v2638_v17 = vmul.f32 %v5744_v42, %v2637_v13  ;;  %v10329_v13 = vld [vmem:[#allocation20_spill] sm:$0xff]  ;;  %v10334_v48 = vld [vmem:[#allocation33_spill] sm:$0xff] }
 0x361   : > { %v8501_v21 = vsel %vm2712_vm7, %v2710_v53, %v8110_v3  ;;  %v10315_v3 = vld [vmem:[#allocation8_spill] sm:$0xff]  ;;  %v10338_v53 = vld [vmem:[#allocation37_spill] sm:$0xff] }
 0x362   : > { %v2639_v57 = vadd.f32 %v5744_v42, %v2638_v17  ;;  %3239 = vmatpush.bf16.msra.mxu0 %v6171_v30  ;;  %3253 = vmatpush.bf16.msra.mxu1 %v6184_v34  ;;  %v2958_v8 = vunpack.c.l.b16 %v8501_v21  ;;  %v10332_v17 = vld [vmem:[#allocation25_spill] sm:$0xff] }
 0x363   : > { %3267 = vmatpush.bf16.msra.mxu2 %v6213_v45  ;;  %3281 = vmatpush.bf16.msra.mxu3 %v6186_v35 }
 0x364   : > { %v2643_v31 = vsel %vm2642_vm8, %v5744_v42, %v2639_v57  ;;  %v10320_v42 = vld [vmem:[#allocation13_spill] sm:$0xff]  ;;  %v10335_v57 = vld [vmem:[#allocation27_spill] sm:$0xff] }
 0x365   : > { %v5748_v43 = vpop.eup %5747  ;;  %v2648_v56 = vsel %vm2645_vm9, %v2647_v62, %v2643_v31  ;;  %v10336_v62 = vld [vmem:[#allocation30_spill] sm:$0xff]  ;;  %v10337_v31 = vld [vmem:[#allocation31_spill] sm:$0xff] }
 0x366   : > { %v2659_v51 = vmul.f32 %v5748_v43, %v2648_v56  ;;  %3240 = vmatpush.bf16.msra.mxu0 %v6211_v44  ;;  %3254 = vmatpush.bf16.msra.mxu1 %v6226_v49  ;;  %v10339_v43 = vld [vmem:[#allocation32_spill] sm:$0xff]  ;;  %v10340_v56 = vld [vmem:[#allocation34_spill] sm:$0xff] }
 0x367   : > { %3268 = vmatpush.bf16.msra.mxu2 %v6259_v60  ;;  %3282 = vmatpush.bf16.msra.mxu3 %v6228_v50 }
 0x368   : > { %v2696_v52 = vsel %vm2694_vm4, %v2659_v51, 0.0  ;;  %v2711_v0 = vpack.c.bf16 %v2659_v51, %v2659_v51  ;;  %v10341_v51 = vld [vmem:[#allocation35_spill] sm:$0xff] }
 0x369   : > { %v5423_v37 = vpack.c.bf16 %v2696_v52, %v2695_v1  ;;  %v10342_v1 = vld [vmem:[#allocation41_spill] sm:$0xff]  ;;  %v10343_v52 = vld [vmem:[#allocation36_spill] sm:$0xff] }
 0x36a   : > { %v8506_v41 = vsel %vm2713_vm11, %v2711_v0, %v10310_v63  ;;  %3241 = vmatpush.bf16.msra.mxu0 %v10312_v22  ;;  %3255 = vmatpush.bf16.msra.mxu1 %v10313_v59  ;;  %v10344_v0 = vld [vmem:[#allocation38_spill] sm:$0xff] }
 0x36b   : > { %10311 = vst [vmem:[#allocation57_spill] sm:$0xff] %v8506_v41  ;;  %v2959_v26 = vunpack.c.l.b16 %v8506_v41  ;;  %3269 = vmatpush.bf16.msra.mxu2 %v10314_v38  ;;  %3283 = vmatpush.bf16.msra.mxu3 %v10315_v3  ;;  %v10346_v63 = vld [vmem:[#allocation46_spill] sm:$0xff] }
 0x36c   : > { %5471 = vst [vmem:[%s6087_s19 + $0x20] sm:$0xff] %v5423_v37   ;;  %v10345_v37 = vld [vmem:[#allocation39_spill] sm:$0xff] }
 0x36d   : > { %v2960_v2 = vpack.c.b16 %v2959_v26, %v2958_v8  ;;  %v10347_v8 = vld [vmem:[#allocation40_spill] sm:$0xff]  ;;  %v10348_v26 = vld [vmem:[#allocation43_spill] sm:$0xff] }
 0x36e   : > { %3242 = vmatpush.bf16.msra.mxu0 %v10316_v29  ;;  %3256 = vmatpush.bf16.msra.mxu1 %v10317_v7 }
 0x36f   : > { %2970 = vmatmul.bf16.vlgmr.msrb.gmra.mxu0 %v2960_v2  ;;  %2984 = vmatmul.bf16.vlgmr.msrb.gmra.mxu1 %v2960_v2 }
 0x370   : > { %2998 = vmatmul.bf16.vlgmr.msrb.gmra.mxu2 %v2960_v2  ;;  %3012 = vmatmul.bf16.vlgmr.msrb.gmra.mxu3 %v2960_v2  ;;  %v10349_v2 = vld [vmem:[#allocation44_spill] sm:$0xff] }
 0x371   : > { %3270 = vmatpush.bf16.msra.mxu2 %v10318_v55  ;;  %3284 = vmatpush.bf16.msra.mxu3 %v10319_v20 }
 0x372   : > { %3243 = vmatpush.bf16.msra.mxu0 %v10320_v42  ;;  %3257 = vmatpush.bf16.msra.mxu1 %v10321_v24 }
 0x375   : > { %3271 = vmatpush.bf16.msra.mxu2 %v10322_v25  ;;  %3285 = vmatpush.bf16.msra.mxu3 %v10323_v54 }
 0x376   : > { %3244 = vmatpush.bf16.msra.mxu0 %v10324_v47  ;;  %3258 = vmatpush.bf16.msra.mxu1 %v10325_v6 }
 0x379   : > { %3272 = vmatpush.bf16.msra.mxu2 %v10328_v27  ;;  %3286 = vmatpush.bf16.msra.mxu3 %v10329_v13 }
 0x37a   : > { %3454 = vmatpush.bf16.msrb.mxu0 %v10326_v33  ;;  %3468 = vmatpush.bf16.msrb.mxu1 %v10327_v12 }
 0x37d   : > { %3482 = vmatpush.bf16.msrb.mxu2 %v10330_v16  ;;  %3496 = vmatpush.bf16.msrb.mxu3 %v10331_v4 }
 0x37e   : > { %3455 = vmatpush.bf16.msrb.mxu0 %v10332_v17  ;;  %3469 = vmatpush.bf16.msrb.mxu1 %v10333_v39 }
 0x381   : > { %3483 = vmatpush.bf16.msrb.mxu2 %v10334_v48  ;;  %3497 = vmatpush.bf16.msrb.mxu3 %v10335_v57  ;;  %v5221_v57 = vld [vmem:[%s6072_s8 + $0x90] sm:$0xff] }
 0x382   : > { %3456 = vmatpush.bf16.msrb.mxu0 %v10336_v62  ;;  %3470 = vmatpush.bf16.msrb.mxu1 %v10337_v31  ;;  %v2728_v17 = vunpack.c.h.bf16 %v5221_v57 }
 0x385   : > { %3484 = vmatpush.bf16.msrb.mxu2 %v10338_v53  ;;  %3498 = vmatpush.bf16.msrb.mxu3 %v10339_v43 }
 0x386   : > { %3457 = vmatpush.bf16.msrb.mxu0 %v10340_v56  ;;  %3471 = vmatpush.bf16.msrb.mxu1 %v10341_v51  ;;  %v10350_v56 = vld [vmem:[#allocation51_spill] sm:$0xff]  ;;  %v10351_v51 = vld [vmem:[#allocation45_spill] sm:$0xff] }
 0x389   : > { %3485 = vmatpush.bf16.msrb.mxu2 %v10342_v1  ;;  %3499 = vmatpush.bf16.msrb.mxu3 %v10343_v52  ;;  %v10352_v52 = vld [vmem:[#allocation48_spill] sm:$0xff]  ;;  %v10354_v1 = vld [vmem:[#allocation55_spill] sm:$0xff] }
 0x38a   : > { %3458 = vmatpush.bf16.msrb.mxu0 %v10344_v0  ;;  %3472 = vmatpush.bf16.msrb.mxu1 %v10345_v37  ;;  %v10353_v0 = vld [vmem:[#allocation49_spill] sm:$0xff]  ;;  %v10355_v37 = vld [vmem:[#allocation50_spill] sm:$0xff] }
 0x38d   : > { %3486 = vmatpush.bf16.msrb.mxu2 %v10346_v63  ;;  %3500 = vmatpush.bf16.msrb.mxu3 %v10347_v8  ;;  %v10356_v63 = vld [vmem:[#allocation52_spill] sm:$0xff]  ;;  %v10357_v8 = vld [vmem:[#allocation53_spill] sm:$0xff] }
 0x38e   : > { %3459 = vmatpush.bf16.msrb.mxu0 %v10348_v26  ;;  %3473 = vmatpush.bf16.msrb.mxu1 %v10349_v2  ;;  %v10358_v26 = vld [vmem:[#allocation56_spill] sm:$0xff]  ;;  %v10359_v2 = vld [vmem:[#allocation54_spill] sm:$0xff] }
 0x391   : > { %3487 = vmatpush.bf16.msrb.mxu2 %v10350_v56  ;;  %3501 = vmatpush.bf16.msrb.mxu3 %v10351_v51  ;;  %v5219_v56 = vld [vmem:[%s6072_s8 + $0x80] sm:$0xff]  ;;  %v10360_v51 = vld [vmem:[#allocation62_spill] sm:$0xff] }
 0x392   : > { %3460 = vmatpush.bf16.msrb.mxu0 %v10352_v52  ;;  %3474 = vmatpush.bf16.msrb.mxu1 %v10353_v0  ;;  %v2723_v43 = vunpack.c.l.bf16 %v5219_v56  ;;  %v2724_v53 = vunpack.c.h.bf16 %v5219_v56  ;;  %v10361_v52 = vld [vmem:[#allocation63_spill] sm:$0xff]  ;;  %v5220_v0 = vld [vmem:[%s6072_s8 + $0x88] sm:$0xff] }
 0x394   : > { %v2731_v31 = vadd.f32 %v2723_v43, %v10360_v51  ;;  %v2732_v62 = vadd.f32 %v2724_v53, %v10361_v52  ;;  %v2736_v43 = vadd.f32 %v2728_v17, %v10361_v52  ;;  %v2725_v53 = vunpack.c.l.bf16 %v5220_v0 }
 0x395   : > { %3488 = vmatpush.bf16.msrb.mxu2 %v10354_v1  ;;  %3502 = vmatpush.bf16.msrb.mxu3 %v10355_v37  ;;  %v2726_v37 = vunpack.c.h.bf16 %v5220_v0 }
 0x396   : > { %3461 = vmatpush.bf16.msrb.mxu0 %v10356_v63  ;;  %3475 = vmatpush.bf16.msrb.mxu1 %v10357_v8  ;;  %v2727_v8 = vunpack.c.l.bf16 %v5221_v57 }
 0x398   : > { %v2735_v56 = vadd.f32 %v2727_v8, %v10360_v51 }
 0x399   : > { %3489 = vmatpush.bf16.msrb.mxu2 %v10358_v26  ;;  %3503 = vmatpush.bf16.msrb.mxu3 %v10359_v2  ;;  %v10362_v2 = vld [vmem:[#allocation64_spill] sm:$0xff] }
 0x39a   : > { %v2734_v16 = vadd.f32 %v2726_v37, %v10362_v2 }
 0x3d5   : > { %v2754_v1 = vpop.f32.mrf.mxu0  ;;  %v2768_v48 = vpop.f32.mrf.mxu1 }
 0x3d6   : > { %v2801_v39 = vadd.f32 %v2754_v1, %v2731_v31  ;;  %v2802_v63 = vadd.f32 %v2768_v48, %v2732_v62  ;;  %v5222_v31 = vld [vmem:[%s6072_s8 + $0x98] sm:$0xff]  ;;  %v10363_v1 = vld [vmem:[#allocation65_spill] sm:$0xff] }
 0x3d7   : > { %v2730_v6 = vunpack.c.h.bf16 %v5222_v31 }
 0x3d8   : > { %v5223_v26 = vmul.f32 -1.442695, %v2801_v39  ;;  %v5225_v4 = vmul.f32 -1.442695, %v2802_v63  ;;  %v2733_v63 = vadd.f32 %v2725_v53, %v10363_v1 }
 0x3da   : > { %5749 = vpow2.f32 %v5223_v26 }
 0x3db   : > { %5751 = vpow2.f32 %v5225_v4 }
 0x3dc   : > { %v2796_v13 = vpop.f32.mrf.mxu3  ;;  %v2782_v37 = vpop.f32.mrf.mxu2 }
 0x3dd   : > { %v2804_v27 = vadd.f32 %v2796_v13, %v2734_v16  ;;  %v2756_v12 = vpop.f32.mrf.mxu0  ;;  %v2770_v33 = vpop.f32.mrf.mxu1  ;;  %v5229_v13 = vld [vmem:[%s6077_s12 + $0x260] sm:$0xff] }
 0x3de   : > { %v2805_v48 = vadd.f32 %v2756_v12, %v2735_v56  ;;  %v2806_v62 = vadd.f32 %v2770_v33, %v2736_v43  ;;  %v2803_v33 = vadd.f32 %v2782_v37, %v2733_v63  ;;  %v2729_v12 = vunpack.c.l.bf16 %v5222_v31  ;;  %v10364_v37 = vld [vmem:[#allocation66_spill] sm:$0xff] }
 0x3df   : > { %v5227_v57 = vmul.f32 -1.442695, %v2804_v27  ;;  %v2738_v27 = vadd.f32 %v2730_v6, %v10362_v2  ;;  %v2940_v0 = vunpack.c.l.bf16 %v5229_v13  ;;  %v2941_v56 = vunpack.c.h.bf16 %v5229_v13 }
 0x3e0   : > { %v5750_v39 = vpop.eup %5749  ;;  %v5224_v26 = vmul.f32 -1.442695, %v2805_v48  ;;  %v5226_v4 = vmul.f32 -1.442695, %v2806_v62  ;;  %v2737_v62 = vadd.f32 %v2729_v12, %v10363_v1  ;;  %v5231_v1 = vld [vmem:[%s6077_s12 + $0x270] sm:$0xff] }
 0x3e1   : > { %v5752_v8 = vpop.eup %5751  ;;  %v8569_v51 = vadd.f32 1.0, %v5750_v39  ;;  %5753 = vpow2.f32 %v5227_v57  ;;  %v2945_v29 = vunpack.c.h.bf16 %v5231_v1 }
 0x3e2   : > { %v8571_v17 = vadd.f32 1.0, %v5752_v8  ;;  %5755 = vpow2.f32 %v5224_v26  ;;  %v2948_v26 = vadd.f32 %v2940_v0, %v10364_v37 }
 0x3e3   : > { %5757 = vrcp.f32 %v8569_v51  ;;  %v2826_v63 = vand.u32 2147483647, %v8569_v51  ;;  %v2828_v6 = vand.u32 2147483648, %v8569_v51  ;;  %vm2822_vm2 = vweird.f32 %v8569_v51 }
 0x3e4   : > { %5759 = vrcp.f32 %v8571_v17  ;;  %v2798_v16 = vpop.f32.mrf.mxu3  ;;  %vm2860_vm0 = vweird.f32 %v8571_v17  ;;  %v2784_v13 = vpop.f32.mrf.mxu2  ;;  %v2866_v0 = vand.u32 2147483648, %v8571_v17 }
 0x3e5   : > { %5761 = vpow2.f32 %v5226_v4  ;;  %v2808_v57 = vadd.f32 %v2798_v16, %v2738_v27  ;;  %v8595_v27 = vld [vmem:[%s6077_s12 + $0x268] sm:$0xff]  ;;  %vm8606_vm12 = vcmp.eq.f32.partialorder %v2826_v63, 8.507059e+37  ;;  %v2829_v25 = vor.u32 1.1754944e-38, %v2828_v6 }
 0x3e6   : > { %5763 = vtanh.f32 %v2803_v33  ;;  %v10365_v33 = vld [vmem:[#allocation67_spill] sm:$0xff]  ;;  %v2807_v24 = vadd.f32 %v2784_v13, %v2737_v62  ;;  %v2943_v20 = vunpack.c.h.bf16 %v8595_v27 }
 0x3e7   : > { %v5754_v43 = vpop.eup %5753  ;;  %v2949_v12 = vadd.f32 %v2941_v56, %v10365_v33  ;;  %v5228_v47 = vmul.f32 -1.442695, %v2808_v57  ;;  %v2867_v57 = vor.u32 1.1754944e-38, %v2866_v0 }
 0x3e8   : > { %v5756_v53 = vpop.eup %5755  ;;  %v8577_v48 = vadd.f32 1.0, %v5754_v43  ;;  %v2951_v0 = vadd.f32 %v2943_v20, %v10209_v28 }
 0x3e9   : > { %v8580_v39 = vpop.eup %5757  ;;  %v8584_v31 = vadd.f32 1.0, %v5756_v53  ;;  %v2864_v53 = vand.u32 2147483647, %v8571_v17 }
 0x3ea   : > { %v8587_v8 = vpop.eup %5759  ;;  %v2818_v4 = vmul.f32 %v8580_v39, %v8569_v51  ;;  %5765 = vrcp.f32 %v8577_v48  ;;  %vm2823_vm14 = vweird.f32 %v8580_v39 }
 0x3eb   : > { %v5762_v16 = vpop.eup %5761  ;;  %v2856_v43 = vmul.f32 %v8587_v8, %v8571_v17  ;;  %5767 = vrcp.f32 %v8584_v31  ;;  %vm8615_vm3 = vcmp.eq.f32.partialorder %v2864_v53, 8.507059e+37  ;;  %vm2861_vm15 = vweird.f32 %v8587_v8  ;;  %vm8628_vm1 = vmor %vm2822_vm2, %vm2823_vm14 }
 0x3ec   : > { %v2819_v2 = vsub.f32 1.0, %v2818_v4  ;;  %v8604_v52 = vadd.f32 1.0, %v5762_v16  ;;  %v2971_v42 = vpop.f32.mrf.mxu0  ;;  %v5764_v55 = vpop.eup %5763  ;;  %v2944_v4 = vunpack.c.l.bf16 %v5231_v1  ;;  %vm8640_vm10 = vmor %vm2860_vm0, %vm2861_vm15  ;;  %vm2837_vm4 = vweird.f32 %v8584_v31 }
 0x3ed   : > { %v2857_v56 = vsub.f32 1.0, %v2856_v43  ;;  %v2985_v62 = vpop.f32.mrf.mxu1  ;;  %v2942_v43 = vunpack.c.l.bf16 %v8595_v27  ;;  %vm2900_vm2 = vweird.f32 %v8577_v48 }
 0x3ee   : > { %v2820_v7 = vmul.f32 %v8580_v39, %v2819_v2  ;;  %5769 = vrcp.f32 %v8604_v52  ;;  %v3018_v2 = vadd.f32 %v2971_v42, %v2948_v26  ;;  %v2952_v42 = vadd.f32 %v2944_v4, %v10364_v37 }
 0x3ef   : > { %v2858_v16 = vmul.f32 %v8587_v8, %v2857_v56  ;;  %5771 = vpow2.f32 %v5228_v47  ;;  %v8634_v47 = vadd.f32 %v2945_v29, %v10365_v33  ;;  %v2841_v26 = vand.u32 2147483647, %v8584_v31 }
 0x3f0   : > { %v2821_v6 = vadd.f32 %v8580_v39, %v2820_v7  ;;  %v8621_v13 = vpop.eup %5765  ;;  %5773 = vtanh.f32 %v2807_v24  ;;  %v5233_v3 = vmul.f32 -1.442695, %v3018_v2  ;;  %v3019_v7 = vadd.f32 %v2985_v62, %v2949_v12 }
 0x3f1   : > { %v2859_v1 = vadd.f32 %v8587_v8, %v2858_v16  ;;  %v5768_v53 = vpop.eup %5767  ;;  %v2896_v27 = vmul.f32 %v8621_v13, %v8577_v48  ;;  %vm2875_vm5 = vweird.f32 %v8604_v52  ;;  %v2881_v16 = vand.u32 2147483648, %v8604_v52 }
 0x3f2   : > { %v2825_v24 = vsel %vm8628_vm1, %v8580_v39, %v2821_v6  ;;  %v2833_v51 = vmul.f32 %v5768_v53, %v8584_v31  ;;  %5775 = vpow2.f32 %v5233_v3  ;;  %v2843_v62 = vand.u32 2147483648, %v8584_v31 }
 0x3f3   : > { %v3013_v29 = vpop.f32.mrf.mxu3  ;;  %v2863_v17 = vsel %vm8640_vm10, %v8587_v8, %v2859_v1  ;;  %v2830_v2 = vsel %vm8606_vm12, %v2829_v25, %v2825_v24  ;;  %v2879_v56 = vand.u32 2147483647, %v8604_v52  ;;  %v5235_v8 = vmul.f32 -1.442695, %v3019_v7 }
 0x3f4   : > { %v5770_v12 = vpop.eup %5769  ;;  %v2834_v4 = vsub.f32 1.0, %v2833_v51  ;;  %v3021_v1 = vadd.f32 %v3013_v29, %v2951_v0  ;;  %v2868_v33 = vsel %vm8615_vm3, %v2867_v57, %v2863_v17  ;;  %vm2838_vm6 = vweird.f32 %v5768_v53  ;;  %v2973_v37 = vpop.f32.mrf.mxu0 }
 0x3f5   : > { %v2871_v39 = vmul.f32 %v5770_v12, %v8604_v52  ;;  %v5772_v6 = vpop.eup %5771  ;;  %v2897_v38 = vsub.f32 1.0, %v2896_v27  ;;  %5777 = vpow2.f32 %v5235_v8  ;;  %vm2876_vm13 = vweird.f32 %v5770_v12  ;;  %vm2839_vm8 = vmor %vm2837_vm4, %vm2838_vm6 }
 0x3f6   : > { %v5774_v20 = vpop.eup %5773  ;;  %v2835_v51 = vmul.f32 %v5768_v53, %v2834_v4  ;;  %v8664_v59 = vadd.f32 1.0, %v5772_v6  ;;  %v5237_v22 = vmul.f32 -1.442695, %v3021_v1  ;;  %v2844_v54 = vor.u32 1.1754944e-38, %v2843_v62  ;;  %vm2877_vm7 = vmor %vm2875_vm5, %vm2876_vm13 }
 0x3f7   : > { %v2872_v3 = vsub.f32 1.0, %v2871_v39  ;;  %v2925_v0 = vmul.f32 %v2868_v33, %v8400_v40  ;;  %v2927_v7 = vmul.f32 %v5764_v55, %v2830_v2  ;;  %v3022_v57 = vadd.f32 %v2973_v37, %v2952_v42  ;;  %v2987_v55 = vpop.f32.mrf.mxu1  ;;  %v2999_v42 = vpop.f32.mrf.mxu2 }
 0x3f8   : > { %v2836_v25 = vadd.f32 %v5768_v53, %v2835_v51  ;;  %v5776_v24 = vpop.eup %5775  ;;  %5779 = vrcp.f32 %v8664_v59  ;;  %vm2842_vm9 = vcmp.eq.f32.partialorder %v2841_v26, 8.507059e+37  ;;  %v2898_v27 = vmul.f32 %v8621_v13, %v2897_v38 }
 0x3f9   : > { %v2873_v41 = vmul.f32 %v5770_v12, %v2872_v3  ;;  %v8670_v17 = vadd.f32 1.0, %v5776_v24  ;;  %v2882_v4 = vor.u32 1.1754944e-38, %v2881_v16  ;;  %5781 = vpow2.f32 %v5237_v22 }
 0x3fa   : > { %v2840_v63 = vsel %vm2839_vm8, %v5768_v53, %v2836_v25  ;;  %vm2880_vm11 = vcmp.eq.f32.partialorder %v2879_v56, 8.507059e+37  ;;  %v2950_v31 = vadd.f32 %v2942_v43, %v10131_v11  ;;  %v2906_v53 = vand.u32 2147483648, %v8577_v48  ;;  %v8691_v43 = vld [vmem:[%s6077_s12 + $0x278] sm:$0xff] }
 0x3fb   : > { %v2874_v29 = vadd.f32 %v5770_v12, %v2873_v41  ;;  %v2845_v39 = vsel %vm2842_vm9, %v2844_v54, %v2840_v63  ;;  %5783 = vrcp.f32 %v8670_v17  ;;  %v5778_v37 = vpop.eup %5777  ;;  %v8677_v41 = vadd.f32 %v2927_v7, %v2925_v0 }
 0x3fc   : > { %v5234_v52 = vmul.f32 -1.442695, %v3022_v57  ;;  %v2928_v16 = vmul.f32 %v5774_v20, %v2845_v39  ;;  %v8681_v22 = vadd.f32 1.0, %v5778_v37  ;;  %v8687_v6 = vadd.f32 %v8621_v13, %v2898_v27 }
 0x3fd   : > { %v2878_v33 = vsel %vm2877_vm7, %v5770_v12, %v2874_v29  ;;  %v3023_v12 = vadd.f32 %v2987_v55, %v8634_v47  ;;  %vm2901_vm0 = vweird.f32 %v8621_v13  ;;  %v2904_v2 = vand.u32 2147483647, %v8577_v48 }
 0x3fe   : > { %v2883_v38 = vsel %vm2880_vm11, %v2882_v4, %v2878_v33  ;;  %v8684_v62 = vpop.eup %5779  ;;  %5785 = vpow2.f32 %v5234_v52  ;;  %v3020_v8 = vadd.f32 %v2999_v42, %v2950_v31  ;;  %v8698_v47 = vor.u32 1.1754944e-38, %v2906_v53  ;;  %vm8701_vm12 = vmor %vm2900_vm2, %vm2901_vm0  ;;  %v3015_v52 = vpop.f32.mrf.mxu3 }
 0x3ff   : > { %v2926_v26 = vmul.f32 %v2883_v38, %v8406_v15  ;;  %v2911_v56 = vmul.f32 %v8684_v62, %v8664_v59  ;;  %5787 = vrcp.f32 %v8681_v22  ;;  %v5782_v1 = vpop.eup %5781  ;;  %v5236_v20 = vmul.f32 -1.442695, %v3023_v12  ;;  %v8734_v12 = vpop.permute.xlu2 %3166 }
 0x400   : > { %5789 = vtanh.f32 %v8677_v41  ;;  %v2947_v24 = vunpack.c.h.bf16 %v8691_v43  ;;  %v2903_v48 = vsel %vm8701_vm12, %v8621_v13, %v8687_v6  ;;  %vm2915_vm14 = vweird.f32 %v8664_v59 }
 0x401   : > { %v5784_v3 = vpop.eup %5783  ;;  %v8705_v25 = vadd.f32 %v2928_v16, %v2926_v26  ;;  %v2912_v54 = vsub.f32 1.0, %v2911_v56  ;;  %v8714_v7 = vadd.f32 1.0, %v5782_v1  ;;  %vm8716_vm3 = vcmp.eq.f32.partialorder %v2904_v2, 8.507059e+37  ;;  %v8732_v16 = vpop.permute.xlu1 %3163 }
 0x402   : > { %v3035_v0 = vmul.f32 %v5784_v3, %v8670_v17  ;;  %v2919_v63 = vand.u32 2147483647, %v8664_v59  ;;  %v2921_v29 = vand.u32 2147483648, %v8664_v59  ;;  %v3043_v27 = vand.u32 2147483647, %v8670_v17 }
 0x403   : > { %5791 = vtanh.f32 %v3020_v8  ;;  %v2913_v13 = vmul.f32 %v8684_v62, %v2912_v54  ;;  %v3045_v55 = vand.u32 2147483648, %v8670_v17  ;;  %v2946_v37 = vunpack.c.l.bf16 %v8691_v43 }
 0x404   : > { %v5786_v4 = vpop.eup %5785  ;;  %v3036_v39 = vsub.f32 1.0, %v3035_v0  ;;  %5793 = vpow2.f32 %v5236_v20  ;;  %v2955_v53 = vadd.f32 %v2947_v24, %v10209_v28  ;;  %vm3040_vm15 = vweird.f32 %v5784_v3 }
 0x405   : > { %v5788_v33 = vpop.eup %5787  ;;  %5795 = vtanh.f32 %v8705_v25  ;;  %v8726_v31 = vadd.f32 1.0, %v5786_v4  ;;  %vm8736_vm1 = vcmp.eq.f32.partialorder %v2919_v63, 8.507059e+37  ;;  %vm3039_vm10 = vweird.f32 %v8670_v17 }
 0x406   : > { %v3073_v38 = vmul.f32 %v5788_v33, %v8681_v22  ;;  %v3037_v42 = vmul.f32 %v5784_v3, %v3036_v39  ;;  %5797 = vrcp.f32 %v8714_v7  ;;  %v5790_v26 = vpop.eup %5789  ;;  %vm8741_vm4 = vcmp.eq.f32.partialorder %v3043_v27, 8.507059e+37  ;;  %vm3041_vm8 = vmor %vm3039_vm10, %vm3040_vm15 }
 0x407   : > { %5799 = vrcp.f32 %v8726_v31  ;;  %vm3168_vm5 = vcmp.eq.s32.totalorder %v8732_v16, 1  ;;  %vm3169_vm6 = vcmp.eq.s32.totalorder %v8734_v12, 1  ;;  %v2914_v2 = vadd.f32 %v8684_v62, %v2913_v13  ;;  %v8754_v13 = vpop.permute.xlu0 %3180 }
 0x408   : > { %vm2916_vm13 = vweird.f32 %v8684_v62  ;;  %v3074_v56 = vsub.f32 1.0, %v3073_v38  ;;  %v3038_v8 = vadd.f32 %v5784_v3, %v3037_v42  ;;  %v3083_v20 = vand.u32 2147483648, %v8681_v22  ;;  %vm3197_vm15 = vmpackc.low %vm3169_vm6, %vm3169_vm6 }
 0x409   : > { %v5792_v1 = vpop.eup %5791  ;;  %v3046_v17 = vor.u32 1.1754944e-38, %v3045_v55  ;;  %v3081_v51 = vand.u32 2147483647, %v8681_v22  ;;  %v3025_v54 = vadd.f32 %v3015_v52, %v2955_v53  ;;  %vm3078_vm9 = vweird.f32 %v5788_v33  ;;  %vm8760_vm7 = vmor %vm2915_vm14, %vm2916_vm13 }
 0x40a   : > { %v5794_v24 = vpop.eup %5793  ;;  %v3075_v0 = vmul.f32 %v5788_v33, %v3074_v56  ;;  %v3042_v63 = vsel %vm3041_vm8, %v5784_v3, %v3038_v8  ;;  %v2954_v27 = vadd.f32 %v2946_v37, %v10131_v11  ;;  %v2922_v55 = vor.u32 1.1754944e-38, %v2921_v29  ;;  %v3001_v3 = vpop.f32.mrf.mxu2 }
 0x40b   : > { %v5796_v4 = vpop.eup %5795  ;;  %v3047_v53 = vsel %vm8741_vm4, %v3046_v17, %v3042_v63  ;;  %v8766_v38 = vadd.f32 1.0, %v5794_v24  ;;  %v5238_v42 = vmul.f32 -1.442695, %v3025_v54  ;;  %vm3185_vm11 = vcmp.eq.s32.totalorder %v8754_v13, 1 }
 0x40c   : > { %v8768_v37 = vpop.eup %5797  ;;  %v2918_v59 = vsel %vm8760_vm7, %v8684_v62, %v2914_v2  ;;  %vm3077_vm0 = vweird.f32 %v8681_v22  ;;  %v3076_v52 = vadd.f32 %v5788_v33, %v3075_v0  ;;  %v2908_v29 = vsel %vm8716_vm3, %v8698_v47, %v2903_v48  ;;  %vm3196_vm3 = vmpackc.low %vm3168_vm5, %vm3168_vm5 }
 0x40d   : > { %v5800_v43 = vpop.eup %5799  ;;  %vm3079_vm2 = vmor %vm3077_vm0, %vm3078_vm9  ;;  %v3084_v56 = vor.u32 1.1754944e-38, %v3083_v20  ;;  %vm3082_vm12 = vcmp.eq.f32.partialorder %v3081_v51, 8.507059e+37  ;;  %5801 = vrcp.f32 %v8766_v38  ;;  %v2933_v8 = vmul.f32 %v5790_v26, %v2908_v29 }
 0x40e   : > { %v3080_v17 = vsel %vm3079_vm2, %v5788_v33, %v3076_v52  ;;  %v3144_v54 = vmul.f32 %v5792_v1, %v3047_v53  ;;  %v3050_v24 = vmul.f32 %v5800_v43, %v8726_v31  ;;  %v3024_v62 = vadd.f32 %v3001_v3, %v2954_v27 }
 0x40f   : > { %v3085_v2 = vsel %vm3082_vm12, %v3084_v56, %v3080_v17  ;;  %v3113_v22 = vmul.f32 %v8768_v37, %v8714_v7  ;;  %5803 = vpow2.f32 %v5238_v42  ;;  %v2923_v47 = vsel %vm8736_vm1, %v2922_v55, %v2918_v59 }
 0x410   : > { %v3142_v48 = vmul.f32 %v3085_v2, %v8440_v32  ;;  %v3051_v57 = vsub.f32 1.0, %v3050_v24  ;;  %v3058_v20 = vand.u32 2147483647, %v8726_v31  ;;  %v2934_v51 = vmul.f32 %v5796_v4, %v2923_v47 }
 0x411   : > { %vm3055_vm14 = vweird.f32 %v5800_v43  ;;  %v3194_v33 = vpack.c.bf16 %v2933_v8, %v2933_v8  ;;  %v8791_v26 = vsel %vm3168_vm5, %v8677_v41, %v8400_v40  ;;  %v8797_v6 = vsel %vm3169_vm6, %v8705_v25, %v8406_v15 }
 0x412   : > { %v3146_v1 = vadd.f32 %v3144_v54, %v3142_v48  ;;  %v3052_v0 = vmul.f32 %v5800_v43, %v3051_v57  ;;  %v3170_v63 = vsel %vm3168_vm5, %v2933_v8, 0.0  ;;  %v3171_v27 = vsel %vm3169_vm6, %v2934_v51, 0.0 }
 0x413   : > { %v5802_v4 = vpop.eup %5801  ;;  %v3114_v40 = vsub.f32 1.0, %v3113_v22  ;;  %v3060_v41 = vand.u32 2147483648, %v8726_v31  ;;  %v5428_v39 = vpack.c.bf16 %v3171_v27, %v3170_v63  ;;  %v3195_v15 = vpack.c.bf16 %v2934_v51, %v2934_v51 }
 0x414   : > { %v3088_v25 = vmul.f32 %v5802_v4, %v8766_v38  ;;  %v3053_v55 = vadd.f32 %v5800_v43, %v3052_v0  ;;  %vm3054_vm1 = vweird.f32 %v8726_v31  ;;  %v8813_v53 = vsel %vm3196_vm3, %v3194_v33, %v8422_v58 }
 0x415   : > { %v5804_v16 = vpop.eup %5803  ;;  %vm8816_vm10 = vmor %vm3054_vm1, %vm3055_vm14  ;;  %vm8820_vm4 = vcmp.eq.f32.partialorder %v3058_v20, 8.507059e+37  ;;  %5805 = vtanh.f32 %v3024_v62  ;;  %5472 = vst [vmem:[%s6082_s15 + $0x20] sm:$0xff] %v5428_v39   ;;  %v8826_v12 = vsel %vm3197_vm15, %v3195_v15, %v8435_v61  ;;  %v8831_v58 = vsel %vm3185_vm11, %v3146_v1, %v8440_v32 }
 0x416   : > { %v3089_v31 = vsub.f32 1.0, %v3088_v25  ;;  %v3057_v59 = vsel %vm8816_vm10, %v5800_v43, %v3053_v55  ;;  %v8835_v52 = vadd.f32 1.0, %v5804_v16  ;;  %v3234_v29 = vunpack.c.l.b16 %v8826_v12  ;;  %vm3204_vm10 = vmpackc.low %vm3185_vm11, %vm3185_vm11 }
 0x417   : > { %v3115_v56 = vmul.f32 %v8768_v37, %v3114_v40  ;;  %v3098_v8 = vand.u32 2147483648, %v8766_v38  ;;  %v3061_v17 = vor.u32 1.1754944e-38, %v3060_v41  ;;  %v3233_v61 = vunpack.c.l.b16 %v8813_v53 }
 0x418   : > { %v3090_v54 = vmul.f32 %v5802_v4, %v3089_v31  ;;  %vm3093_vm5 = vweird.f32 %v5802_v4  ;;  %v3096_v32 = vand.u32 2147483647, %v8766_v38  ;;  %5807 = vrcp.f32 %v8835_v52 }
 0x419   : > { %v3062_v43 = vsel %vm8820_vm4, %v3061_v17, %v3057_v59  ;;  %v3235_v24 = vpack.c.b16 %v3234_v29, %v3233_v61  ;;  %5809 = vtanh.f32 %v3146_v1  ;;  %vm3092_vm6 = vweird.f32 %v8766_v38  ;;  %v10402_v1 = vld [vmem:[#allocation15_spill] sm:$0xff] }
 0x41a   : > { %v3091_v62 = vadd.f32 %v5802_v4, %v3090_v54  ;;  %v3116_v22 = vadd.f32 %v8768_v37, %v3115_v56  ;;  %vm3118_vm13 = vweird.f32 %v8768_v37  ;;  %vm3094_vm8 = vmor %vm3092_vm6, %vm3093_vm5  ;;  %v3099_v47 = vor.u32 1.1754944e-38, %v3098_v8 }
 0x41b   : > { %v5806_v2 = vpop.eup %5805  ;;  %3245 = vmatmul.bf16.vlgmr.msra.gmra.mxu0 %v3235_v24  ;;  %3259 = vmatmul.bf16.vlgmr.msra.gmra.mxu1 %v3235_v24  ;;  %v3123_v48 = vand.u32 2147483648, %v8714_v7  ;;  %vm3097_vm9 = vcmp.eq.f32.partialorder %v3096_v32, 8.507059e+37  ;;  %vm3117_vm7 = vweird.f32 %v8714_v7  ;;  %v3121_v38 = vand.u32 2147483647, %v8714_v7 }
 0x41c   : > { %v3095_v57 = vsel %vm3094_vm8, %v5802_v4, %v3091_v62  ;;  %v3145_v20 = vmul.f32 %v5806_v2, %v3062_v43  ;;  %3273 = vmatmul.bf16.vlgmr.msra.gmra.mxu2 %v3235_v24  ;;  %3287 = vmatmul.bf16.vlgmr.msra.gmra.mxu3 %v3235_v24  ;;  %vm8855_vm0 = vmor %vm3117_vm7, %vm3118_vm13  ;;  %v3184_v4 = vpop.permute.xlu1 %3183  ;;  %v3138_v15 = vand.u32 2147483648, %v8835_v52  ;;  %v3136_v16 = vand.u32 2147483647, %v8835_v52  ;;  %v10391_v43 = vld [vmem:[#allocation57_spill] sm:$0xff]  ;;  %v10393_v62 = vld [vmem:[#allocation6_spill] sm:$0xff] }
 0x41d   : > { %v3100_v51 = vsel %vm3097_vm9, %v3099_v47, %v3095_v57  ;;  %3729 = vmatpush.bf16.msra.mxu0 %v6098_v5  ;;  %3743 = vmatpush.bf16.msra.mxu1 %v6109_v9  ;;  %v3120_v7 = vsel %vm8855_vm0, %v8768_v37, %v3116_v22  ;;  %v3124_v40 = vor.u32 1.1754944e-38, %v3123_v48  ;;  %vm3186_vm2 = vcmp.eq.s32.totalorder %v3184_v4, 1  ;;  %v10394_v2 = vld [vmem:[#allocation7_spill] sm:$0xff]  ;;  %v10395_v47 = vld [vmem:[#allocation10_spill] sm:$0xff]  ;;  %v10397_v57 = vld [vmem:[#allocation9_spill] sm:$0xff] }
 0x41e   : > { %v5808_v33 = vpop.eup %5807  ;;  %v3143_v0 = vmul.f32 %v3100_v51, %v8482_v46  ;;  %3757 = vmatpush.bf16.msra.mxu2 %v6149_v23  ;;  %3771 = vmatpush.bf16.msra.mxu3 %v6111_v10  ;;  %vm3122_vm12 = vcmp.eq.f32.partialorder %v3121_v38, 8.507059e+37  ;;  %vm3132_vm3 = vweird.f32 %v8835_v52  ;;  %v3139_v31 = vor.u32 1.1754944e-38, %v3138_v15  ;;  %vm3205_vm4 = vmpackc.low %vm3186_vm2, %vm3186_vm2  ;;  %v10399_v38 = vld [vmem:[#allocation14_spill] sm:$0xff]  ;;  %v10400_v51 = vld [vmem:[#allocation12_spill] sm:$0xff] }
 0x41f   : > { %v3128_v63 = vmul.f32 %v5808_v33, %v8835_v52  ;;  %v5810_v27 = vpop.eup %5809  ;;  %v3125_v25 = vsel %vm3122_vm12, %v3124_v40, %v3120_v7  ;;  %vm3133_vm14 = vweird.f32 %v5808_v33  ;;  %vm3137_vm1 = vcmp.eq.f32.partialorder %v3136_v16, 8.507059e+37  ;;  %v10404_v7 = vld [vmem:[#allocation16_spill] sm:$0xff]  ;;  %v10407_v4 = vld [vmem:[#allocation21_spill] sm:$0xff]  ;;  %v10408_v40 = vld [vmem:[#allocation22_spill] sm:$0xff] }
 0x420   : > { %v3147_v41 = vadd.f32 %v3145_v20, %v3143_v0  ;;  %v3150_v3 = vmul.f32 %v5810_v27, %v3125_v25  ;;  %vm3134_vm15 = vmor %vm3132_vm3, %vm3133_vm14  ;;  %v10398_v20 = vld [vmem:[#allocation11_spill] sm:$0xff]  ;;  %v10403_v0 = vld [vmem:[#allocation18_spill] sm:$0xff] }
 0x421   : > { %v3129_v39 = vsub.f32 1.0, %v3128_v63  ;;  %3730 = vmatpush.bf16.msra.mxu0 %v6123_v14  ;;  %3744 = vmatpush.bf16.msra.mxu1 %v6136_v18  ;;  %v10405_v63 = vld [vmem:[#allocation17_spill] sm:$0xff]  ;;  %v10406_v27 = vld [vmem:[#allocation19_spill] sm:$0xff]  ;;  %v10411_v15 = vld [vmem:[#allocation28_spill] sm:$0xff] }
 0x422   : > { %5811 = vtanh.f32 %v3147_v41  ;;  %3758 = vmatpush.bf16.msra.mxu2 %v6188_v36  ;;  %3772 = vmatpush.bf16.msra.mxu3 %v6138_v19  ;;  %v8873_v37 = vsel %vm3186_vm2, %v3147_v41, %v8482_v46  ;;  %v3202_v59 = vpack.c.bf16 %v3150_v3, %v3150_v3  ;;  %v3187_v52 = vsel %vm3185_vm11, %v3150_v3, 0.0  ;;  %v10409_v41 = vld [vmem:[#allocation24_spill] sm:$0xff]  ;;  %v10412_v25 = vld [vmem:[#allocation23_spill] sm:$0xff]  ;;  %v10414_v16 = vld [vmem:[#allocation26_spill] sm:$0xff] }
 0x423   : > { %v3130_v55 = vmul.f32 %v5808_v33, %v3129_v39  ;;  %v10410_v39 = vld [vmem:[#allocation20_spill] sm:$0xff]  ;;  %v10415_v3 = vld [vmem:[#allocation33_spill] sm:$0xff] }
 0x424   : > { %v8892_v54 = vsel %vm3204_vm10, %v3202_v59, %v8501_v21  ;;  %v10396_v21 = vld [vmem:[#allocation8_spill] sm:$0xff]  ;;  %v10419_v59 = vld [vmem:[#allocation37_spill] sm:$0xff] }
 0x425   : > { %v3131_v42 = vadd.f32 %v5808_v33, %v3130_v55  ;;  %3731 = vmatpush.bf16.msra.mxu0 %v6171_v30  ;;  %3745 = vmatpush.bf16.msra.mxu1 %v6184_v34  ;;  %10390 = vst [vmem:[#allocation58_spill] sm:$0xff] %v8892_v54  ;;  %v3450_v13 = vunpack.c.l.b16 %v8892_v54  ;;  %v10413_v55 = vld [vmem:[#allocation25_spill] sm:$0xff] }
 0x426   : > { %3759 = vmatpush.bf16.msra.mxu2 %v6213_v45  ;;  %3773 = vmatpush.bf16.msra.mxu3 %v6186_v35 }
 0x427   : > { %v3135_v46 = vsel %vm3134_vm15, %v5808_v33, %v3131_v42  ;;  %v10401_v33 = vld [vmem:[#allocation13_spill] sm:$0xff]  ;;  %v10416_v42 = vld [vmem:[#allocation27_spill] sm:$0xff] }
 0x428   : > { %v5812_v29 = vpop.eup %5811  ;;  %v3140_v56 = vsel %vm3137_vm1, %v3139_v31, %v3135_v46  ;;  %v10417_v31 = vld [vmem:[#allocation30_spill] sm:$0xff]  ;;  %v10418_v46 = vld [vmem:[#allocation31_spill] sm:$0xff] }
 0x429   : > { %v3151_v8 = vmul.f32 %v5812_v29, %v3140_v56  ;;  %3732 = vmatpush.bf16.msra.mxu0 %v6211_v44  ;;  %3746 = vmatpush.bf16.msra.mxu1 %v6226_v49  ;;  %v10420_v29 = vld [vmem:[#allocation32_spill] sm:$0xff]  ;;  %v10421_v56 = vld [vmem:[#allocation34_spill] sm:$0xff] }
 0x42a   : > { %3760 = vmatpush.bf16.msra.mxu2 %v6259_v60  ;;  %3774 = vmatpush.bf16.msra.mxu3 %v6228_v50 }
 0x42b   : > { %v3188_v17 = vsel %vm3186_vm2, %v3151_v8, 0.0  ;;  %v3203_v61 = vpack.c.bf16 %v3151_v8, %v3151_v8  ;;  %v10422_v8 = vld [vmem:[#allocation35_spill] sm:$0xff] }
 0x42c   : > { %v5433_v32 = vpack.c.bf16 %v3188_v17, %v3187_v52  ;;  %v10423_v52 = vld [vmem:[#allocation41_spill] sm:$0xff]  ;;  %v10424_v17 = vld [vmem:[#allocation36_spill] sm:$0xff] }
 0x42d   : > { %v8897_v24 = vsel %vm3205_vm4, %v3203_v61, %v10391_v43  ;;  %3733 = vmatpush.bf16.msra.mxu0 %v10393_v62  ;;  %3747 = vmatpush.bf16.msra.mxu1 %v10394_v2  ;;  %v10425_v61 = vld [vmem:[#allocation38_spill] sm:$0xff] }
 0x42e   : > { %10392 = vst [vmem:[#allocation59_spill] sm:$0xff] %v8897_v24  ;;  %v3451_v22 = vunpack.c.l.b16 %v8897_v24  ;;  %3761 = vmatpush.bf16.msra.mxu2 %v10395_v47  ;;  %3775 = vmatpush.bf16.msra.mxu3 %v10396_v21  ;;  %v10427_v43 = vld [vmem:[#allocation46_spill] sm:$0xff] }
 0x42f   : > { %5473 = vst [vmem:[%s6087_s19 + $0x18] sm:$0xff] %v5433_v32   ;;  %v10426_v32 = vld [vmem:[#allocation39_spill] sm:$0xff] }
 0x430   : > { %v3452_v48 = vpack.c.b16 %v3451_v22, %v3450_v13  ;;  %v10428_v13 = vld [vmem:[#allocation40_spill] sm:$0xff]  ;;  %v10429_v22 = vld [vmem:[#allocation43_spill] sm:$0xff] }
 0x431   : > { %3734 = vmatpush.bf16.msra.mxu0 %v10397_v57  ;;  %3748 = vmatpush.bf16.msra.mxu1 %v10398_v20 }
 0x432   : > { %3462 = vmatmul.bf16.vlgmr.msrb.gmra.mxu0 %v3452_v48  ;;  %3476 = vmatmul.bf16.vlgmr.msrb.gmra.mxu1 %v3452_v48 }
 0x433   : > { %3490 = vmatmul.bf16.vlgmr.msrb.gmra.mxu2 %v3452_v48  ;;  %3504 = vmatmul.bf16.vlgmr.msrb.gmra.mxu3 %v3452_v48  ;;  %v10430_v48 = vld [vmem:[#allocation44_spill] sm:$0xff] }
 0x434   : > { %3762 = vmatpush.bf16.msra.mxu2 %v10399_v38  ;;  %3776 = vmatpush.bf16.msra.mxu3 %v10400_v51 }
 0x435   : > { %3735 = vmatpush.bf16.msra.mxu0 %v10401_v33  ;;  %3749 = vmatpush.bf16.msra.mxu1 %v10402_v1 }
 0x438   : > { %3763 = vmatpush.bf16.msra.mxu2 %v10403_v0  ;;  %3777 = vmatpush.bf16.msra.mxu3 %v10404_v7 }
 0x439   : > { %3736 = vmatpush.bf16.msra.mxu0 %v10405_v63  ;;  %3750 = vmatpush.bf16.msra.mxu1 %v10406_v27 }
 0x43c   : > { %3764 = vmatpush.bf16.msra.mxu2 %v10409_v41  ;;  %3778 = vmatpush.bf16.msra.mxu3 %v10410_v39 }
 0x43d   : > { %3946 = vmatpush.bf16.msrb.mxu0 %v10407_v4  ;;  %3960 = vmatpush.bf16.msrb.mxu1 %v10408_v40 }
 0x440   : > { %3974 = vmatpush.bf16.msrb.mxu2 %v10411_v15  ;;  %3988 = vmatpush.bf16.msrb.mxu3 %v10412_v25 }
 0x441   : > { %3947 = vmatpush.bf16.msrb.mxu0 %v10413_v55  ;;  %3961 = vmatpush.bf16.msrb.mxu1 %v10414_v16 }
 0x444   : > { %3975 = vmatpush.bf16.msrb.mxu2 %v10415_v3  ;;  %3989 = vmatpush.bf16.msrb.mxu3 %v10416_v42  ;;  %v5245_v42 = vld [vmem:[%s6072_s8 + $0xb0] sm:$0xff] }
 0x445   : > { %3948 = vmatpush.bf16.msrb.mxu0 %v10417_v31  ;;  %3962 = vmatpush.bf16.msrb.mxu1 %v10418_v46  ;;  %v3220_v55 = vunpack.c.h.bf16 %v5245_v42 }
 0x448   : > { %3976 = vmatpush.bf16.msrb.mxu2 %v10419_v59  ;;  %3990 = vmatpush.bf16.msrb.mxu3 %v10420_v29 }
 0x449   : > { %3949 = vmatpush.bf16.msrb.mxu0 %v10421_v56  ;;  %3963 = vmatpush.bf16.msrb.mxu1 %v10422_v8  ;;  %v10431_v56 = vld [vmem:[#allocation51_spill] sm:$0xff]  ;;  %v10432_v8 = vld [vmem:[#allocation45_spill] sm:$0xff] }
 0x44c   : > { %3977 = vmatpush.bf16.msrb.mxu2 %v10423_v52  ;;  %3991 = vmatpush.bf16.msrb.mxu3 %v10424_v17  ;;  %v10433_v17 = vld [vmem:[#allocation48_spill] sm:$0xff]  ;;  %v10435_v52 = vld [vmem:[#allocation55_spill] sm:$0xff] }
 0x44d   : > { %3950 = vmatpush.bf16.msrb.mxu0 %v10425_v61  ;;  %3964 = vmatpush.bf16.msrb.mxu1 %v10426_v32  ;;  %v10434_v61 = vld [vmem:[#allocation49_spill] sm:$0xff]  ;;  %v10436_v32 = vld [vmem:[#allocation50_spill] sm:$0xff] }
 0x450   : > { %3978 = vmatpush.bf16.msrb.mxu2 %v10427_v43  ;;  %3992 = vmatpush.bf16.msrb.mxu3 %v10428_v13  ;;  %v10437_v43 = vld [vmem:[#allocation52_spill] sm:$0xff]  ;;  %v10438_v13 = vld [vmem:[#allocation53_spill] sm:$0xff] }
 0x451   : > { %3951 = vmatpush.bf16.msrb.mxu0 %v10429_v22  ;;  %3965 = vmatpush.bf16.msrb.mxu1 %v10430_v48  ;;  %v10439_v22 = vld [vmem:[#allocation56_spill] sm:$0xff]  ;;  %v10440_v48 = vld [vmem:[#allocation54_spill] sm:$0xff] }
 0x454   : > { %3979 = vmatpush.bf16.msrb.mxu2 %v10431_v56  ;;  %3993 = vmatpush.bf16.msrb.mxu3 %v10432_v8  ;;  %v5243_v56 = vld [vmem:[%s6072_s8 + $0xa0] sm:$0xff]  ;;  %v10441_v8 = vld [vmem:[#allocation62_spill] sm:$0xff] }
 0x455   : > { %3952 = vmatpush.bf16.msrb.mxu0 %v10433_v17  ;;  %3966 = vmatpush.bf16.msrb.mxu1 %v10434_v61  ;;  %v3215_v29 = vunpack.c.l.bf16 %v5243_v56  ;;  %v3216_v59 = vunpack.c.h.bf16 %v5243_v56  ;;  %v10442_v17 = vld [vmem:[#allocation63_spill] sm:$0xff]  ;;  %v5244_v61 = vld [vmem:[%s6072_s8 + $0xa8] sm:$0xff] }
 0x457   : > { %v3223_v46 = vadd.f32 %v3215_v29, %v10441_v8  ;;  %v3224_v31 = vadd.f32 %v3216_v59, %v10442_v17  ;;  %v3228_v29 = vadd.f32 %v3220_v55, %v10442_v17  ;;  %v3217_v59 = vunpack.c.l.bf16 %v5244_v61 }
 0x458   : > { %3980 = vmatpush.bf16.msrb.mxu2 %v10435_v52  ;;  %3994 = vmatpush.bf16.msrb.mxu3 %v10436_v32  ;;  %v3218_v32 = vunpack.c.h.bf16 %v5244_v61 }
 0x459   : > { %3953 = vmatpush.bf16.msrb.mxu0 %v10437_v43  ;;  %3967 = vmatpush.bf16.msrb.mxu1 %v10438_v13  ;;  %v3219_v13 = vunpack.c.l.bf16 %v5245_v42 }
 0x45b   : > { %v3227_v56 = vadd.f32 %v3219_v13, %v10441_v8  ;;  %v5253_v13 = vld [vmem:[%s6077_s12 + $0x240] sm:$0xff] }
 0x45c   : > { %3981 = vmatpush.bf16.msrb.mxu2 %v10439_v22  ;;  %3995 = vmatpush.bf16.msrb.mxu3 %v10440_v48  ;;  %v10443_v48 = vld [vmem:[#allocation64_spill] sm:$0xff] }
 0x45d   : > { %v3226_v15 = vadd.f32 %v3218_v32, %v10443_v48 }
 0x498   : > { %v3246_v52 = vpop.f32.mrf.mxu0  ;;  %v3260_v3 = vpop.f32.mrf.mxu1 }
 0x499   : > { %v3293_v16 = vadd.f32 %v3246_v52, %v3223_v46  ;;  %v3294_v43 = vadd.f32 %v3260_v3, %v3224_v31  ;;  %v5246_v31 = vld [vmem:[%s6072_s8 + $0xb8] sm:$0xff] }
 0x49a   : > { %v3222_v27 = vunpack.c.h.bf16 %v5246_v31  ;;  %v3221_v61 = vunpack.c.l.bf16 %v5246_v31  ;;  %v10445_v31 = vld [vmem:[#allocation66_spill] sm:$0xff] }
 0x49b   : > { %v5247_v22 = vmul.f32 -1.442695, %v3293_v16  ;;  %v5249_v25 = vmul.f32 -1.442695, %v3294_v43  ;;  %v10444_v16 = vld [vmem:[#allocation65_spill] sm:$0xff] }
 0x49c   : > { %v3225_v43 = vadd.f32 %v3217_v59, %v10444_v16 }
 0x49d   : > { %5813 = vpow2.f32 %v5247_v22 }
 0x49e   : > { %5815 = vpow2.f32 %v5249_v25 }
 0x49f   : > { %v3274_v40 = vpop.f32.mrf.mxu2  ;;  %v3288_v4 = vpop.f32.mrf.mxu3 }
 0x4a0   : > { %v3296_v39 = vadd.f32 %v3288_v4, %v3226_v15  ;;  %v3248_v46 = vpop.f32.mrf.mxu0  ;;  %v3262_v3 = vpop.f32.mrf.mxu1  ;;  %v3295_v4 = vadd.f32 %v3274_v40, %v3225_v43  ;;  %v3432_v15 = vunpack.c.l.bf16 %v5253_v13 }
 0x4a1   : > { %v3297_v52 = vadd.f32 %v3248_v46, %v3227_v56  ;;  %v3298_v42 = vadd.f32 %v3262_v3, %v3228_v29  ;;  %v3433_v56 = vunpack.c.h.bf16 %v5253_v13  ;;  %v3229_v29 = vadd.f32 %v3221_v61, %v10444_v16  ;;  %v5255_v13 = vld [vmem:[%s6077_s12 + $0x250] sm:$0xff] }
 0x4a2   : > { %v5251_v41 = vmul.f32 -1.442695, %v3296_v39  ;;  %v3230_v39 = vadd.f32 %v3222_v27, %v10443_v48  ;;  %v3440_v40 = vadd.f32 %v3432_v15, %v10445_v31  ;;  %v3436_v1 = vunpack.c.l.bf16 %v5255_v13 }
 0x4a3   : > { %v5814_v32 = vpop.eup %5813  ;;  %v5248_v22 = vmul.f32 -1.442695, %v3297_v52  ;;  %v5250_v25 = vmul.f32 -1.442695, %v3298_v42  ;;  %v5254_v52 = vld [vmem:[%s6077_s12 + $0x248] sm:$0xff]  ;;  %v3437_v33 = vunpack.c.h.bf16 %v5255_v13 }
 0x4a4   : > { %v5816_v8 = vpop.eup %5815  ;;  %v8961_v55 = vadd.f32 1.0, %v5814_v32  ;;  %5817 = vpow2.f32 %v5251_v41  ;;  %v10446_v32 = vld [vmem:[#allocation67_spill] sm:$0xff]  ;;  %v3435_v0 = vunpack.c.h.bf16 %v5254_v52 }
 0x4a5   : > { %v8963_v17 = vadd.f32 1.0, %v5816_v8  ;;  %5819 = vpow2.f32 %v5248_v22  ;;  %v3441_v22 = vadd.f32 %v3433_v56, %v10446_v32  ;;  %v3434_v56 = vunpack.c.l.bf16 %v5254_v52 }
 0x4a6   : > { %5821 = vrcp.f32 %v8961_v55  ;;  %v3318_v59 = vand.u32 2147483647, %v8961_v55  ;;  %v3320_v8 = vand.u32 2147483648, %v8961_v55  ;;  %vm3314_vm11 = vweird.f32 %v8961_v55 }
 0x4a7   : > { %5823 = vrcp.f32 %v8963_v17  ;;  %v3290_v41 = vpop.f32.mrf.mxu3  ;;  %v3276_v46 = vpop.f32.mrf.mxu2  ;;  %vm3352_vm5 = vweird.f32 %v8963_v17  ;;  %v3358_v61 = vand.u32 2147483648, %v8963_v17  ;;  %v3356_v16 = vand.u32 2147483647, %v8963_v17 }
 0x4a8   : > { %5825 = vpow2.f32 %v5250_v25  ;;  %v3300_v43 = vadd.f32 %v3290_v41, %v3230_v39  ;;  %v3299_v15 = vadd.f32 %v3276_v46, %v3229_v29  ;;  %vm8984_vm6 = vcmp.eq.f32.partialorder %v3318_v59, 8.507059e+37 }
 0x4a9   : > { %5827 = vtanh.f32 %v3295_v4  ;;  %v3321_v39 = vor.u32 1.1754944e-38, %v3320_v8  ;;  %v3359_v38 = vor.u32 1.1754944e-38, %v3358_v61  ;;  %vm8993_vm13 = vcmp.eq.f32.partialorder %v3356_v16, 8.507059e+37 }
 0x4aa   : > { %v5818_v3 = vpop.eup %5817  ;;  %v5252_v46 = vmul.f32 -1.442695, %v3300_v43  ;;  %v3443_v43 = vadd.f32 %v3435_v0, %v10209_v28 }
 0x4ab   : > { %v5820_v42 = vpop.eup %5819  ;;  %v8974_v27 = vadd.f32 1.0, %v5818_v3 }
 0x4ac   : > { %v5822_v25 = vpop.eup %5821  ;;  %v8981_v4 = vadd.f32 1.0, %v5820_v42 }
 0x4ad   : > { %v5824_v48 = vpop.eup %5823  ;;  %v3310_v63 = vmul.f32 %v5822_v25, %v8961_v55  ;;  %5829 = vrcp.f32 %v8974_v27  ;;  %vm3315_vm8 = vweird.f32 %v5822_v25  ;;  %vm3392_vm14 = vweird.f32 %v8974_v27 }
 0x4ae   : > { %v5826_v41 = vpop.eup %5825  ;;  %v3348_v7 = vmul.f32 %v5824_v48, %v8963_v17  ;;  %5831 = vrcp.f32 %v8981_v4  ;;  %vm3353_vm9 = vweird.f32 %v5824_v48  ;;  %vm3316_vm7 = vmor %vm3314_vm11, %vm3315_vm8  ;;  %v3333_v0 = vand.u32 2147483647, %v8981_v4 }
 0x4af   : > { %v3311_v42 = vsub.f32 1.0, %v3310_v63  ;;  %v8991_v29 = vadd.f32 1.0, %v5826_v41  ;;  %v3463_v59 = vpop.f32.mrf.mxu0  ;;  %v5828_v24 = vpop.eup %5827  ;;  %5833 = vtanh.f32 %v3299_v15  ;;  %v8999_v63 = vadd.f32 %v3434_v56, %v10131_v11  ;;  %vm3354_vm0 = vmor %vm3352_vm5, %vm3353_vm9 }
 0x4b0   : > { %v3349_v51 = vsub.f32 1.0, %v3348_v7  ;;  %v3477_v13 = vpop.f32.mrf.mxu1  ;;  %v3444_v7 = vadd.f32 %v3436_v1, %v10445_v31  ;;  %v3510_v41 = vadd.f32 %v3463_v59, %v3440_v40  ;;  %v9006_v15 = vadd.f32 %v3437_v33, %v10446_v32 }
 0x4b1   : > { %v3312_v54 = vmul.f32 %v5822_v25, %v3311_v42  ;;  %5835 = vrcp.f32 %v8991_v29  ;;  %vm3329_vm2 = vweird.f32 %v8981_v4  ;;  %v3511_v40 = vadd.f32 %v3477_v13, %v3441_v22 }
 0x4b2   : > { %v3350_v52 = vmul.f32 %v5824_v48, %v3349_v51  ;;  %5837 = vpow2.f32 %v5252_v46  ;;  %v5257_v33 = vmul.f32 -1.442695, %v3510_v41  ;;  %vm3367_vm12 = vweird.f32 %v8991_v29 }
 0x4b3   : > { %v9003_v61 = vpop.eup %5829  ;;  %v3313_v16 = vadd.f32 %v5822_v25, %v3312_v54  ;;  %v3373_v22 = vand.u32 2147483648, %v8991_v29  ;;  %vm9028_vm3 = vcmp.eq.f32.partialorder %v3333_v0, 8.507059e+37 }
 0x4b4   : > { %v3351_v56 = vadd.f32 %v5824_v48, %v3350_v52  ;;  %v3388_v51 = vmul.f32 %v9003_v61, %v8974_v27  ;;  %v5832_v1 = vpop.eup %5831  ;;  %5839 = vpow2.f32 %v5257_v33  ;;  %vm3393_vm1 = vweird.f32 %v9003_v61 }
 0x4b5   : > { %v3317_v54 = vsel %vm3316_vm7, %v5822_v25, %v3313_v16  ;;  %v5834_v55 = vpop.eup %5833  ;;  %v3325_v42 = vmul.f32 %v5832_v1, %v8981_v4  ;;  %vm3330_vm15 = vweird.f32 %v5832_v1  ;;  %vm9056_vm5 = vmor %vm3392_vm14, %vm3393_vm1 }
 0x4b6   : > { %v3322_v46 = vsel %vm8984_vm6, %v3321_v39, %v3317_v54  ;;  %v3355_v59 = vsel %vm3354_vm0, %v5824_v48, %v3351_v56  ;;  %v3389_v52 = vsub.f32 1.0, %v3388_v51  ;;  %v3505_v32 = vpop.f32.mrf.mxu3  ;;  %vm3331_vm4 = vmor %vm3329_vm2, %vm3330_vm15 }
 0x4b7   : > { %v5836_v31 = vpop.eup %5835  ;;  %v3360_v17 = vsel %vm8993_vm13, %v3359_v38, %v3355_v59  ;;  %v3419_v25 = vmul.f32 %v5828_v24, %v3322_v46  ;;  %v3326_v39 = vsub.f32 1.0, %v3325_v42  ;;  %v3465_v16 = vpop.f32.mrf.mxu0  ;;  %v3335_v24 = vand.u32 2147483648, %v8981_v4 }
 0x4b8   : > { %v3417_v3 = vmul.f32 %v3360_v17, %v8791_v26  ;;  %v3363_v48 = vmul.f32 %v5836_v31, %v8991_v29  ;;  %v5838_v41 = vpop.eup %5837  ;;  %v3390_v8 = vmul.f32 %v9003_v61, %v3389_v52  ;;  %v5259_v38 = vmul.f32 -1.442695, %v3511_v40 }
 0x4b9   : > { %v3513_v56 = vadd.f32 %v3505_v32, %v3443_v43  ;;  %v3327_v33 = vmul.f32 %v5832_v1, %v3326_v39  ;;  %v3371_v42 = vand.u32 2147483647, %v8991_v29  ;;  %v9037_v46 = vadd.f32 1.0, %v5838_v41  ;;  %v3479_v41 = vpop.f32.mrf.mxu1  ;;  %v3491_v29 = vpop.f32.mrf.mxu2 }
 0x4ba   : > { %v9034_v51 = vadd.f32 %v3419_v25, %v3417_v3  ;;  %v3364_v54 = vsub.f32 1.0, %v3363_v48  ;;  %5841 = vpow2.f32 %v5259_v38  ;;  %v3514_v0 = vadd.f32 %v3465_v16, %v3444_v7  ;;  %v5840_v17 = vpop.eup %5839 }
 0x4bb   : > { %vm3368_vm10 = vweird.f32 %v5836_v31  ;;  %v3328_v52 = vadd.f32 %v5832_v1, %v3327_v33  ;;  %v3391_v40 = vadd.f32 %v9003_v61, %v3390_v8  ;;  %v3336_v32 = vor.u32 1.1754944e-38, %v3335_v24 }
 0x4bc   : > { %v3365_v59 = vmul.f32 %v5836_v31, %v3364_v54  ;;  %5843 = vrcp.f32 %v9037_v46  ;;  %v5261_v43 = vmul.f32 -1.442695, %v3513_v56  ;;  %v9045_v7 = vadd.f32 1.0, %v5840_v17  ;;  %vm3369_vm11 = vmor %vm3367_vm12, %vm3368_vm10 }
 0x4bd   : > { %5845 = vtanh.f32 %v9034_v51  ;;  %v3332_v25 = vsel %vm3331_vm4, %v5832_v1, %v3328_v52  ;;  %v3398_v39 = vand.u32 2147483648, %v8974_v27  ;;  %v3374_v48 = vor.u32 1.1754944e-38, %v3373_v22  ;;  %v9071_v52 = vpop.permute.xlu2 %3655 }
 0x4be   : > { %v3366_v3 = vadd.f32 %v5836_v31, %v3365_v59  ;;  %v3337_v4 = vsel %vm9028_vm3, %v3336_v32, %v3332_v25  ;;  %v5258_v16 = vmul.f32 -1.442695, %v3514_v0  ;;  %vm3372_vm6 = vcmp.eq.f32.partialorder %v3371_v42, 8.507059e+37 }
 0x4bf   : > { %v3420_v24 = vmul.f32 %v5834_v55, %v3337_v4  ;;  %5847 = vrcp.f32 %v9045_v7  ;;  %v3395_v13 = vsel %vm9056_vm5, %v9003_v61, %v3391_v40  ;;  %v3515_v33 = vadd.f32 %v3479_v41, %v9006_v15 }
 0x4c0   : > { %v3370_v8 = vsel %vm3369_vm11, %v5836_v31, %v3366_v3  ;;  %v5842_v22 = vpop.eup %5841  ;;  %5849 = vpow2.f32 %v5261_v43  ;;  %v10455_v31 = vand.u32 2147483647, %v8974_v27  ;;  %v3399_v55 = vor.u32 1.1754944e-38, %v3398_v39  ;;  %v9081_v43 = vpop.permute.xlu0 %3658 }
 0x4c1   : > { %v3375_v38 = vsel %vm3372_vm6, %v3374_v48, %v3370_v8  ;;  %v9065_v54 = vadd.f32 1.0, %v5842_v22  ;;  %v3512_v42 = vadd.f32 %v3491_v29, %v8999_v63  ;;  %5851 = vpow2.f32 %v5258_v16  ;;  %v5256_v22 = vld [vmem:[%s6077_s12 + $0x258] sm:$0xff] }
 0x4c2   : > { %v3418_v56 = vmul.f32 %v3375_v38, %v8797_v6  ;;  %v5844_v0 = vpop.eup %5843  ;;  %vm3397_vm13 = vcmp.eq.f32.partialorder %v10455_v31, 8.507059e+37  ;;  %v3411_v40 = vand.u32 2147483647, %v9037_v46  ;;  %vm3660_vm8 = vcmp.eq.s32.totalorder %v9071_v52, 1 }
 0x4c3   : > { %v5846_v59 = vpop.eup %5845  ;;  %v3403_v17 = vmul.f32 %v5844_v0, %v9037_v46  ;;  %5853 = vrcp.f32 %v9065_v54  ;;  %v3400_v15 = vsel %vm3397_vm13, %v3399_v55, %v3395_v13  ;;  %v3413_v27 = vand.u32 2147483648, %v9037_v46 }
 0x4c4   : > { %v9073_v61 = vadd.f32 %v3420_v24, %v3418_v56  ;;  %v3535_v32 = vand.u32 2147483647, %v9045_v7  ;;  %v3537_v3 = vand.u32 2147483648, %v9045_v7  ;;  %v5260_v39 = vmul.f32 -1.442695, %v3515_v33 }
 0x4c5   : > { %v5848_v63 = vpop.eup %5847  ;;  %v3404_v25 = vsub.f32 1.0, %v3403_v17  ;;  %vm3661_vm9 = vcmp.eq.s32.totalorder %v9081_v43, 1  ;;  %v9086_v48 = vmul.f32 %v5846_v59, %v3400_v15  ;;  %vm3407_vm7 = vweird.f32 %v9037_v46 }
 0x4c6   : > { %5855 = vtanh.f32 %v9073_v61  ;;  %v3527_v4 = vmul.f32 %v5848_v63, %v9045_v7  ;;  %v5850_v16 = vpop.eup %5849  ;;  %vm3408_vm0 = vweird.f32 %v5844_v0  ;;  %vm9090_vm2 = vcmp.eq.f32.partialorder %v3411_v40, 8.507059e+37 }
 0x4c7   : > { %5857 = vtanh.f32 %v3512_v42  ;;  %v3405_v41 = vmul.f32 %v5844_v0, %v3404_v25  ;;  %v5852_v8 = vpop.eup %5851  ;;  %v3414_v24 = vor.u32 1.1754944e-38, %v3413_v27  ;;  %vm3531_vm12 = vweird.f32 %v9045_v7  ;;  %vm3409_vm3 = vmor %vm3407_vm7, %vm3408_vm0 }
 0x4c8   : > { %5859 = vpow2.f32 %v5260_v39  ;;  %v3528_v29 = vsub.f32 1.0, %v3527_v4  ;;  %v9100_v13 = vsel %vm3660_vm8, %v9034_v51, %v8791_v26  ;;  %vm9102_vm14 = vcmp.eq.f32.partialorder %v3535_v32, 8.507059e+37  ;;  %vm3688_vm7 = vmpackc.low %vm3660_vm8, %vm3660_vm8 }
 0x4c9   : > { %v5854_v38 = vpop.eup %5853  ;;  %v3406_v56 = vadd.f32 %v5844_v0, %v3405_v41  ;;  %v3538_v31 = vor.u32 1.1754944e-38, %v3537_v3  ;;  %v9106_v55 = vadd.f32 1.0, %v5852_v8  ;;  %v3662_v42 = vsel %vm3660_vm8, %v9086_v48, 0.0  ;;  %vm3689_vm0 = vmpackc.low %vm3661_vm9, %vm3661_vm9 }
 0x4ca   : > { %v3565_v26 = vmul.f32 %v5854_v38, %v9065_v54  ;;  %v3529_v51 = vmul.f32 %v5848_v63, %v3528_v29  ;;  %vm3532_vm15 = vweird.f32 %v5848_v63  ;;  %v9115_v40 = vadd.f32 1.0, %v5850_v16 }
 0x4cb   : > { %v3410_v17 = vsel %vm3409_vm3, %v5844_v0, %v3406_v56  ;;  %v3438_v15 = vunpack.c.l.bf16 %v5256_v22  ;;  %v3439_v27 = vunpack.c.h.bf16 %v5256_v22  ;;  %5861 = vrcp.f32 %v9106_v55  ;;  %vm3533_vm10 = vmor %vm3531_vm12, %vm3532_vm15 }
 0x4cc   : > { %v5856_v59 = vpop.eup %5855  ;;  %v3415_v25 = vsel %vm9090_vm2, %v3414_v24, %v3410_v17  ;;  %v3566_v3 = vsub.f32 1.0, %v3565_v26  ;;  %v3530_v39 = vadd.f32 %v5848_v63, %v3529_v51  ;;  %vm3569_vm1 = vweird.f32 %v9065_v54  ;;  %v3493_v51 = vpop.f32.mrf.mxu2 }
 0x4cd   : > { %v5858_v32 = vpop.eup %5857  ;;  %v3426_v4 = vmul.f32 %v5856_v59, %v3415_v25  ;;  %v3575_v41 = vand.u32 2147483648, %v9065_v54  ;;  %v3573_v0 = vand.u32 2147483647, %v9065_v54  ;;  %vm3570_vm4 = vweird.f32 %v5854_v38  ;;  %v3507_v59 = vpop.f32.mrf.mxu3 }
 0x4ce   : > { %v5860_v46 = vpop.eup %5859  ;;  %v3567_v16 = vmul.f32 %v5854_v38, %v3566_v3  ;;  %v3534_v1 = vsel %vm3533_vm10, %v5848_v63, %v3530_v39  ;;  %5863 = vrcp.f32 %v9115_v40  ;;  %v3446_v22 = vadd.f32 %v3438_v15, %v10131_v11  ;;  %vm3571_vm11 = vmor %vm3569_vm1, %vm3570_vm4  ;;  %v9139_v25 = vpop.permute.xlu1 %3672 }
 0x4cf   : > { %v9126_v8 = vadd.f32 1.0, %v5860_v46  ;;  %v3663_v24 = vsel %vm3661_vm9, %v3426_v4, 0.0  ;;  %v3539_v29 = vsel %vm9102_vm14, %v3538_v31, %v3534_v1  ;;  %v3447_v26 = vadd.f32 %v3439_v27, %v10209_v28 }
 0x4d0   : > { %v5438_v7 = vpack.c.bf16 %v3663_v24, %v3662_v42  ;;  %v3568_v56 = vadd.f32 %v5854_v38, %v3567_v16  ;;  %v3576_v63 = vor.u32 1.1754944e-38, %v3575_v41  ;;  %vm3574_vm5 = vcmp.eq.f32.partialorder %v3573_v0, 8.507059e+37 }
 0x4d1   : > { %5865 = vrcp.f32 %v9126_v8  ;;  %v5862_v17 = vpop.eup %5861  ;;  %v3636_v31 = vmul.f32 %v5858_v32, %v3539_v29  ;;  %v3686_v3 = vpack.c.bf16 %v9086_v48, %v9086_v48  ;;  %vm3677_vm6 = vcmp.eq.s32.totalorder %v9139_v25, 1 }
 0x4d2   : > { %5474 = vst [vmem:[%s6082_s15 + $0x28] sm:$0xff] %v5438_v7   ;;  %v3572_v33 = vsel %vm3571_vm11, %v5854_v38, %v3568_v56  ;;  %v3542_v42 = vmul.f32 %v5862_v17, %v9106_v55  ;;  %v3516_v27 = vadd.f32 %v3493_v51, %v3446_v22  ;;  %v3517_v39 = vadd.f32 %v3507_v59, %v3447_v26 }
 0x4d3   : > { %v3577_v15 = vsel %vm3574_vm5, %v3576_v63, %v3572_v33  ;;  %vm3546_vm13 = vweird.f32 %v9106_v55  ;;  %v3550_v38 = vand.u32 2147483647, %v9106_v55  ;;  %v3687_v32 = vpack.c.bf16 %v3426_v4, %v3426_v4 }
 0x4d4   : > { %v3634_v54 = vmul.f32 %v3577_v15, %v8831_v58  ;;  %v9146_v46 = vpop.eup %5863  ;;  %v3543_v41 = vsub.f32 1.0, %v3542_v42  ;;  %v3552_v16 = vand.u32 2147483648, %v9106_v55  ;;  %v5262_v1 = vmul.f32 -1.442695, %v3517_v39 }
 0x4d5   : > { %v9158_v24 = vsel %vm3661_vm9, %v9073_v61, %v8797_v6  ;;  %vm3547_vm2 = vweird.f32 %v5862_v17  ;;  %v9165_v52 = vsel %vm3688_vm7, %v3686_v3, %v8813_v53  ;;  %v3605_v22 = vmul.f32 %v9146_v46, %v9115_v40 }
 0x4d6   : > { %v3638_v48 = vadd.f32 %v3636_v31, %v3634_v54  ;;  %v3544_v29 = vmul.f32 %v5862_v17, %v3543_v41  ;;  %5867 = vtanh.f32 %v3516_v27  ;;  %v9170_v7 = vsel %vm3689_vm0, %v3687_v32, %v8826_v12  ;;  %vm3548_vm8 = vmor %vm3546_vm13, %vm3547_vm2 }
 0x4d7   : > { %v5866_v0 = vpop.eup %5865  ;;  %v3590_v43 = vand.u32 2147483648, %v9126_v8  ;;  %5869 = vpow2.f32 %v5262_v1  ;;  %vm3551_vm9 = vcmp.eq.f32.partialorder %v3550_v38, 8.507059e+37  ;;  %v3553_v53 = vor.u32 1.1754944e-38, %v3552_v16  ;;  %v3676_v38 = vpop.permute.xlu2 %3675 }
 0x4d8   : > { %v3580_v4 = vmul.f32 %v5866_v0, %v9126_v8  ;;  %v9175_v6 = vsel %vm3677_vm6, %v3638_v48, %v8831_v58  ;;  %v3545_v56 = vadd.f32 %v5862_v17, %v3544_v29  ;;  %v3725_v26 = vunpack.c.l.b16 %v9165_v52  ;;  %v10462_v29 = vld [vmem:[#allocation12_spill] sm:$0xff] }
 0x4d9   : > { %v3726_v12 = vunpack.c.l.b16 %v9170_v7  ;;  %vm3585_vm12 = vweird.f32 %v5866_v0  ;;  %v3588_v58 = vand.u32 2147483647, %v9126_v8  ;;  %v3606_v31 = vsub.f32 1.0, %v3605_v22 }
 0x4da   : > { %v3581_v61 = vsub.f32 1.0, %v3580_v4  ;;  %v3549_v51 = vsel %vm3548_vm8, %v5862_v17, %v3545_v56  ;;  %vm3584_vm14 = vweird.f32 %v9126_v8  ;;  %v3591_v55 = vor.u32 1.1754944e-38, %v3590_v43  ;;  %vm3696_vm8 = vmpackc.low %vm3677_vm6, %vm3677_vm6  ;;  %v10464_v43 = vld [vmem:[#allocation13_spill] sm:$0xff]  ;;  %v10465_v56 = vld [vmem:[#allocation15_spill] sm:$0xff] }
 0x4db   : > { %v3554_v59 = vsel %vm3551_vm9, %v3553_v53, %v3549_v51  ;;  %v3727_v33 = vpack.c.b16 %v3726_v12, %v3725_v26  ;;  %vm3586_vm3 = vmor %vm3584_vm14, %vm3585_vm12  ;;  %vm3589_vm15 = vcmp.eq.f32.partialorder %v3588_v58, 8.507059e+37  ;;  %v3607_v8 = vmul.f32 %v9146_v46, %v3606_v31  ;;  %v10466_v53 = vld [vmem:[#allocation18_spill] sm:$0xff]  ;;  %v10467_v26 = vld [vmem:[#allocation16_spill] sm:$0xff] }
 0x4dc   : > { %v3582_v63 = vmul.f32 %v5866_v0, %v3581_v61  ;;  %v5868_v42 = vpop.eup %5867  ;;  %vm3678_vm1 = vcmp.eq.s32.totalorder %v3676_v38, 1  ;;  %vm3610_vm10 = vweird.f32 %v9146_v46  ;;  %vm3609_vm4 = vweird.f32 %v9115_v40  ;;  %v10469_v51 = vld [vmem:[#allocation19_spill] sm:$0xff]  ;;  %v10470_v58 = vld [vmem:[#allocation24_spill] sm:$0xff]  ;;  %v10473_v31 = vld [vmem:[#allocation22_spill] sm:$0xff] }
 0x4dd   : > { %3737 = vmatmul.bf16.vlgmr.msra.gmra.mxu0 %v3727_v33  ;;  %3751 = vmatmul.bf16.vlgmr.msra.gmra.mxu1 %v3727_v33  ;;  %v5870_v3 = vpop.eup %5869  ;;  %v3637_v27 = vmul.f32 %v5868_v42, %v3554_v59  ;;  %vm3611_vm11 = vmor %vm3609_vm4, %vm3610_vm10  ;;  %v10471_v59 = vld [vmem:[#allocation20_spill] sm:$0xff]  ;;  %v10475_v42 = vld [vmem:[#allocation23_spill] sm:$0xff] }
 0x4de   : > { %v3583_v15 = vadd.f32 %v5866_v0, %v3582_v63  ;;  %3765 = vmatmul.bf16.vlgmr.msra.gmra.mxu2 %v3727_v33  ;;  %3779 = vmatmul.bf16.vlgmr.msra.gmra.mxu3 %v3727_v33  ;;  %v3603_v39 = vadd.f32 1.0, %v5870_v3  ;;  %vm3697_vm9 = vmpackc.low %vm3678_vm1, %vm3678_vm1  ;;  %v10468_v63 = vld [vmem:[#allocation17_spill] sm:$0xff]  ;;  %v10477_v3 = vld [vmem:[#allocation26_spill] sm:$0xff] }
 0x4df   : > { %4221 = vmatpush.bf16.msra.mxu0 %v6098_v5  ;;  %4235 = vmatpush.bf16.msra.mxu1 %v6109_v9  ;;  %v3608_v5 = vadd.f32 %v9146_v46, %v3607_v8  ;;  %v10472_v33 = vld [vmem:[#allocation21_spill] sm:$0xff]  ;;  %v10484_v38 = vld [vmem:[#allocation34_spill] sm:$0xff] }
 0x4e0   : > { %v3587_v54 = vsel %vm3586_vm3, %v5866_v0, %v3583_v15  ;;  %4249 = vmatpush.bf16.msra.mxu2 %v6149_v23  ;;  %4263 = vmatpush.bf16.msra.mxu3 %v6111_v10  ;;  %5871 = vrcp.f32 %v3603_v39  ;;  %v3615_v10 = vand.u32 2147483648, %v9115_v40  ;;  %vm3624_vm7 = vweird.f32 %v3603_v39  ;;  %v10474_v15 = vld [vmem:[#allocation28_spill] sm:$0xff]  ;;  %v10482_v8 = vld [vmem:[#allocation37_spill] sm:$0xff] }
 0x4e1   : > { %v3592_v17 = vsel %vm3589_vm15, %v3591_v55, %v3587_v54  ;;  %5873 = vtanh.f32 %v3638_v48  ;;  %v10476_v55 = vld [vmem:[#allocation25_spill] sm:$0xff] }
 0x4e2   : > { %v3635_v41 = vmul.f32 %v3592_v17, %v8873_v37  ;;  %v10478_v54 = vld [vmem:[#allocation33_spill] sm:$0xff]  ;;  %v10480_v17 = vld [vmem:[#allocation30_spill] sm:$0xff] }
 0x4e3   : > { %4222 = vmatpush.bf16.msra.mxu0 %v6123_v14  ;;  %4236 = vmatpush.bf16.msra.mxu1 %v6136_v18  ;;  %v3613_v14 = vand.u32 2147483647, %v9115_v40  ;;  %v3612_v18 = vsel %vm3611_vm11, %v9146_v46, %v3608_v5  ;;  %v3630_v40 = vand.u32 2147483648, %v3603_v39  ;;  %v3628_v46 = vand.u32 2147483647, %v3603_v39  ;;  %v10486_v5 = vld [vmem:[#allocation41_spill] sm:$0xff] }
 0x4e4   : > { %v3639_v32 = vadd.f32 %v3637_v27, %v3635_v41  ;;  %4250 = vmatpush.bf16.msra.mxu2 %v6188_v36  ;;  %4264 = vmatpush.bf16.msra.mxu3 %v6138_v19  ;;  %v10479_v27 = vld [vmem:[#allocation27_spill] sm:$0xff]  ;;  %v10483_v41 = vld [vmem:[#allocation32_spill] sm:$0xff] }
 0x4e5   : > { %vm3614_vm5 = vcmp.eq.f32.partialorder %v3613_v14, 8.507059e+37  ;;  %v3631_v16 = vor.u32 1.1754944e-38, %v3630_v40  ;;  %vm3629_vm2 = vcmp.eq.f32.partialorder %v3628_v46, 8.507059e+37  ;;  %v10488_v14 = vld [vmem:[#allocation38_spill] sm:$0xff]  ;;  %v10496_v40 = vld [vmem:[#allocation48_spill] sm:$0xff] }
 0x4e6   : > { %v9198_v9 = vsel %vm3678_vm1, %v3639_v32, %v8873_v37  ;;  %v5872_v23 = vpop.eup %5871  ;;  %v3616_v37 = vor.u32 1.1754944e-38, %v3615_v10  ;;  %5875 = vtanh.f32 %v3639_v32  ;;  %v10485_v32 = vld [vmem:[#allocation35_spill] sm:$0xff]  ;;  %v10487_v10 = vld [vmem:[#allocation36_spill] sm:$0xff]  ;;  %v10499_v46 = vld [vmem:[#allocation50_spill] sm:$0xff] }
 0x4e7   : > { %4223 = vmatpush.bf16.msra.mxu0 %v6171_v30  ;;  %4237 = vmatpush.bf16.msra.mxu1 %v6184_v34  ;;  %v3620_v36 = vmul.f32 %v5872_v23, %v3603_v39  ;;  %v5874_v19 = vpop.eup %5873  ;;  %vm3625_vm13 = vweird.f32 %v5872_v23  ;;  %v10481_v39 = vld [vmem:[#allocation31_spill] sm:$0xff] }
 0x4e8   : > { %4251 = vmatpush.bf16.msra.mxu2 %v6213_v45  ;;  %4265 = vmatpush.bf16.msra.mxu3 %v6186_v35  ;;  %v3617_v48 = vsel %vm3614_vm5, %v3616_v37, %v3612_v18  ;;  %vm3626_vm0 = vmor %vm3624_vm7, %vm3625_vm13  ;;  %v10490_v18 = vld [vmem:[#allocation46_spill] sm:$0xff]  ;;  %v10493_v37 = vld [vmem:[#allocation44_spill] sm:$0xff] }
 0x4e9   : > { %v3621_v0 = vsub.f32 1.0, %v3620_v36  ;;  %v3642_v30 = vmul.f32 %v5874_v19, %v3617_v48  ;;  %v10491_v36 = vld [vmem:[#allocation40_spill] sm:$0xff]  ;;  %v10492_v19 = vld [vmem:[#allocation43_spill] sm:$0xff]  ;;  %v10495_v48 = vld [vmem:[#allocation45_spill] sm:$0xff] }
 0x4eb   : > { %4224 = vmatpush.bf16.msra.mxu0 %v6211_v44  ;;  %4238 = vmatpush.bf16.msra.mxu1 %v6226_v49  ;;  %v3622_v34 = vmul.f32 %v5872_v23, %v3621_v0  ;;  %v3694_v49 = vpack.c.bf16 %v3642_v30, %v3642_v30  ;;  %v10494_v0 = vld [vmem:[#allocation51_spill] sm:$0xff] }
 0x4ec   : > { %4252 = vmatpush.bf16.msra.mxu2 %v6259_v60  ;;  %4266 = vmatpush.bf16.msra.mxu3 %v6228_v50  ;;  %v5876_v45 = vpop.eup %5875  ;;  %v3679_v50 = vsel %vm3677_vm6, %v3642_v30, 0.0  ;;  %v10497_v30 = vld [vmem:[#allocation49_spill] sm:$0xff] }
 0x4ed   : > { %v3623_v35 = vadd.f32 %v5872_v23, %v3622_v34  ;;  %v10498_v34 = vld [vmem:[#allocation55_spill] sm:$0xff] }
 0x4ef   : > { %4225 = vmatpush.bf16.msra.mxu0 %v10393_v62  ;;  %4239 = vmatpush.bf16.msra.mxu1 %v10394_v2  ;;  %v3627_v44 = vsel %vm3626_vm0, %v5872_v23, %v3623_v35  ;;  %v10489_v23 = vld [vmem:[#allocation39_spill] sm:$0xff]  ;;  %v10500_v35 = vld [vmem:[#allocation52_spill] sm:$0xff] }
 0x4f0   : > { %4253 = vmatpush.bf16.msra.mxu2 %v10395_v47  ;;  %4267 = vmatpush.bf16.msra.mxu3 %v10396_v21  ;;  %v3632_v60 = vsel %vm3629_vm2, %v3631_v16, %v3627_v44  ;;  %v10460_v47 = vld [vmem:[#allocation58_spill] sm:$0xff]  ;;  %v10502_v16 = vld [vmem:[#allocation56_spill] sm:$0xff] }
 0x4f1   : > { %v3643_v1 = vmul.f32 %v5876_v45, %v3632_v60  ;;  %v9225_v4 = vsel %vm3696_vm8, %v3694_v49, %v10460_v47  ;;  %v10461_v21 = vld [vmem:[#allocation14_spill] sm:$0xff]  ;;  %v10501_v45 = vld [vmem:[#allocation53_spill] sm:$0xff]  ;;  %v5267_v49 = vld [vmem:[%s6072_s8 + $0xc0] sm:$0xff] }
 0x4f2   : > { %v10503_v44 = vld [vmem:[#allocation54_spill] sm:$0xff]  ;;  %v3707_v60 = vunpack.c.l.bf16 %v5267_v49 }
 0x4f3   : > { %4226 = vmatpush.bf16.msra.mxu0 %v10397_v57  ;;  %4240 = vmatpush.bf16.msra.mxu1 %v10398_v20  ;;  %v3680_v62 = vsel %vm3678_vm1, %v3643_v1, 0.0  ;;  %v3695_v2 = vpack.c.bf16 %v3643_v1, %v3643_v1  ;;  %v10463_v57 = vld [vmem:[#allocation59_spill] sm:$0xff]  ;;  %v3942_v20 = vunpack.c.l.b16 %v9225_v4  ;;  %v3708_v1 = vunpack.c.h.bf16 %v5267_v49 }
 0x4f4   : > { %4254 = vmatpush.bf16.msra.mxu2 %v10461_v21  ;;  %4268 = vmatpush.bf16.msra.mxu3 %v10462_v29  ;;  %v5443_v22 = vpack.c.bf16 %v3680_v62, %v3679_v50  ;;  %v10504_v50 = vld [vmem:[#allocation62_spill] sm:$0xff]  ;;  %v5268_v21 = vld [vmem:[%s6072_s8 + $0xc8] sm:$0xff] }
 0x4f5   : > { %v9232_v61 = vsel %vm3697_vm9, %v3695_v2, %v10463_v57  ;;  %v3715_v62 = vadd.f32 %v3707_v60, %v10504_v50  ;;  %v10505_v2 = vld [vmem:[#allocation63_spill] sm:$0xff]  ;;  %v5269_v29 = vld [vmem:[%s6072_s8 + $0xd0] sm:$0xff] }
 0x4f6   : > { %5475 = vst [vmem:[%s6087_s19 + $0x10] sm:$0xff] %v5443_v22   ;;  %v3943_v25 = vunpack.c.l.b16 %v9232_v61  ;;  %v3716_v47 = vadd.f32 %v3708_v1, %v10505_v2  ;;  %v10508_v1 = vld [vmem:[#allocation66_spill] sm:$0xff] }
 0x4f7   : > { %4227 = vmatpush.bf16.msra.mxu0 %v10464_v43  ;;  %4241 = vmatpush.bf16.msra.mxu1 %v10465_v56  ;;  %v3711_v56 = vunpack.c.l.bf16 %v5269_v29 }
 0x4f8   : > { %4255 = vmatpush.bf16.msra.mxu2 %v10466_v53  ;;  %4269 = vmatpush.bf16.msra.mxu3 %v10467_v26  ;;  %v3944_v12 = vpack.c.b16 %v3943_v25, %v3942_v20  ;;  %v3710_v20 = vunpack.c.h.bf16 %v5268_v21  ;;  %v3712_v53 = vunpack.c.h.bf16 %v5269_v29 }
 0x4fa   : > { %3954 = vmatmul.bf16.vlgmr.msrb.gmra.mxu0 %v3944_v12  ;;  %3968 = vmatmul.bf16.vlgmr.msrb.gmra.mxu1 %v3944_v12 }
 0x4fb   : > { %3982 = vmatmul.bf16.vlgmr.msrb.gmra.mxu2 %v3944_v12  ;;  %3996 = vmatmul.bf16.vlgmr.msrb.gmra.mxu3 %v3944_v12 }
 0x4fc   : > { %4228 = vmatpush.bf16.msra.mxu0 %v10468_v63  ;;  %4242 = vmatpush.bf16.msra.mxu1 %v10469_v51  ;;  %v10506_v63 = vld [vmem:[#allocation64_spill] sm:$0xff] }
 0x4fd   : > { %4256 = vmatpush.bf16.msra.mxu2 %v10470_v58  ;;  %4270 = vmatpush.bf16.msra.mxu3 %v10471_v59  ;;  %v3718_v51 = vadd.f32 %v3710_v20, %v10506_v63  ;;  %v3719_v58 = vadd.f32 %v3711_v56, %v10504_v50  ;;  %v3720_v59 = vadd.f32 %v3712_v53, %v10505_v2 }
 0x500   : > { %4437 = vmatpush.bf16.msrb.mxu0 %v10472_v33  ;;  %4451 = vmatpush.bf16.msrb.mxu1 %v10473_v31  ;;  %v3709_v31 = vunpack.c.l.bf16 %v5268_v21 }
 0x501   : > { %4465 = vmatpush.bf16.msrb.mxu2 %v10474_v15  ;;  %4479 = vmatpush.bf16.msrb.mxu3 %v10475_v42 }
 0x504   : > { %4438 = vmatpush.bf16.msrb.mxu0 %v10476_v55  ;;  %4452 = vmatpush.bf16.msrb.mxu1 %v10477_v3  ;;  %v5270_v3 = vld [vmem:[%s6072_s8 + $0xd8] sm:$0xff] }
 0x505   : > { %4466 = vmatpush.bf16.msrb.mxu2 %v10478_v54  ;;  %4480 = vmatpush.bf16.msrb.mxu3 %v10479_v27 }
 0x508   : > { %4439 = vmatpush.bf16.msrb.mxu0 %v10480_v17  ;;  %4453 = vmatpush.bf16.msrb.mxu1 %v10481_v39 }
 0x509   : > { %4467 = vmatpush.bf16.msrb.mxu2 %v10482_v8  ;;  %4481 = vmatpush.bf16.msrb.mxu3 %v10483_v41 }
 0x50c   : > { %4440 = vmatpush.bf16.msrb.mxu0 %v10484_v38  ;;  %4454 = vmatpush.bf16.msrb.mxu1 %v10485_v32  ;;  %v3714_v38 = vunpack.c.h.bf16 %v5270_v3 }
 0x50d   : > { %4468 = vmatpush.bf16.msrb.mxu2 %v10486_v5  ;;  %4482 = vmatpush.bf16.msrb.mxu3 %v10487_v10  ;;  %v10507_v10 = vld [vmem:[#allocation65_spill] sm:$0xff] }
 0x510   : > { %4441 = vmatpush.bf16.msrb.mxu0 %v10488_v14  ;;  %4455 = vmatpush.bf16.msrb.mxu1 %v10489_v23  ;;  %v3717_v14 = vadd.f32 %v3709_v31, %v10507_v10 }
 0x511   : > { %4469 = vmatpush.bf16.msrb.mxu2 %v10490_v18  ;;  %4483 = vmatpush.bf16.msrb.mxu3 %v10491_v36  ;;  %v5277_v18 = vld [vmem:[%s6077_s12 + $0x220] sm:$0xff] }
 0x514   : > { %4442 = vmatpush.bf16.msrb.mxu0 %v10492_v19  ;;  %4456 = vmatpush.bf16.msrb.mxu1 %v10493_v37  ;;  %v9293_v19 = vld [vmem:[%s6077_s12 + $0x228] sm:$0xff]  ;;  %v3713_v37 = vunpack.c.l.bf16 %v5270_v3 }
 0x515   : > { %4470 = vmatpush.bf16.msrb.mxu2 %v10494_v0  ;;  %4484 = vmatpush.bf16.msrb.mxu3 %v10495_v48  ;;  %v3722_v0 = vadd.f32 %v3714_v38, %v10506_v63  ;;  %v3924_v48 = vunpack.c.l.bf16 %v5277_v18  ;;  %v9331_v38 = vld [vmem:[%s6077_s12 + $0x238] sm:$0xff] }
 0x518   : > { %4443 = vmatpush.bf16.msrb.mxu0 %v10496_v40  ;;  %4457 = vmatpush.bf16.msrb.mxu1 %v10497_v30  ;;  %v3925_v40 = vunpack.c.h.bf16 %v5277_v18 }
 0x519   : > { %4471 = vmatpush.bf16.msrb.mxu2 %v10498_v34  ;;  %4485 = vmatpush.bf16.msrb.mxu3 %v10499_v46  ;;  %v3927_v46 = vunpack.c.h.bf16 %v9293_v19 }
 0x51b   : > { %v9311_v20 = vadd.f32 %v3927_v46, %v10209_v28 }
 0x51c   : > { %4444 = vmatpush.bf16.msrb.mxu0 %v10500_v35  ;;  %4458 = vmatpush.bf16.msrb.mxu1 %v10501_v45  ;;  %v3721_v45 = vadd.f32 %v3713_v37, %v10507_v10 }
 0x51d   : > { %4472 = vmatpush.bf16.msrb.mxu2 %v10502_v16  ;;  %4486 = vmatpush.bf16.msrb.mxu3 %v10503_v44  ;;  %v5279_v16 = vld [vmem:[%s6077_s12 + $0x230] sm:$0xff] }
 0x55a   : > { %v3738_v22 = vpop.f32.mrf.mxu0  ;;  %v3752_v57 = vpop.f32.mrf.mxu1 }
 0x55b   : > { %v3785_v25 = vadd.f32 %v3738_v22, %v3715_v62  ;;  %v3786_v43 = vadd.f32 %v3752_v57, %v3716_v47  ;;  %v3932_v62 = vadd.f32 %v3924_v48, %v10508_v1  ;;  %v10509_v47 = vld [vmem:[#allocation67_spill] sm:$0xff]  ;;  %v3926_v57 = vunpack.c.l.bf16 %v9293_v19 }
 0x55c   : > { %v9305_v21 = vadd.f32 %v3925_v40, %v10509_v47 }
 0x55d   : > { %v5271_v26 = vmul.f32 -1.442695, %v3785_v25  ;;  %v5273_v12 = vmul.f32 -1.442695, %v3786_v43 }
 0x55f   : > { %5877 = vpow2.f32 %v5271_v26  ;;  %v3928_v26 = vunpack.c.l.bf16 %v5279_v16 }
 0x560   : > { %5879 = vpow2.f32 %v5273_v12 }
 0x561   : > { %v3780_v33 = vpop.f32.mrf.mxu3  ;;  %v3766_v8 = vpop.f32.mrf.mxu2  ;;  %v9344_v48 = vadd.f32 %v3928_v26, %v10508_v1 }
 0x562   : > { %v3788_v15 = vadd.f32 %v3780_v33, %v3718_v51  ;;  %v3740_v42 = vpop.f32.mrf.mxu0  ;;  %v3754_v55 = vpop.f32.mrf.mxu1  ;;  %v3787_v30 = vadd.f32 %v3766_v8, %v3717_v14 }
 0x563   : > { %v3789_v54 = vadd.f32 %v3740_v42, %v3719_v58  ;;  %v3790_v27 = vadd.f32 %v3754_v55, %v3720_v59  ;;  %v9360_v26 = vpop.permute.xlu0 %4147 }
 0x564   : > { %v5275_v17 = vmul.f32 -1.442695, %v3788_v15  ;;  %vm4152_vm13 = vcmp.eq.s32.totalorder %v9360_v26, 1 }
 0x565   : > { %v5878_v39 = vpop.eup %5877  ;;  %v5272_v41 = vmul.f32 -1.442695, %v3789_v54  ;;  %v5274_v23 = vmul.f32 -1.442695, %v3790_v27  ;;  %v3929_v54 = vunpack.c.h.bf16 %v5279_v16 }
 0x566   : > { %v5880_v32 = vpop.eup %5879  ;;  %v9286_v5 = vadd.f32 1.0, %v5878_v39  ;;  %5881 = vpow2.f32 %v5275_v17 }
 0x567   : > { %v9290_v36 = vadd.f32 1.0, %v5880_v32  ;;  %5883 = vpow2.f32 %v5272_v41 }
 0x568   : > { %5885 = vrcp.f32 %v9286_v5  ;;  %v3810_v56 = vand.u32 2147483647, %v9286_v5  ;;  %v3812_v59 = vand.u32 2147483648, %v9286_v5  ;;  %vm3806_vm6 = vweird.f32 %v9286_v5 }
 0x569   : > { %5887 = vrcp.f32 %v9290_v36  ;;  %v3782_v34 = vpop.f32.mrf.mxu3  ;;  %v3768_v53 = vpop.f32.mrf.mxu2  ;;  %v3850_v58 = vand.u32 2147483648, %v9290_v36  ;;  %v3848_v33 = vand.u32 2147483647, %v9290_v36  ;;  %vm3844_vm12 = vweird.f32 %v9290_v36 }
 0x56a   : > { %5889 = vpow2.f32 %v5274_v23  ;;  %v3792_v60 = vadd.f32 %v3782_v34, %v3722_v0  ;;  %v3791_v3 = vadd.f32 %v3768_v53, %v3721_v45  ;;  %vm9326_vm15 = vcmp.eq.f32.partialorder %v3810_v56, 8.507059e+37 }
 0x56b   : > { %5891 = vtanh.f32 %v3787_v30  ;;  %v3813_v41 = vor.u32 1.1754944e-38, %v3812_v59  ;;  %v3851_v14 = vor.u32 1.1754944e-38, %v3850_v58  ;;  %vm9335_vm1 = vcmp.eq.f32.partialorder %v3848_v33, 8.507059e+37 }
 0x56c   : > { %v5882_v35 = vpop.eup %5881  ;;  %v5276_v42 = vmul.f32 -1.442695, %v3792_v60  ;;  %v9351_v34 = vadd.f32 %v3929_v54, %v10509_v47 }
 0x56d   : > { %v5884_v44 = vpop.eup %5883  ;;  %v9301_v49 = vadd.f32 1.0, %v5882_v35 }
 0x56e   : > { %v5886_v29 = vpop.eup %5885  ;;  %v9307_v22 = vadd.f32 1.0, %v5884_v44 }
 0x56f   : > { %v5888_v25 = vpop.eup %5887  ;;  %v3802_v43 = vmul.f32 %v5886_v29, %v9286_v5  ;;  %5893 = vrcp.f32 %v9301_v49  ;;  %vm3807_vm14 = vweird.f32 %v5886_v29  ;;  %v3931_v5 = vunpack.c.h.bf16 %v9331_v38 }
 0x570   : > { %v5890_v12 = vpop.eup %5889  ;;  %v3840_v51 = vmul.f32 %v5888_v25, %v9290_v36  ;;  %5895 = vrcp.f32 %v9307_v22  ;;  %vm3845_vm3 = vweird.f32 %v5888_v25  ;;  %vm3808_vm10 = vmor %vm3806_vm6, %vm3807_vm14  ;;  %vm3821_vm11 = vweird.f32 %v9307_v22 }
 0x571   : > { %v3803_v31 = vsub.f32 1.0, %v3802_v43  ;;  %v9321_v15 = vadd.f32 1.0, %v5890_v12  ;;  %v5892_v17 = vpop.eup %5891  ;;  %vm3846_vm4 = vmor %vm3844_vm12, %vm3845_vm3  ;;  %v3825_v56 = vand.u32 2147483647, %v9307_v22  ;;  %vm3884_vm7 = vweird.f32 %v9301_v49 }
 0x572   : > { %v3841_v55 = vsub.f32 1.0, %v3840_v51  ;;  %v3827_v33 = vand.u32 2147483648, %v9307_v22  ;;  %v3939_v19 = vadd.f32 %v3931_v5, %v10209_v28 }
 0x573   : > { %v3804_v27 = vmul.f32 %v5886_v29, %v3803_v31  ;;  %5897 = vrcp.f32 %v9321_v15  ;;  %vm3859_vm5 = vweird.f32 %v9321_v15  ;;  %v3865_v59 = vand.u32 2147483648, %v9321_v15 }
 0x574   : > { %v3842_v39 = vmul.f32 %v5888_v25, %v3841_v55  ;;  %5899 = vpow2.f32 %v5276_v42  ;;  %vm3826_vm9 = vcmp.eq.f32.partialorder %v3825_v56, 8.507059e+37 }
 0x575   : > { %v9333_v32 = vpop.eup %5893  ;;  %v3805_v23 = vadd.f32 %v5886_v29, %v3804_v27  ;;  %5901 = vtanh.f32 %v3791_v3 }
 0x576   : > { %v3843_v37 = vadd.f32 %v5888_v25, %v3842_v39  ;;  %v3880_v0 = vmul.f32 %v9333_v32, %v9301_v49  ;;  %v5896_v40 = vpop.eup %5895  ;;  %vm3885_vm6 = vweird.f32 %v9333_v32 }
 0x577   : > { %v3809_v30 = vsel %vm3808_vm10, %v5886_v29, %v3805_v23  ;;  %v3817_v16 = vmul.f32 %v5896_v40, %v9307_v22  ;;  %v3955_v44 = vpop.f32.mrf.mxu0  ;;  %v3969_v60 = vpop.f32.mrf.mxu1  ;;  %vm3822_vm0 = vweird.f32 %v5896_v40  ;;  %v3866_v23 = vor.u32 1.1754944e-38, %v3865_v59  ;;  %vm9390_vm3 = vmor %vm3884_vm7, %vm3885_vm6 }
 0x578   : > { %v3814_v46 = vsel %vm9326_vm15, %v3813_v41, %v3809_v30  ;;  %v3847_v35 = vsel %vm3846_vm4, %v5888_v25, %v3843_v37  ;;  %v3881_v45 = vsub.f32 1.0, %v3880_v0  ;;  %v4002_v53 = vadd.f32 %v3955_v44, %v3932_v62  ;;  %vm3823_vm8 = vmor %vm3821_vm11, %vm3822_vm0 }
 0x579   : > { %v5898_v43 = vpop.eup %5897  ;;  %v3852_v36 = vsel %vm9335_vm1, %v3851_v14, %v3847_v35  ;;  %v3911_v29 = vmul.f32 %v5892_v17, %v3814_v46  ;;  %v3818_v51 = vsub.f32 1.0, %v3817_v16  ;;  %v4003_v62 = vadd.f32 %v3969_v60, %v9305_v21 }
 0x57a   : > { %v3909_v12 = vmul.f32 %v3852_v36, %v9100_v13  ;;  %v3855_v25 = vmul.f32 %v5898_v43, %v9321_v15  ;;  %v5900_v58 = vpop.eup %5899  ;;  %v5281_v31 = vmul.f32 -1.442695, %v4002_v53  ;;  %v3882_v55 = vmul.f32 %v9333_v32, %v3881_v45 }
 0x57b   : > { %v5902_v42 = vpop.eup %5901  ;;  %v3819_v54 = vmul.f32 %v5896_v40, %v3818_v51  ;;  %v9371_v17 = vadd.f32 1.0, %v5900_v58  ;;  %v5283_v39 = vmul.f32 -1.442695, %v4003_v62  ;;  %vm3860_vm2 = vweird.f32 %v5898_v43 }
 0x57c   : > { %v3856_v3 = vsub.f32 1.0, %v3855_v25  ;;  %v3913_v27 = vadd.f32 %v3911_v29, %v3909_v12  ;;  %5903 = vpow2.f32 %v5281_v31  ;;  %v3863_v14 = vand.u32 2147483647, %v9321_v15  ;;  %vm3861_vm12 = vmor %vm3859_vm5, %vm3860_vm2 }
 0x57d   : > { %v3820_v41 = vadd.f32 %v5896_v40, %v3819_v54  ;;  %v3828_v21 = vor.u32 1.1754944e-38, %v3827_v33  ;;  %5905 = vrcp.f32 %v9371_v17  ;;  %v3883_v35 = vadd.f32 %v9333_v32, %v3882_v55 }
 0x57e   : > { %v3857_v8 = vmul.f32 %v5898_v43, %v3856_v3  ;;  %v3997_v18 = vpop.f32.mrf.mxu3  ;;  %5907 = vpow2.f32 %v5283_v39  ;;  %vm3864_vm14 = vcmp.eq.f32.partialorder %v3863_v14, 8.507059e+37  ;;  %v3890_v36 = vand.u32 2147483648, %v9301_v49 }
 0x57f   : > { %v3824_v37 = vsel %vm3823_vm8, %v5896_v40, %v3820_v41  ;;  %v3957_v30 = vpop.f32.mrf.mxu0  ;;  %v3971_v46 = vpop.f32.mrf.mxu1  ;;  %5909 = vtanh.f32 %v3913_v27  ;;  %v4005_v45 = vadd.f32 %v3997_v18, %v9311_v20  ;;  %v3888_v20 = vand.u32 2147483647, %v9301_v49 }
 0x580   : > { %v3858_v0 = vadd.f32 %v5898_v43, %v3857_v8  ;;  %v3829_v22 = vsel %vm3826_vm9, %v3828_v21, %v3824_v37  ;;  %v4006_v60 = vadd.f32 %v3957_v30, %v9344_v48  ;;  %v4007_v53 = vadd.f32 %v3971_v46, %v9351_v34  ;;  %v9423_v41 = vpop.permute.xlu1 %4150  ;;  %vm4180_vm9 = vmpackc.low %vm4152_vm13, %vm4152_vm13 }
 0x581   : > { %v3912_v44 = vmul.f32 %v5902_v42, %v3829_v22  ;;  %v5285_v56 = vmul.f32 -1.442695, %v4005_v45  ;;  %v9401_v12 = vsel %vm4152_vm13, %v3913_v27, %v9100_v13  ;;  %v3887_v51 = vsel %vm9390_vm3, %v9333_v32, %v3883_v35  ;;  %v3983_v13 = vpop.f32.mrf.mxu2 }
 0x582   : > { %v3862_v16 = vsel %vm3861_vm12, %v5898_v43, %v3858_v0  ;;  %v5904_v40 = vpop.eup %5903  ;;  %v3934_v25 = vadd.f32 %v3926_v57, %v10131_v11  ;;  %v3930_v49 = vunpack.c.l.bf16 %v9331_v38  ;;  %v5282_v31 = vmul.f32 -1.442695, %v4006_v60 }
 0x583   : > { %v3867_v29 = vsel %vm3864_vm14, %v3866_v23, %v3862_v16  ;;  %v9396_v48 = vadd.f32 1.0, %v5904_v40  ;;  %v5906_v34 = vpop.eup %5905  ;;  %5911 = vpow2.f32 %v5285_v56  ;;  %v3891_v42 = vor.u32 1.1754944e-38, %v3890_v36 }
 0x584   : > { %v3910_v43 = vmul.f32 %v3867_v29, %v9158_v24  ;;  %v5908_v58 = vpop.eup %5907  ;;  %v3895_v33 = vmul.f32 %v5906_v34, %v9371_v17  ;;  %v5284_v32 = vmul.f32 -1.442695, %v4007_v53  ;;  %vm3889_vm15 = vcmp.eq.f32.partialorder %v3888_v20, 8.507059e+37 }
 0x585   : > { %5913 = vrcp.f32 %v9396_v48  ;;  %v5910_v62 = vpop.eup %5909  ;;  %v9414_v55 = vadd.f32 1.0, %v5908_v58  ;;  %v3905_v3 = vand.u32 2147483648, %v9371_v17  ;;  %v3892_v27 = vsel %vm3889_vm15, %v3891_v42, %v3887_v51 }
 0x586   : > { %v9410_v59 = vadd.f32 %v3912_v44, %v3910_v43  ;;  %v3896_v57 = vsub.f32 1.0, %v3895_v33  ;;  %v3999_v54 = vpop.f32.mrf.mxu3  ;;  %v3903_v39 = vand.u32 2147483647, %v9371_v17  ;;  %v4004_v8 = vadd.f32 %v3983_v13, %v3934_v25 }
 0x587   : > { %v9425_v14 = vmul.f32 %v5910_v62, %v3892_v27  ;;  %vm3900_vm1 = vweird.f32 %v5906_v34  ;;  %vm4153_vm10 = vcmp.eq.s32.totalorder %v9423_v41, 1  ;;  %v3938_v5 = vadd.f32 %v3930_v49, %v10131_v11 }
 0x588   : > { %5915 = vtanh.f32 %v9410_v59  ;;  %v3897_v23 = vmul.f32 %v5906_v34, %v3896_v57  ;;  %v4009_v21 = vadd.f32 %v3999_v54, %v3939_v19  ;;  %vm3899_vm4 = vweird.f32 %v9371_v17  ;;  %vm4181_vm12 = vmpackc.low %vm4153_vm10, %vm4153_vm10 }
 0x589   : > { %5917 = vrcp.f32 %v9414_v55  ;;  %v5912_v38 = vpop.eup %5911  ;;  %v3906_v0 = vor.u32 1.1754944e-38, %v3905_v3  ;;  %vm3901_vm11 = vmor %vm3899_vm4, %vm3900_vm1  ;;  %v4029_v35 = vand.u32 2147483648, %v9396_v48  ;;  %v4154_v16 = vsel %vm4152_vm13, %v9425_v14, 0.0  ;;  %v3985_v57 = vpop.f32.mrf.mxu2 }
 0x58a   : > { %5919 = vpow2.f32 %v5282_v31  ;;  %v3898_v37 = vadd.f32 %v5906_v34, %v3897_v23  ;;  %v9430_v30 = vadd.f32 1.0, %v5912_v38  ;;  %v5286_v22 = vmul.f32 -1.442695, %v4009_v21 }
 0x58b   : > { %5921 = vpow2.f32 %v5284_v32  ;;  %v5914_v18 = vpop.eup %5913  ;;  %vm3904_vm5 = vcmp.eq.f32.partialorder %v3903_v39, 8.507059e+37  ;;  %vm4023_vm7 = vweird.f32 %v9396_v48  ;;  %v4067_v53 = vand.u32 2147483648, %v9414_v55 }
 0x58c   : > { %v4019_v46 = vmul.f32 %v5914_v18, %v9396_v48  ;;  %5923 = vtanh.f32 %v4004_v8  ;;  %v3902_v44 = vsel %vm3901_vm11, %v5906_v34, %v3898_v37  ;;  %v4027_v15 = vand.u32 2147483647, %v9396_v48 }
 0x58d   : > { %5925 = vrcp.f32 %v9430_v30  ;;  %v3907_v60 = vsel %vm3904_vm5, %v3906_v0, %v3902_v44  ;;  %vm4024_vm0 = vweird.f32 %v5914_v18  ;;  %v4030_v34 = vor.u32 1.1754944e-38, %v4029_v35 }
 0x58e   : > { %v5916_v45 = vpop.eup %5915  ;;  %v4020_v40 = vsub.f32 1.0, %v4019_v46  ;;  %5927 = vpow2.f32 %v5286_v22  ;;  %v4065_v58 = vand.u32 2147483647, %v9414_v55  ;;  %v4178_v42 = vpack.c.bf16 %v9425_v14, %v9425_v14  ;;  %vm4025_vm8 = vmor %vm4023_vm7, %vm4024_vm0  ;;  %v9478_v22 = vpop.permute.xlu2 %4164 }
 0x58f   : > { %v5918_v17 = vpop.eup %5917  ;;  %v3918_v29 = vmul.f32 %v5916_v45, %v3907_v60  ;;  %vm4028_vm6 = vcmp.eq.f32.partialorder %v4027_v15, 8.507059e+37  ;;  %vm4061_vm14 = vweird.f32 %v9414_v55  ;;  %v4068_v14 = vor.u32 1.1754944e-38, %v4067_v53 }
 0x590   : > { %v5920_v36 = vpop.eup %5919  ;;  %v4057_v56 = vmul.f32 %v5918_v17, %v9414_v55  ;;  %v4021_v43 = vmul.f32 %v5914_v18, %v4020_v40  ;;  %vm4062_vm2 = vweird.f32 %v5918_v17  ;;  %vm4066_vm15 = vcmp.eq.f32.partialorder %v4065_v58, 8.507059e+37 }
 0x591   : > { %v5922_v20 = vpop.eup %5921  ;;  %v9442_v51 = vadd.f32 1.0, %v5920_v36  ;;  %v4155_v25 = vsel %vm4153_vm10, %v3918_v29, 0.0  ;;  %v4179_v3 = vpack.c.bf16 %v3918_v29, %v3918_v29  ;;  %vm4063_vm3 = vmor %vm4061_vm14, %vm4062_vm2  ;;  %v4008_v26 = vadd.f32 %v3985_v57, %v3938_v5 }
 0x592   : > { %v4058_v49 = vsub.f32 1.0, %v4057_v56  ;;  %v9447_v33 = vadd.f32 1.0, %v5922_v20  ;;  %v5924_v13 = vpop.eup %5923  ;;  %v5448_v31 = vpack.c.bf16 %v4155_v25, %v4154_v16  ;;  %v4022_v62 = vadd.f32 %v5914_v18, %v4021_v43 }
 0x593   : > { %5929 = vrcp.f32 %v9442_v51  ;;  %v9452_v32 = vpop.eup %5925  ;;  %v9470_v23 = vsel %vm4180_vm9, %v4178_v42, %v9165_v52  ;;  %v9475_v37 = vsel %vm4181_vm12, %v4179_v3, %v9170_v7  ;;  %vm4169_vm13 = vcmp.eq.s32.totalorder %v9478_v22, 1 }
 0x594   : > { %v4059_v19 = vmul.f32 %v5918_v17, %v4058_v49  ;;  %5931 = vrcp.f32 %v9447_v33  ;;  %v5928_v54 = vpop.eup %5927  ;;  %5476 = vst [vmem:[%s6082_s15 + $0x30] sm:$0xff] %v5448_v31   ;;  %v4026_v27 = vsel %vm4025_vm8, %v5914_v18, %v4022_v62  ;;  %v4097_v8 = vmul.f32 %v9452_v32, %v9430_v30 }
 0x595   : > { %v4031_v48 = vsel %vm4028_vm6, %v4030_v34, %v4026_v27  ;;  %v9472_v18 = vadd.f32 1.0, %v5928_v54  ;;  %v4218_v46 = vunpack.c.l.b16 %v9475_v37  ;;  %v4217_v7 = vunpack.c.l.b16 %v9470_v23 }
 0x596   : > { %v4060_v39 = vadd.f32 %v5918_v17, %v4059_v19  ;;  %v4128_v21 = vmul.f32 %v5924_v13, %v4031_v48  ;;  %v4098_v5 = vsub.f32 1.0, %v4097_v8  ;;  %vm4038_vm1 = vweird.f32 %v9442_v51 }
 0x597   : > { %5933 = vrcp.f32 %v9472_v18  ;;  %v4082_v36 = vand.u32 2147483648, %v9447_v33  ;;  %v4044_v29 = vand.u32 2147483648, %v9442_v51  ;;  %v4219_v56 = vpack.c.b16 %v4218_v46, %v4217_v7 }
 0x598   : > { %v4064_v38 = vsel %vm4063_vm3, %v5918_v17, %v4060_v39  ;;  %5935 = vtanh.f32 %v4008_v26  ;;  %v4107_v17 = vand.u32 2147483648, %v9430_v30  ;;  %v4099_v53 = vmul.f32 %v9452_v32, %v4098_v5 }
 0x599   : > { %v5930_v55 = vpop.eup %5929  ;;  %v4069_v0 = vsel %vm4066_vm15, %v4068_v14, %v4064_v38  ;;  %v4042_v20 = vand.u32 2147483647, %v9442_v51  ;;  %v4080_v34 = vand.u32 2147483647, %v9447_v33  ;;  %4229 = vmatmul.bf16.vlgmr.msra.gmra.mxu0 %v4219_v56  ;;  %4243 = vmatmul.bf16.vlgmr.msra.gmra.mxu1 %v4219_v56  ;;  %v9497_v25 = vsel %vm4153_vm10, %v9410_v59, %v9158_v24  ;;  %v4168_v14 = vpop.permute.xlu0 %4167 }
 0x59a   : > { %v5932_v35 = vpop.eup %5931  ;;  %v4126_v45 = vmul.f32 %v4069_v0, %v9175_v6  ;;  %v4034_v52 = vmul.f32 %v5930_v55, %v9442_v51  ;;  %vm4039_vm4 = vweird.f32 %v5930_v55  ;;  %vm4102_vm5 = vweird.f32 %v9452_v32  ;;  %4257 = vmatmul.bf16.vlgmr.msra.gmra.mxu2 %v4219_v56  ;;  %4271 = vmatmul.bf16.vlgmr.msra.gmra.mxu3 %v4219_v56 }
 0x59b   : > { %v4072_v16 = vmul.f32 %v5932_v35, %v9447_v33  ;;  %vm4077_vm11 = vweird.f32 %v5932_v35  ;;  %vm4076_vm7 = vweird.f32 %v9447_v33  ;;  %vm4040_vm10 = vmor %vm4038_vm1, %vm4039_vm4  ;;  %v4045_v24 = vor.u32 1.1754944e-38, %v4044_v29 }
 0x59c   : > { %v4130_v44 = vadd.f32 %v4128_v21, %v4126_v45  ;;  %v4035_v60 = vsub.f32 1.0, %v4034_v52  ;;  %v4100_v33 = vadd.f32 %v9452_v32, %v4099_v53  ;;  %vm4078_vm0 = vmor %vm4076_vm7, %vm4077_vm11  ;;  %v4083_v62 = vor.u32 1.1754944e-38, %v4082_v36 }
 0x59d   : > { %v4073_v40 = vsub.f32 1.0, %v4072_v16  ;;  %v5934_v49 = vpop.eup %5933  ;;  %vm4043_vm2 = vcmp.eq.f32.partialorder %v4042_v20, 8.507059e+37  ;;  %vm4081_vm8 = vcmp.eq.f32.partialorder %v4080_v34, 8.507059e+37  ;;  %vm4101_vm9 = vweird.f32 %v9430_v30  ;;  %vm4188_vm11 = vmpackc.low %vm4169_vm13, %vm4169_vm13 }
 0x59e   : > { %v4036_v15 = vmul.f32 %v5930_v55, %v4035_v60  ;;  %v9504_v13 = vsel %vm4169_vm13, %v4130_v44, %v9175_v6  ;;  %v5936_v31 = vpop.eup %5935  ;;  %5937 = vtanh.f32 %v4130_v44  ;;  %v4112_v41 = vmul.f32 %v5934_v49, %v9472_v18  ;;  %vm4103_vm6 = vmor %vm4101_vm9, %vm4102_vm5 }
 0x59f   : > { %v4074_v43 = vmul.f32 %v5932_v35, %v4073_v40  ;;  %v4105_v51 = vand.u32 2147483647, %v9430_v30  ;;  %v4104_v39 = vsel %vm4103_vm6, %v9452_v32, %v4100_v33  ;;  %v4108_v26 = vor.u32 1.1754944e-38, %v4107_v17 }
 0x5a0   : > { %v4037_v58 = vadd.f32 %v5930_v55, %v4036_v15  ;;  %v4113_v57 = vsub.f32 1.0, %v4112_v41  ;;  %vm4170_vm12 = vcmp.eq.s32.totalorder %v4168_v14, 1  ;;  %vm4117_vm3 = vweird.f32 %v5934_v49 }
 0x5a1   : > { %v4075_v59 = vadd.f32 %v5932_v35, %v4074_v43  ;;  %vm4106_vm14 = vcmp.eq.f32.partialorder %v4105_v51, 8.507059e+37  ;;  %v4122_v30 = vand.u32 2147483648, %v9472_v18  ;;  %vm4116_vm15 = vweird.f32 %v9472_v18  ;;  %vm4189_vm5 = vmpackc.low %vm4170_vm12, %vm4170_vm12  ;;  %v5292_v43 = vld [vmem:[%s6072_s8 + $0xe8] sm:$0xff] }
 0x5a2   : > { %v4041_v42 = vsel %vm4040_vm10, %v5930_v55, %v4037_v58  ;;  %v4114_v48 = vmul.f32 %v5934_v49, %v4113_v57  ;;  %v4109_v55 = vsel %vm4106_vm14, %v4108_v26, %v4104_v39  ;;  %v4120_v32 = vand.u32 2147483647, %v9472_v18  ;;  %vm4118_vm1 = vmor %vm4116_vm15, %vm4117_vm3  ;;  %v5294_v39 = vld [vmem:[%s6072_s8 + $0xf8] sm:$0xff] }
 0x5a3   : > { %v4046_v19 = vsel %vm4043_vm2, %v4045_v24, %v4041_v42  ;;  %v4079_v6 = vsel %vm4078_vm0, %v5932_v35, %v4075_v59  ;;  %v4123_v45 = vor.u32 1.1754944e-38, %v4122_v30  ;;  %v4202_v58 = vunpack.c.h.bf16 %v5292_v43 }
 0x5a4   : > { %v4084_v3 = vsel %vm4081_vm8, %v4083_v62, %v4079_v6  ;;  %v4129_v54 = vmul.f32 %v5936_v31, %v4046_v19  ;;  %v5938_v8 = vpop.eup %5937  ;;  %v4115_v21 = vadd.f32 %v5934_v49, %v4114_v48  ;;  %vm4121_vm4 = vcmp.eq.f32.partialorder %v4120_v32, 8.507059e+37 }
 0x5a5   : > { %v4127_v27 = vmul.f32 %v4084_v3, %v9198_v9  ;;  %v4134_v46 = vmul.f32 %v5938_v8, %v4109_v55  ;;  %v4210_v42 = vadd.f32 %v4202_v58, %v10506_v63  ;;  %v4201_v57 = vunpack.c.l.bf16 %v5292_v43 }
 0x5a6   : > { %v4119_v35 = vsel %vm4118_vm1, %v5934_v49, %v4115_v21  ;;  %v4206_v30 = vunpack.c.h.bf16 %v5294_v39 }
 0x5a7   : > { %v4131_v38 = vadd.f32 %v4129_v54, %v4127_v27  ;;  %v4186_v5 = vpack.c.bf16 %v4134_v46, %v4134_v46  ;;  %v4124_v16 = vsel %vm4121_vm4, %v4123_v45, %v4119_v35  ;;  %v4209_v26 = vadd.f32 %v4201_v57, %v10507_v10 }
 0x5a8   : > { %v4205_v35 = vunpack.c.l.bf16 %v5294_v39 }
 0x5a9   : > { %5939 = vtanh.f32 %v4131_v38  ;;  %v9521_v0 = vsel %vm4170_vm12, %v4131_v38, %v9198_v9  ;;  %v4171_v9 = vsel %vm4169_vm13, %v4134_v46, 0.0  ;;  %v9532_v17 = vsel %vm4188_vm11, %v4186_v5, %v9225_v4  ;;  %v5291_v4 = vld [vmem:[%s6072_s8 + $0xe0] sm:$0xff] }
 0x5aa   : > { %v4433_v22 = vunpack.c.l.b16 %v9532_v17  ;;  %v4199_v56 = vunpack.c.l.bf16 %v5291_v4  ;;  %v4200_v53 = vunpack.c.h.bf16 %v5291_v4  ;;  %v5302_v4 = vld [vmem:[%s6077_s12 + $0x208] sm:$0xff] }
 0x5ac   : > { %v4207_v15 = vadd.f32 %v4199_v56, %v10504_v50  ;;  %v4208_v20 = vadd.f32 %v4200_v53, %v10505_v2 }
 0x5af   : > { %v5940_v52 = vpop.eup %5939 }
 0x5b0   : > { %v4135_v7 = vmul.f32 %v5940_v52, %v4124_v16  ;;  %v4214_v16 = vadd.f32 %v4206_v30, %v10506_v63 }
 0x5b2   : > { %v4172_v44 = vsel %vm4170_vm12, %v4135_v7, 0.0  ;;  %v4187_v18 = vpack.c.bf16 %v4135_v7, %v4135_v7 }
 0x5b3   : > { %v5453_v60 = vpack.c.bf16 %v4172_v44, %v4171_v9  ;;  %v4213_v9 = vadd.f32 %v4205_v35, %v10507_v10  ;;  %v5303_v10 = vld [vmem:[%s6077_s12 + $0x210] sm:$0xff] }
 0x5b4   : > { %v9537_v40 = vsel %vm4189_vm5, %v4187_v18, %v9232_v61  ;;  %v5293_v61 = vld [vmem:[%s6072_s8 + $0xf0] sm:$0xff] }
 0x5b5   : > { %5477 = vst [vmem:[%s6087_s19 + $0x8] sm:$0xff] %v5453_v60   ;;  %v4434_v36 = vunpack.c.l.b16 %v9537_v40  ;;  %v4203_v59 = vunpack.c.l.bf16 %v5293_v61  ;;  %v4204_v41 = vunpack.c.h.bf16 %v5293_v61 }
 0x5b7   : > { %v4435_v29 = vpack.c.b16 %v4434_v36, %v4433_v22  ;;  %v4211_v19 = vadd.f32 %v4203_v59, %v10504_v50  ;;  %v4212_v6 = vadd.f32 %v4204_v41, %v10505_v2  ;;  %v5301_v50 = vld [vmem:[%s6077_s12 + $0x200] sm:$0xff]  ;;  %v4417_v41 = vunpack.c.l.bf16 %v5302_v4 }
 0x5b8   : > { %v4415_v52 = vunpack.c.l.bf16 %v5301_v50  ;;  %v4416_v7 = vunpack.c.h.bf16 %v5301_v50 }
 0x5b9   : > { %4445 = vmatmul.bf16.vlgmr.msrb.gmra.mxu0 %v4435_v29  ;;  %4459 = vmatmul.bf16.vlgmr.msrb.gmra.mxu1 %v4435_v29 }
 0x5ba   : > { %4473 = vmatmul.bf16.vlgmr.msrb.gmra.mxu2 %v4435_v29  ;;  %4487 = vmatmul.bf16.vlgmr.msrb.gmra.mxu3 %v4435_v29  ;;  %v4423_v29 = vadd.f32 %v4415_v52, %v10508_v1 }
 0x616   : > { %v4230_v34 = vpop.f32.mrf.mxu0  ;;  %v4244_v49 = vpop.f32.mrf.mxu1 }
 0x617   : > { %v4277_v31 = vadd.f32 %v4230_v34, %v4207_v15  ;;  %v4278_v24 = vadd.f32 %v4244_v49, %v4208_v20  ;;  %v4424_v15 = vadd.f32 %v4416_v7, %v10509_v47 }
 0x619   : > { %v5295_v33 = vmul.f32 -1.442695, %v4277_v31  ;;  %v5297_v62 = vmul.f32 -1.442695, %v4278_v24 }
 0x61b   : > { %5941 = vpow2.f32 %v5295_v33 }
 0x61c   : > { %5943 = vpow2.f32 %v5297_v62 }
 0x61d   : > { %v4258_v51 = vpop.f32.mrf.mxu2  ;;  %v4272_v3 = vpop.f32.mrf.mxu3 }
 0x61e   : > { %v4280_v54 = vadd.f32 %v4272_v3, %v4210_v42  ;;  %v4232_v27 = vpop.f32.mrf.mxu0  ;;  %v4246_v48 = vpop.f32.mrf.mxu1  ;;  %v4279_v5 = vadd.f32 %v4258_v51, %v4209_v26  ;;  %v4418_v42 = vunpack.c.h.bf16 %v5302_v4  ;;  %v9593_v26 = vadd.f32 %v4417_v41, %v10131_v11 }
 0x61f   : > { %v4281_v8 = vadd.f32 %v4232_v27, %v4211_v19  ;;  %v4282_v14 = vadd.f32 %v4246_v48, %v4212_v6  ;;  %v4419_v19 = vunpack.c.l.bf16 %v5303_v10  ;;  %v4420_v6 = vunpack.c.h.bf16 %v5303_v10  ;;  %v9630_v41 = vpop.permute.xlu2 %4640 }
 0x620   : > { %v5299_v38 = vmul.f32 -1.442695, %v4280_v54  ;;  %v4426_v30 = vadd.f32 %v4418_v42, %v10209_v28  ;;  %vm4643_vm11 = vcmp.eq.s32.totalorder %v9630_v41, 1 }
 0x621   : > { %v5942_v21 = vpop.eup %5941  ;;  %v5296_v55 = vmul.f32 -1.442695, %v4281_v8  ;;  %v5298_v32 = vmul.f32 -1.442695, %v4282_v14  ;;  %v9589_v8 = vpop.permute.xlu1 %4637  ;;  %v9597_v50 = vadd.f32 %v4419_v19, %v10508_v1 }
 0x622   : > { %v5944_v46 = vpop.eup %5943  ;;  %v9553_v2 = vadd.f32 1.0, %v5942_v21  ;;  %5945 = vpow2.f32 %v5299_v38  ;;  %vm4642_vm9 = vcmp.eq.s32.totalorder %v9589_v8, 1 }
 0x623   : > { %v9555_v45 = vadd.f32 1.0, %v5944_v46  ;;  %5947 = vpow2.f32 %v5296_v55 }
 0x624   : > { %5949 = vrcp.f32 %v9553_v2  ;;  %v4302_v18 = vand.u32 2147483647, %v9553_v2  ;;  %v4304_v60 = vand.u32 2147483648, %v9553_v2  ;;  %vm4298_vm13 = vweird.f32 %v9553_v2 }
 0x625   : > { %5951 = vrcp.f32 %v9555_v45  ;;  %v4274_v44 = vpop.f32.mrf.mxu3  ;;  %v4260_v22 = vpop.f32.mrf.mxu2  ;;  %vm4336_vm7 = vweird.f32 %v9555_v45  ;;  %v4342_v43 = vand.u32 2147483648, %v9555_v45  ;;  %v4340_v61 = vand.u32 2147483647, %v9555_v45 }
 0x626   : > { %5953 = vpow2.f32 %v5298_v32  ;;  %v4284_v53 = vadd.f32 %v4274_v44, %v4214_v16  ;;  %v4283_v49 = vadd.f32 %v4260_v22, %v4213_v9  ;;  %vm9576_vm10 = vcmp.eq.f32.partialorder %v4302_v18, 8.507059e+37 }
 0x627   : > { %5955 = vtanh.f32 %v4279_v5  ;;  %v4305_v59 = vor.u32 1.1754944e-38, %v4304_v60  ;;  %v4343_v48 = vor.u32 1.1754944e-38, %v4342_v43  ;;  %vm9585_vm0 = vcmp.eq.f32.partialorder %v4340_v61, 8.507059e+37 }
 0x628   : > { %v5946_v36 = vpop.eup %5945  ;;  %v5300_v3 = vmul.f32 -1.442695, %v4284_v53  ;;  %v9603_v5 = vadd.f32 %v4420_v6, %v10509_v47 }
 0x629   : > { %v5948_v56 = vpop.eup %5947  ;;  %v9566_v63 = vadd.f32 1.0, %v5946_v36 }
 0x62a   : > { %v5950_v20 = vpop.eup %5949  ;;  %v9573_v34 = vadd.f32 1.0, %v5948_v56 }
 0x62b   : > { %v5952_v58 = vpop.eup %5951  ;;  %v4294_v31 = vmul.f32 %v5950_v20, %v9553_v2  ;;  %5957 = vrcp.f32 %v9566_v63  ;;  %vm4299_vm2 = vweird.f32 %v5950_v20  ;;  %vm4376_vm12 = vweird.f32 %v9566_v63 }
 0x62c   : > { %v5954_v33 = vpop.eup %5953  ;;  %v4332_v62 = vmul.f32 %v5952_v58, %v9555_v45  ;;  %5959 = vrcp.f32 %v9573_v34  ;;  %vm4337_vm8 = vweird.f32 %v5952_v58  ;;  %vm4300_vm6 = vmor %vm4298_vm13, %vm4299_vm2  ;;  %v4380_v1 = vand.u32 2147483647, %v9566_v63 }
 0x62d   : > { %v4295_v57 = vsub.f32 1.0, %v4294_v31  ;;  %v9583_v51 = vadd.f32 1.0, %v5954_v33  ;;  %v5956_v54 = vpop.eup %5955  ;;  %5961 = vtanh.f32 %v4283_v49  ;;  %v4382_v7 = vand.u32 2147483648, %v9566_v63  ;;  %vm4338_vm14 = vmor %vm4336_vm7, %vm4337_vm8 }
 0x62e   : > { %v4333_v27 = vsub.f32 1.0, %v4332_v62  ;;  %vm4313_vm3 = vweird.f32 %v9573_v34  ;;  %v4317_v2 = vand.u32 2147483647, %v9573_v34  ;;  %vm4381_vm8 = vcmp.eq.f32.partialorder %v4380_v1, 8.507059e+37 }
 0x62f   : > { %v4296_v14 = vmul.f32 %v5950_v20, %v4295_v57  ;;  %5963 = vrcp.f32 %v9583_v51  ;;  %v4357_v10 = vand.u32 2147483648, %v9583_v51  ;;  %v4355_v31 = vand.u32 2147483647, %v9583_v51 }
 0x630   : > { %v4334_v38 = vmul.f32 %v5952_v58, %v4333_v27  ;;  %5965 = vpow2.f32 %v5300_v3  ;;  %v4383_v39 = vor.u32 1.1754944e-38, %v4382_v7  ;;  %vm4351_vm13 = vweird.f32 %v9583_v51 }
 0x631   : > { %v9599_v46 = vpop.eup %5957  ;;  %v4297_v32 = vadd.f32 %v5950_v20, %v4296_v14  ;;  %vm4356_vm2 = vcmp.eq.f32.partialorder %v4355_v31, 8.507059e+37 }
 0x632   : > { %v4335_v52 = vadd.f32 %v5952_v58, %v4334_v38  ;;  %v4372_v16 = vmul.f32 %v9599_v46, %v9566_v63  ;;  %v5960_v9 = vpop.eup %5959  ;;  %vm4377_vm15 = vweird.f32 %v9599_v46 }
 0x633   : > { %v4301_v47 = vsel %vm4300_vm6, %v5950_v20, %v4297_v32  ;;  %v5962_v60 = vpop.eup %5961  ;;  %v4309_v4 = vmul.f32 %v5960_v9, %v9573_v34  ;;  %vm4314_vm1 = vweird.f32 %v5960_v9  ;;  %vm9643_vm5 = vmor %vm4376_vm12, %vm4377_vm15 }
 0x634   : > { %v4306_v22 = vsel %vm9576_vm10, %v4305_v59, %v4301_v47  ;;  %v4339_v36 = vsel %vm4338_vm14, %v5952_v58, %v4335_v52  ;;  %v4319_v58 = vand.u32 2147483648, %v9573_v34  ;;  %vm4315_vm7 = vmor %vm4313_vm3, %vm4314_vm1  ;;  %vm4318_vm10 = vcmp.eq.f32.partialorder %v4317_v2, 8.507059e+37 }
 0x635   : > { %v5964_v56 = vpop.eup %5963  ;;  %v4344_v45 = vsel %vm9585_vm0, %v4343_v48, %v4339_v36  ;;  %v4403_v53 = vmul.f32 %v5956_v54, %v4306_v22  ;;  %v4310_v43 = vsub.f32 1.0, %v4309_v4  ;;  %v9667_v4 = vld [vmem:[%s6077_s12 + $0x218] sm:$0xff]  ;;  %vm4669_vm6 = vmpackc.low %vm4642_vm9, %vm4642_vm9 }
 0x636   : > { %v4446_v21 = vpop.f32.mrf.mxu0  ;;  %v4460_v55 = vpop.f32.mrf.mxu1  ;;  %v4401_v20 = vmul.f32 %v4344_v45, %v9401_v12  ;;  %v4347_v61 = vmul.f32 %v5964_v56, %v9583_v51  ;;  %vm4352_vm4 = vweird.f32 %v5964_v56  ;;  %v4320_v38 = vor.u32 1.1754944e-38, %v4319_v58 }
 0x637   : > { %v4493_v35 = vadd.f32 %v4446_v21, %v4423_v29  ;;  %v4494_v18 = vadd.f32 %v4460_v55, %v4424_v15  ;;  %v4373_v29 = vsub.f32 1.0, %v4372_v16  ;;  %v5966_v49 = vpop.eup %5965  ;;  %v4311_v42 = vmul.f32 %v5960_v9, %v4310_v43  ;;  %vm4353_vm0 = vmor %vm4351_vm13, %vm4352_vm4 }
 0x638   : > { %v4405_v33 = vadd.f32 %v4403_v53, %v4401_v20  ;;  %v4348_v62 = vsub.f32 1.0, %v4347_v61  ;;  %v9633_v6 = vadd.f32 1.0, %v5966_v49  ;;  %v4358_v51 = vor.u32 1.1754944e-38, %v4357_v10 }
 0x639   : > { %v5305_v44 = vmul.f32 -1.442695, %v4493_v35  ;;  %v4374_v15 = vmul.f32 %v9599_v46, %v4373_v29  ;;  %v5307_v24 = vmul.f32 -1.442695, %v4494_v18  ;;  %v4312_v14 = vadd.f32 %v5960_v9, %v4311_v42 }
 0x63a   : > { %v4673_v3 = vsel %vm4642_vm9, %v4405_v33, %v9401_v12  ;;  %v4349_v54 = vmul.f32 %v5964_v56, %v4348_v62  ;;  %v4395_v63 = vand.u32 2147483647, %v9633_v6  ;;  %v4397_v1 = vand.u32 2147483648, %v9633_v6 }
 0x63b   : > { %5967 = vpow2.f32 %v5305_v44  ;;  %v4375_v19 = vadd.f32 %v9599_v46, %v4374_v15  ;;  %4685 = vst [vmem:[#allocation3] sm:$0xff] %v4673_v3  ;;  %v4316_v32 = vsel %vm4315_vm7, %v5960_v9, %v4312_v14  ;;  %v4422_v15 = vunpack.c.h.bf16 %v9667_v4 }
 0x63c   : > { %5969 = vpow2.f32 %v5307_v24  ;;  %v4350_v21 = vadd.f32 %v5964_v56, %v4349_v54  ;;  %v4321_v16 = vsel %vm4318_vm10, %v4320_v38, %v4316_v32  ;;  %vm4391_vm12 = vweird.f32 %v9633_v6  ;;  %vm4670_vm10 = vmpackc.low %vm4643_vm11, %vm4643_vm11 }
 0x63d   : > { %v4488_v59 = vpop.f32.mrf.mxu3  ;;  %5971 = vtanh.f32 %v4405_v33  ;;  %v4474_v35 = vpop.f32.mrf.mxu2  ;;  %v4404_v44 = vmul.f32 %v5962_v60, %v4321_v16  ;;  %vm9684_vm14 = vcmp.eq.f32.partialorder %v4395_v63, 8.507059e+37  ;;  %v4398_v31 = vor.u32 1.1754944e-38, %v4397_v1 }
 0x63e   : > { %v4496_v57 = vadd.f32 %v4488_v59, %v4426_v30  ;;  %5973 = vrcp.f32 %v9633_v6  ;;  %v4448_v12 = vpop.f32.mrf.mxu0  ;;  %v4379_v30 = vsel %vm9643_vm5, %v9599_v46, %v4375_v19  ;;  %v4354_v7 = vsel %vm4353_vm0, %v5964_v56, %v4350_v21  ;;  %v4462_v29 = vpop.f32.mrf.mxu1 }
 0x63f   : > { %v4497_v34 = vadd.f32 %v4448_v12, %v9597_v50  ;;  %v4359_v2 = vsel %vm4356_vm2, %v4358_v51, %v4354_v7  ;;  %v4384_v18 = vsel %vm4381_vm8, %v4383_v39, %v4379_v30  ;;  %v4495_v36 = vadd.f32 %v4474_v35, %v9593_v26 }
 0x640   : > { %v5309_v52 = vmul.f32 -1.442695, %v4496_v57  ;;  %v4402_v9 = vmul.f32 %v4359_v2, %v9497_v25  ;;  %v4498_v20 = vadd.f32 %v4462_v29, %v9603_v5  ;;  %v4421_v26 = vunpack.c.l.bf16 %v9667_v4 }
 0x641   : > { %v5968_v27 = vpop.eup %5967  ;;  %v5306_v53 = vmul.f32 -1.442695, %v4497_v34  ;;  %v4430_v54 = vadd.f32 %v4422_v15, %v10209_v28 }
 0x642   : > { %v9652_v55 = vadd.f32 1.0, %v5968_v27  ;;  %v5970_v47 = vpop.eup %5969  ;;  %v4406_v60 = vadd.f32 %v4404_v44, %v4402_v9  ;;  %v5308_v62 = vmul.f32 -1.442695, %v4498_v20 }
 0x643   : > { %v5972_v46 = vpop.eup %5971  ;;  %v9663_v22 = vadd.f32 1.0, %v5970_v47 }
 0x644   : > { %5975 = vrcp.f32 %v9652_v55  ;;  %v5974_v50 = vpop.eup %5973  ;;  %v4409_v56 = vmul.f32 %v5972_v46, %v4384_v18  ;;  %v4674_v43 = vsel %vm4643_vm11, %v4406_v60, %v9497_v25  ;;  %vm4514_vm15 = vweird.f32 %v9652_v55 }
 0x645   : > { %5977 = vpow2.f32 %v5309_v52  ;;  %v4387_v45 = vmul.f32 %v5974_v50, %v9633_v6  ;;  %4686 = vst [vmem:[#allocation3 + $0x8] sm:$0xff] %v4674_v43  ;;  %vm4392_vm3 = vweird.f32 %v5974_v50  ;;  %v4518_v33 = vand.u32 2147483647, %v9652_v55  ;;  %v4490_v14 = vpop.f32.mrf.mxu3 }
 0x646   : > { %5979 = vrcp.f32 %v9663_v22  ;;  %v4667_v10 = vpack.c.bf16 %v4409_v56, %v4409_v56  ;;  %v4644_v27 = vsel %vm4642_vm9, %v4409_v56, 0.0  ;;  %vm4393_vm1 = vmor %vm4391_vm12, %vm4392_vm3  ;;  %v4558_v39 = vand.u32 2147483648, %v9663_v22 }
 0x647   : > { %5981 = vtanh.f32 %v4406_v60  ;;  %v4388_v61 = vsub.f32 1.0, %v4387_v45  ;;  %vm4552_vm9 = vweird.f32 %v9663_v22  ;;  %vm9705_vm5 = vcmp.eq.f32.partialorder %v4518_v33, 8.507059e+37 }
 0x648   : > { %v4671_v58 = vsel %vm4669_vm6, %v4667_v10, %v9470_v23  ;;  %5983 = vtanh.f32 %v4495_v36  ;;  %v4520_v23 = vand.u32 2147483648, %v9652_v55  ;;  %v4556_v52 = vand.u32 2147483647, %v9663_v22 }
 0x649   : > { %4683 = vst [vmem:[#allocation2] sm:$0xf] %v4671_v58  ;;  %v4389_v24 = vmul.f32 %v5974_v50, %v4388_v61  ;;  %5985 = vpow2.f32 %v5306_v53  ;;  %v4500_v16 = vadd.f32 %v4490_v14, %v4430_v54  ;;  %v4559_v46 = vor.u32 1.1754944e-38, %v4558_v39 }
 0x64a   : > { %v5976_v49 = vpop.eup %5975  ;;  %5987 = vpow2.f32 %v5308_v62  ;;  %v4521_v34 = vor.u32 1.1754944e-38, %v4520_v23  ;;  %vm4557_vm2 = vcmp.eq.f32.partialorder %v4556_v52, 8.507059e+37  ;;  %v4429_v53 = vadd.f32 %v4421_v26, %v10131_v11 }
 0x64b   : > { %v4510_v59 = vmul.f32 %v5976_v49, %v9652_v55  ;;  %v5978_v25 = vpop.eup %5977  ;;  %v4390_v19 = vadd.f32 %v5974_v50, %v4389_v24  ;;  %vm4515_vm4 = vweird.f32 %v5976_v49  ;;  %v5310_v41 = vmul.f32 -1.442695, %v4500_v16 }
 0x64c   : > { %v5980_v42 = vpop.eup %5979  ;;  %v9692_v3 = vadd.f32 1.0, %v5978_v25  ;;  %vm4516_vm7 = vmor %vm4514_vm15, %vm4515_vm4 }
 0x64d   : > { %v4511_v57 = vsub.f32 1.0, %v4510_v59  ;;  %v4548_v48 = vmul.f32 %v5980_v42, %v9663_v22  ;;  %v5982_v12 = vpop.eup %5981  ;;  %v4394_v38 = vsel %vm4393_vm1, %v5974_v50, %v4390_v19  ;;  %vm4553_vm13 = vweird.f32 %v5980_v42  ;;  %v9734_v22 = vpop.permute.xlu0 %4654 }
 0x64e   : > { %5989 = vrcp.f32 %v9692_v3  ;;  %v5984_v30 = vpop.eup %5983  ;;  %v4399_v28 = vsel %vm9684_vm14, %v4398_v31, %v4394_v38  ;;  %vm4554_vm0 = vmor %vm4552_vm9, %vm4553_vm13  ;;  %v4596_v58 = vand.u32 2147483647, %v9692_v3  ;;  %v4598_v31 = vand.u32 2147483648, %v9692_v3 }
 0x64f   : > { %v4512_v21 = vmul.f32 %v5976_v49, %v4511_v57  ;;  %v4549_v8 = vsub.f32 1.0, %v4548_v48  ;;  %v5986_v51 = vpop.eup %5985  ;;  %v4410_v32 = vmul.f32 %v5982_v12, %v4399_v28  ;;  %vm4592_vm6 = vweird.f32 %v9692_v3 }
 0x650   : > { %v9712_v47 = vadd.f32 1.0, %v5986_v51  ;;  %v5988_v9 = vpop.eup %5987  ;;  %vm9750_vm14 = vcmp.eq.f32.partialorder %v4596_v58, 8.507059e+37 }
 0x651   : > { %v4513_v35 = vadd.f32 %v5976_v49, %v4512_v21  ;;  %v4550_v7 = vmul.f32 %v5980_v42, %v4549_v8  ;;  %v4645_v2 = vsel %vm4643_vm11, %v4410_v32, 0.0  ;;  %v4668_v44 = vpack.c.bf16 %v4410_v32, %v4410_v32 }
 0x652   : > { %v5458_v36 = vpack.c.bf16 %v4645_v2, %v4644_v27  ;;  %5991 = vrcp.f32 %v9712_v47  ;;  %v9726_v63 = vadd.f32 1.0, %v5988_v9  ;;  %vm4659_vm11 = vcmp.eq.s32.totalorder %v9734_v22, 1 }
 0x653   : > { %v4517_v18 = vsel %vm4516_vm7, %v5976_v49, %v4513_v35  ;;  %v4551_v29 = vadd.f32 %v5980_v42, %v4550_v7  ;;  %v4672_v56 = vsel %vm4670_vm10, %v4668_v44, %v9475_v37  ;;  %v4476_v37 = vpop.f32.mrf.mxu2  ;;  %v4535_v25 = vand.u32 2147483648, %v9712_v47  ;;  %vm4677_vm7 = vmpackc.low %vm4659_vm11, %vm4659_vm11  ;;  %v4658_v44 = vpop.permute.xlu1 %4657 }
 0x654   : > { %v4522_v55 = vsel %vm9705_vm5, %v4521_v34, %v4517_v18  ;;  %v5990_v50 = vpop.eup %5989  ;;  %5478 = vst [vmem:[%s6082_s15 + $0x38] sm:$0xff] %v5458_v36   ;;  %5993 = vrcp.f32 %v9726_v63  ;;  %v4499_v5 = vadd.f32 %v4476_v37, %v4429_v53  ;;  %v4533_v57 = vand.u32 2147483647, %v9712_v47 }
 0x655   : > { %v4555_v1 = vsel %vm4554_vm0, %v5980_v42, %v4551_v29  ;;  %v4619_v60 = vmul.f32 %v5984_v30, %v4522_v55  ;;  %v4588_v45 = vmul.f32 %v5990_v50, %v9692_v3  ;;  %4684 = vst [vmem:[#allocation2 + $0x4] sm:$0xf] %v4672_v56  ;;  %5995 = vpow2.f32 %v5310_v41 }
 0x656   : > { %v4560_v10 = vsel %vm4557_vm2, %v4559_v46, %v4555_v1  ;;  %vm4593_vm8 = vweird.f32 %v5990_v50  ;;  %v4599_v3 = vor.u32 1.1754944e-38, %v4598_v31  ;;  %vm4529_vm15 = vweird.f32 %v9712_v47 }
 0x657   : > { %v4617_v20 = vmul.f32 %v4560_v10, %v9504_v13  ;;  %v4589_v15 = vsub.f32 1.0, %v4588_v45  ;;  %vm9746_vm12 = vmor %vm4592_vm6, %vm4593_vm8  ;;  %v4573_v48 = vand.u32 2147483648, %v9726_v63  ;;  %v4536_v14 = vor.u32 1.1754944e-38, %v4535_v25 }
 0x658   : > { %v5992_v43 = vpop.eup %5991  ;;  %v4571_v12 = vand.u32 2147483647, %v9726_v63  ;;  %vm4534_vm9 = vcmp.eq.f32.partialorder %v4533_v57, 8.507059e+37  ;;  %vm4567_vm5 = vweird.f32 %v9726_v63  ;;  %vm4660_vm0 = vcmp.eq.s32.totalorder %v4658_v44, 1 }
 0x659   : > { %v4621_v61 = vadd.f32 %v4619_v60, %v4617_v20  ;;  %v4590_v49 = vmul.f32 %v5990_v50, %v4589_v15  ;;  %v4525_v11 = vmul.f32 %v5992_v43, %v9712_v47  ;;  %vm4530_vm3 = vweird.f32 %v5992_v43 }
 0x65a   : > { %v5994_v24 = vpop.eup %5993  ;;  %vm4531_vm4 = vmor %vm4529_vm15, %vm4530_vm3  ;;  %v4574_v52 = vor.u32 1.1754944e-38, %v4573_v48  ;;  %vm4572_vm10 = vcmp.eq.f32.partialorder %v4571_v12, 8.507059e+37 }
 0x65b   : > { %5997 = vtanh.f32 %v4621_v61  ;;  %v4681_v4 = vsel %vm4659_vm11, %v4621_v61, %v9504_v13  ;;  %v4591_v26 = vadd.f32 %v5990_v50, %v4590_v49  ;;  %v4526_v59 = vsub.f32 1.0, %v4525_v11  ;;  %v5996_v62 = vpop.eup %5995 }
 0x65c   : > { %4689 = vst [vmem:[#allocation5 + $0x8] sm:$0xff] %v4681_v4  ;;  %v4563_v13 = vmul.f32 %v5994_v24, %v9726_v63  ;;  %5999 = vtanh.f32 %v4499_v5  ;;  %v4586_v27 = vadd.f32 1.0, %v5996_v62  ;;  %vm4568_vm1 = vweird.f32 %v5994_v24 }
 0x65d   : > { %v4595_v42 = vsel %vm9746_vm12, %v5990_v50, %v4591_v26  ;;  %v4527_v19 = vmul.f32 %v5992_v43, %v4526_v59  ;;  %vm4569_vm13 = vmor %vm4567_vm5, %vm4568_vm1 }
 0x65e   : > { %v4564_v54 = vsub.f32 1.0, %v4563_v13  ;;  %v4600_v21 = vsel %vm9750_vm14, %v4599_v3, %v4595_v42  ;;  %6001 = vrcp.f32 %v4586_v27  ;;  %v4613_v29 = vand.u32 2147483648, %v4586_v27  ;;  %vm4678_vm14 = vmpackc.low %vm4660_vm0, %vm4660_vm0 }
 0x65f   : > { %v4528_v39 = vadd.f32 %v5992_v43, %v4527_v19  ;;  %v4611_v56 = vand.u32 2147483647, %v4586_v27  ;;  %vm4607_vm8 = vweird.f32 %v4586_v27 }
 0x660   : > { %v4565_v30 = vmul.f32 %v5994_v24, %v4564_v54  ;;  %v4614_v63 = vor.u32 1.1754944e-38, %v4613_v29 }
 0x661   : > { %v5998_v38 = vpop.eup %5997  ;;  %v4532_v8 = vsel %vm4531_vm4, %v5992_v43, %v4528_v39  ;;  %vm4612_vm12 = vcmp.eq.f32.partialorder %v4611_v56, 8.507059e+37 }
 0x662   : > { %v4625_v28 = vmul.f32 %v5998_v38, %v4600_v21  ;;  %v6000_v6 = vpop.eup %5999  ;;  %v4537_v51 = vsel %vm4534_vm9, %v4536_v14, %v4532_v8  ;;  %v4566_v32 = vadd.f32 %v5994_v24, %v4565_v30 }
 0x663   : > { %v4620_v7 = vmul.f32 %v6000_v6, %v4537_v51 }
 0x664   : > { %v4675_v35 = vpack.c.bf16 %v4625_v28, %v4625_v28  ;;  %v4570_v16 = vsel %vm4569_vm13, %v5994_v24, %v4566_v32  ;;  %v6002_v2 = vpop.eup %6001  ;;  %v4661_v53 = vsel %vm4659_vm11, %v4625_v28, 0.0 }
 0x665   : > { %v4575_v47 = vsel %vm4572_vm10, %v4574_v52, %v4570_v16  ;;  %v4603_v18 = vmul.f32 %v6002_v2, %v4586_v27  ;;  %vm4608_vm2 = vweird.f32 %v6002_v2 }
 0x666   : > { %v4679_v34 = vsel %vm4677_vm7, %v4675_v35, %v9532_v17  ;;  %v4618_v46 = vmul.f32 %v4575_v47, %v9521_v0  ;;  %vm4609_vm6 = vmor %vm4607_vm8, %vm4608_vm2 }
 0x667   : > { %4687 = vst [vmem:[#allocation4] sm:$0xf] %v4679_v34  ;;  %v4604_v36 = vsub.f32 1.0, %v4603_v18 }
 0x668   : > { %v4622_v9 = vadd.f32 %v4620_v7, %v4618_v46 }
 0x669   : > { %v4605_v50 = vmul.f32 %v6002_v2, %v4604_v36 }
 0x66a   : > { %6003 = vtanh.f32 %v4622_v9  ;;  %v4682_v55 = vsel %vm4660_vm0, %v4622_v9, %v9521_v0 }
 0x66b   : > { %4690 = vst [vmem:[#allocation5] sm:$0xff] %v4682_v55  ;;  %v4606_v17 = vadd.f32 %v6002_v2, %v4605_v50 }
 0x66d   : > { %v4610_v41 = vsel %vm4609_vm6, %v6002_v2, %v4606_v17 }
 0x66e   : > { %v4615_v60 = vsel %vm4612_vm12, %v4614_v63, %v4610_v41 }
 0x670   : > { %v6004_v1 = vpop.eup %6003 }
 0x671   : > { %v4626_v45 = vmul.f32 %v6004_v1, %v4615_v60 }
 0x673   : > { %v4662_v0 = vsel %vm4660_vm0, %v4626_v45, 0.0  ;;  %v4676_v10 = vpack.c.bf16 %v4626_v45, %v4626_v45 }
 0x674   : > { %v5463_v37 = vpack.c.bf16 %v4662_v0, %v4661_v53 }
 0x675   : > { %v4680_v20 = vsel %vm4678_vm14, %v4676_v10, %v9537_v40 }
 0x676   : > { %5464 = vst [vmem:[%s6087_s19] sm:$0xff] %v5463_v37  }
 0x677   : > { %4688 = vst [vmem:[#allocation4 + $0x4] sm:$0xf] %v4680_v20 }
 0x678 PF: > { %s17_s21 = sadd.s32 1, %s6013_s21  }
 0x679   : > { %p14_p6 = scmp.ge.s32.totalorder %s17_s21, 4  }
 0x67b   :  { %16 = sbr.rel (!%p14_p6) target bundleno = 1 (0x1), region = 118 }

</bundles_post_ra>
